<compile_context>
chip_gen: v6e
topology: v6e:2x2x1
jax: 0.10.0
libtpu: 0.0.40
codegen_flags: <defaults>
</compile_context>

<pallas_src>
import functools

import numpy as np

import jax
import jax.numpy as jnp
from jax.experimental import pallas as pl
from jax.experimental.pallas import tpu as pltpu

_EPS = 1e-6
_MIN_SQ = 1e-24


def _expmap0(u):
    """Poincare-ball (c=1) exponential map at the origin: tanh(||u||) u / ||u||."""
    sq = jnp.sum(u * u, axis=-1, keepdims=True)
    nrm = jnp.sqrt(jnp.maximum(sq, _MIN_SQ))
    return (jnp.tanh(nrm) / nrm) * u


def _hgnn_kernel(cnt_ref, emb_src_ref, emb_dst_ref, rel_ref, adj_ref, out_ref,
                 acc_y, coefx, deg, x_sc, b_sc):
    i = pl.program_id(0)
    j = pl.program_id(1)                      # dst-tile (reduction) axis
    nj = pl.num_programs(1)

    @pl.when(j == 0)
    def _init():
        acc_y[...] = jnp.zeros_like(acc_y)
        coefx[...] = jnp.zeros_like(coefx)
        deg[...] = jnp.zeros_like(deg)
        # expmap0 of the src tile depends only on i -> compute once, cache.
        x = _expmap0(emb_src_ref[...])        # (TS, D) 'node1' of the src tile
        x_sc[...] = x
        b_sc[...] = 1.0 - jnp.sum(x * x, axis=-1, keepdims=True)   # 1 - ||x||^2

    # Skip all compute for tiles with no edges (adjacency tile is all zero).
    @pl.when(cnt_ref[i * nj + j] > 0)
    def _compute():
        x = x_sc[...]                         # (TS, D)
        b = b_sc[...]                         # (TS, 1) == 2 / lambda_x
        xx = 1.0 - b                          # (TS, 1) ||x||^2
        x_bf = x.astype(jnp.bfloat16)
        ones_bf = jnp.ones(x.shape, jnp.bfloat16)   # hoisted out of relation loop

        e_dst = emb_dst_ref[...]              # (TD, D) Euclidean 'node' (dst tile)
        rel_all = rel_ref[...]                # (R, D)
        bits = adj_ref[...]                   # (TS, TD) int32 relation bitmask

        n_rel = rel_all.shape[0]
        for r in range(n_rel):                # small static (unrolled) loop
            rel_r = rel_all[r:r + 1, :]       # (1, D)
            y = _expmap0(e_dst + rel_r)       # (TD, D) = expmap0(node_dst + rel_r)
            y_bf = y.astype(jnp.bfloat16)

            # S[s,t] = <x_s, y_t>;  yyB[s,t] = ||y_t||^2 (row-broadcast done on
            # the MXU so no sublane->lane relayout is needed; bf16 operands).
            s_mat = jnp.einsum('sd,td->st', x_bf, y_bf,
                               preferred_element_type=jnp.float32)
            yy_b = jnp.einsum('sd,td->st', ones_bf, (y * y).astype(jnp.bfloat16),
                              preferred_element_type=jnp.float32)

            # mobius_add(x, y) = (A x + B y) / C with per-(s,t) scalars A, C
            # (B = 1 - ||x||^2 is per s).
            a_mat = 1.0 + 2.0 * s_mat + yy_b
            c_mat = 1.0 + 2.0 * s_mat + xx * yy_b          # > 0 always
            inv_c = 1.0 / c_mat   # exact: feeds artanh (amplified near boundary)

            # ||mobius_add(x,y)||^2 without materializing the (TS,TD,D) point.
            pn2 = (a_mat * a_mat * xx + 2.0 * a_mat * b * s_mat + b * b * yy_b) \
                * inv_c * inv_c
            pn = jnp.sqrt(jnp.clip(pn2, _MIN_SQ, (1.0 - _EPS) ** 2))
            # logmap0 scale = artanh(pn)/pn; artanh via log (EUP), recip on EUP.
            g = 0.5 * jnp.log((1.0 + pn) / (1.0 - pn)) * pl.reciprocal(pn, approx=True)

            adj_r = ((bits >> r) & 1).astype(jnp.float32)  # (TS, TD) 0/1 edge mask
            m = adj_r * g * inv_c                          # per-edge weight (f32)

            coefx[...] += jnp.sum(m * a_mat, axis=-1, keepdims=True)
            deg[...] += jnp.sum(adj_r, axis=-1, keepdims=True)
            acc_y[...] += jnp.einsum('st,td->sd', m.astype(jnp.bfloat16), y_bf,
                                     preferred_element_type=jnp.float32)

    @pl.when(j == nj - 1)
    def _finalize():
        # Deferred mean normalization. Zero-out-degree rows have an all-zero
        # numerator; max(deg,1) keeps the approx reciprocal finite -> exact 0.
        inv_deg = pl.reciprocal(jnp.maximum(deg[...], 1.0), approx=True)
        out = (coefx[...] * x_sc[...] + b_sc[...] * acc_y[...]) * inv_deg
        out_ref[...] = out.astype(out_ref.dtype)


def heterogeneous_gnn_forward(int_embed, slot_embed, relation_embed, adj_rel,
                              *, src_tile=128, dst_tile=128):
    """heterogeneousGNN.forward. adj_rel[r, src, dst] = 1 iff edge src->dst of type r."""
    embed = jnp.concatenate([slot_embed, int_embed], axis=0).astype(jnp.float32)
    n, d = embed.shape
    n_rel = relation_embed.shape[0]
    assert n % src_tile == 0 and n % dst_tile == 0 and d % 128 == 0
    assert n_rel <= 31, "relation bitmask packed into int32"

    gi, gj = n // src_tile, n // dst_tile

    adj_bool = adj_rel > 0
    # Pack the R adjacency planes into ONE int32 bitmask plane (bit r == type r).
    weights = (jnp.int32(1) << jnp.arange(n_rel, dtype=jnp.int32))[:, None, None]
    adj_bits = jnp.sum(adj_bool.astype(jnp.int32) * weights, axis=0)     # (N, N)

    # Per-(src-tile, dst-tile) edge counts: lets the kernel skip empty tiles.
    pair_cnt = jnp.sum(adj_bool.astype(jnp.int32), axis=0)               # (N, N)
    tile_cnt = pair_cnt.reshape(gi, src_tile, gj, dst_tile) \
                       .sum(axis=(1, 3)).reshape(-1).astype(jnp.int32)   # (gi*gj,)

    out = pl.pallas_call(
        _hgnn_kernel,
        out_shape=jax.ShapeDtypeStruct((n, d), jnp.float32),
        grid_spec=pltpu.PrefetchScalarGridSpec(
            num_scalar_prefetch=1,
            grid=(gi, gj),
            in_specs=[
                pl.BlockSpec((src_tile, d), lambda i, j, c: (i, 0)),   # embed, src rows
                pl.BlockSpec((dst_tile, d), lambda i, j, c: (j, 0)),   # embed, dst rows
                pl.BlockSpec((n_rel, d), lambda i, j, c: (0, 0)),      # relation embeds
                pl.BlockSpec((src_tile, dst_tile),
                             lambda i, j, c: (i, j)),                  # adjacency bitmask tile
            ],
            out_specs=pl.BlockSpec((src_tile, d), lambda i, j, c: (i, 0)),
            scratch_shapes=[
                pltpu.VMEM((src_tile, d), jnp.float32),   # acc_y
                pltpu.VMEM((src_tile, 1), jnp.float32),   # coefx
                pltpu.VMEM((src_tile, 1), jnp.float32),   # deg (out-degree)
                pltpu.VMEM((src_tile, d), jnp.float32),   # x_sc = expmap0(src tile)
                pltpu.VMEM((src_tile, 1), jnp.float32),   # b_sc = 1 - ||x||^2
            ],
        ),
        compiler_params=pltpu.CompilerParams(
            dimension_semantics=("parallel", "arbitrary"),
            vmem_limit_bytes=32 * 1024 * 1024,
        ),
    )(tile_cnt, embed, embed, relation_embed.astype(jnp.float32), adj_bits)

    n_slot = slot_embed.shape[0]
    return out[:n_slot], out[n_slot:]


# ----------------------- pure numpy (float64) reference -----------------------
_MIN_NORM = 1e-15


def _r_norm(u):
    return np.clip(np.linalg.norm(u, axis=-1, keepdims=True), _MIN_NORM, None)


def _r_expmap0(u):
    n = _r_norm(u)
    return np.tanh(n) * u / n


def _r_logmap0(p):
    n = _r_norm(p)
    return np.arctanh(np.clip(n, None, 1.0 - 1e-12)) * p / n


def _r_mobius_add(x, y):
    x2 = np.sum(x * x, -1, keepdims=True)
    y2 = np.sum(y * y, -1, keepdims=True)
    xy = np.sum(x * y, -1, keepdims=True)
    num = (1.0 + 2.0 * xy + y2) * x + (1.0 - x2) * y
    den = 1.0 + 2.0 * xy + x2 * y2
    return num / np.clip(den, _MIN_NORM, None)


def _r_expmap(u, p):
    lam = 2.0 / np.clip(1.0 - np.sum(p * p, -1, keepdims=True), _MIN_NORM, None)
    n = _r_norm(u)
    return _r_mobius_add(p, np.tanh(0.5 * lam * n) * u / n)


def _r_ptransp0(x, u):
    return u * (1.0 - np.sum(x * x, -1, keepdims=True))


def reference_forward(int_embed, slot_embed, relation_embed, adj_mask, etype):
    """Literal per-edge translation of the DGL forward (apply_edges + mean)."""
    slot = np.asarray(slot_embed, np.float64)
    intr = np.asarray(int_embed, np.float64)
    rel = np.asarray(relation_embed, np.float64)
    embed = np.concatenate([slot, intr], axis=0)
    node1 = _r_expmap0(embed)
    src, dst = np.nonzero(np.asarray(adj_mask))
    t = np.asarray(etype)[src, dst]
    u = embed[dst] + rel[t]
    tan = _r_logmap0(_r_expmap(_r_ptransp0(node1[src], u), node1[src]))
    n, d = embed.shape
    out = np.zeros((n, d))
    cnt = np.zeros((n,))
    np.add.at(out, src, tan)
    np.add.at(cnt, src, 1.0)
    out = np.where(cnt[:, None] > 0, out / np.maximum(cnt, 1.0)[:, None], 0.0)
    ns = slot.shape[0]
    return out[:ns], out[ns:]


if __name__ == "__main__":
    n_slot, n_int = 96, 160        # N = 256 nodes -> 2x2 grid of 128-wide tiles
    r_dim = 128                    # lane-dense feature dim
    n_rel = 4

    key = jax.random.PRNGKey(0)
    k_slot, k_int, k_rel, k_adj, k_typ = jax.random.split(key, 5)
    n = n_slot + n_int

    # Small scale keeps the points comfortably inside the Poincare ball.
    slot_embed = 0.05 * jax.random.normal(k_slot, (n_slot, r_dim), jnp.float32)
    int_embed = 0.05 * jax.random.normal(k_int, (n_int, r_dim), jnp.float32)
    relation_embed = 0.05 * jax.random.normal(k_rel, (n_rel, r_dim), jnp.float32)

    # Dense typed graph: adj_mask[src, dst] = edge src->dst, etype = its relation.
    adj_mask = jax.random.bernoulli(k_adj, 0.05, (n, n))
    etype = jax.random.randint(k_typ, (n, n), 0, n_rel)
    adj_rel = (adj_mask[None, :, :]
               & (etype[None, :, :] == jnp.arange(n_rel)[:, None, None]))
    adj_rel = adj_rel.astype(jnp.float32)                       # (R, N, N)

    fwd = jax.jit(functools.partial(heterogeneous_gnn_forward,
                                    src_tile=128, dst_tile=128))
    slot_out, int_out = fwd(int_embed, slot_embed, relation_embed, adj_rel)
    slot_out, int_out = jax.block_until_ready((slot_out, int_out))

    assert slot_out.shape == (n_slot, r_dim) and int_out.shape == (n_int, r_dim)
    assert bool(jnp.all(jnp.isfinite(slot_out)))
    assert bool(jnp.all(jnp.isfinite(int_out)))

    ref_slot, ref_int = reference_forward(
        np.asarray(int_embed), np.asarray(slot_embed), np.asarray(relation_embed),
        np.asarray(adj_mask), np.asarray(etype))
    np.testing.assert_allclose(np.asarray(slot_out), ref_slot, rtol=5e-2, atol=1e-2)
    np.testing.assert_allclose(np.asarray(int_out), ref_int, rtol=5e-2, atol=1e-2)

    print("KERNEL_OK")
</pallas_src>

<mosaic_0001>
module attributes {stable_mosaic.version = 11 : i64} {
  func.func @_hgnn_kernel(%arg0: i32, %arg1: i32, %arg2: memref<4xi32, #tpu.memory_space<smem>>, %arg3: memref<128x128xf32, #tpu.memory_space<vmem>>, %arg4: memref<128x128xf32, #tpu.memory_space<vmem>>, %arg5: memref<4x128xf32, #tpu.memory_space<vmem>>, %arg6: memref<128x128xi32, #tpu.memory_space<vmem>>, %arg7: memref<128x128xf32, #tpu.memory_space<vmem>>, %arg8: memref<128x128xf32, #tpu.memory_space<vmem>>, %arg9: memref<128x1xf32, #tpu.memory_space<vmem>>, %arg10: memref<128x1xf32, #tpu.memory_space<vmem>>, %arg11: memref<128x128xf32, #tpu.memory_space<vmem>>, %arg12: memref<128x1xf32, #tpu.memory_space<vmem>>) attributes {dimension_semantics = [#tpu.dimension_semantics<parallel>, #tpu.dimension_semantics<arbitrary>], iteration_bounds = array<i64: 2, 2>, scalar_prefetch = 1 : i64, scratch_operands = 5 : i64, tpu.core_type = #tpu.core_type<tc>, window_params = [{transform_indices = @transform_0, window_bounds = array<i64: 128, 128>}, {transform_indices = @transform_1, window_bounds = array<i64: 128, 128>}, {pipeline_mode = #tpu.pipeline_mode<synchronous>, transform_indices = @transform_2, window_bounds = array<i64: 4, 128>}, {transform_indices = @transform_3, window_bounds = array<i64: 128, 128>}, {transform_indices = @transform_4, window_bounds = array<i64: 128, 128>}]} {
    %c0_i32 = arith.constant 0 : i32
    %0 = arith.cmpi eq, %arg1, %c0_i32 : i32
    %1 = arith.extui %0 : i1 to i32
    %c0_i32_0 = arith.constant 0 : i32
    %2 = arith.cmpi ne, %1, %c0_i32_0 : i32
    scf.if %2 {
      %cst = arith.constant 0.000000e+00 : f32
      %13 = vector.broadcast %cst : f32 to vector<128x128xf32>
      %c0 = arith.constant 0 : index
      %c0_4 = arith.constant 0 : index
      %14 = vector.load %arg8[%c0, %c0_4] : memref<128x128xf32, #tpu.memory_space<vmem>>, vector<128x128xf32>
      tpu.vector_store %arg8[%c0, %c0_4], %13 {strides = array<i32>} : memref<128x128xf32, #tpu.memory_space<vmem>>, vector<128x128xf32>,
      %cst_5 = arith.constant 0.000000e+00 : f32
      %15 = vector.broadcast %cst_5 : f32 to vector<128x1xf32>
      %c0_6 = arith.constant 0 : index
      %c0_7 = arith.constant 0 : index
      %16 = vector.load %arg9[%c0_6, %c0_7] : memref<128x1xf32, #tpu.memory_space<vmem>>, vector<128x1xf32>
      tpu.vector_store %arg9[%c0_6, %c0_7], %15 {strides = array<i32>} : memref<128x1xf32, #tpu.memory_space<vmem>>, vector<128x1xf32>,
      %cst_8 = arith.constant 0.000000e+00 : f32
      %17 = vector.broadcast %cst_8 : f32 to vector<128x1xf32>
      %c0_9 = arith.constant 0 : index
      %c0_10 = arith.constant 0 : index
      %18 = vector.load %arg10[%c0_9, %c0_10] : memref<128x1xf32, #tpu.memory_space<vmem>>, vector<128x1xf32>
      tpu.vector_store %arg10[%c0_9, %c0_10], %17 {strides = array<i32>} : memref<128x1xf32, #tpu.memory_space<vmem>>, vector<128x1xf32>,
      %c0_11 = arith.constant 0 : index
      %c0_12 = arith.constant 0 : index
      %19 = vector.load %arg3[%c0_11, %c0_12] : memref<128x128xf32, #tpu.memory_space<vmem>>, vector<128x128xf32>
      %20 = arith.mulf %19, %19 : vector<128x128xf32>
      %cst_13 = arith.constant dense<0.000000e+00> : vector<128xf32>
      %21 = vector.multi_reduction <add>, %20, %cst_13 [1] : vector<128x128xf32> to vector<128xf32>
      %22 = vector.shape_cast %21 : vector<128xf32> to vector<128x1xf32>
      %cst_14 = arith.constant 1.000000e-24 : f32
      %23 = vector.broadcast %cst_14 : f32 to vector<128x1xf32>
      %24 = arith.maximumf %22, %23 : vector<128x1xf32>
      %25 = math.sqrt %24 : vector<128x1xf32>
      %26 = math.tanh %25 : vector<128x1xf32>
      %27 = arith.divf %26, %25 : vector<128x1xf32>
      %28 = vector.broadcast %27 : vector<128x1xf32> to vector<128x128xf32>
      %29 = arith.mulf %28, %19 : vector<128x128xf32>
      %c0_15 = arith.constant 0 : index
      %c0_16 = arith.constant 0 : index
      %30 = vector.load %arg11[%c0_15, %c0_16] : memref<128x128xf32, #tpu.memory_space<vmem>>, vector<128x128xf32>
      tpu.vector_store %arg11[%c0_15, %c0_16], %29 {strides = array<i32>} : memref<128x128xf32, #tpu.memory_space<vmem>>, vector<128x128xf32>,
      %31 = arith.mulf %29, %29 : vector<128x128xf32>
      %cst_17 = arith.constant dense<0.000000e+00> : vector<128xf32>
      %32 = vector.multi_reduction <add>, %31, %cst_17 [1] : vector<128x128xf32> to vector<128xf32>
      %33 = vector.shape_cast %32 : vector<128xf32> to vector<128x1xf32>
      %cst_18 = arith.constant 1.000000e+00 : f32
      %34 = vector.broadcast %cst_18 : f32 to vector<128x1xf32>
      %35 = arith.subf %34, %33 : vector<128x1xf32>
      %c0_19 = arith.constant 0 : index
      %c0_20 = arith.constant 0 : index
      %36 = vector.load %arg12[%c0_19, %c0_20] : memref<128x1xf32, #tpu.memory_space<vmem>>, vector<128x1xf32>
      tpu.vector_store %arg12[%c0_19, %c0_20], %35 {strides = array<i32>} : memref<128x1xf32, #tpu.memory_space<vmem>>, vector<128x1xf32>,
    } else {
    }
    %c2_i32 = arith.constant 2 : i32
    %3 = arith.muli %arg0, %c2_i32 : i32
    %4 = arith.addi %3, %arg1 : i32
    %5 = arith.index_cast %4 : i32 to index
    %6 = memref.load %arg2[%5] : memref<4xi32, #tpu.memory_space<smem>>
    %c0_i32_1 = arith.constant 0 : i32
    %7 = arith.cmpi sgt, %6, %c0_i32_1 : i32
    %8 = arith.extui %7 : i1 to i32
    %c0_i32_2 = arith.constant 0 : i32
    %9 = arith.cmpi ne, %8, %c0_i32_2 : i32
    scf.if %9 {
      %c0 = arith.constant 0 : index
      %c0_4 = arith.constant 0 : index
      %13 = vector.load %arg11[%c0, %c0_4] : memref<128x128xf32, #tpu.memory_space<vmem>>, vector<128x128xf32>
      %c0_5 = arith.constant 0 : index
      %c0_6 = arith.constant 0 : index
      %14 = vector.load %arg12[%c0_5, %c0_6] : memref<128x1xf32, #tpu.memory_space<vmem>>, vector<128x1xf32>
      %cst = arith.constant 1.000000e+00 : f32
      %15 = vector.broadcast %cst : f32 to vector<128x1xf32>
      %16 = arith.subf %15, %14 : vector<128x1xf32>
      %17 = arith.truncf %13 : vector<128x128xf32> to vector<128x128xbf16>
      %cst_7 = arith.constant 1.000000e+00 : bf16
      %18 = vector.broadcast %cst_7 : bf16 to vector<128x128xbf16>
      %c0_8 = arith.constant 0 : index
      %c0_9 = arith.constant 0 : index
      %19 = vector.load %arg4[%c0_8, %c0_9] : memref<128x128xf32, #tpu.memory_space<vmem>>, vector<128x128xf32>
      %c0_10 = arith.constant 0 : index
      %c0_11 = arith.constant 0 : index
      %20 = vector.load %arg5[%c0_10, %c0_11] : memref<4x128xf32, #tpu.memory_space<vmem>>, vector<4x128xf32>
      %c0_12 = arith.constant 0 : index
      %c0_13 = arith.constant 0 : index
      %21 = vector.load %arg6[%c0_12, %c0_13] : memref<128x128xi32, #tpu.memory_space<vmem>>, vector<128x128xi32>
      %22 = vector.extract_strided_slice %20 {offsets = [0, 0], sizes = [1, 128], strides = [1, 1]} : vector<4x128xf32> to vector<1x128xf32>
      %23 = vector.broadcast %22 : vector<1x128xf32> to vector<128x128xf32>
      %24 = arith.addf %19, %23 : vector<128x128xf32>
      %25 = arith.mulf %24, %24 : vector<128x128xf32>
      %cst_14 = arith.constant dense<0.000000e+00> : vector<128xf32>
      %26 = vector.multi_reduction <add>, %25, %cst_14 [1] : vector<128x128xf32> to vector<128xf32>
      %27 = vector.shape_cast %26 : vector<128xf32> to vector<128x1xf32>
      %cst_15 = arith.constant 1.000000e-24 : f32
      %28 = vector.broadcast %cst_15 : f32 to vector<128x1xf32>
      %29 = arith.maximumf %27, %28 : vector<128x1xf32>
      %30 = math.sqrt %29 : vector<128x1xf32>
      %31 = math.tanh %30 : vector<128x1xf32>
      %32 = arith.divf %31, %30 : vector<128x1xf32>
      %33 = vector.broadcast %32 : vector<128x1xf32> to vector<128x128xf32>
      %34 = arith.mulf %33, %24 : vector<128x128xf32>
      %35 = arith.truncf %34 : vector<128x128xf32> to vector<128x128xbf16>
      "tpu.trace_start"() <{level = 10 : i32, message = "sd,td->st"}> : () -> ()
      %cst_16 = arith.constant dense<0.000000e+00> : vector<128x128xf32>
      %36 = tpu.matmul %17, %35, %cst_16 {dimension_numbers = #tpu.dot_dimension_numbers<[1], [1], [0], [0], [0, 0, 1, 0], [], []>} : vector<128x128xbf16>, vector<128x128xbf16>, vector<128x128xf32> -> vector<128x128xf32>
      "tpu.trace_stop"() : () -> ()
      %37 = arith.mulf %34, %34 : vector<128x128xf32>
      %38 = arith.truncf %37 : vector<128x128xf32> to vector<128x128xbf16>
      "tpu.trace_start"() <{level = 10 : i32, message = "sd,td->st"}> : () -> ()
      %cst_17 = arith.constant dense<0.000000e+00> : vector<128x128xf32>
      %39 = tpu.matmul %18, %38, %cst_17 {dimension_numbers = #tpu.dot_dimension_numbers<[1], [1], [0], [0], [0, 0, 1, 0], [], []>} : vector<128x128xbf16>, vector<128x128xbf16>, vector<128x128xf32> -> vector<128x128xf32>
      "tpu.trace_stop"() : () -> ()
      %cst_18 = arith.constant 2.000000e+00 : f32
      %40 = vector.broadcast %cst_18 : f32 to vector<128x128xf32>
      %41 = arith.mulf %40, %36 : vector<128x128xf32>
      %cst_19 = arith.constant 1.000000e+00 : f32
      %42 = vector.broadcast %cst_19 : f32 to vector<128x128xf32>
      %43 = arith.addf %42, %41 : vector<128x128xf32>
      %44 = arith.addf %43, %39 : vector<128x128xf32>
      %cst_20 = arith.constant 2.000000e+00 : f32
      %45 = vector.broadcast %cst_20 : f32 to vector<128x128xf32>
      %46 = arith.mulf %45, %36 : vector<128x128xf32>
      %cst_21 = arith.constant 1.000000e+00 : f32
      %47 = vector.broadcast %cst_21 : f32 to vector<128x128xf32>
      %48 = arith.addf %47, %46 : vector<128x128xf32>
      %49 = vector.broadcast %16 : vector<128x1xf32> to vector<128x128xf32>
      %50 = arith.mulf %49, %39 : vector<128x128xf32>
      %51 = arith.addf %48, %50 : vector<128x128xf32>
      %cst_22 = arith.constant 1.000000e+00 : f32
      %52 = vector.broadcast %cst_22 : f32 to vector<128x128xf32>
      %53 = arith.divf %52, %51 : vector<128x128xf32>
      %54 = arith.mulf %44, %44 : vector<128x128xf32>
      %55 = vector.broadcast %16 : vector<128x1xf32> to vector<128x128xf32>
      %56 = arith.mulf %54, %55 : vector<128x128xf32>
      %cst_23 = arith.constant 2.000000e+00 : f32
      %57 = vector.broadcast %cst_23 : f32 to vector<128x128xf32>
      %58 = arith.mulf %57, %44 : vector<128x128xf32>
      %59 = vector.broadcast %14 : vector<128x1xf32> to vector<128x128xf32>
      %60 = arith.mulf %58, %59 : vector<128x128xf32>
      %61 = arith.mulf %60, %36 : vector<128x128xf32>
      %62 = arith.addf %56, %61 : vector<128x128xf32>
      %63 = arith.mulf %14, %14 : vector<128x1xf32>
      %64 = vector.broadcast %63 : vector<128x1xf32> to vector<128x128xf32>
      %65 = arith.mulf %64, %39 : vector<128x128xf32>
      %66 = arith.addf %62, %65 : vector<128x128xf32>
      %67 = arith.mulf %66, %53 : vector<128x128xf32>
      %68 = arith.mulf %67, %53 : vector<128x128xf32>
      %cst_24 = arith.constant 1.000000e-24 : f32
      %cst_25 = arith.constant 0.999997973 : f32
      %69 = vector.broadcast %cst_24 : f32 to vector<128x128xf32>
      %70 = arith.maximumf %69, %68 : vector<128x128xf32>
      %71 = vector.broadcast %cst_25 : f32 to vector<128x128xf32>
      %72 = arith.minimumf %71, %70 : vector<128x128xf32>
      %73 = math.sqrt %72 : vector<128x128xf32>
      %cst_26 = arith.constant 1.000000e+00 : f32
      %74 = vector.broadcast %cst_26 : f32 to vector<128x128xf32>
      %75 = arith.addf %74, %73 : vector<128x128xf32>
      %cst_27 = arith.constant 1.000000e+00 : f32
      %76 = vector.broadcast %cst_27 : f32 to vector<128x128xf32>
      %77 = arith.subf %76, %73 : vector<128x128xf32>
      %78 = arith.divf %75, %77 : vector<128x128xf32>
      %79 = math.log %78 : vector<128x128xf32>
      %cst_28 = arith.constant 5.000000e-01 : f32
      %80 = vector.broadcast %cst_28 : f32 to vector<128x128xf32>
      %81 = arith.mulf %80, %79 : vector<128x128xf32>
      %82 = tpu.reciprocal %73 {approx = true} : vector<128x128xf32> -> vector<128x128xf32>
      %83 = arith.mulf %81, %82 : vector<128x128xf32>
      %c0_i32_29 = arith.constant 0 : i32
      %84 = vector.broadcast %c0_i32_29 : i32 to vector<128x128xi32>
      %85 = arith.shrsi %21, %84 : vector<128x128xi32>
      %c1_i32_30 = arith.constant 1 : i32
      %86 = vector.broadcast %c1_i32_30 : i32 to vector<128x128xi32>
      %87 = arith.andi %85, %86 : vector<128x128xi32>
      %88 = arith.sitofp %87 : vector<128x128xi32> to vector<128x128xf32>
      %89 = arith.mulf %88, %83 : vector<128x128xf32>
      %90 = arith.mulf %89, %53 : vector<128x128xf32>
      %c0_31 = arith.constant 0 : index
      %c0_32 = arith.constant 0 : index
      %91 = vector.load %arg9[%c0_31, %c0_32] : memref<128x1xf32, #tpu.memory_space<vmem>>, vector<128x1xf32>
      %92 = arith.mulf %90, %44 : vector<128x128xf32>
      %cst_33 = arith.constant dense<0.000000e+00> : vector<128xf32>
      %93 = vector.multi_reduction <add>, %92, %cst_33 [1] : vector<128x128xf32> to vector<128xf32>
      %94 = vector.shape_cast %93 : vector<128xf32> to vector<128x1xf32>
      %95 = arith.addf %91, %94 : vector<128x1xf32>
      %c0_34 = arith.constant 0 : index
      %c0_35 = arith.constant 0 : index
      %96 = vector.load %arg9[%c0_34, %c0_35] : memref<128x1xf32, #tpu.memory_space<vmem>>, vector<128x1xf32>
      tpu.vector_store %arg9[%c0_34, %c0_35], %95 {strides = array<i32>} : memref<128x1xf32, #tpu.memory_space<vmem>>, vector<128x1xf32>,
      %c0_36 = arith.constant 0 : index
      %c0_37 = arith.constant 0 : index
      %97 = vector.load %arg10[%c0_36, %c0_37] : memref<128x1xf32, #tpu.memory_space<vmem>>, vector<128x1xf32>
      %cst_38 = arith.constant dense<0.000000e+00> : vector<128xf32>
      %98 = vector.multi_reduction <add>, %88, %cst_38 [1] : vector<128x128xf32> to vector<128xf32>
      %99 = vector.shape_cast %98 : vector<128xf32> to vector<128x1xf32>
      %100 = arith.addf %97, %99 : vector<128x1xf32>
      %c0_39 = arith.constant 0 : index
      %c0_40 = arith.constant 0 : index
      %101 = vector.load %arg10[%c0_39, %c0_40] : memref<128x1xf32, #tpu.memory_space<vmem>>, vector<128x1xf32>
      tpu.vector_store %arg10[%c0_39, %c0_40], %100 {strides = array<i32>} : memref<128x1xf32, #tpu.memory_space<vmem>>, vector<128x1xf32>,
      %c0_41 = arith.constant 0 : index
      %c0_42 = arith.constant 0 : index
      %102 = vector.load %arg8[%c0_41, %c0_42] : memref<128x128xf32, #tpu.memory_space<vmem>>, vector<128x128xf32>
      %103 = arith.truncf %90 : vector<128x128xf32> to vector<128x128xbf16>
      "tpu.trace_start"() <{level = 10 : i32, message = "st,td->sd"}> : () -> ()
      %cst_43 = arith.constant dense<0.000000e+00> : vector<128x128xf32>
      %104 = tpu.matmul %103, %35, %cst_43 {dimension_numbers = #tpu.dot_dimension_numbers<[1], [0], [0], [1], [0, 0, 1, 1], [], []>} : vector<128x128xbf16>, vector<128x128xbf16>, vector<128x128xf32> -> vector<128x128xf32>
      "tpu.trace_stop"() : () -> ()
      %105 = arith.addf %102, %104 : vector<128x128xf32>
      %c0_44 = arith.constant 0 : index
      %c0_45 = arith.constant 0 : index
      %106 = vector.load %arg8[%c0_44, %c0_45] : memref<128x128xf32, #tpu.memory_space<vmem>>, vector<128x128xf32>
      tpu.vector_store %arg8[%c0_44, %c0_45], %105 {strides = array<i32>} : memref<128x128xf32, #tpu.memory_space<vmem>>, vector<128x128xf32>,
      %107 = vector.extract_strided_slice %20 {offsets = [1, 0], sizes = [1, 128], strides = [1, 1]} : vector<4x128xf32> to vector<1x128xf32>
      %108 = vector.broadcast %107 : vector<1x128xf32> to vector<128x128xf32>
      %109 = arith.addf %19, %108 : vector<128x128xf32>
      %110 = arith.mulf %109, %109 : vector<128x128xf32>
      %cst_46 = arith.constant dense<0.000000e+00> : vector<128xf32>
      %111 = vector.multi_reduction <add>, %110, %cst_46 [1] : vector<128x128xf32> to vector<128xf32>
      %112 = vector.shape_cast %111 : vector<128xf32> to vector<128x1xf32>
      %cst_47 = arith.constant 1.000000e-24 : f32
      %113 = vector.broadcast %cst_47 : f32 to vector<128x1xf32>
      %114 = arith.maximumf %112, %113 : vector<128x1xf32>
      %115 = math.sqrt %114 : vector<128x1xf32>
      %116 = math.tanh %115 : vector<128x1xf32>
      %117 = arith.divf %116, %115 : vector<128x1xf32>
      %118 = vector.broadcast %117 : vector<128x1xf32> to vector<128x128xf32>
      %119 = arith.mulf %118, %109 : vector<128x128xf32>
      %120 = arith.truncf %119 : vector<128x128xf32> to vector<128x128xbf16>
      "tpu.trace_start"() <{level = 10 : i32, message = "sd,td->st"}> : () -> ()
      %cst_48 = arith.constant dense<0.000000e+00> : vector<128x128xf32>
      %121 = tpu.matmul %17, %120, %cst_48 {dimension_numbers = #tpu.dot_dimension_numbers<[1], [1], [0], [0], [0, 0, 1, 0], [], []>} : vector<128x128xbf16>, vector<128x128xbf16>, vector<128x128xf32> -> vector<128x128xf32>
      "tpu.trace_stop"() : () -> ()
      %122 = arith.mulf %119, %119 : vector<128x128xf32>
      %123 = arith.truncf %122 : vector<128x128xf32> to vector<128x128xbf16>
      "tpu.trace_start"() <{level = 10 : i32, message = "sd,td->st"}> : () -> ()
      %cst_49 = arith.constant dense<0.000000e+00> : vector<128x128xf32>
      %124 = tpu.matmul %18, %123, %cst_49 {dimension_numbers = #tpu.dot_dimension_numbers<[1], [1], [0], [0], [0, 0, 1, 0], [], []>} : vector<128x128xbf16>, vector<128x128xbf16>, vector<128x128xf32> -> vector<128x128xf32>
      "tpu.trace_stop"() : () -> ()
      %cst_50 = arith.constant 2.000000e+00 : f32
      %125 = vector.broadcast %cst_50 : f32 to vector<128x128xf32>
      %126 = arith.mulf %125, %121 : vector<128x128xf32>
      %cst_51 = arith.constant 1.000000e+00 : f32
      %127 = vector.broadcast %cst_51 : f32 to vector<128x128xf32>
      %128 = arith.addf %127, %126 : vector<128x128xf32>
      %129 = arith.addf %128, %124 : vector<128x128xf32>
      %cst_52 = arith.constant 2.000000e+00 : f32
      %130 = vector.broadcast %cst_52 : f32 to vector<128x128xf32>
      %131 = arith.mulf %130, %121 : vector<128x128xf32>
      %cst_53 = arith.constant 1.000000e+00 : f32
      %132 = vector.broadcast %cst_53 : f32 to vector<128x128xf32>
      %133 = arith.addf %132, %131 : vector<128x128xf32>
      %134 = vector.broadcast %16 : vector<128x1xf32> to vector<128x128xf32>
      %135 = arith.mulf %134, %124 : vector<128x128xf32>
      %136 = arith.addf %133, %135 : vector<128x128xf32>
      %cst_54 = arith.constant 1.000000e+00 : f32
      %137 = vector.broadcast %cst_54 : f32 to vector<128x128xf32>
      %138 = arith.divf %137, %136 : vector<128x128xf32>
      %139 = arith.mulf %129, %129 : vector<128x128xf32>
      %140 = vector.broadcast %16 : vector<128x1xf32> to vector<128x128xf32>
      %141 = arith.mulf %139, %140 : vector<128x128xf32>
      %cst_55 = arith.constant 2.000000e+00 : f32
      %142 = vector.broadcast %cst_55 : f32 to vector<128x128xf32>
      %143 = arith.mulf %142, %129 : vector<128x128xf32>
      %144 = vector.broadcast %14 : vector<128x1xf32> to vector<128x128xf32>
      %145 = arith.mulf %143, %144 : vector<128x128xf32>
      %146 = arith.mulf %145, %121 : vector<128x128xf32>
      %147 = arith.addf %141, %146 : vector<128x128xf32>
      %148 = arith.mulf %14, %14 : vector<128x1xf32>
      %149 = vector.broadcast %148 : vector<128x1xf32> to vector<128x128xf32>
      %150 = arith.mulf %149, %124 : vector<128x128xf32>
      %151 = arith.addf %147, %150 : vector<128x128xf32>
      %152 = arith.mulf %151, %138 : vector<128x128xf32>
      %153 = arith.mulf %152, %138 : vector<128x128xf32>
      %cst_56 = arith.constant 1.000000e-24 : f32
      %cst_57 = arith.constant 0.999997973 : f32
      %154 = vector.broadcast %cst_56 : f32 to vector<128x128xf32>
      %155 = arith.maximumf %154, %153 : vector<128x128xf32>
      %156 = vector.broadcast %cst_57 : f32 to vector<128x128xf32>
      %157 = arith.minimumf %156, %155 : vector<128x128xf32>
      %158 = math.sqrt %157 : vector<128x128xf32>
      %cst_58 = arith.constant 1.000000e+00 : f32
      %159 = vector.broadcast %cst_58 : f32 to vector<128x128xf32>
      %160 = arith.addf %159, %158 : vector<128x128xf32>
      %cst_59 = arith.constant 1.000000e+00 : f32
      %161 = vector.broadcast %cst_59 : f32 to vector<128x128xf32>
      %162 = arith.subf %161, %158 : vector<128x128xf32>
      %163 = arith.divf %160, %162 : vector<128x128xf32>
      %164 = math.log %163 : vector<128x128xf32>
      %cst_60 = arith.constant 5.000000e-01 : f32
      %165 = vector.broadcast %cst_60 : f32 to vector<128x128xf32>
      %166 = arith.mulf %165, %164 : vector<128x128xf32>
      %167 = tpu.reciprocal %158 {approx = true} : vector<128x128xf32> -> vector<128x128xf32>
      %168 = arith.mulf %166, %167 : vector<128x128xf32>
      %c1_i32_61 = arith.constant 1 : i32
      %169 = vector.broadcast %c1_i32_61 : i32 to vector<128x128xi32>
      %170 = arith.shrsi %21, %169 : vector<128x128xi32>
      %c1_i32_62 = arith.constant 1 : i32
      %171 = vector.broadcast %c1_i32_62 : i32 to vector<128x128xi32>
      %172 = arith.andi %170, %171 : vector<128x128xi32>
      %173 = arith.sitofp %172 : vector<128x128xi32> to vector<128x128xf32>
      %174 = arith.mulf %173, %168 : vector<128x128xf32>
      %175 = arith.mulf %174, %138 : vector<128x128xf32>
      %c0_63 = arith.constant 0 : index
      %c0_64 = arith.constant 0 : index
      %176 = vector.load %arg9[%c0_63, %c0_64] : memref<128x1xf32, #tpu.memory_space<vmem>>, vector<128x1xf32>
      %177 = arith.mulf %175, %129 : vector<128x128xf32>
      %cst_65 = arith.constant dense<0.000000e+00> : vector<128xf32>
      %178 = vector.multi_reduction <add>, %177, %cst_65 [1] : vector<128x128xf32> to vector<128xf32>
      %179 = vector.shape_cast %178 : vector<128xf32> to vector<128x1xf32>
      %180 = arith.addf %176, %179 : vector<128x1xf32>
      %c0_66 = arith.constant 0 : index
      %c0_67 = arith.constant 0 : index
      %181 = vector.load %arg9[%c0_66, %c0_67] : memref<128x1xf32, #tpu.memory_space<vmem>>, vector<128x1xf32>
      tpu.vector_store %arg9[%c0_66, %c0_67], %180 {strides = array<i32>} : memref<128x1xf32, #tpu.memory_space<vmem>>, vector<128x1xf32>,
      %c0_68 = arith.constant 0 : index
      %c0_69 = arith.constant 0 : index
      %182 = vector.load %arg10[%c0_68, %c0_69] : memref<128x1xf32, #tpu.memory_space<vmem>>, vector<128x1xf32>
      %cst_70 = arith.constant dense<0.000000e+00> : vector<128xf32>
      %183 = vector.multi_reduction <add>, %173, %cst_70 [1] : vector<128x128xf32> to vector<128xf32>
      %184 = vector.shape_cast %183 : vector<128xf32> to vector<128x1xf32>
      %185 = arith.addf %182, %184 : vector<128x1xf32>
      %c0_71 = arith.constant 0 : index
      %c0_72 = arith.constant 0 : index
      %186 = vector.load %arg10[%c0_71, %c0_72] : memref<128x1xf32, #tpu.memory_space<vmem>>, vector<128x1xf32>
      tpu.vector_store %arg10[%c0_71, %c0_72], %185 {strides = array<i32>} : memref<128x1xf32, #tpu.memory_space<vmem>>, vector<128x1xf32>,
      %c0_73 = arith.constant 0 : index
      %c0_74 = arith.constant 0 : index
      %187 = vector.load %arg8[%c0_73, %c0_74] : memref<128x128xf32, #tpu.memory_space<vmem>>, vector<128x128xf32>
      %188 = arith.truncf %175 : vector<128x128xf32> to vector<128x128xbf16>
      "tpu.trace_start"() <{level = 10 : i32, message = "st,td->sd"}> : () -> ()
      %cst_75 = arith.constant dense<0.000000e+00> : vector<128x128xf32>
      %189 = tpu.matmul %188, %120, %cst_75 {dimension_numbers = #tpu.dot_dimension_numbers<[1], [0], [0], [1], [0, 0, 1, 1], [], []>} : vector<128x128xbf16>, vector<128x128xbf16>, vector<128x128xf32> -> vector<128x128xf32>
      "tpu.trace_stop"() : () -> ()
      %190 = arith.addf %187, %189 : vector<128x128xf32>
      %c0_76 = arith.constant 0 : index
      %c0_77 = arith.constant 0 : index
      %191 = vector.load %arg8[%c0_76, %c0_77] : memref<128x128xf32, #tpu.memory_space<vmem>>, vector<128x128xf32>
      tpu.vector_store %arg8[%c0_76, %c0_77], %190 {strides = array<i32>} : memref<128x128xf32, #tpu.memory_space<vmem>>, vector<128x128xf32>,
      %192 = vector.extract_strided_slice %20 {offsets = [2, 0], sizes = [1, 128], strides = [1, 1]} : vector<4x128xf32> to vector<1x128xf32>
      %193 = vector.broadcast %192 : vector<1x128xf32> to vector<128x128xf32>
      %194 = arith.addf %19, %193 : vector<128x128xf32>
      %195 = arith.mulf %194, %194 : vector<128x128xf32>
      %cst_78 = arith.constant dense<0.000000e+00> : vector<128xf32>
      %196 = vector.multi_reduction <add>, %195, %cst_78 [1] : vector<128x128xf32> to vector<128xf32>
      %197 = vector.shape_cast %196 : vector<128xf32> to vector<128x1xf32>
      %cst_79 = arith.constant 1.000000e-24 : f32
      %198 = vector.broadcast %cst_79 : f32 to vector<128x1xf32>
      %199 = arith.maximumf %197, %198 : vector<128x1xf32>
      %200 = math.sqrt %199 : vector<128x1xf32>
      %201 = math.tanh %200 : vector<128x1xf32>
      %202 = arith.divf %201, %200 : vector<128x1xf32>
      %203 = vector.broadcast %202 : vector<128x1xf32> to vector<128x128xf32>
      %204 = arith.mulf %203, %194 : vector<128x128xf32>
      %205 = arith.truncf %204 : vector<128x128xf32> to vector<128x128xbf16>
      "tpu.trace_start"() <{level = 10 : i32, message = "sd,td->st"}> : () -> ()
      %cst_80 = arith.constant dense<0.000000e+00> : vector<128x128xf32>
      %206 = tpu.matmul %17, %205, %cst_80 {dimension_numbers = #tpu.dot_dimension_numbers<[1], [1], [0], [0], [0, 0, 1, 0], [], []>} : vector<128x128xbf16>, vector<128x128xbf16>, vector<128x128xf32> -> vector<128x128xf32>
      "tpu.trace_stop"() : () -> ()
      %207 = arith.mulf %204, %204 : vector<128x128xf32>
      %208 = arith.truncf %207 : vector<128x128xf32> to vector<128x128xbf16>
      "tpu.trace_start"() <{level = 10 : i32, message = "sd,td->st"}> : () -> ()
      %cst_81 = arith.constant dense<0.000000e+00> : vector<128x128xf32>
      %209 = tpu.matmul %18, %208, %cst_81 {dimension_numbers = #tpu.dot_dimension_numbers<[1], [1], [0], [0], [0, 0, 1, 0], [], []>} : vector<128x128xbf16>, vector<128x128xbf16>, vector<128x128xf32> -> vector<128x128xf32>
      "tpu.trace_stop"() : () -> ()
      %cst_82 = arith.constant 2.000000e+00 : f32
      %210 = vector.broadcast %cst_82 : f32 to vector<128x128xf32>
      %211 = arith.mulf %210, %206 : vector<128x128xf32>
      %cst_83 = arith.constant 1.000000e+00 : f32
      %212 = vector.broadcast %cst_83 : f32 to vector<128x128xf32>
      %213 = arith.addf %212, %211 : vector<128x128xf32>
      %214 = arith.addf %213, %209 : vector<128x128xf32>
      %cst_84 = arith.constant 2.000000e+00 : f32
      %215 = vector.broadcast %cst_84 : f32 to vector<128x128xf32>
      %216 = arith.mulf %215, %206 : vector<128x128xf32>
      %cst_85 = arith.constant 1.000000e+00 : f32
      %217 = vector.broadcast %cst_85 : f32 to vector<128x128xf32>
      %218 = arith.addf %217, %216 : vector<128x128xf32>
      %219 = vector.broadcast %16 : vector<128x1xf32> to vector<128x128xf32>
      %220 = arith.mulf %219, %209 : vector<128x128xf32>
      %221 = arith.addf %218, %220 : vector<128x128xf32>
      %cst_86 = arith.constant 1.000000e+00 : f32
      %222 = vector.broadcast %cst_86 : f32 to vector<128x128xf32>
      %223 = arith.divf %222, %221 : vector<128x128xf32>
      %224 = arith.mulf %214, %214 : vector<128x128xf32>
      %225 = vector.broadcast %16 : vector<128x1xf32> to vector<128x128xf32>
      %226 = arith.mulf %224, %225 : vector<128x128xf32>
      %cst_87 = arith.constant 2.000000e+00 : f32
      %227 = vector.broadcast %cst_87 : f32 to vector<128x128xf32>
      %228 = arith.mulf %227, %214 : vector<128x128xf32>
      %229 = vector.broadcast %14 : vector<128x1xf32> to vector<128x128xf32>
      %230 = arith.mulf %228, %229 : vector<128x128xf32>
      %231 = arith.mulf %230, %206 : vector<128x128xf32>
      %232 = arith.addf %226, %231 : vector<128x128xf32>
      %233 = arith.mulf %14, %14 : vector<128x1xf32>
      %234 = vector.broadcast %233 : vector<128x1xf32> to vector<128x128xf32>
      %235 = arith.mulf %234, %209 : vector<128x128xf32>
      %236 = arith.addf %232, %235 : vector<128x128xf32>
      %237 = arith.mulf %236, %223 : vector<128x128xf32>
      %238 = arith.mulf %237, %223 : vector<128x128xf32>
      %cst_88 = arith.constant 1.000000e-24 : f32
      %cst_89 = arith.constant 0.999997973 : f32
      %239 = vector.broadcast %cst_88 : f32 to vector<128x128xf32>
      %240 = arith.maximumf %239, %238 : vector<128x128xf32>
      %241 = vector.broadcast %cst_89 : f32 to vector<128x128xf32>
      %242 = arith.minimumf %241, %240 : vector<128x128xf32>
      %243 = math.sqrt %242 : vector<128x128xf32>
      %cst_90 = arith.constant 1.000000e+00 : f32
      %244 = vector.broadcast %cst_90 : f32 to vector<128x128xf32>
      %245 = arith.addf %244, %243 : vector<128x128xf32>
      %cst_91 = arith.constant 1.000000e+00 : f32
      %246 = vector.broadcast %cst_91 : f32 to vector<128x128xf32>
      %247 = arith.subf %246, %243 : vector<128x128xf32>
      %248 = arith.divf %245, %247 : vector<128x128xf32>
      %249 = math.log %248 : vector<128x128xf32>
      %cst_92 = arith.constant 5.000000e-01 : f32
      %250 = vector.broadcast %cst_92 : f32 to vector<128x128xf32>
      %251 = arith.mulf %250, %249 : vector<128x128xf32>
      %252 = tpu.reciprocal %243 {approx = true} : vector<128x128xf32> -> vector<128x128xf32>
      %253 = arith.mulf %251, %252 : vector<128x128xf32>
      %c2_i32_93 = arith.constant 2 : i32
      %254 = vector.broadcast %c2_i32_93 : i32 to vector<128x128xi32>
      %255 = arith.shrsi %21, %254 : vector<128x128xi32>
      %c1_i32_94 = arith.constant 1 : i32
      %256 = vector.broadcast %c1_i32_94 : i32 to vector<128x128xi32>
      %257 = arith.andi %255, %256 : vector<128x128xi32>
      %258 = arith.sitofp %257 : vector<128x128xi32> to vector<128x128xf32>
      %259 = arith.mulf %258, %253 : vector<128x128xf32>
      %260 = arith.mulf %259, %223 : vector<128x128xf32>
      %c0_95 = arith.constant 0 : index
      %c0_96 = arith.constant 0 : index
      %261 = vector.load %arg9[%c0_95, %c0_96] : memref<128x1xf32, #tpu.memory_space<vmem>>, vector<128x1xf32>
      %262 = arith.mulf %260, %214 : vector<128x128xf32>
      %cst_97 = arith.constant dense<0.000000e+00> : vector<128xf32>
      %263 = vector.multi_reduction <add>, %262, %cst_97 [1] : vector<128x128xf32> to vector<128xf32>
      %264 = vector.shape_cast %263 : vector<128xf32> to vector<128x1xf32>
      %265 = arith.addf %261, %264 : vector<128x1xf32>
      %c0_98 = arith.constant 0 : index
      %c0_99 = arith.constant 0 : index
      %266 = vector.load %arg9[%c0_98, %c0_99] : memref<128x1xf32, #tpu.memory_space<vmem>>, vector<128x1xf32>
      tpu.vector_store %arg9[%c0_98, %c0_99], %265 {strides = array<i32>} : memref<128x1xf32, #tpu.memory_space<vmem>>, vector<128x1xf32>,
      %c0_100 = arith.constant 0 : index
      %c0_101 = arith.constant 0 : index
      %267 = vector.load %arg10[%c0_100, %c0_101] : memref<128x1xf32, #tpu.memory_space<vmem>>, vector<128x1xf32>
      %cst_102 = arith.constant dense<0.000000e+00> : vector<128xf32>
      %268 = vector.multi_reduction <add>, %258, %cst_102 [1] : vector<128x128xf32> to vector<128xf32>
      %269 = vector.shape_cast %268 : vector<128xf32> to vector<128x1xf32>
      %270 = arith.addf %267, %269 : vector<128x1xf32>
      %c0_103 = arith.constant 0 : index
      %c0_104 = arith.constant 0 : index
      %271 = vector.load %arg10[%c0_103, %c0_104] : memref<128x1xf32, #tpu.memory_space<vmem>>, vector<128x1xf32>
      tpu.vector_store %arg10[%c0_103, %c0_104], %270 {strides = array<i32>} : memref<128x1xf32, #tpu.memory_space<vmem>>, vector<128x1xf32>,
      %c0_105 = arith.constant 0 : index
      %c0_106 = arith.constant 0 : index
      %272 = vector.load %arg8[%c0_105, %c0_106] : memref<128x128xf32, #tpu.memory_space<vmem>>, vector<128x128xf32>
      %273 = arith.truncf %260 : vector<128x128xf32> to vector<128x128xbf16>
      "tpu.trace_start"() <{level = 10 : i32, message = "st,td->sd"}> : () -> ()
      %cst_107 = arith.constant dense<0.000000e+00> : vector<128x128xf32>
      %274 = tpu.matmul %273, %205, %cst_107 {dimension_numbers = #tpu.dot_dimension_numbers<[1], [0], [0], [1], [0, 0, 1, 1], [], []>} : vector<128x128xbf16>, vector<128x128xbf16>, vector<128x128xf32> -> vector<128x128xf32>
      "tpu.trace_stop"() : () -> ()
      %275 = arith.addf %272, %274 : vector<128x128xf32>
      %c0_108 = arith.constant 0 : index
      %c0_109 = arith.constant 0 : index
      %276 = vector.load %arg8[%c0_108, %c0_109] : memref<128x128xf32, #tpu.memory_space<vmem>>, vector<128x128xf32>
      tpu.vector_store %arg8[%c0_108, %c0_109], %275 {strides = array<i32>} : memref<128x128xf32, #tpu.memory_space<vmem>>, vector<128x128xf32>,
      %277 = vector.extract_strided_slice %20 {offsets = [3, 0], sizes = [1, 128], strides = [1, 1]} : vector<4x128xf32> to vector<1x128xf32>
      %278 = vector.broadcast %277 : vector<1x128xf32> to vector<128x128xf32>
      %279 = arith.addf %19, %278 : vector<128x128xf32>
      %280 = arith.mulf %279, %279 : vector<128x128xf32>
      %cst_110 = arith.constant dense<0.000000e+00> : vector<128xf32>
      %281 = vector.multi_reduction <add>, %280, %cst_110 [1] : vector<128x128xf32> to vector<128xf32>
      %282 = vector.shape_cast %281 : vector<128xf32> to vector<128x1xf32>
      %cst_111 = arith.constant 1.000000e-24 : f32
      %283 = vector.broadcast %cst_111 : f32 to vector<128x1xf32>
      %284 = arith.maximumf %282, %283 : vector<128x1xf32>
      %285 = math.sqrt %284 : vector<128x1xf32>
      %286 = math.tanh %285 : vector<128x1xf32>
      %287 = arith.divf %286, %285 : vector<128x1xf32>
      %288 = vector.broadcast %287 : vector<128x1xf32> to vector<128x128xf32>
      %289 = arith.mulf %288, %279 : vector<128x128xf32>
      %290 = arith.truncf %289 : vector<128x128xf32> to vector<128x128xbf16>
      "tpu.trace_start"() <{level = 10 : i32, message = "sd,td->st"}> : () -> ()
      %cst_112 = arith.constant dense<0.000000e+00> : vector<128x128xf32>
      %291 = tpu.matmul %17, %290, %cst_112 {dimension_numbers = #tpu.dot_dimension_numbers<[1], [1], [0], [0], [0, 0, 1, 0], [], []>} : vector<128x128xbf16>, vector<128x128xbf16>, vector<128x128xf32> -> vector<128x128xf32>
      "tpu.trace_stop"() : () -> ()
      %292 = arith.mulf %289, %289 : vector<128x128xf32>
      %293 = arith.truncf %292 : vector<128x128xf32> to vector<128x128xbf16>
      "tpu.trace_start"() <{level = 10 : i32, message = "sd,td->st"}> : () -> ()
      %cst_113 = arith.constant dense<0.000000e+00> : vector<128x128xf32>
      %294 = tpu.matmul %18, %293, %cst_113 {dimension_numbers = #tpu.dot_dimension_numbers<[1], [1], [0], [0], [0, 0, 1, 0], [], []>} : vector<128x128xbf16>, vector<128x128xbf16>, vector<128x128xf32> -> vector<128x128xf32>
      "tpu.trace_stop"() : () -> ()
      %cst_114 = arith.constant 2.000000e+00 : f32
      %295 = vector.broadcast %cst_114 : f32 to vector<128x128xf32>
      %296 = arith.mulf %295, %291 : vector<128x128xf32>
      %cst_115 = arith.constant 1.000000e+00 : f32
      %297 = vector.broadcast %cst_115 : f32 to vector<128x128xf32>
      %298 = arith.addf %297, %296 : vector<128x128xf32>
      %299 = arith.addf %298, %294 : vector<128x128xf32>
      %cst_116 = arith.constant 2.000000e+00 : f32
      %300 = vector.broadcast %cst_116 : f32 to vector<128x128xf32>
      %301 = arith.mulf %300, %291 : vector<128x128xf32>
      %cst_117 = arith.constant 1.000000e+00 : f32
      %302 = vector.broadcast %cst_117 : f32 to vector<128x128xf32>
      %303 = arith.addf %302, %301 : vector<128x128xf32>
      %304 = vector.broadcast %16 : vector<128x1xf32> to vector<128x128xf32>
      %305 = arith.mulf %304, %294 : vector<128x128xf32>
      %306 = arith.addf %303, %305 : vector<128x128xf32>
      %cst_118 = arith.constant 1.000000e+00 : f32
      %307 = vector.broadcast %cst_118 : f32 to vector<128x128xf32>
      %308 = arith.divf %307, %306 : vector<128x128xf32>
      %309 = arith.mulf %299, %299 : vector<128x128xf32>
      %310 = vector.broadcast %16 : vector<128x1xf32> to vector<128x128xf32>
      %311 = arith.mulf %309, %310 : vector<128x128xf32>
      %cst_119 = arith.constant 2.000000e+00 : f32
      %312 = vector.broadcast %cst_119 : f32 to vector<128x128xf32>
      %313 = arith.mulf %312, %299 : vector<128x128xf32>
      %314 = vector.broadcast %14 : vector<128x1xf32> to vector<128x128xf32>
      %315 = arith.mulf %313, %314 : vector<128x128xf32>
      %316 = arith.mulf %315, %291 : vector<128x128xf32>
      %317 = arith.addf %311, %316 : vector<128x128xf32>
      %318 = arith.mulf %14, %14 : vector<128x1xf32>
      %319 = vector.broadcast %318 : vector<128x1xf32> to vector<128x128xf32>
      %320 = arith.mulf %319, %294 : vector<128x128xf32>
      %321 = arith.addf %317, %320 : vector<128x128xf32>
      %322 = arith.mulf %321, %308 : vector<128x128xf32>
      %323 = arith.mulf %322, %308 : vector<128x128xf32>
      %cst_120 = arith.constant 1.000000e-24 : f32
      %cst_121 = arith.constant 0.999997973 : f32
      %324 = vector.broadcast %cst_120 : f32 to vector<128x128xf32>
      %325 = arith.maximumf %324, %323 : vector<128x128xf32>
      %326 = vector.broadcast %cst_121 : f32 to vector<128x128xf32>
      %327 = arith.minimumf %326, %325 : vector<128x128xf32>
      %328 = math.sqrt %327 : vector<128x128xf32>
      %cst_122 = arith.constant 1.000000e+00 : f32
      %329 = vector.broadcast %cst_122 : f32 to vector<128x128xf32>
      %330 = arith.addf %329, %328 : vector<128x128xf32>
      %cst_123 = arith.constant 1.000000e+00 : f32
      %331 = vector.broadcast %cst_123 : f32 to vector<128x128xf32>
      %332 = arith.subf %331, %328 : vector<128x128xf32>
      %333 = arith.divf %330, %332 : vector<128x128xf32>
      %334 = math.log %333 : vector<128x128xf32>
      %cst_124 = arith.constant 5.000000e-01 : f32
      %335 = vector.broadcast %cst_124 : f32 to vector<128x128xf32>
      %336 = arith.mulf %335, %334 : vector<128x128xf32>
      %337 = tpu.reciprocal %328 {approx = true} : vector<128x128xf32> -> vector<128x128xf32>
      %338 = arith.mulf %336, %337 : vector<128x128xf32>
      %c3_i32 = arith.constant 3 : i32
      %339 = vector.broadcast %c3_i32 : i32 to vector<128x128xi32>
      %340 = arith.shrsi %21, %339 : vector<128x128xi32>
      %c1_i32_125 = arith.constant 1 : i32
      %341 = vector.broadcast %c1_i32_125 : i32 to vector<128x128xi32>
      %342 = arith.andi %340, %341 : vector<128x128xi32>
      %343 = arith.sitofp %342 : vector<128x128xi32> to vector<128x128xf32>
      %344 = arith.mulf %343, %338 : vector<128x128xf32>
      %345 = arith.mulf %344, %308 : vector<128x128xf32>
      %c0_126 = arith.constant 0 : index
      %c0_127 = arith.constant 0 : index
      %346 = vector.load %arg9[%c0_126, %c0_127] : memref<128x1xf32, #tpu.memory_space<vmem>>, vector<128x1xf32>
      %347 = arith.mulf %345, %299 : vector<128x128xf32>
      %cst_128 = arith.constant dense<0.000000e+00> : vector<128xf32>
      %348 = vector.multi_reduction <add>, %347, %cst_128 [1] : vector<128x128xf32> to vector<128xf32>
      %349 = vector.shape_cast %348 : vector<128xf32> to vector<128x1xf32>
      %350 = arith.addf %346, %349 : vector<128x1xf32>
      %c0_129 = arith.constant 0 : index
      %c0_130 = arith.constant 0 : index
      %351 = vector.load %arg9[%c0_129, %c0_130] : memref<128x1xf32, #tpu.memory_space<vmem>>, vector<128x1xf32>
      tpu.vector_store %arg9[%c0_129, %c0_130], %350 {strides = array<i32>} : memref<128x1xf32, #tpu.memory_space<vmem>>, vector<128x1xf32>,
      %c0_131 = arith.constant 0 : index
      %c0_132 = arith.constant 0 : index
      %352 = vector.load %arg10[%c0_131, %c0_132] : memref<128x1xf32, #tpu.memory_space<vmem>>, vector<128x1xf32>
      %cst_133 = arith.constant dense<0.000000e+00> : vector<128xf32>
      %353 = vector.multi_reduction <add>, %343, %cst_133 [1] : vector<128x128xf32> to vector<128xf32>
      %354 = vector.shape_cast %353 : vector<128xf32> to vector<128x1xf32>
      %355 = arith.addf %352, %354 : vector<128x1xf32>
      %c0_134 = arith.constant 0 : index
      %c0_135 = arith.constant 0 : index
      %356 = vector.load %arg10[%c0_134, %c0_135] : memref<128x1xf32, #tpu.memory_space<vmem>>, vector<128x1xf32>
      tpu.vector_store %arg10[%c0_134, %c0_135], %355 {strides = array<i32>} : memref<128x1xf32, #tpu.memory_space<vmem>>, vector<128x1xf32>,
      %c0_136 = arith.constant 0 : index
      %c0_137 = arith.constant 0 : index
      %357 = vector.load %arg8[%c0_136, %c0_137] : memref<128x128xf32, #tpu.memory_space<vmem>>, vector<128x128xf32>
      %358 = arith.truncf %345 : vector<128x128xf32> to vector<128x128xbf16>
      "tpu.trace_start"() <{level = 10 : i32, message = "st,td->sd"}> : () -> ()
      %cst_138 = arith.constant dense<0.000000e+00> : vector<128x128xf32>
      %359 = tpu.matmul %358, %290, %cst_138 {dimension_numbers = #tpu.dot_dimension_numbers<[1], [0], [0], [1], [0, 0, 1, 1], [], []>} : vector<128x128xbf16>, vector<128x128xbf16>, vector<128x128xf32> -> vector<128x128xf32>
      "tpu.trace_stop"() : () -> ()
      %360 = arith.addf %357, %359 : vector<128x128xf32>
      %c0_139 = arith.constant 0 : index
      %c0_140 = arith.constant 0 : index
      %361 = vector.load %arg8[%c0_139, %c0_140] : memref<128x128xf32, #tpu.memory_space<vmem>>, vector<128x128xf32>
      tpu.vector_store %arg8[%c0_139, %c0_140], %360 {strides = array<i32>} : memref<128x128xf32, #tpu.memory_space<vmem>>, vector<128x128xf32>,
    } else {
    }
    %c1_i32 = arith.constant 1 : i32
    %10 = arith.cmpi eq, %arg1, %c1_i32 : i32
    %11 = arith.extui %10 : i1 to i32
    %c0_i32_3 = arith.constant 0 : i32
    %12 = arith.cmpi ne, %11, %c0_i32_3 : i32
    scf.if %12 {
      %c0 = arith.constant 0 : index
      %c0_4 = arith.constant 0 : index
      %13 = vector.load %arg10[%c0, %c0_4] : memref<128x1xf32, #tpu.memory_space<vmem>>, vector<128x1xf32>
      %cst = arith.constant 1.000000e+00 : f32
      %14 = vector.broadcast %cst : f32 to vector<128x1xf32>
      %15 = arith.maximumf %13, %14 : vector<128x1xf32>
      %16 = tpu.reciprocal %15 {approx = true} : vector<128x1xf32> -> vector<128x1xf32>
      %c0_5 = arith.constant 0 : index
      %c0_6 = arith.constant 0 : index
      %17 = vector.load %arg9[%c0_5, %c0_6] : memref<128x1xf32, #tpu.memory_space<vmem>>, vector<128x1xf32>
      %c0_7 = arith.constant 0 : index
      %c0_8 = arith.constant 0 : index
      %18 = vector.load %arg11[%c0_7, %c0_8] : memref<128x128xf32, #tpu.memory_space<vmem>>, vector<128x128xf32>
      %19 = vector.broadcast %17 : vector<128x1xf32> to vector<128x128xf32>
      %20 = arith.mulf %19, %18 : vector<128x128xf32>
      %c0_9 = arith.constant 0 : index
      %c0_10 = arith.constant 0 : index
      %21 = vector.load %arg12[%c0_9, %c0_10] : memref<128x1xf32, #tpu.memory_space<vmem>>, vector<128x1xf32>
      %c0_11 = arith.constant 0 : index
      %c0_12 = arith.constant 0 : index
      %22 = vector.load %arg8[%c0_11, %c0_12] : memref<128x128xf32, #tpu.memory_space<vmem>>, vector<128x128xf32>
      %23 = vector.broadcast %21 : vector<128x1xf32> to vector<128x128xf32>
      %24 = arith.mulf %23, %22 : vector<128x128xf32>
      %25 = arith.addf %20, %24 : vector<128x128xf32>
      %26 = vector.broadcast %16 : vector<128x1xf32> to vector<128x128xf32>
      %27 = arith.mulf %25, %26 : vector<128x128xf32>
      %c0_13 = arith.constant 0 : index
      %c0_14 = arith.constant 0 : index
      %28 = vector.load %arg7[%c0_13, %c0_14] : memref<128x128xf32, #tpu.memory_space<vmem>>, vector<128x128xf32>
      tpu.vector_store %arg7[%c0_13, %c0_14], %27 {strides = array<i32>} : memref<128x128xf32, #tpu.memory_space<vmem>>, vector<128x128xf32>,
    } else {
    }
    return
  }
  func.func @transform_0(%arg0: i32, %arg1: i32, %arg2: memref<4xi32, #tpu.memory_space<smem>>) -> (i32, i32) {
    %c0_i32 = arith.constant 0 : i32
    %c0_i32_0 = arith.constant 0 : i32
    return %arg0, %c0_i32 : i32, i32
  }
  func.func @transform_1(%arg0: i32, %arg1: i32, %arg2: memref<4xi32, #tpu.memory_space<smem>>) -> (i32, i32) {
    %c0_i32 = arith.constant 0 : i32
    %c0_i32_0 = arith.constant 0 : i32
    return %arg1, %c0_i32 : i32, i32
  }
  func.func @transform_2(%arg0: i32, %arg1: i32, %arg2: memref<4xi32, #tpu.memory_space<smem>>) -> (i32, i32) {
    %c0_i32 = arith.constant 0 : i32
    %c0_i32_0 = arith.constant 0 : i32
    %c0_i32_1 = arith.constant 0 : i32
    return %c0_i32, %c0_i32_0 : i32, i32
  }
  func.func @transform_3(%arg0: i32, %arg1: i32, %arg2: memref<4xi32, #tpu.memory_space<smem>>) -> (i32, i32) {
    %c0_i32 = arith.constant 0 : i32
    return %arg0, %arg1 : i32, i32
  }
  func.func @transform_4(%arg0: i32, %arg1: i32, %arg2: memref<4xi32, #tpu.memory_space<smem>>) -> (i32, i32) {
    %c0_i32 = arith.constant 0 : i32
    %c0_i32_0 = arith.constant 0 : i32
    return %arg0, %c0_i32 : i32, i32
  }
}

</mosaic_0001>

<bundles_post_ra>
// kernel: heterogeneous_gnn_forward.1
= control target key start
LH: loop header
LB: loop body
LE: loop exit
PB: predicated region body
PF: predicated region fallthrough
CT: control target
= control target key end

     0   :  { %s15100_s0 = inlined_call_operand.vmem [shape: s32[4], index: 0, kind: input, shape index: {}]   ;;  %s15101_s1 = inlined_call_operand.vmem [shape: f32[256,128], index: 1, kind: input, shape index: {}, may-alias: {1,2}]   ;;  %s15102_s2 = inlined_call_operand.vmem [shape: f32[256,128], index: 2, kind: input, shape index: {}, may-alias: {1,2}]   ;;  %s15103_s3 = inlined_call_operand.vmem [shape: f32[4,128], index: 3, kind: input, shape index: {}]   ;;  %s15104_s4 = inlined_call_operand.vmem [shape: s32[256,256], index: 4, kind: input, shape index: {}]   ;;  %s15105_s5 = inlined_call_operand.vmem [shape: f32[256,128], index: 5, kind: output, shape index: {}]  }
   0x1   :  { %s10_s20 = sshll.u32 %s15100_s0, 4  ;;  %s11_s20 = int_to_ptr.vmem [resolvable:$true] %s10_s20 }
   0x2   :  { %s9327_s21 = scalar_lea.vmem %s11_s20, 16  ;;  %p9332_p1 = scmp.lt.s32.totalorder %s11_s20, %s11_s20 }
   0x3   :  { %p9328_p0 = scmp.ne.s32.totalorder %s11_s20, %s9327_s21  ;;  %p9333_p2 = scmp.lt.s32.totalorder %s9327_s21, %s9327_s21 }
   0x5   :  { %p9334_p3 = por %p9333_p2, %p9332_p1 }
   0x7   :  { %p9335_p4 = pnand %p9334_p3, %p9328_p0 }
   0x9   :  { %9338 = shalt.err (!%p9335_p4)  }
   0xa   :  { %s9397_s22 = smov [#allocation8]  }
   0xb   :  { %13 = dma.vmem_to_smem %s11_s20, 16, %s9397_s22, [#allocation7] }
   0xc   :  { %9367 = dma.done.wait [#allocation7], 16 }
   0xd   :  { %9368 = vsyncadd [#allocation7], 4294967280 }
   0xe   :  { %15 = sfence }
   0xf   :  { %s9435_s23 = smov 0   ;;  %s9437_s24 = smov 0  }
  0x10   :  { %s9439_s25 = smov 0   ;;  %s9441_s0 = smov 0  }
  0x11   :  { %s9443_s26 = smov 0   ;;  %s9445_s27 = smov 0  }
  0x12   :  { %s9447_s28 = smov 0  }
  0x13 LB: > { %s30_s29 = sadd.s32 1, %s9387_s26  ;;  %s33_s30 = sadd.s32 1, %s9391_s27  ;;  %s9395_s28 = sphi %s9447_s28, %s21_s28   ;;  %s9391_s27 = sphi %s9445_s27, %s16222_s27   ;;  %s9387_s26 = sphi %s9443_s26, %s16221_s26   ;;  %s9383_s0 = sphi %s9441_s0, %s16220_s0   ;;  %s9379_s25 = sphi %s9439_s25, %s16219_s25   ;;  %s9375_s24 = sphi %s9437_s24, %s16218_s24   ;;  %s9371_s23 = sphi %s9435_s23, %s16217_s23  }
  0x14   : > { %p31_p5 = scmp.ge.s32.totalorder %s30_s29, 2  ;;  %p122_p6 = scmp.ne.s32.totalorder %s9375_s24, %s9371_s23 }
  0x15   : > { %p123_p7 = scmp.eq.s32.totalorder %s9395_s28, 0  ;;  %s115_s9 = sadd.s32 1, %s9375_s24 }
  0x16   : > { %s16224_s29 = smov (%p31_p5, %s30_s29), 0  ;;  %s16226_s30 = smov (!%p31_p5, %s33_s30), %s9391_s27 }
  0x17   : > { %p124_p8 = por %p123_p7, %p122_p6  ;;  %p35_p9 = scmp.ge.s32.totalorder %s16226_s30, 2 }
  0x18   : > { %s111_s6 = ssub.s32 %s9387_s26, %s16224_s29  ;;  %p7466_p11 = scmp.ge.s32.totalorder %s9395_s28, 4 }
  0x19   : > { %s16228_s30 = smov (%p35_p9, %s16226_s30), 0 }
  0x1a   : > { %s110_s7 = ssub.s32 %s9391_s27, %s16228_s30  ;;  %177 = sbr.rel (%p7466_p11) target bundleno = 45 (0x2d), region = 20 }
  0x1b   : > { %s112_s8 = sor.u32 %s111_s6, %s110_s7 }
  0x1c   : > { %p113_p10 = scmp.eq.s32.totalorder %s112_s8, 0 }
  0x1e   : > { %s9486_s10 = scalar_select %p113_p10, %s9375_s24, %s115_s9  }
  0x1f   : > { %198 = sbr.rel (!%p124_p8) target bundleno = 45 (0x2d), region = 32  ;;  %s200_s11 = sand.u32 (%p124_p8), 1, %s9375_s24  }
  0x20   : > { %s7485_s12 = sshll.u32 (%p124_p8), %s9391_s27, 5  ;;  %s7467_s13 = sshll.u32 (%p124_p8), %s200_s11, 7 }
  0x21   : > { %s205_s14 = sadd.s32 (%p124_p8), %s9387_s26, %s7485_s12  ;;  %s202_s19 = scalar_lea.vmem (%p124_p8), [#allocation9], %s7467_s13 }
  0x22   : > { %s7470_s15 = sshll.u32 (%p124_p8), %s205_s14, 3 }
  0x23   : > { %s9495_s18 = scalar_lea.vmem (%p124_p8), %s15104_s4, %s7470_s15 }
  0x24   : > { %v266_v0 = vld [vmem:[%s9495_s18] sm:$0xff]  ;;  %v268_v1 = vld [vmem:[%s9495_s18 + $0x10] sm:$0xff] }
  0x25   : > { %v270_v2 = vld [vmem:[%s9495_s18 + $0x20] sm:$0xff]  ;;  %267 = vst [vmem:[%s202_s19] sm:$0xff] %v266_v0  ;;  %269 = vst [vmem:[%s202_s19 + $0x8] sm:$0xff] %v268_v1  ;;  %v272_v3 = vld [vmem:[%s9495_s18 + $0x30] sm:$0xff] }
  0x26   : > { %271 = vst [vmem:[%s202_s19 + $0x10] sm:$0xff] %v270_v2  ;;  %v274_v4 = vld [vmem:[%s9495_s18 + $0x40] sm:$0xff]  ;;  %v276_v5 = vld [vmem:[%s9495_s18 + $0x50] sm:$0xff]  ;;  %273 = vst [vmem:[%s202_s19 + $0x18] sm:$0xff] %v272_v3 }
  0x27   : > { %275 = vst [vmem:[%s202_s19 + $0x20] sm:$0xff] %v274_v4  ;;  %277 = vst [vmem:[%s202_s19 + $0x28] sm:$0xff] %v276_v5  ;;  %v278_v6 = vld [vmem:[%s9495_s18 + $0x60] sm:$0xff]  ;;  %v280_v7 = vld [vmem:[%s9495_s18 + $0x70] sm:$0xff] }
  0x28   : > { %v282_v8 = vld [vmem:[%s9495_s18 + $0x80] sm:$0xff]  ;;  %279 = vst [vmem:[%s202_s19 + $0x30] sm:$0xff] %v278_v6  ;;  %281 = vst [vmem:[%s202_s19 + $0x38] sm:$0xff] %v280_v7  ;;  %v284_v9 = vld [vmem:[%s9495_s18 + $0x90] sm:$0xff] }
  0x29   : > { %283 = vst [vmem:[%s202_s19 + $0x40] sm:$0xff] %v282_v8  ;;  %v286_v10 = vld [vmem:[%s9495_s18 + $0xa0] sm:$0xff]  ;;  %v288_v11 = vld [vmem:[%s9495_s18 + $0xb0] sm:$0xff]  ;;  %285 = vst [vmem:[%s202_s19 + $0x48] sm:$0xff] %v284_v9 }
  0x2a   : > { %287 = vst [vmem:[%s202_s19 + $0x50] sm:$0xff] %v286_v10  ;;  %289 = vst [vmem:[%s202_s19 + $0x58] sm:$0xff] %v288_v11  ;;  %v290_v12 = vld [vmem:[%s9495_s18 + $0xc0] sm:$0xff]  ;;  %v292_v13 = vld [vmem:[%s9495_s18 + $0xd0] sm:$0xff] }
  0x2b   : > { %v294_v14 = vld [vmem:[%s9495_s18 + $0xe0] sm:$0xff]  ;;  %291 = vst [vmem:[%s202_s19 + $0x60] sm:$0xff] %v290_v12  ;;  %293 = vst [vmem:[%s202_s19 + $0x68] sm:$0xff] %v292_v13  ;;  %v296_v15 = vld [vmem:[%s9495_s18 + $0xf0] sm:$0xff] }
  0x2c   : > { %295 = vst [vmem:[%s202_s19 + $0x70] sm:$0xff] %v294_v14  ;;  %297 = vst [vmem:[%s202_s19 + $0x78] sm:$0xff] %v296_v15 }
  0x2d PF: > { %p7471_p12 = scmp.ge.s32.totalorder %s9395_s28, 1  ;;  %p302_p13 = scmp.lt.s32.totalorder %s9395_s28, 5 }
  0x2f   : > { %p303_p0 = pnand %p7471_p12, %p302_p13 }
  0x30   : > { %s309_s20 = sand.u32 (!%p303_p0), 1, %s9371_s23   ;;  %s7473_s21 = sshll.u32 (!%p303_p0), %s9383_s0, 4 }
  0x31   : > { %306 = sbr.rel (%p303_p0) target bundleno = 2662 (0xa66), region = 70  ;;  %s7472_s22 = sshll.u32 (!%p303_p0), %s309_s20, 7 }
  0x32   : > { %p345_p1 = scmp.lt.s32.totalorder (!%p303_p0), %s7473_s21, 31  ;;  %s7475_s6 = sshll.u32 (!%p303_p0), %s9379_s25, 4 }
  0x33   : > { %p351_p2 = scmp.lt.s32.totalorder (!%p303_p0), %s7475_s6, 31  ;;  %s9533_s18 = scalar_lea.vmem (!%p303_p0), [#allocation9], %s7472_s22 }
  0x34   : > { %p7479_p3 = scmp.ne.s32.totalorder (!%p303_p0), %s9379_s25, 0 }
  0x36   : > { %s16230_s21 = smov (!%p345_p1, %s7473_s21), 31  ;;  %s16232_s6 = smov (!%p351_p2, %s7475_s6), 31 }
  0x37   : > { %s7474_s7 = sshll.u32 %s16230_s21, 3  ;;  %s7476_s15 = sshll.u32 %s16232_s6, 3 }
  0x38   : > { %s9521_s11 = scalar_lea.vmem %s15101_s1, %s7474_s7  ;;  %s9526_s14 = scalar_lea.vmem %s15105_s5, %s7474_s7 }
  0x39   : > { %s9531_s17 = scalar_lea.vmem %s15102_s2, %s7476_s15  ;;  %368 = sbr.rel (%p7479_p3) target bundleno = 427 (0x1ab), region = 78 }
  0x3e   : > { %v9537_v16 = vld [vmem:[%s9521_s11 + $0x10] sm:$0xff]  ;;  %v9540_v17 = vld [vmem:[%s9521_s11] sm:$0xff]  ;;  %v9543_v18 = vld [vmem:[%s9521_s11 + $0x18] sm:$0xff] }
  0x3f   : > { %v436_v19 = vmul.f32 %v9537_v16, %v9537_v16  ;;  %v434_v20 = vmul.f32 %v9540_v17, %v9540_v17  ;;  %v9550_v21 = vld [vmem:[%s9521_s11 + $0x8] sm:$0xff]  ;;  %v437_v22 = vmul.f32 %v9543_v18, %v9543_v18  ;;  %v9560_v25 = vld [vmem:[%s9521_s11 + $0x20] sm:$0xff]  ;;  %v9567_v28 = vld [vmem:[%s9521_s11 + $0x38] sm:$0xff] }
  0x40   : > { %v435_v23 = vmul.f32 %v9550_v21, %v9550_v21  ;;  %v9557_v24 = vld [vmem:[%s9521_s11 + $0x28] sm:$0xff]  ;;  %v438_v27 = vmul.f32 %v9560_v25, %v9560_v25  ;;  %v9570_v29 = vld [vmem:[%s9521_s11 + $0x30] sm:$0xff]  ;;  %v441_v30 = vmul.f32 %v9567_v28, %v9567_v28  ;;  %v9580_v33 = vld [vmem:[%s9521_s11 + $0x40] sm:$0xff] }
  0x41   : > { %454 = vadd.xlane.f32.xlu1 %v436_v19  ;;  %450 = vadd.xlane.f32.xlu0 %v434_v20  ;;  %v439_v26 = vmul.f32 %v9557_v24, %v9557_v24  ;;  %v440_v31 = vmul.f32 %v9570_v29, %v9570_v29  ;;  %v9577_v32 = vld [vmem:[%s9521_s11 + $0x48] sm:$0xff]  ;;  %v442_v35 = vmul.f32 %v9580_v33, %v9580_v33  ;;  %v9587_v36 = vld [vmem:[%s9521_s11 + $0x58] sm:$0xff]  ;;  %v9590_v37 = vld [vmem:[%s9521_s11 + $0x50] sm:$0xff] }
  0x42   : > { %v443_v34 = vmul.f32 %v9577_v32, %v9577_v32  ;;  %v445_v38 = vmul.f32 %v9587_v36, %v9587_v36  ;;  %v444_v39 = vmul.f32 %v9590_v37, %v9590_v37  ;;  %v9597_v40 = vld [vmem:[%s9521_s11 + $0x68] sm:$0xff]  ;;  %v9600_v41 = vld [vmem:[%s9521_s11 + $0x60] sm:$0xff]  ;;  %v9607_v44 = vld [vmem:[%s9521_s11 + $0x78] sm:$0xff] }
  0x43   : > { %v447_v42 = vmul.f32 %v9597_v40, %v9597_v40  ;;  %v446_v43 = vmul.f32 %v9600_v41, %v9600_v41  ;;  %v9610_v45 = vld [vmem:[%s9521_s11 + $0x70] sm:$0xff]  ;;  %v449_v46 = vmul.f32 %v9607_v44, %v9607_v44 }
  0x44   : > { %v448_v47 = vmul.f32 %v9610_v45, %v9610_v45 }
  0x45   : > { %456 = vadd.xlane.f32.xlu1 %v437_v22  ;;  %452 = vadd.xlane.f32.xlu0 %v435_v23 }
  0x49   : > { %460 = vadd.xlane.f32.xlu1 %v439_v26  ;;  %458 = vadd.xlane.f32.xlu0 %v438_v27 }
  0x4d   : > { %464 = vadd.xlane.f32.xlu1 %v441_v30  ;;  %462 = vadd.xlane.f32.xlu0 %v440_v31 }
  0x51   : > { %468 = vadd.xlane.f32.xlu1 %v443_v34  ;;  %466 = vadd.xlane.f32.xlu0 %v442_v35 }
  0x55   : > { %472 = vadd.xlane.f32.xlu1 %v445_v38  ;;  %470 = vadd.xlane.f32.xlu0 %v444_v39 }
  0x59   : > { %476 = vadd.xlane.f32.xlu1 %v447_v42  ;;  %474 = vadd.xlane.f32.xlu0 %v446_v43 }
  0x5d   : > { %480 = vadd.xlane.f32.xlu1 %v449_v46  ;;  %478 = vadd.xlane.f32.xlu0 %v448_v47 }
  0xca   : > { %v455_v48 = vpop.xlane.xlu1 %454  ;;  %v451_v49 = vpop.xlane.xlu0 %450 }
  0xcb   : > { %v482_v50 = vmax.f32 %v451_v49, 1e-24  ;;  %v9616_v51 = vmax.f32 %v455_v48, 1e-24 }
  0xcd   : > { %8123 = vrsqrt.f32 %v482_v50  ;;  %vm500_vm0 = vcmp.eq.f32.partialorder %v482_v50, inf  ;;  %v503_v11 = vand.u32 2147483648, %v482_v50  ;;  %vm514_vm1 = vcmp.eq.f32.partialorder %v9616_v51, inf }
  0xce   : > { %v457_v52 = vpop.xlane.xlu1 %456  ;;  %v453_v53 = vpop.xlane.xlu0 %452  ;;  %8125 = vrsqrt.f32 %v9616_v51  ;;  %vm516_vm2 = vcmp.eq.f32.partialorder %v9616_v51, 0.0  ;;  %vm502_vm3 = vcmp.eq.f32.partialorder %v482_v50, 0.0  ;;  %v517_v19 = vand.u32 2147483648, %v9616_v51 }
  0xcf   : > { %v9618_v54 = vmax.f32 %v453_v53, 1e-24  ;;  %v9621_v55 = vmax.f32 %v457_v52, 1e-24 }
  0xd1   : > { %8127 = vrsqrt.f32 %v9618_v54  ;;  %vm521_vm4 = vcmp.eq.f32.partialorder %v9621_v55, inf  ;;  %vm523_vm5 = vcmp.eq.f32.partialorder %v9621_v55, 0.0  ;;  %v524_v26 = vand.u32 2147483648, %v9621_v55 }
  0xd2   : > { %v461_v56 = vpop.xlane.xlu1 %460  ;;  %v459_v57 = vpop.xlane.xlu0 %458  ;;  %8129 = vrsqrt.f32 %v9621_v55  ;;  %vm507_vm6 = vcmp.eq.f32.partialorder %v9618_v54, inf  ;;  %vm509_vm7 = vcmp.eq.f32.partialorder %v9618_v54, 0.0  ;;  %v510_v39 = vand.u32 2147483648, %v9618_v54 }
  0xd3   : > { %v9624_v58 = vmax.f32 %v459_v57, 1e-24  ;;  %v9627_v59 = vmax.f32 %v461_v56, 1e-24 }
  0xd5   : > { %8131 = vrsqrt.f32 %v9624_v58  ;;  %vm535_vm8 = vcmp.eq.f32.partialorder %v9627_v59, inf  ;;  %v538_v43 = vand.u32 2147483648, %v9627_v59  ;;  %vm528_vm9 = vcmp.eq.f32.partialorder %v9624_v58, inf }
  0xd6   : > { %v465_v60 = vpop.xlane.xlu1 %464  ;;  %v463_v61 = vpop.xlane.xlu0 %462  ;;  %8133 = vrsqrt.f32 %v9627_v59  ;;  %vm537_vm10 = vcmp.eq.f32.partialorder %v9627_v59, 0.0  ;;  %vm530_vm11 = vcmp.eq.f32.partialorder %v9624_v58, 0.0 }
  0xd7   : > { %v9630_v62 = vmax.f32 %v463_v61, 1e-24  ;;  %v9633_v63 = vmax.f32 %v465_v60, 1e-24  ;;  %v531_v61 = vand.u32 2147483648, %v9624_v58 }
  0xd9   : > { %8135 = vrsqrt.f32 %v9630_v62  ;;  %vm549_vm12 = vcmp.eq.f32.partialorder %v9633_v63, inf  ;;  %vm551_vm13 = vcmp.eq.f32.partialorder %v9633_v63, 0.0  ;;  %vm542_vm14 = vcmp.eq.f32.partialorder %v9630_v62, inf }
  0xda   : > { %v469_v0 = vpop.xlane.xlu1 %468  ;;  %v467_v1 = vpop.xlane.xlu0 %466  ;;  %8137 = vrsqrt.f32 %v9633_v63  ;;  %vm544_vm15 = vcmp.eq.f32.partialorder %v9630_v62, 0.0 }
  0xdb   : > { %v8124_v2 = vpop.eup %8123  ;;  %v9636_v3 = vmax.f32 %v467_v1, 1e-24  ;;  %v9638_v5 = vmax.f32 %v469_v0, 1e-24  ;;  %v552_v1 = vand.u32 2147483648, %v9633_v63 }
  0xdc   : > { %v499_v4 = vmul.f32 %v8124_v2, %v482_v50  ;;  %v8126_v6 = vpop.eup %8125 }
  0xdd   : > { %8139 = vrsqrt.f32 %v9636_v3  ;;  %v513_v14 = vmul.f32 %v8126_v6, %v9616_v51 }
  0xde   : > { %v473_v7 = vpop.xlane.xlu1 %472  ;;  %v471_v8 = vpop.xlane.xlu0 %470  ;;  %v501_v9 = vsel %vm500_vm0, %v482_v50, %v499_v4  ;;  %8141 = vrsqrt.f32 %v9638_v5  ;;  %vm563_vm0 = vcmp.eq.f32.partialorder %v9638_v5, inf }
  0xdf   : > { %v8128_v10 = vpop.eup %8127  ;;  %v9643_v12 = vmax.f32 %v473_v7, 1e-24  ;;  %v9645_v13 = vmax.f32 %v471_v8, 1e-24  ;;  %v504_v23 = vsel %vm502_vm3, %v503_v11, %v501_v9  ;;  %v515_v35 = vsel %vm514_vm1, %v9616_v51, %v513_v14 }
  0xe0   : > { %v8130_v15 = vpop.eup %8129  ;;  %v506_v27 = vmul.f32 %v8128_v10, %v9618_v54  ;;  %v518_v56 = vsel %vm516_vm2, %v517_v19, %v515_v35  ;;  %v545_v7 = vand.u32 2147483648, %v9630_v62  ;;  %vm565_vm1 = vcmp.eq.f32.partialorder %v9638_v5, 0.0 }
  0xe1   : > { %8143 = vrsqrt.f32 %v9645_v13  ;;  %v520_v38 = vmul.f32 %v8130_v15, %v9621_v55  ;;  %v566_v11 = vand.u32 2147483648, %v9638_v5  ;;  %vm556_vm2 = vcmp.eq.f32.partialorder %v9636_v3, inf }
  0xe2   : > { %v477_v20 = vpop.xlane.xlu1 %476  ;;  %v475_v22 = vpop.xlane.xlu0 %474  ;;  %8145 = vrsqrt.f32 %v9643_v12  ;;  %v508_v48 = vsel %vm507_vm6, %v9618_v54, %v506_v27  ;;  %vm558_vm3 = vcmp.eq.f32.partialorder %v9636_v3, 0.0  ;;  %v580_v27 = vand.u32 2147483648, %v9643_v12 }
  0xe3   : > { %v9656_v30 = vmax.f32 %v477_v20, 1e-24  ;;  %v8132_v31 = vpop.eup %8131  ;;  %v9661_v34 = vmax.f32 %v475_v22, 1e-24  ;;  %8147 = vtanh.f32 %v504_v23  ;;  %v522_v57 = vsel %vm521_vm4, %v9621_v55, %v520_v38 }
  0xe4   : > { %v8134_v42 = vpop.eup %8133  ;;  %v527_v49 = vmul.f32 %v8132_v31, %v9624_v58  ;;  %v511_v51 = vsel %vm509_vm7, %v510_v39, %v508_v48  ;;  %v525_v54 = vsel %vm523_vm5, %v524_v26, %v522_v57  ;;  %v559_v22 = vand.u32 2147483648, %v9636_v3 }
  0xe5   : > { %8149 = vrsqrt.f32 %v9661_v34  ;;  %v534_v60 = vmul.f32 %v8134_v42, %v9627_v59  ;;  %vm577_vm4 = vcmp.eq.f32.partialorder %v9643_v12, inf  ;;  %vm579_vm5 = vcmp.eq.f32.partialorder %v9643_v12, 0.0 }
  0xe6   : > { %v481_v46 = vpop.xlane.xlu1 %480  ;;  %v479_v47 = vpop.xlane.xlu0 %478  ;;  %8151 = vrsqrt.f32 %v9656_v30  ;;  %v529_v4 = vsel %vm528_vm9, %v9624_v58, %v527_v49  ;;  %vm570_vm6 = vcmp.eq.f32.partialorder %v9645_v13, inf  ;;  %vm572_vm7 = vcmp.eq.f32.partialorder %v9645_v13, 0.0 }
  0xe7   : > { %v9676_v50 = vmax.f32 %v481_v46, 1e-24  ;;  %v8136_v52 = vpop.eup %8135  ;;  %v9679_v53 = vmax.f32 %v479_v47, 1e-24  ;;  %8153 = vrcp.f32 %v504_v23  ;;  %v536_v9 = vsel %vm535_vm8, %v9627_v59, %v534_v60 }
  0xe8   : > { %v8138_v0 = vpop.eup %8137  ;;  %v541_v6 = vmul.f32 %v8136_v52, %v9630_v62  ;;  %v532_v55 = vsel %vm530_vm11, %v531_v61, %v529_v4  ;;  %v539_v23 = vsel %vm537_vm10, %v538_v43, %v536_v9  ;;  %v573_v42 = vand.u32 2147483648, %v9645_v13 }
  0xe9   : > { %8155 = vrsqrt.f32 %v9676_v50  ;;  %v548_v10 = vmul.f32 %v8138_v0, %v9633_v63  ;;  %vm591_vm8 = vcmp.eq.f32.partialorder %v9656_v30, inf  ;;  %v594_v49 = vand.u32 2147483648, %v9656_v30 }
  0xea   : > { %8157 = vrsqrt.f32 %v9679_v53  ;;  %v8140_v2 = vpop.eup %8139  ;;  %v543_v19 = vsel %vm542_vm14, %v9630_v62, %v541_v6  ;;  %vm593_vm9 = vcmp.eq.f32.partialorder %v9656_v30, 0.0  ;;  %vm584_vm10 = vcmp.eq.f32.partialorder %v9661_v34, inf }
  0xeb   : > { %8159 = vtanh.f32 %v518_v56  ;;  %v8142_v8 = vpop.eup %8141  ;;  %v555_v14 = vmul.f32 %v8140_v2, %v9636_v3  ;;  %v550_v26 = vsel %vm549_vm12, %v9633_v63, %v548_v10  ;;  %v546_v59 = vsel %vm544_vm15, %v545_v7, %v543_v19 }
  0xec   : > { %8161 = vrcp.f32 %v518_v56  ;;  %v562_v20 = vmul.f32 %v8142_v8, %v9638_v5  ;;  %v553_v62 = vsel %vm551_vm13, %v552_v1, %v550_v26  ;;  %vm586_vm11 = vcmp.eq.f32.partialorder %v9661_v34, 0.0 }
  0xed   : > { %8163 = vtanh.f32 %v511_v51  ;;  %v557_v35 = vsel %vm556_vm2, %v9636_v3, %v555_v14  ;;  %v587_v6 = vand.u32 2147483648, %v9661_v34  ;;  %vm605_vm12 = vcmp.eq.f32.partialorder %v9676_v50, inf }
  0xee   : > { %8165 = vrcp.f32 %v511_v51  ;;  %v8144_v15 = vpop.eup %8143  ;;  %v564_v46 = vsel %vm563_vm0, %v9638_v5, %v562_v20  ;;  %v560_v52 = vsel %vm558_vm3, %v559_v22, %v557_v35  ;;  %vm598_vm13 = vcmp.eq.f32.partialorder %v9679_v53, inf }
  0xef   : > { %8167 = vtanh.f32 %v525_v54  ;;  %v8146_v58 = vpop.eup %8145  ;;  %v569_v38 = vmul.f32 %v8144_v15, %v9645_v13  ;;  %v567_v0 = vsel %vm565_vm1, %v566_v11, %v564_v46  ;;  %v601_v22 = vand.u32 2147483648, %v9679_v53 }
  0xf0   : > { %8169 = vrcp.f32 %v525_v54  ;;  %v8148_v31 = vpop.eup %8147  ;;  %v576_v47 = vmul.f32 %v8146_v58, %v9643_v12  ;;  %vm607_vm14 = vcmp.eq.f32.partialorder %v9676_v50, 0.0  ;;  %vm600_vm15 = vcmp.eq.f32.partialorder %v9679_v53, 0.0 }
  0xf1   : > { %8171 = vtanh.f32 %v532_v55  ;;  %v571_v57 = vsel %vm570_vm6, %v9645_v13, %v569_v38  ;;  %vm385_vm0 = vcmask 7168  }
  0xf2   : > { %8173 = vrcp.f32 %v532_v55  ;;  %v8150_v39 = vpop.eup %8149  ;;  %v578_v1 = vsel %vm577_vm4, %v9643_v12, %v576_v47  ;;  %v574_v5 = vsel %vm572_vm7, %v573_v42, %v571_v57 }
  0xf3   : > { %8175 = vtanh.f32 %v539_v23  ;;  %v8152_v43 = vpop.eup %8151  ;;  %v583_v60 = vmul.f32 %v8150_v39, %v9661_v34  ;;  %v581_v14 = vsel %vm579_vm5, %v580_v27, %v578_v1 }
  0xf4   : > { %8177 = vrcp.f32 %v539_v23  ;;  %v8154_v48 = vpop.eup %8153  ;;  %v590_v51 = vmul.f32 %v8152_v43, %v9656_v30  ;;  %v608_v43 = vand.u32 2147483648, %v9676_v50 }
  0xf5   : > { %8179 = vtanh.f32 %v546_v59  ;;  %v627_v61 = vmul.f32 %v8154_v48, %v8148_v31  ;;  %v585_v54 = vsel %vm584_vm10, %v9661_v34, %v583_v60 }
  0xf6   : > { %v8156_v56 = vpop.eup %8155  ;;  %8181 = vrcp.f32 %v546_v59  ;;  %v592_v13 = vsel %vm591_vm8, %v9656_v30, %v590_v51  ;;  %v588_v12 = vsel %vm586_vm11, %v587_v6, %v585_v54 }
  0xf7   : > { %v8158_v63 = vpop.eup %8157  ;;  %8183 = vtanh.f32 %v553_v62  ;;  %v658_v2 = vmul.f32 %v627_v61, %v9540_v17  ;;  %v604_v17 = vmul.f32 %v8156_v56, %v9676_v50  ;;  %v595_v38 = vsel %vm593_vm9, %v594_v49, %v592_v13 }
  0xf8   : > { %v8160_v3 = vpop.eup %8159  ;;  %8185 = vrcp.f32 %v553_v62  ;;  %v597_v11 = vmul.f32 %v8158_v63, %v9679_v53  ;;  %v9398_v63 = vmov 0.0  }
  0xf9   : > { %v8162_v4 = vpop.eup %8161  ;;  %8187 = vtanh.f32 %v560_v52  ;;  %v690_v8 = vmul.f32 %v658_v2, %v658_v2  ;;  %674 = vst [vmem:[#allocation5 + $0x28] sm:$0xff] %v658_v2  ;;  %386 = vst.msk [vmem:[#allocation3] sm:$0xff] %vm385_vm0, %v9398_v63 }
  0xfa   : > { %v8164_v7 = vpop.eup %8163  ;;  %v631_v9 = vmul.f32 %v8162_v4, %v8160_v3  ;;  %8189 = vrcp.f32 %v560_v52  ;;  %v599_v35 = vsel %vm598_vm13, %v9679_v53, %v597_v11  ;;  %387 = vst.msk [vmem:[#allocation3 + $0x8] sm:$0xff] %vm385_vm0, %v9398_v63  ;;  %388 = vst.msk [vmem:[#allocation3 + $0x10] sm:$0xff] %vm385_vm0, %v9398_v63 }
  0xfb   : > { %v8166_v10 = vpop.eup %8165  ;;  %8191 = vtanh.f32 %v567_v0  ;;  %706 = vadd.xlane.f32.xlu0 %v690_v8  ;;  %v602_v62 = vsel %vm600_vm15, %v601_v22, %v599_v35  ;;  %389 = vst.msk [vmem:[#allocation3 + $0x18] sm:$0xff] %vm385_vm0, %v9398_v63  ;;  %390 = vst.msk [vmem:[#allocation3 + $0x20] sm:$0xff] %vm385_vm0, %v9398_v63 }
  0xfc   : > { %v8168_v55 = vpop.eup %8167  ;;  %v660_v15 = vmul.f32 %v631_v9, %v9537_v16  ;;  %v629_v19 = vmul.f32 %v8166_v10, %v8164_v7  ;;  %8193 = vrcp.f32 %v567_v0  ;;  %v606_v16 = vsel %vm605_vm12, %v9676_v50, %v604_v17  ;;  %391 = vst.msk [vmem:[#allocation3 + $0x28] sm:$0xff] %vm385_vm0, %v9398_v63  ;;  %392 = vst.msk [vmem:[#allocation3 + $0x30] sm:$0xff] %vm385_vm0, %v9398_v63 }
  0xfd   : > { %v8170_v20 = vpop.eup %8169  ;;  %8195 = vtanh.f32 %v574_v5  ;;  %v9787_v49 = vsel %vm607_vm14, %v608_v43, %v606_v16  ;;  %393 = vst.msk [vmem:[#allocation3 + $0x38] sm:$0xff] %vm385_vm0, %v9398_v63  ;;  %394 = vst.msk [vmem:[#allocation3 + $0x40] sm:$0xff] %vm385_vm0, %v9398_v63 }
  0xfe   : > { %v8172_v23 = vpop.eup %8171  ;;  %676 = vst [vmem:[#allocation5 + $0x10] sm:$0xff] %v660_v15  ;;  %v692_v58 = vmul.f32 %v660_v15, %v660_v15  ;;  %v659_v26 = vmul.f32 %v629_v19, %v9550_v21  ;;  %v633_v27 = vmul.f32 %v8170_v20, %v8168_v55  ;;  %8197 = vrcp.f32 %v574_v5  ;;  %395 = vst.msk [vmem:[#allocation3 + $0x48] sm:$0xff] %vm385_vm0, %v9398_v63 }
  0xff   : > { %v8174_v31 = vpop.eup %8173  ;;  %8199 = vtanh.f32 %v581_v14  ;;  %396 = vst.msk [vmem:[#allocation3 + $0x50] sm:$0xff] %vm385_vm0, %v9398_v63  ;;  %397 = vst.msk [vmem:[#allocation3 + $0x58] sm:$0xff] %vm385_vm0, %v9398_v63 }
 0x100   : > { %v8176_v34 = vpop.eup %8175  ;;  %710 = vadd.xlane.f32.xlu0 %v692_v58  ;;  %v691_v59 = vmul.f32 %v659_v26, %v659_v26  ;;  %675 = vst [vmem:[#allocation5 + $0x68] sm:$0xff] %v659_v26  ;;  %v661_v39 = vmul.f32 %v633_v27, %v9543_v18  ;;  %v635_v21 = vmul.f32 %v8174_v31, %v8172_v23  ;;  %8201 = vrcp.f32 %v581_v14 }
 0x101   : > { %v8178_v42 = vpop.eup %8177  ;;  %8203 = vtanh.f32 %v588_v12  ;;  %398 = vst.msk [vmem:[#allocation3 + $0x60] sm:$0xff] %vm385_vm0, %v9398_v63  ;;  %399 = vst.msk [vmem:[#allocation3 + $0x68] sm:$0xff] %vm385_vm0, %v9398_v63 }
 0x102   : > { %v8180_v46 = vpop.eup %8179  ;;  %708 = vadd.xlane.f32.xlu1 %v691_v59  ;;  %677 = vst [vmem:[#allocation5 + $0x40] sm:$0xff] %v661_v39  ;;  %v662_v30 = vmul.f32 %v635_v21, %v9560_v25  ;;  %v637_v47 = vmul.f32 %v8178_v42, %v8176_v34  ;;  %8205 = vrcp.f32 %v588_v12  ;;  %v693_v18 = vmul.f32 %v661_v39, %v661_v39 }
 0x103   : > { %v8182_v48 = vpop.eup %8181  ;;  %8207 = vtanh.f32 %v595_v38  ;;  %400 = vst.msk [vmem:[#allocation3 + $0x70] sm:$0xff] %vm385_vm0, %v9398_v63  ;;  %401 = vst.msk [vmem:[#allocation3 + $0x78] sm:$0xff] %vm385_vm0, %v9398_v63 }
 0x104   : > { %v8184_v52 = vpop.eup %8183  ;;  %v694_v56 = vmul.f32 %v662_v30, %v662_v30  ;;  %678 = vst [vmem:[#allocation5 + $0x48] sm:$0xff] %v662_v30  ;;  %v663_v50 = vmul.f32 %v637_v47, %v9557_v24  ;;  %v639_v53 = vmul.f32 %v8182_v48, %v8180_v46  ;;  %8209 = vrcp.f32 %v595_v38  ;;  %402 = vst.msk [vmem:[#allocation4] sm:$0xff] %vm385_vm0, %v9398_v63 }
 0x105   : > { %v8186_v57 = vpop.eup %8185  ;;  %8211 = vtanh.f32 %v602_v62  ;;  %403 = vst.msk [vmem:[#allocation4 + $0x8] sm:$0xff] %vm385_vm0, %v9398_v63  ;;  %404 = vst.msk [vmem:[#allocation4 + $0x10] sm:$0xff] %vm385_vm0, %v9398_v63 }
 0x106   : > { %v9790_v60 = vpop.eup %8187  ;;  %712 = vadd.xlane.f32.xlu1 %v693_v18  ;;  %714 = vadd.xlane.f32.xlu0 %v694_v56  ;;  %679 = vst [vmem:[#allocation5 + $0x30] sm:$0xff] %v663_v50  ;;  %v664_v25 = vmul.f32 %v639_v53, %v9570_v29  ;;  %v641_v61 = vmul.f32 %v8186_v57, %v8184_v52  ;;  %8213 = vrcp.f32 %v602_v62  ;;  %405 = vst.msk [vmem:[#allocation4 + $0x18] sm:$0xff] %vm385_vm0, %v9398_v63 }
 0x107   : > { %406 = vst.msk [vmem:[#allocation4 + $0x20] sm:$0xff] %vm385_vm0, %v9398_v63  ;;  %407 = vst.msk [vmem:[#allocation4 + $0x28] sm:$0xff] %vm385_vm0, %v9398_v63  ;;  %v8190_v24 = vpop.eup %8189  ;;  %v695_v29 = vmul.f32 %v663_v50, %v663_v50  ;;  %8215 = vtanh.f32 %v9787_v49 }
 0x108   : > { %408 = vst.msk [vmem:[#allocation4 + $0x30] sm:$0xff] %vm385_vm0, %v9398_v63  ;;  %409 = vst.msk [vmem:[#allocation4 + $0x38] sm:$0xff] %vm385_vm0, %v9398_v63  ;;  %v8192_v0 = vpop.eup %8191  ;;  %v696_v3 = vmul.f32 %v664_v25, %v664_v25  ;;  %v665_v1 = vmul.f32 %v641_v61, %v9567_v28  ;;  %v643_v51 = vmul.f32 %v8190_v24, %v9790_v60  ;;  %8217 = vrcp.f32 %v9787_v49 }
 0x109   : > { %410 = vst.msk [vmem:[#allocation4 + $0x40] sm:$0xff] %vm385_vm0, %v9398_v63  ;;  %411 = vst.msk [vmem:[#allocation4 + $0x48] sm:$0xff] %vm385_vm0, %v9398_v63  ;;  %v8194_v2 = vpop.eup %8193 }
 0x10a   : > { %412 = vst.msk [vmem:[#allocation4 + $0x50] sm:$0xff] %vm385_vm0, %v9398_v63  ;;  %413 = vst.msk [vmem:[#allocation4 + $0x58] sm:$0xff] %vm385_vm0, %v9398_v63  ;;  %v8196_v4 = vpop.eup %8195  ;;  %716 = vadd.xlane.f32.xlu1 %v695_v29  ;;  %718 = vadd.xlane.f32.xlu0 %v696_v3  ;;  %v666_v6 = vmul.f32 %v643_v51, %v9580_v33  ;;  %v645_v5 = vmul.f32 %v8194_v2, %v8192_v0 }
 0x10b   : > { %414 = vst.msk [vmem:[#allocation4 + $0x60] sm:$0xff] %vm385_vm0, %v9398_v63  ;;  %415 = vst.msk [vmem:[#allocation4 + $0x68] sm:$0xff] %vm385_vm0, %v9398_v63  ;;  %v8198_v7 = vpop.eup %8197  ;;  %v697_v8 = vmul.f32 %v665_v1, %v665_v1 }
 0x10c   : > { %416 = vst.msk [vmem:[#allocation4 + $0x70] sm:$0xff] %vm385_vm0, %v9398_v63  ;;  %417 = vst.msk [vmem:[#allocation4 + $0x78] sm:$0xff] %vm385_vm0, %v9398_v63  ;;  %v8200_v54 = vpop.eup %8199  ;;  %v698_v9 = vmul.f32 %v666_v6, %v666_v6  ;;  %v667_v10 = vmul.f32 %v645_v5, %v9577_v32  ;;  %v647_v28 = vmul.f32 %v8198_v7, %v8196_v4 }
 0x10d   : > { %369 = vst [vmem:[#allocation2 + $0x30] sm:$0xff] %v9398_v63  ;;  %370 = vst [vmem:[#allocation2] sm:$0xff] %v9398_v63  ;;  %v8202_v17 = vpop.eup %8201 }
 0x10e   : > { %371 = vst [vmem:[#allocation2 + $0x58] sm:$0xff] %v9398_v63  ;;  %372 = vst [vmem:[#allocation2 + $0x18] sm:$0xff] %v9398_v63  ;;  %v8204_v11 = vpop.eup %8203  ;;  %720 = vadd.xlane.f32.xlu1 %v697_v8  ;;  %722 = vadd.xlane.f32.xlu0 %v698_v9  ;;  %v668_v14 = vmul.f32 %v647_v28, %v9590_v37  ;;  %v649_v55 = vmul.f32 %v8202_v17, %v8200_v54 }
 0x10f   : > { %373 = vst [vmem:[#allocation2 + $0x50] sm:$0xff] %v9398_v63  ;;  %374 = vst [vmem:[#allocation2 + $0x68] sm:$0xff] %v9398_v63  ;;  %v8206_v13 = vpop.eup %8205  ;;  %v699_v33 = vmul.f32 %v667_v10, %v667_v10 }
 0x110   : > { %375 = vst [vmem:[#allocation2 + $0x8] sm:$0xff] %v9398_v63  ;;  %376 = vst [vmem:[#allocation2 + $0x48] sm:$0xff] %v9398_v63  ;;  %v8208_v15 = vpop.eup %8207  ;;  %v700_v19 = vmul.f32 %v668_v14, %v668_v14  ;;  %v669_v20 = vmul.f32 %v649_v55, %v9587_v36  ;;  %v651_v22 = vmul.f32 %v8206_v13, %v8204_v11 }
 0x111   : > { %377 = vst [vmem:[#allocation2 + $0x40] sm:$0xff] %v9398_v63  ;;  %378 = vst [vmem:[#allocation2 + $0x20] sm:$0xff] %v9398_v63  ;;  %v8210_v12 = vpop.eup %8209 }
 0x112   : > { %379 = vst [vmem:[#allocation2 + $0x10] sm:$0xff] %v9398_v63  ;;  %380 = vst [vmem:[#allocation2 + $0x38] sm:$0xff] %v9398_v63  ;;  %v8212_v23 = vpop.eup %8211  ;;  %724 = vadd.xlane.f32.xlu1 %v699_v33  ;;  %726 = vadd.xlane.f32.xlu0 %v700_v19  ;;  %v670_v32 = vmul.f32 %v651_v22, %v9600_v41  ;;  %v653_v58 = vmul.f32 %v8210_v12, %v8208_v15 }
 0x113   : > { %381 = vst [vmem:[#allocation2 + $0x60] sm:$0xff] %v9398_v63  ;;  %382 = vst [vmem:[#allocation2 + $0x70] sm:$0xff] %v9398_v63  ;;  %v8214_v26 = vpop.eup %8213  ;;  %v701_v37 = vmul.f32 %v669_v20, %v669_v20 }
 0x114   : > { %383 = vst [vmem:[#allocation2 + $0x78] sm:$0xff] %v9398_v63  ;;  %384 = vst [vmem:[#allocation2 + $0x28] sm:$0xff] %v9398_v63  ;;  %v8216_v27 = vpop.eup %8215  ;;  %v702_v31 = vmul.f32 %v670_v32, %v670_v32  ;;  %v671_v16 = vmul.f32 %v653_v58, %v9597_v40  ;;  %v655_v35 = vmul.f32 %v8214_v26, %v8212_v23 }
 0x115   : > { %680 = vst [vmem:[#allocation5 + $0x70] sm:$0xff] %v664_v25  ;;  %681 = vst [vmem:[#allocation5 + $0x38] sm:$0xff] %v665_v1  ;;  %v8218_v38 = vpop.eup %8217 }
 0x116   : > { %682 = vst [vmem:[#allocation5 + $0x20] sm:$0xff] %v666_v6  ;;  %683 = vst [vmem:[#allocation5 + $0x78] sm:$0xff] %v667_v10  ;;  %728 = vadd.xlane.f32.xlu1 %v701_v37  ;;  %730 = vadd.xlane.f32.xlu0 %v702_v31  ;;  %v672_v36 = vmul.f32 %v655_v35, %v9610_v45  ;;  %v657_v34 = vmul.f32 %v8218_v38, %v8216_v27 }
 0x117   : > { %684 = vst [vmem:[#allocation5 + $0x18] sm:$0xff] %v668_v14  ;;  %685 = vst [vmem:[#allocation5 + $0x58] sm:$0xff] %v669_v20  ;;  %v703_v59 = vmul.f32 %v671_v16, %v671_v16 }
 0x118   : > { %686 = vst [vmem:[#allocation5] sm:$0xff] %v670_v32  ;;  %687 = vst [vmem:[#allocation5 + $0x8] sm:$0xff] %v671_v16  ;;  %v704_v39 = vmul.f32 %v672_v36, %v672_v36  ;;  %v673_v41 = vmul.f32 %v657_v34, %v9607_v44 }
 0x119   : > { %688 = vst [vmem:[#allocation5 + $0x60] sm:$0xff] %v672_v36 }
 0x11a   : > { %732 = vadd.xlane.f32.xlu1 %v703_v59  ;;  %734 = vadd.xlane.f32.xlu0 %v704_v39  ;;  %689 = vst [vmem:[#allocation5 + $0x50] sm:$0xff] %v673_v41  ;;  %v705_v21 = vmul.f32 %v673_v41, %v673_v41 }
 0x11e   : > { %736 = vadd.xlane.f32.xlu1 %v705_v21 }
 0x184   : > { %v707_v42 = vpop.xlane.xlu0 %706 }
 0x185   : > { %v738_v40 = vsub.f32 1.0, %v707_v42 }
 0x187   : > { %754 = vst.msk [vmem:[#allocation6] sm:$0xff] %vm385_vm0, %v738_v40 }
 0x189   : > { %v711_v43 = vpop.xlane.xlu0 %710 }
 0x18a   : > { %v740_v46 = vsub.f32 1.0, %v711_v43 }
 0x18b   : > { %v709_v30 = vpop.xlane.xlu1 %708 }
 0x18c   : > { %v739_v47 = vsub.f32 1.0, %v709_v30  ;;  %756 = vst.msk [vmem:[#allocation6 + $0x10] sm:$0xff] %vm385_vm0, %v740_v46 }
 0x18e   : > { %755 = vst.msk [vmem:[#allocation6 + $0x8] sm:$0xff] %vm385_vm0, %v739_v47 }
 0x18f   : > { %v713_v45 = vpop.xlane.xlu1 %712  ;;  %v715_v62 = vpop.xlane.xlu0 %714 }
 0x190   : > { %v741_v44 = vsub.f32 1.0, %v713_v45  ;;  %v742_v48 = vsub.f32 1.0, %v715_v62 }
 0x192   : > { %757 = vst.msk [vmem:[#allocation6 + $0x18] sm:$0xff] %vm385_vm0, %v741_v44  ;;  %758 = vst.msk [vmem:[#allocation6 + $0x20] sm:$0xff] %vm385_vm0, %v742_v48 }
 0x193   : > { %v717_v18 = vpop.xlane.xlu1 %716  ;;  %v719_v49 = vpop.xlane.xlu0 %718 }
 0x194   : > { %v743_v52 = vsub.f32 1.0, %v717_v18  ;;  %v744_v56 = vsub.f32 1.0, %v719_v49 }
 0x196   : > { %759 = vst.msk [vmem:[#allocation6 + $0x28] sm:$0xff] %vm385_vm0, %v743_v52  ;;  %760 = vst.msk [vmem:[#allocation6 + $0x30] sm:$0xff] %vm385_vm0, %v744_v56 }
 0x197   : > { %v721_v50 = vpop.xlane.xlu1 %720  ;;  %v723_v53 = vpop.xlane.xlu0 %722 }
 0x198   : > { %v745_v57 = vsub.f32 1.0, %v721_v50  ;;  %v746_v60 = vsub.f32 1.0, %v723_v53 }
 0x19a   : > { %761 = vst.msk [vmem:[#allocation6 + $0x38] sm:$0xff] %vm385_vm0, %v745_v57  ;;  %762 = vst.msk [vmem:[#allocation6 + $0x40] sm:$0xff] %vm385_vm0, %v746_v60 }
 0x19b   : > { %v725_v25 = vpop.xlane.xlu1 %724  ;;  %v727_v61 = vpop.xlane.xlu0 %726 }
 0x19c   : > { %v747_v63 = vsub.f32 1.0, %v725_v25  ;;  %v748_v24 = vsub.f32 1.0, %v727_v61 }
 0x19e   : > { %763 = vst.msk [vmem:[#allocation6 + $0x48] sm:$0xff] %vm385_vm0, %v747_v63  ;;  %764 = vst.msk [vmem:[#allocation6 + $0x50] sm:$0xff] %vm385_vm0, %v748_v24 }
 0x19f   : > { %v729_v29 = vpop.xlane.xlu1 %728  ;;  %v731_v0 = vpop.xlane.xlu0 %730 }
 0x1a0   : > { %v749_v3 = vsub.f32 1.0, %v729_v29  ;;  %v750_v1 = vsub.f32 1.0, %v731_v0 }
 0x1a2   : > { %765 = vst.msk [vmem:[#allocation6 + $0x58] sm:$0xff] %vm385_vm0, %v749_v3  ;;  %766 = vst.msk [vmem:[#allocation6 + $0x60] sm:$0xff] %vm385_vm0, %v750_v1 }
 0x1a3   : > { %v733_v51 = vpop.xlane.xlu1 %732  ;;  %v735_v2 = vpop.xlane.xlu0 %734 }
 0x1a4   : > { %v751_v4 = vsub.f32 1.0, %v733_v51  ;;  %v752_v6 = vsub.f32 1.0, %v735_v2 }
 0x1a6   : > { %767 = vst.msk [vmem:[#allocation6 + $0x68] sm:$0xff] %vm385_vm0, %v751_v4  ;;  %768 = vst.msk [vmem:[#allocation6 + $0x70] sm:$0xff] %vm385_vm0, %v752_v6 }
 0x1a7   : > { %v737_v5 = vpop.xlane.xlu1 %736 }
 0x1a8   : > { %v753_v7 = vsub.f32 1.0, %v737_v5 }
 0x1aa   : > { %769 = vst.msk [vmem:[#allocation6 + $0x78] sm:$0xff] %vm385_vm0, %v753_v7 }
 0x1ab PF: > { %s7480_s19 = sshll.u32 %s9383_s0, 1 }
 0x1ac   : > { %s771_s20 = sadd.s32 %s9379_s25, %s7480_s19 }
 0x1ad   : > { %s772_s21 = sld [smem:[#allocation8 + %s771_s20]] }
 0x1b3   : > { %p7481_p4 = scmp.le.s32.totalorder %s772_s21, 0 }
 0x1b5   : > { %776 = sbr.rel (%p7481_p4) target bundleno = 2434 (0x982), region = 82 }
 0x1ba   : > { %v866_v54 = vlaneseq  ;;  %v9399_v8 = vmov 0   ;;  %v849_v10 = vld [vmem:[%s15103_s3] sm:$0xf]  ;;  %v847_v28 = vld [vmem:[%s9531_s17 + $0x70] sm:$0xff]  ;;  %v9866_v14 = vld [vmem:[%s9531_s17 + $0x78] sm:$0xff] }
 0x1bb   : > { %8219 = vset.pattern.permute.xlu1 %v9399_v8  ;;  %8220 = vset.pattern.permute.xlu0 %v9399_v8  ;;  %v9863_v11 = vld [vmem:[%s9531_s17 + $0x60] sm:$0xff]  ;;  %v9869_v55 = vld [vmem:[%s9531_s17 + $0x68] sm:$0xff]  ;;  %v9883_v22 = vld [vmem:[%s9531_s17 + $0x58] sm:$0xff] }
 0x1bc   : > { %v9855_v9 = vshrl.u32 %v866_v54, 7  ;;  %v9886_v12 = vld [vmem:[%s9531_s17 + $0x50] sm:$0xff]  ;;  %v9903_v31 = vld [vmem:[%s9531_s17 + $0x48] sm:$0xff]  ;;  %v841_v16 = vld [vmem:[%s9531_s17 + $0x40] sm:$0xff] }
 0x1bd   : > { %v9916_v59 = vld [vmem:[%s9531_s17 + $0x38] sm:$0xff]  ;;  %v9919_v39 = vld [vmem:[%s9531_s17 + $0x30] sm:$0xff]  ;;  %v9932_v43 = vld [vmem:[%s9531_s17 + $0x28] sm:$0xff] }
 0x1be   : > { %15466 = vst [vmem:[#allocation11_spill] sm:$0xff] %v9855_v9  ;;  %v868_v17 = vsub.s32 0, %v9855_v9  ;;  %v9935_v46 = vld [vmem:[%s9531_s17 + $0x20] sm:$0xff]  ;;  %v9945_v62 = vld [vmem:[%s9531_s17 + $0x18] sm:$0xff]  ;;  %v9951_v48 = vld [vmem:[%s9531_s17 + $0x10] sm:$0xff]  ;;  %v2564_v49 = vsub.s32 1, %v9855_v9 }
 0x1bf   : > { %v9962_v50 = vld [vmem:[%s9531_s17 + $0x8] sm:$0xff]  ;;  %v9968_v57 = vld [vmem:[%s9531_s17] sm:$0xff] }
 0x1c0   : > { %v869_v13 = vrot.slane %v849_v10, %v868_v17  ;;  %v9973_v25 = vrot.slane %v849_v10, %v2564_v49 }
 0x1c2   : > { %v9871_v15 = vadd.f32 %v869_v13, %v847_v28  ;;  %v9874_v33 = vadd.f32 %v869_v13, %v9863_v11  ;;  %v9877_v19 = vadd.f32 %v869_v13, %v9866_v14  ;;  %v9880_v20 = vadd.f32 %v869_v13, %v9869_v55 }
 0x1c3   : > { %v9893_v58 = vadd.f32 %v869_v13, %v9883_v22  ;;  %v9900_v37 = vadd.f32 %v869_v13, %v9886_v12  ;;  %v9907_v35 = vadd.f32 %v869_v13, %v9903_v31  ;;  %v9913_v34 = vadd.f32 %v869_v13, %v841_v16 }
 0x1c4   : > { %v900_v23 = vmul.f32 %v9871_v15, %v9871_v15  ;;  %v898_v32 = vmul.f32 %v9874_v33, %v9874_v33  ;;  %v901_v26 = vmul.f32 %v9877_v19, %v9877_v19  ;;  %v899_v27 = vmul.f32 %v9880_v20, %v9880_v20 }
 0x1c5   : > { %v897_v38 = vmul.f32 %v9893_v58, %v9893_v58  ;;  %v896_v36 = vmul.f32 %v9900_v37, %v9900_v37  ;;  %v895_v41 = vmul.f32 %v9907_v35, %v9907_v35  ;;  %v894_v21 = vmul.f32 %v9913_v34, %v9913_v34 }
 0x1c6   : > { %930 = vadd.xlane.f32.xlu0 %v900_v23  ;;  %926 = vadd.xlane.f32.xlu1 %v898_v32  ;;  %v9926_v42 = vadd.f32 %v869_v13, %v9916_v59  ;;  %v9929_v40 = vadd.f32 %v869_v13, %v9919_v39  ;;  %v9938_v30 = vadd.f32 %v869_v13, %v9932_v43  ;;  %v793_v32 = vld [vmem:[#allocation6] sm:$0xff] }
 0x1c7   : > { %v9948_v44 = vadd.f32 %v869_v13, %v9935_v46  ;;  %v9954_v18 = vadd.f32 %v869_v13, %v9945_v62  ;;  %v9965_v53 = vadd.f32 %v869_v13, %v9951_v48  ;;  %v9971_v60 = vadd.f32 %v869_v13, %v9962_v50 }
 0x1c8   : > { %v893_v47 = vmul.f32 %v9926_v42, %v9926_v42  ;;  %v892_v45 = vmul.f32 %v9929_v40, %v9929_v40  ;;  %v891_v52 = vmul.f32 %v9938_v30, %v9938_v30  ;;  %v9980_v24 = vadd.f32 %v869_v13, %v9968_v57  ;;  %v794_v13 = vld [vmem:[#allocation6 + $0x8] sm:$0xff] }
 0x1c9   : > { %v890_v56 = vmul.f32 %v9948_v44, %v9948_v44  ;;  %v889_v61 = vmul.f32 %v9954_v18, %v9954_v18  ;;  %v888_v63 = vmul.f32 %v9965_v53, %v9965_v53  ;;  %v9983_v29 = vadd.f32 %v9973_v25, %v847_v28 }
 0x1ca   : > { %932 = vadd.xlane.f32.xlu0 %v901_v26  ;;  %928 = vadd.xlane.f32.xlu1 %v899_v27  ;;  %v887_v0 = vmul.f32 %v9971_v60, %v9971_v60  ;;  %v886_v3 = vmul.f32 %v9980_v24, %v9980_v24  ;;  %v9991_v1 = vadd.f32 %v9973_v25, %v9866_v14  ;;  %v796_v26 = vld [vmem:[#allocation6 + $0x18] sm:$0xff]  ;;  %v809_v27 = vsub.f32 1.0, %v793_v32 }
 0x1cb   : > { %v2596_v51 = vmul.f32 %v9983_v29, %v9983_v29  ;;  %v9997_v2 = vadd.f32 %v9973_v25, %v9863_v11  ;;  %v10003_v6 = vadd.f32 %v9973_v25, %v9869_v55  ;;  %v10007_v5 = vadd.f32 %v9973_v25, %v9886_v12  ;;  %v795_v12 = vld [vmem:[#allocation6 + $0x10] sm:$0xff] }
 0x1cc   : > { %v2597_v4 = vmul.f32 %v9991_v1, %v9991_v1  ;;  %v10015_v8 = vadd.f32 %v9973_v25, %v9883_v22  ;;  %v10018_v10 = vadd.f32 %v9973_v25, %v841_v16  ;;  %v10026_v11 = vadd.f32 %v9973_v25, %v9903_v31 }
 0x1cd   : > { %v2594_v7 = vmul.f32 %v9997_v2, %v9997_v2  ;;  %v2595_v54 = vmul.f32 %v10003_v6, %v10003_v6  ;;  %v2592_v28 = vmul.f32 %v10007_v5, %v10007_v5  ;;  %v810_v22 = vsub.f32 1.0, %v794_v13 }
 0x1ce   : > { %924 = vadd.xlane.f32.xlu1 %v897_v38  ;;  %922 = vadd.xlane.f32.xlu0 %v896_v36  ;;  %15467 = vst [vmem:[#allocation12_spill] sm:$0xff] %v10018_v10  ;;  %v2593_v17 = vmul.f32 %v10015_v8, %v10015_v8  ;;  %15468 = vst [vmem:[#allocation13_spill] sm:$0xff] %v10026_v11  ;;  %v2590_v14 = vmul.f32 %v10018_v10, %v10018_v10  ;;  %v811_v23 = vsub.f32 1.0, %v795_v12  ;;  %v798_v36 = vld [vmem:[#allocation6 + $0x28] sm:$0xff] }
 0x1cf   : > { %v2591_v55 = vmul.f32 %v10026_v11, %v10026_v11  ;;  %v812_v31 = vsub.f32 1.0, %v796_v26  ;;  %v1721_v16 = vmul.f32 %v794_v13, %v794_v13  ;;  %v1723_v38 = vmul.f32 %v796_v26, %v796_v26 }
 0x1d2   : > { %920 = vadd.xlane.f32.xlu1 %v895_v41  ;;  %918 = vadd.xlane.f32.xlu0 %v894_v21  ;;  %v814_v41 = vsub.f32 1.0, %v798_v36  ;;  %v799_v21 = vld [vmem:[#allocation6 + $0x30] sm:$0xff] }
 0x1d6   : > { %916 = vadd.xlane.f32.xlu1 %v893_v47  ;;  %914 = vadd.xlane.f32.xlu0 %v892_v45  ;;  %v815_v47 = vsub.f32 1.0, %v799_v21  ;;  %v802_v45 = vld [vmem:[#allocation6 + $0x48] sm:$0xff] }
 0x1d7   : > { %v818_v49 = vsub.f32 1.0, %v802_v45 }
 0x1da   : > { %912 = vadd.xlane.f32.xlu1 %v891_v52  ;;  %910 = vadd.xlane.f32.xlu0 %v890_v56  ;;  %v10032_v52 = vld [vmem:[#allocation6 + $0x50] sm:$0xff]  ;;  %v1720_v56 = vmul.f32 %v793_v32, %v793_v32 }
 0x1de   : > { %908 = vadd.xlane.f32.xlu1 %v889_v61  ;;  %906 = vadd.xlane.f32.xlu0 %v888_v63  ;;  %v819_v61 = vsub.f32 1.0, %v10032_v52  ;;  %v1722_v63 = vmul.f32 %v795_v12, %v795_v12 }
 0x1e2   : > { %904 = vadd.xlane.f32.xlu1 %v887_v0  ;;  %902 = vadd.xlane.f32.xlu0 %v886_v3  ;;  %v797_v0 = vld [vmem:[#allocation6 + $0x20] sm:$0xff] }
 0x1e3   : > { %v813_v3 = vsub.f32 1.0, %v797_v0 }
 0x1e6   : > { %2626 = vadd.xlane.f32.xlu1 %v2596_v51  ;;  %2628 = vadd.xlane.f32.xlu0 %v2597_v4  ;;  %v800_v51 = vld [vmem:[#allocation6 + $0x38] sm:$0xff] }
 0x1e7   : > { %v816_v4 = vsub.f32 1.0, %v800_v51 }
 0x1ea   : > { %2622 = vadd.xlane.f32.xlu1 %v2594_v7  ;;  %2624 = vadd.xlane.f32.xlu0 %v2595_v54  ;;  %v801_v7 = vld [vmem:[#allocation6 + $0x40] sm:$0xff]  ;;  %v1725_v54 = vmul.f32 %v798_v36, %v798_v36 }
 0x1ee   : > { %2618 = vadd.xlane.f32.xlu1 %v2592_v28  ;;  %2620 = vadd.xlane.f32.xlu0 %v2593_v17  ;;  %v817_v28 = vsub.f32 1.0, %v801_v7  ;;  %v804_v17 = vld [vmem:[#allocation6 + $0x58] sm:$0xff] }
 0x1f2   : > { %2614 = vadd.xlane.f32.xlu1 %v2590_v14  ;;  %2616 = vadd.xlane.f32.xlu0 %v2591_v55  ;;  %v1727_v14 = vmul.f32 %v800_v51, %v800_v51  ;;  %v10035_v55 = vld [vmem:[#allocation6 + $0x68] sm:$0xff] }
 0x203   : > { %1407 = vperm.xlu1 %8219, %v810_v22   ;;  %v822_v22 = vsub.f32 1.0, %v10035_v55 }
 0x207   : > { %1412 = vperm.xlu1 %8219, %v811_v23  }
 0x208   : > { %1402 = vperm.xlu0 %8220, %v809_v27  }
 0x20b   : > { %1417 = vperm.xlu1 %8219, %v812_v31   ;;  %v1724_v31 = vmul.f32 %v797_v0, %v797_v0 }
 0x20c   : > { %1743 = vperm.xlu0 %8220, %v1721_v16   ;;  %v15106_v16 = vmov 1065369472  }
 0x20d   : > { %7726 = vmatprep.mubr.bf16.mxu1 %v15106_v16 }
 0x20f   : > { %1594 = vperm.xlu1 %8219, %v793_v32   ;;  %v777_v32 = vld [vmem:[#allocation5 + $0x28] sm:$0xff] }
 0x210   : > { %1753 = vperm.xlu0 %8220, %v1723_v38   ;;  %v1726_v38 = vmul.f32 %v799_v21, %v799_v21 }
 0x213   : > { %1599 = vperm.xlu1 %8219, %v794_v13   ;;  %v820_v13 = vsub.f32 1.0, %v804_v17 }
 0x214   : > { %1427 = vperm.xlu0 %8220, %v814_v41   ;;  %v1729_v41 = vmul.f32 %v802_v45, %v802_v45 }
 0x217   : > { %1604 = vperm.xlu1 %8219, %v795_v12   ;;  %v10038_v12 = vld [vmem:[#allocation6 + $0x70] sm:$0xff] }
 0x218   : > { %1432 = vperm.xlu0 %8220, %v815_v47   ;;  %v823_v23 = vsub.f32 1.0, %v10038_v12 }
 0x21b   : > { %1609 = vperm.xlu1 %8219, %v796_v26   ;;  %v778_v26 = vld [vmem:[#allocation5 + $0x68] sm:$0xff] }
 0x21c   : > { %1447 = vperm.xlu0 %8220, %v818_v49   ;;  %v10041_v27 = vpack.c.bf16 %v778_v26, %v777_v32  ;;  %v808_v49 = vld [vmem:[#allocation6 + $0x78] sm:$0xff] }
 0x21e   : > { %15469 = vst [vmem:[#allocation14_spill] sm:$0xff] %v10041_v27  ;;  %7694 = vmatprep.mubr.bf16.mxu0 %v10041_v27 }
 0x21f   : > { %1738 = vperm.xlu1 %8219, %v1720_v56   ;;  %v1731_v56 = vmul.f32 %v804_v17, %v804_v17 }
 0x220   : > { %1452 = vperm.xlu0 %8220, %v819_v61   ;;  %v824_v61 = vsub.f32 1.0, %v808_v49 }
 0x223   : > { %1748 = vperm.xlu1 %8219, %v1722_v63  }
 0x224   : > { %1619 = vperm.xlu0 %8220, %v798_v36   ;;  %v805_v36 = vld [vmem:[#allocation6 + $0x60] sm:$0xff] }
 0x225   : > { %v821_v47 = vsub.f32 1.0, %v805_v36 }
 0x227   : > { %1422 = vperm.xlu1 %8219, %v813_v3  }
 0x228   : > { %1629 = vperm.xlu0 %8220, %v800_v51  }
 0x22b   : > { %1437 = vperm.xlu1 %8219, %v816_v4  }
 0x22c   : > { %1763 = vperm.xlu0 %8220, %v1725_v54   ;;  %v1728_v54 = vmul.f32 %v801_v7, %v801_v7 }
 0x22f   : > { %1442 = vperm.xlu1 %8219, %v817_v28  }
 0x230   : > { %1773 = vperm.xlu0 %8220, %v1727_v14   ;;  %v1735_v14 = vmul.f32 %v808_v49, %v808_v49 }
 0x233   : > { %1457 = vperm.xlu1 %8219, %v820_v13  }
 0x234   : > { %1467 = vperm.xlu0 %8220, %v822_v22  }
 0x237   : > { %1614 = vperm.xlu1 %8219, %v797_v0  }
 0x238   : > { %1472 = vperm.xlu0 %8220, %v823_v23   ;;  %v1730_v23 = vmul.f32 %v10032_v52, %v10032_v52 }
 0x23b   : > { %1624 = vperm.xlu1 %8219, %v799_v21   ;;  %v1733_v21 = vmul.f32 %v10035_v55, %v10035_v55 }
 0x23c   : > { %1639 = vperm.xlu0 %8220, %v802_v45  }
 0x23f   : > { %1758 = vperm.xlu1 %8219, %v1724_v31  }
 0x240   : > { %1649 = vperm.xlu0 %8220, %v804_v17  }
 0x243   : > { %1768 = vperm.xlu1 %8219, %v1726_v38  }
 0x244   : > { %1783 = vperm.xlu0 %8220, %v1729_v41  }
 0x247   : > { %1462 = vperm.xlu1 %8219, %v821_v47   ;;  %v1732_v47 = vmul.f32 %v805_v36, %v805_v36 }
 0x248   : > { %1793 = vperm.xlu0 %8220, %v1731_v56  }
 0x24b   : > { %1477 = vperm.xlu1 %8219, %v824_v61  }
 0x24c   : > { %1654 = vperm.xlu0 %8220, %v805_v36  }
 0x24f   : > { %v931_v63 = vpop.xlane.xlu0 %930  ;;  %v927_v0 = vpop.xlane.xlu1 %926  ;;  %1634 = vperm.xlu1 %8219, %v801_v7  }
 0x250   : > { %v948_v3 = vmax.f32 %v931_v63, 1e-24  ;;  %v10045_v51 = vmax.f32 %v927_v0, 1e-24  ;;  %1669 = vperm.xlu0 %8220, %v808_v49   ;;  %v10076_v49 = vadd.f32 %v9973_v25, %v9916_v59 }
 0x252   : > { %8221 = vrsqrt.f32 %v948_v3  ;;  %15470 = vst [vmem:[#allocation15_spill] sm:$0xff] %v10076_v49  ;;  %vm1050_vm1 = vcmp.eq.f32.partialorder %v948_v3, inf  ;;  %vm1052_vm2 = vcmp.eq.f32.partialorder %v948_v3, 0.0  ;;  %v1053_v61 = vand.u32 2147483648, %v948_v3 }
 0x253   : > { %8223 = vrsqrt.f32 %v10045_v51  ;;  %v933_v45 = vpop.xlane.xlu0 %932  ;;  %v929_v4 = vpop.xlane.xlu1 %928  ;;  %1644 = vperm.xlu1 %8219, %v10032_v52   ;;  %v10072_v52 = vmul.f32 %v10038_v12, %v10038_v12  ;;  %vm1036_vm3 = vcmp.eq.f32.partialorder %v10045_v51, inf  ;;  %vm1038_vm4 = vcmp.eq.f32.partialorder %v10045_v51, 0.0 }
 0x254   : > { %v10051_v28 = vmax.f32 %v933_v45, 1e-24  ;;  %v10053_v17 = vmax.f32 %v929_v4, 1e-24  ;;  %1803 = vperm.xlu0 %8220, %v1733_v21  }
 0x256   : > { %8225 = vrsqrt.f32 %v10051_v28  ;;  %vm1057_vm5 = vcmp.eq.f32.partialorder %v10051_v28, inf  ;;  %vm1059_vm6 = vcmp.eq.f32.partialorder %v10051_v28, 0.0  ;;  %vm1043_vm7 = vcmp.eq.f32.partialorder %v10053_v17, inf }
 0x257   : > { %8227 = vrsqrt.f32 %v10053_v17  ;;  %v925_v13 = vpop.xlane.xlu1 %924  ;;  %v923_v22 = vpop.xlane.xlu0 %922  ;;  %1778 = vperm.xlu1 %8219, %v1728_v54   ;;  %v1039_v54 = vand.u32 2147483648, %v10045_v51  ;;  %vm1045_vm8 = vcmp.eq.f32.partialorder %v10053_v17, 0.0 }
 0x258   : > { %v10059_v32 = vmax.f32 %v925_v13, 1e-24  ;;  %v10061_v26 = vmax.f32 %v923_v22, 1e-24  ;;  %1813 = vperm.xlu0 %8220, %v1735_v14   ;;  %v1060_v14 = vand.u32 2147483648, %v10051_v28 }
 0x25a   : > { %8229 = vrsqrt.f32 %v10059_v32  ;;  %vm1029_vm9 = vcmp.eq.f32.partialorder %v10059_v32, inf  ;;  %vm1031_vm10 = vcmp.eq.f32.partialorder %v10059_v32, 0.0  ;;  %vm1022_vm11 = vcmp.eq.f32.partialorder %v10061_v26, inf }
 0x25b   : > { %8231 = vrsqrt.f32 %v10061_v26  ;;  %v921_v7 = vpop.xlane.xlu1 %920  ;;  %v919_v31 = vpop.xlane.xlu0 %918  ;;  %1788 = vperm.xlu1 %8219, %v1730_v23   ;;  %vm1024_vm12 = vcmp.eq.f32.partialorder %v10061_v26, 0.0 }
 0x25c   : > { %v10065_v38 = vmax.f32 %v921_v7, 1e-24  ;;  %v10067_v41 = vmax.f32 %v919_v31, 1e-24 }
 0x25e   : > { %8233 = vrsqrt.f32 %v10065_v38  ;;  %vm1015_vm13 = vcmp.eq.f32.partialorder %v10065_v38, inf  ;;  %vm1017_vm14 = vcmp.eq.f32.partialorder %v10065_v38, 0.0  ;;  %vm1008_vm15 = vcmp.eq.f32.partialorder %v10067_v41, inf }
 0x25f   : > { %v8222_v56 = vpop.eup %8221  ;;  %8235 = vrsqrt.f32 %v10067_v41  ;;  %1659 = vperm.xlu1 %8219, %v10035_v55   ;;  %v917_v63 = vpop.xlane.xlu1 %916  ;;  %vm1010_vm0 = vcmp.eq.f32.partialorder %v10067_v41, 0.0 }
 0x260   : > { %v915_v0 = vpop.xlane.xlu0 %914  ;;  %v8224_v21 = vpop.eup %8223  ;;  %v1049_v36 = vmul.f32 %v8222_v56, %v948_v3  ;;  %v10081_v45 = vmax.f32 %v917_v63, 1e-24 }
 0x261   : > { %v10083_v4 = vmax.f32 %v915_v0, 1e-24  ;;  %v1035_v59 = vmul.f32 %v8224_v21, %v10045_v51  ;;  %v1046_v0 = vand.u32 2147483648, %v10053_v17 }
 0x262   : > { %v1051_v55 = vsel %vm1050_vm1, %v948_v3, %v1049_v36  ;;  %8237 = vrsqrt.f32 %v10081_v45  ;;  %vm1001_vm1 = vcmp.eq.f32.partialorder %v10081_v45, inf }
 0x263   : > { %v8226_v13 = vpop.eup %8225  ;;  %v1054_v22 = vsel %vm1052_vm2, %v1053_v61, %v1051_v55  ;;  %v1037_v23 = vsel %vm1036_vm3, %v10045_v51, %v1035_v59  ;;  %8239 = vrsqrt.f32 %v10083_v4  ;;  %1664 = vperm.xlu1 %8219, %v10038_v12   ;;  %v10098_v7 = vpop.xlane.xlu1 %912  ;;  %v1032_v51 = vand.u32 2147483648, %v10059_v32 }
 0x264   : > { %v10100_v31 = vpop.xlane.xlu0 %910  ;;  %v8228_v56 = vpop.eup %8227  ;;  %8241 = vtanh.f32 %v1054_v22  ;;  %v1040_v63 = vsel %vm1038_vm4, %v1039_v54, %v1037_v23  ;;  %v1056_v3 = vmul.f32 %v8226_v13, %v10051_v28  ;;  %vm1003_vm2 = vcmp.eq.f32.partialorder %v10081_v45, 0.0 }
 0x265   : > { %8243 = vrcp.f32 %v1054_v22  ;;  %v1042_v61 = vmul.f32 %v8228_v56, %v10053_v17  ;;  %vm994_vm3 = vcmp.eq.f32.partialorder %v10083_v4, inf  ;;  %vm996_vm4 = vcmp.eq.f32.partialorder %v10083_v4, 0.0 }
 0x266   : > { %8245 = vtanh.f32 %v1040_v63  ;;  %v1058_v12 = vsel %vm1057_vm5, %v10051_v28, %v1056_v3 }
 0x267   : > { %v8230_v21 = vpop.eup %8229  ;;  %8247 = vrcp.f32 %v1040_v63  ;;  %v1061_v36 = vsel %vm1059_vm6, %v1060_v14, %v1058_v12  ;;  %v1044_v59 = vsel %vm1043_vm7, %v10053_v17, %v1042_v61  ;;  %1798 = vperm.xlu1 %8219, %v1732_v47   ;;  %v10120_v54 = vpop.xlane.xlu1 %908  ;;  %v1025_v14 = vand.u32 2147483648, %v10061_v26 }
 0x268   : > { %v10122_v55 = vpop.xlane.xlu0 %906  ;;  %v8232_v13 = vpop.eup %8231  ;;  %8249 = vtanh.f32 %v1061_v36  ;;  %v1047_v22 = vsel %vm1045_vm8, %v1046_v0, %v1044_v59  ;;  %v1028_v23 = vmul.f32 %v8230_v21, %v10059_v32  ;;  %v1018_v17 = vand.u32 2147483648, %v10065_v38 }
 0x269   : > { %8251 = vrcp.f32 %v1061_v36  ;;  %v1021_v28 = vmul.f32 %v8232_v13, %v10061_v26 }
 0x26a   : > { %8253 = vtanh.f32 %v1047_v22  ;;  %v1030_v47 = vsel %vm1029_vm9, %v10059_v32, %v1028_v23 }
 0x26b   : > { %v8234_v56 = vpop.eup %8233  ;;  %8255 = vrcp.f32 %v1047_v22  ;;  %v1033_v63 = vsel %vm1031_vm10, %v1032_v51, %v1030_v47  ;;  %v1023_v3 = vsel %vm1022_vm11, %v10061_v26, %v1021_v28  ;;  %1808 = vperm.xlu1 %8219, %v10072_v52   ;;  %v10143_v61 = vpop.xlane.xlu1 %904  ;;  %v1011_v51 = vand.u32 2147483648, %v10067_v41 }
 0x26c   : > { %v10145_v0 = vpop.xlane.xlu0 %902  ;;  %v8236_v12 = vpop.eup %8235  ;;  %8257 = vtanh.f32 %v1033_v63  ;;  %v1026_v21 = vsel %vm1024_vm12, %v1025_v14, %v1023_v3  ;;  %v1014_v32 = vmul.f32 %v8234_v56, %v10065_v38  ;;  %v1004_v26 = vand.u32 2147483648, %v10081_v45 }
 0x26d   : > { %8259 = vrcp.f32 %v1033_v63  ;;  %v1007_v36 = vmul.f32 %v8236_v12, %v10067_v41  ;;  %v997_v63 = vand.u32 2147483648, %v10083_v4  ;;  %v10178_v12 = vadd.f32 %v9973_v25, %v9935_v46 }
 0x26e   : > { %8261 = vtanh.f32 %v1026_v21  ;;  %v1016_v52 = vsel %vm1015_vm13, %v10065_v38, %v1014_v32 }
 0x26f   : > { %v8238_v59 = vpop.eup %8237  ;;  %8263 = vrcp.f32 %v1026_v21  ;;  %v1019_v13 = vsel %vm1017_vm14, %v1018_v17, %v1016_v52  ;;  %v1009_v22 = vsel %vm1008_vm15, %v10067_v41, %v1007_v36  ;;  %v10165_v23 = vpop.xlane.xlu1 %2626  ;;  %15471 = vst [vmem:[#allocation16_spill] sm:$0xff] %v10178_v12  ;;  %v2589_v36 = vmul.f32 %v10076_v49, %v10076_v49 }
 0x270   : > { %v10167_v28 = vpop.xlane.xlu0 %2628  ;;  %v8240_v14 = vpop.eup %8239  ;;  %8265 = vtanh.f32 %v1019_v13  ;;  %v1012_v47 = vsel %vm1010_vm0, %v1011_v51, %v1009_v22  ;;  %v1000_v56 = vmul.f32 %v8238_v59, %v10081_v45  ;;  %v10192_v22 = vmax.f32 %v10098_v7, 1e-24 }
 0x271   : > { %v8242_v3 = vpop.eup %8241  ;;  %8267 = vrcp.f32 %v1019_v13  ;;  %v993_v38 = vmul.f32 %v8240_v14, %v10083_v4  ;;  %v2586_v7 = vmul.f32 %v10178_v12, %v10178_v12 }
 0x272   : > { %v8244_v41 = vpop.eup %8243  ;;  %8269 = vtanh.f32 %v1012_v47  ;;  %v1002_v17 = vsel %vm1001_vm1, %v10081_v45, %v1000_v56  ;;  %vm987_vm5 = vcmp.eq.f32.partialorder %v10192_v22, inf  ;;  %vm989_vm6 = vcmp.eq.f32.partialorder %v10192_v22, 0.0 }
 0x273   : > { %v8246_v21 = vpop.eup %8245  ;;  %8271 = vrcp.f32 %v1012_v47  ;;  %v1005_v32 = vsel %vm1003_vm2, %v1004_v26, %v1002_v17  ;;  %v995_v51 = vsel %vm994_vm3, %v10083_v4, %v993_v38  ;;  %v10187_v52 = vpop.xlane.xlu1 %2622  ;;  %v1107_v14 = vmul.f32 %v8244_v41, %v8242_v3 }
 0x274   : > { %v10189_v59 = vpop.xlane.xlu0 %2624  ;;  %v8248_v13 = vpop.eup %8247  ;;  %8273 = vtanh.f32 %v1005_v32  ;;  %v998_v46 = vsel %vm996_vm4, %v997_v63, %v995_v51  ;;  %v10195_v26 = vmax.f32 %v10100_v31, 1e-24  ;;  %v10199_v47 = vadd.f32 %v9973_v25, %v9919_v39 }
 0x275   : > { %v8250_v45 = vpop.eup %8249  ;;  %8275 = vrcp.f32 %v1005_v32  ;;  %v1103_v4 = vmul.f32 %v8248_v13, %v8246_v21  ;;  %v10202_v38 = vmax.f32 %v10120_v54, 1e-24  ;;  %v10208_v63 = vadd.f32 %v9973_v25, %v9951_v48 }
 0x276   : > { %15472 = vst [vmem:[#allocation17_spill] sm:$0xff] %v10199_v47  ;;  %v8252_v56 = vpop.eup %8251  ;;  %8277 = vtanh.f32 %v998_v46  ;;  %v10211_v31 = vmax.f32 %v10122_v55, 1e-24  ;;  %v1124_v39 = vmul.f32 %v1107_v14, %v9871_v15  ;;  %v10218_v21 = vmax.f32 %v10143_v61, 1e-24 }
 0x277   : > { %15473 = vst [vmem:[#allocation18_spill] sm:$0xff] %v10208_v63  ;;  %v8254_v3 = vpop.eup %8253  ;;  %8279 = vrcp.f32 %v998_v46  ;;  %v1109_v41 = vmul.f32 %v8252_v56, %v8250_v45  ;;  %2612 = vadd.xlane.f32.xlu0 %v2589_v36  ;;  %v10214_v17 = vpop.xlane.xlu1 %2618  ;;  %v1122_v48 = vmul.f32 %v1103_v4, %v9874_v33  ;;  %v10223_v32 = vadd.f32 %v9973_v25, %v9932_v43 }
 0x278   : > { %v8256_v54 = vpop.eup %8255  ;;  %8281 = vrsqrt.f32 %v10192_v22  ;;  %v10225_v55 = vpop.xlane.xlu0 %2620  ;;  %v10229_v15 = vmax.f32 %v10145_v0, 1e-24  ;;  %v1245_v61 = vmul.f32 %v1124_v39, %v1124_v39  ;;  %v2584_v33 = vmul.f32 %v10208_v63, %v10208_v63 }
 0x279   : > { %15474 = vst [vmem:[#allocation19_spill] sm:$0xff] %v10223_v32  ;;  %v8258_v51 = vpop.eup %8257  ;;  %8283 = vrsqrt.f32 %v10195_v26  ;;  %v1125_v36 = vmul.f32 %v1109_v41, %v9877_v19  ;;  %v1105_v13 = vmul.f32 %v8256_v54, %v8254_v3  ;;  %v10237_v43 = vadd.f32 %v9973_v25, %v9968_v57 }
 0x27a   : > { %v8260_v46 = vpop.eup %8259  ;;  %8285 = vrsqrt.f32 %v10202_v38  ;;  %v1243_v3 = vmul.f32 %v1122_v48, %v1122_v48  ;;  %v10247_v54 = vmax.f32 %v10165_v23, 1e-24  ;;  %v10256_v16 = vmul.f32 %v10199_v47, %v10199_v47 }
 0x27b   : > { %15475 = vst [vmem:[#allocation20_spill] sm:$0xff] %v10237_v43  ;;  %v8262_v14 = vpop.eup %8261  ;;  %8287 = vrsqrt.f32 %v10211_v31  ;;  %v10240_v45 = vpack.c.bf16 %v1125_v36, %v1124_v39  ;;  %v1123_v0 = vmul.f32 %v1105_v13, %v9880_v20  ;;  %v1246_v19 = vmul.f32 %v1125_v36, %v1125_v36  ;;  %2606 = vadd.xlane.f32.xlu0 %v2586_v7  ;;  %v10243_v4 = vpop.xlane.xlu1 %2614 }
 0x27c   : > { %v8264_v56 = vpop.eup %8263  ;;  %8289 = vrsqrt.f32 %v10218_v21  ;;  %v1101_v41 = vmul.f32 %v8260_v46, %v8258_v51  ;;  %v10260_v23 = vmul.f32 %v10223_v32, %v10223_v32  ;;  %v2582_v51 = vmul.f32 %v10237_v43, %v10237_v43  ;;  %v10264_v46 = vpop.xlane.xlu0 %2616 }
 0x27d   : > { %v8266_v57 = vpop.eup %8265  ;;  %8291 = vrsqrt.f32 %v10229_v15  ;;  %7678 = vmatprep.subr.bf16.mxu0 %v10240_v45  ;;  %v10251_v39 = vpack.c.bf16 %v1123_v0, %v1122_v48  ;;  %v1254_v20 = vpack.c.bf16 %v1246_v19, %v1245_v61  ;;  %v1244_v36 = vmul.f32 %v1123_v0, %v1123_v0 }
 0x27e   : > { %v8268_v7 = vpop.eup %8267  ;;  %7679 = vmatpush3.bf16.xpose.msra.mxu0 %v10240_v45  ;;  %v1099_v13 = vmul.f32 %v8264_v56, %v8262_v14  ;;  %v1121_v14 = vmul.f32 %v1101_v41, %v9893_v58  ;;  %v990_v63 = vand.u32 2147483648, %v10192_v22  ;;  %vm980_vm7 = vcmp.eq.f32.partialorder %v10195_v26, inf }
 0x27f   : > { %v8270_v48 = vpop.eup %8269  ;;  %7680 = vmatprep.subr.bf16.mxu0 %v10251_v39  ;;  %7710 = vmatprep.subr.bf16.mxu1 %v1254_v20  ;;  %v1253_v61 = vpack.c.bf16 %v1244_v36, %v1243_v3  ;;  %v1097_v0 = vmul.f32 %v8268_v7, %v8266_v57  ;;  %v10269_v19 = vpop.permute.xlu1 %1407  ;;  %vm982_vm8 = vcmp.eq.f32.partialorder %v10195_v26, 0.0  ;;  %8293 = vrsqrt.f32 %v10247_v54 }
 0x280   : > { %15476 = vst [vmem:[#allocation21_spill] sm:$0xff] %v10269_v19  ;;  %v8272_v56 = vpop.eup %8271  ;;  %7711 = vmatpush3.bf16.xpose.msra.mxu1 %v1254_v20  ;;  %v1120_v43 = vmul.f32 %v1099_v13, %v9900_v37  ;;  %2602 = vadd.xlane.f32.xlu0 %v2584_v33  ;;  %v10278_v58 = vmax.f32 %v10187_v52, 1e-24  ;;  %v983_v57 = vand.u32 2147483648, %v10195_v26  ;;  %vm973_vm9 = vcmp.eq.f32.partialorder %v10202_v38, inf }
 0x281   : > { %v8274_v32 = vpop.eup %8273  ;;  %7712 = vmatprep.subr.bf16.mxu1 %v1253_v61  ;;  %v1095_v3 = vmul.f32 %v8272_v56, %v8270_v48  ;;  %vm975_vm10 = vcmp.eq.f32.partialorder %v10202_v38, 0.0  ;;  %v10284_v37 = vmax.f32 %v10167_v28, 1e-24  ;;  %v976_v20 = vand.u32 2147483648, %v10202_v38 }
 0x282   : > { %v8276_v41 = vpop.eup %8275  ;;  %v1241_v36 = vmul.f32 %v1120_v43, %v1120_v43  ;;  %v1242_v7 = vmul.f32 %v1121_v14, %v1121_v14  ;;  %v1119_v13 = vmul.f32 %v1097_v0, %v9907_v35  ;;  %vm966_vm11 = vcmp.eq.f32.partialorder %v10211_v31, inf }
 0x283   : > { %v8278_v33 = vpop.eup %8277  ;;  %v10288_v48 = vpop.permute.xlu1 %1412  ;;  %vm968_vm12 = vcmp.eq.f32.partialorder %v10211_v31, 0.0  ;;  %v969_v56 = vand.u32 2147483648, %v10211_v31  ;;  %v1118_v19 = vmul.f32 %v1095_v3, %v9913_v34  ;;  %vm959_vm13 = vcmp.eq.f32.partialorder %v10218_v21, inf }
 0x284   : > { %15477 = vst [vmem:[#allocation22_spill] sm:$0xff] %v10288_v48  ;;  %v8280_v52 = vpop.eup %8279  ;;  %2598 = vadd.xlane.f32.xlu0 %v2582_v51  ;;  %v10294_v28 = vpop.permute.xlu0 %1402  ;;  %v10297_v47 = vpack.c.bf16 %v1121_v14, %v1120_v43  ;;  %8295 = vrsqrt.f32 %v10278_v58  ;;  %v10301_v35 = vmax.f32 %v10189_v59, 1e-24  ;;  %v962_v49 = vand.u32 2147483648, %v10218_v21 }
 0x285   : > { %15478 = vst [vmem:[#allocation23_spill] sm:$0xff] %v10294_v28  ;;  %v8282_v12 = vpop.eup %8281  ;;  %vm952_vm14 = vcmp.eq.f32.partialorder %v10229_v15, inf  ;;  %8297 = vrsqrt.f32 %v10284_v37  ;;  %v1252_v51 = vpack.c.bf16 %v1242_v7, %v1241_v36  ;;  %v1240_v14 = vmul.f32 %v1119_v13, %v1119_v13 }
 0x286   : > { %v8284_v0 = vpop.eup %8283  ;;  %v986_v48 = vmul.f32 %v8282_v12, %v10192_v22  ;;  %7681 = vmatpush3.bf16.xpose.msra.mxu0 %v10251_v39  ;;  %v1093_v59 = vmul.f32 %v8276_v41, %v8274_v32  ;;  %v1239_v9 = vmul.f32 %v1118_v19, %v1118_v19  ;;  %v1091_v11 = vmul.f32 %v8280_v52, %v8278_v33 }
 0x287   : > { %v8286_v34 = vpop.eup %8285  ;;  %v979_v43 = vmul.f32 %v8284_v0, %v10195_v26  ;;  %7682 = vmatprep.subr.bf16.mxu0 %v10297_v47  ;;  %v10310_v3 = vpop.permute.xlu1 %1417  ;;  %8299 = vrsqrt.f32 %v10301_v35  ;;  %vm961_vm15 = vcmp.eq.f32.partialorder %v10218_v21, 0.0  ;;  %vm954_vm0 = vcmp.eq.f32.partialorder %v10229_v15, 0.0 }
 0x288   : > { %15479 = vst [vmem:[#allocation24_spill] sm:$0xff] %v10310_v3  ;;  %v8288_v28 = vpop.eup %8287  ;;  %v988_v12 = vsel %vm987_vm5, %v10192_v22, %v986_v48  ;;  %v972_v27 = vmul.f32 %v8286_v34, %v10202_v38  ;;  %7713 = vmatpush3.bf16.xpose.msra.mxu1 %v1253_v61  ;;  %vm2746_vm1 = vcmp.eq.f32.partialorder %v10247_v54, inf  ;;  %vm2748_vm2 = vcmp.eq.f32.partialorder %v10247_v54, 0.0 }
 0x289   : > { %v8290_v10 = vpop.eup %8289  ;;  %v991_v0 = vsel %vm989_vm6, %v990_v63, %v988_v12  ;;  %v981_v32 = vsel %vm980_vm7, %v10195_v26, %v979_v43  ;;  %v965_v41 = vmul.f32 %v8288_v28, %v10211_v31  ;;  %7714 = vmatprep.subr.bf16.mxu1 %v1252_v51  ;;  %v10329_v63 = vpop.permute.xlu0 %1743  ;;  %vm2753_vm3 = vcmp.eq.f32.partialorder %v10284_v37, inf }
 0x28a   : > { %v8292_v36 = vpop.eup %8291  ;;  %8301 = vtanh.f32 %v991_v0  ;;  %v984_v61 = vsel %vm982_vm8, %v983_v57, %v981_v32  ;;  %v974_v33 = vsel %vm973_vm9, %v10202_v38, %v972_v27  ;;  %v958_v22 = vmul.f32 %v8290_v10, %v10218_v21  ;;  %15480 = vst [vmem:[#allocation25_spill] sm:$0xff] %v10329_v63 }
 0x28b   : > { %8303 = vrcp.f32 %v991_v0  ;;  %v977_v7 = vsel %vm975_vm10, %v976_v20, %v974_v33  ;;  %v967_v48 = vsel %vm966_vm11, %v10211_v31, %v965_v41  ;;  %v951_v52 = vmul.f32 %v8292_v36, %v10229_v15  ;;  %v10337_v26 = vpop.permute.xlu1 %1594 }
 0x28c   : > { %15481 = vst [vmem:[#allocation26_spill] sm:$0xff] %v10337_v26  ;;  %8305 = vtanh.f32 %v984_v61  ;;  %v960_v27 = vsel %vm959_vm13, %v10218_v21, %v958_v22  ;;  %v10345_v10 = vadd.f32 %v9973_v25, %v9945_v62  ;;  %v970_v38 = vsel %vm968_vm12, %v969_v56, %v967_v48  ;;  %v8294_v28 = vpop.eup %8293 }
 0x28d   : > { %8307 = vrcp.f32 %v984_v61  ;;  %v955_v57 = vand.u32 2147483648, %v10229_v15  ;;  %v10350_v20 = vpack.c.bf16 %v1119_v13, %v1118_v19  ;;  %v953_v34 = vsel %vm952_vm14, %v10229_v15, %v951_v52  ;;  %v10363_v56 = vpop.permute.xlu0 %1753 }
 0x28e   : > { %8309 = vtanh.f32 %v977_v7  ;;  %7683 = vmatpush3.bf16.xpose.msra.mxu0 %v10297_v47  ;;  %v1117_v62 = vmul.f32 %v1093_v59, %v9926_v42  ;;  %v963_v21 = vsel %vm961_vm15, %v962_v49, %v960_v27  ;;  %v1251_v31 = vpack.c.bf16 %v1240_v14, %v1239_v9  ;;  %15483 = vst [vmem:[#allocation28_spill] sm:$0xff] %v10363_v56 }
 0x28f   : > { %8311 = vrcp.f32 %v977_v7  ;;  %7684 = vmatprep.subr.bf16.mxu0 %v10350_v20  ;;  %2610 = vadd.xlane.f32.xlu1 %v10256_v16  ;;  %v1116_v19 = vmul.f32 %v1091_v11, %v9929_v40  ;;  %v10361_v13 = vpop.permute.xlu1 %1599  ;;  %v956_v15 = vsel %vm954_vm0, %v955_v57, %v953_v34  ;;  %v2745_v42 = vmul.f32 %v8294_v28, %v10247_v54 }
 0x290   : > { %15482 = vst [vmem:[#allocation27_spill] sm:$0xff] %v10361_v13  ;;  %8313 = vtanh.f32 %v970_v38  ;;  %7715 = vmatpush3.bf16.xpose.msra.mxu1 %v1252_v51  ;;  %v2585_v49 = vmul.f32 %v10345_v10, %v10345_v10  ;;  %v10372_v9 = vadd.f32 %v9973_v25, %v9962_v50  ;;  %v1238_v16 = vmul.f32 %v1117_v62, %v1117_v62 }
 0x291   : > { %8315 = vrcp.f32 %v970_v38  ;;  %7716 = vmatprep.subr.bf16.mxu1 %v1251_v31  ;;  %v8296_v43 = vpop.eup %8295  ;;  %v1237_v11 = vmul.f32 %v1116_v19, %v1116_v19  ;;  %v10376_v51 = vmax.f32 %v10214_v17, 1e-24  ;;  %v2749_v14 = vand.u32 2147483648, %v10247_v54  ;;  %v10395_v32 = vpop.permute.xlu0 %1427 }
 0x292   : > { %8317 = vtanh.f32 %v963_v21  ;;  %v8298_v40 = vpop.eup %8297  ;;  %v10380_v59 = vmax.f32 %v10243_v4, 1e-24  ;;  %v10385_v50 = vpack.c.bf16 %v1117_v62, %v1116_v19  ;;  %v2747_v25 = vsel %vm2746_vm1, %v10247_v54, %v2745_v42  ;;  %15485 = vst [vmem:[#allocation30_spill] sm:$0xff] %v10395_v32 }
 0x293   : > { %8319 = vrcp.f32 %v963_v21  ;;  %2608 = vadd.xlane.f32.xlu1 %v10260_v23  ;;  %v2752_v12 = vmul.f32 %v8298_v40, %v10284_v37  ;;  %v10383_v0 = vpop.permute.xlu1 %1604  ;;  %v2731_v23 = vmul.f32 %v8296_v43, %v10278_v58  ;;  %v2583_v4 = vmul.f32 %v10372_v9, %v10372_v9 }
 0x294   : > { %8321 = vtanh.f32 %v956_v15  ;;  %15484 = vst [vmem:[#allocation29_spill] sm:$0xff] %v10383_v0  ;;  %v8300_v17 = vpop.eup %8299  ;;  %v1250_v36 = vpack.c.bf16 %v1238_v16, %v1237_v11  ;;  %vm2732_vm4 = vcmp.eq.f32.partialorder %v10278_v58, inf  ;;  %v2756_v61 = vand.u32 2147483648, %v10284_v37 }
 0x295   : > { %8323 = vrcp.f32 %v956_v15  ;;  %v2750_v22 = vsel %vm2748_vm2, %v2749_v14, %v2747_v25  ;;  %v2754_v7 = vsel %vm2753_vm3, %v10284_v37, %v2752_v12  ;;  %vm2755_vm5 = vcmp.eq.f32.partialorder %v10284_v37, 0.0  ;;  %v10420_v42 = vpop.permute.xlu0 %1432 }
 0x296   : > { %7685 = vmatpush3.bf16.xpose.msra.mxu0 %v10350_v20  ;;  %8325 = vrsqrt.f32 %v10376_v51  ;;  %v2738_v27 = vmul.f32 %v8300_v17, %v10301_v35  ;;  %v2733_v57 = vsel %vm2732_vm4, %v10278_v58, %v2731_v23  ;;  %vm2734_vm6 = vcmp.eq.f32.partialorder %v10278_v58, 0.0  ;;  %15487 = vst [vmem:[#allocation32_spill] sm:$0xff] %v10420_v42 }
 0x297   : > { %v8302_v41 = vpop.eup %8301  ;;  %7686 = vmatprep.subr.bf16.mxu0 %v10385_v50  ;;  %2604 = vadd.xlane.f32.xlu1 %v2585_v49  ;;  %8327 = vrsqrt.f32 %v10380_v59  ;;  %v2735_v54 = vand.u32 2147483648, %v10278_v58  ;;  %vm2739_vm7 = vcmp.eq.f32.partialorder %v10301_v35, inf  ;;  %v10413_v28 = vpop.permute.xlu1 %1609  ;;  %vm2741_vm8 = vcmp.eq.f32.partialorder %v10301_v35, 0.0 }
 0x298   : > { %v8304_v33 = vpop.eup %8303  ;;  %7717 = vmatpush3.bf16.xpose.msra.mxu1 %v1251_v31  ;;  %15486 = vst [vmem:[#allocation31_spill] sm:$0xff] %v10413_v28  ;;  %8329 = vtanh.f32 %v2750_v22  ;;  %v2757_v31 = vsel %vm2755_vm5, %v2756_v61, %v2754_v7  ;;  %v2742_v15 = vand.u32 2147483648, %v10301_v35  ;;  %vm2718_vm9 = vcmp.eq.f32.partialorder %v10376_v51, inf }
 0x299   : > { %v8306_v48 = vpop.eup %8305  ;;  %7718 = vmatprep.subr.bf16.mxu1 %v1250_v36  ;;  %v1089_v52 = vmul.f32 %v8304_v33, %v8302_v41  ;;  %8331 = vrcp.f32 %v2750_v22  ;;  %v2736_v37 = vsel %vm2734_vm6, %v2735_v54, %v2733_v57  ;;  %v10439_v22 = vmax.f32 %v10225_v55, 1e-24 }
 0x29a   : > { %v8308_v38 = vpop.eup %8307  ;;  %8333 = vtanh.f32 %v2757_v31  ;;  %vm2704_vm10 = vcmp.eq.f32.partialorder %v10380_v59, inf  ;;  %vm2720_vm11 = vcmp.eq.f32.partialorder %v10376_v51, 0.0  ;;  %vm2706_vm12 = vcmp.eq.f32.partialorder %v10380_v59, 0.0 }
 0x29b   : > { %v8310_v34 = vpop.eup %8309  ;;  %v1087_v62 = vmul.f32 %v8308_v38, %v8306_v48  ;;  %v1115_v21 = vmul.f32 %v1089_v52, %v9938_v30  ;;  %2600 = vadd.xlane.f32.xlu1 %v2583_v4  ;;  %v2740_v30 = vsel %vm2739_vm7, %v10301_v35, %v2738_v27  ;;  %8335 = vrcp.f32 %v2757_v31  ;;  %v10434_v41 = vpop.permute.xlu1 %1738 }
 0x29c   : > { %v8312_v19 = vpop.eup %8311  ;;  %v2743_v4 = vsel %vm2741_vm8, %v2742_v15, %v2740_v30  ;;  %15488 = vst [vmem:[#allocation33_spill] sm:$0xff] %v10434_v41  ;;  %8337 = vtanh.f32 %v2736_v37  ;;  %v10444_v35 = vpop.permute.xlu0 %1447  ;;  %vm2725_vm13 = vcmp.eq.f32.partialorder %v10439_v22, inf  ;;  %vm2727_vm14 = vcmp.eq.f32.partialorder %v10439_v22, 0.0 }
 0x29d   : > { %v8314_v49 = vpop.eup %8313  ;;  %v1114_v43 = vmul.f32 %v1087_v62, %v9948_v44  ;;  %v1236_v40 = vmul.f32 %v1115_v21, %v1115_v21  ;;  %v1085_v11 = vmul.f32 %v8312_v19, %v8310_v34  ;;  %8339 = vrcp.f32 %v2736_v37  ;;  %15489 = vst [vmem:[#allocation34_spill] sm:$0xff] %v10444_v35  ;;  %v10761_v35 = vld [vmem:[%s9531_s17] sm:$0xff] }
 0x29e   : > { %v8316_v16 = vpop.eup %8315  ;;  %7687 = vmatpush3.bf16.xpose.msra.mxu0 %v10385_v50  ;;  %8341 = vtanh.f32 %v2743_v4 }
 0x29f   : > { %v8318_v14 = vpop.eup %8317  ;;  %v10429_v12 = vpack.c.bf16 %v1115_v21, %v1114_v43  ;;  %v1235_v25 = vmul.f32 %v1114_v43, %v1114_v43  ;;  %v1083_v17 = vmul.f32 %v8316_v16, %v8314_v49  ;;  %v1113_v44 = vmul.f32 %v1085_v11, %v9954_v18  ;;  %v10451_v55 = vpop.permute.xlu1 %1748 }
 0x2a0   : > { %v8320_v23 = vpop.eup %8319  ;;  %7719 = vmatpush3.bf16.xpose.msra.mxu1 %v1250_v36  ;;  %v10442_v36 = vmax.f32 %v10264_v46, 1e-24  ;;  %8343 = vrcp.f32 %v2743_v4  ;;  %15490 = vst [vmem:[#allocation35_spill] sm:$0xff] %v10451_v55  ;;  %v10458_v31 = vpop.permute.xlu0 %1452  ;;  %v2721_v49 = vand.u32 2147483648, %v10376_v51  ;;  %v2707_v11 = vand.u32 2147483648, %v10380_v59 }
 0x2a1   : > { %v8322_v61 = vpop.eup %8321  ;;  %7688 = vmatprep.subr.bf16.mxu0 %v10429_v12  ;;  %v1249_v58 = vpack.c.bf16 %v1236_v40, %v1235_v25  ;;  %v1112_v33 = vmul.f32 %v1083_v17, %v9965_v53  ;;  %v1234_v18 = vmul.f32 %v1113_v44, %v1113_v44  ;;  %v1081_v27 = vmul.f32 %v8320_v23, %v8318_v14 }
 0x2a2   : > { %v8324_v7 = vpop.eup %8323  ;;  %8345 = vrsqrt.f32 %v10439_v22  ;;  %15491 = vst [vmem:[#allocation36_spill] sm:$0xff] %v10458_v31  ;;  %vm2711_vm15 = vcmp.eq.f32.partialorder %v10442_v36, inf  ;;  %vm2713_vm0 = vcmp.eq.f32.partialorder %v10442_v36, 0.0 }
 0x2a3   : > { %7720 = vmatprep.subr.bf16.mxu1 %v1249_v58  ;;  %v1233_v48 = vmul.f32 %v1112_v33, %v1112_v33  ;;  %v1079_v52 = vmul.f32 %v8324_v7, %v8322_v61  ;;  %v8326_v38 = vpop.eup %8325  ;;  %v10446_v57 = vpack.c.bf16 %v1113_v44, %v1112_v33  ;;  %8347 = vrsqrt.f32 %v10442_v36  ;;  %v10466_v30 = vpop.permute.xlu1 %1422 }
 0x2a4   : > { %v8328_v53 = vpop.eup %8327  ;;  %v2717_v46 = vmul.f32 %v8326_v38, %v10376_v51  ;;  %v1111_v62 = vmul.f32 %v1081_v27, %v9971_v60  ;;  %15492 = vst [vmem:[#allocation37_spill] sm:$0xff] %v10466_v30  ;;  %v10473_v23 = vpop.permute.xlu0 %1619 }
 0x2a5   : > { %v1248_v54 = vpack.c.bf16 %v1234_v18, %v1233_v48  ;;  %v1110_v34 = vmul.f32 %v1079_v52, %v9980_v24  ;;  %v8330_v21 = vpop.eup %8329  ;;  %v2703_v15 = vmul.f32 %v8328_v53, %v10380_v59  ;;  %15493 = vst [vmem:[#allocation38_spill] sm:$0xff] %v10473_v23  ;;  %v2728_v52 = vand.u32 2147483648, %v10439_v22 }
 0x2a6   : > { %7689 = vmatpush3.bf16.xpose.msra.mxu0 %v10429_v12  ;;  %v8332_v19 = vpop.eup %8331  ;;  %v2719_v40 = vsel %vm2718_vm9, %v10376_v51, %v2717_v46  ;;  %v1232_v24 = vmul.f32 %v1111_v62, %v1111_v62 }
 0x2a7   : > { %7690 = vmatprep.subr.bf16.mxu0 %v10446_v57  ;;  %v8334_v43 = vpop.eup %8333  ;;  %v1231_v60 = vmul.f32 %v1110_v34, %v1110_v34  ;;  %v2705_v37 = vsel %vm2704_vm10, %v10380_v59, %v2703_v15  ;;  %v10470_v14 = vpack.c.bf16 %v1111_v62, %v1110_v34  ;;  %v2803_v25 = vmul.f32 %v8332_v19, %v8330_v21  ;;  %v10485_v27 = vpop.permute.xlu1 %1437  ;;  %v779_v15 = vld [vmem:[#allocation5 + $0x10] sm:$0xff] }
 0x2a8   : > { %7721 = vmatpush3.bf16.xpose.msra.mxu1 %v1249_v58  ;;  %v8336_v16 = vpop.eup %8335  ;;  %v2722_v44 = vsel %vm2720_vm11, %v2721_v49, %v2719_v40  ;;  %v2708_v33 = vsel %vm2706_vm12, %v2707_v11, %v2705_v37  ;;  %15494 = vst [vmem:[#allocation39_spill] sm:$0xff] %v10485_v27  ;;  %v10492_v46 = vpop.permute.xlu0 %1629  ;;  %v780_v49 = vld [vmem:[#allocation5 + $0x40] sm:$0xff] }
 0x2a9   : > { %7722 = vmatprep.subr.bf16.mxu1 %v1248_v54  ;;  %v8338_v17 = vpop.eup %8337  ;;  %v2805_v51 = vmul.f32 %v8336_v16, %v8334_v43  ;;  %v1247_v61 = vpack.c.bf16 %v1232_v24, %v1231_v60  ;;  %8349 = vtanh.f32 %v2722_v44  ;;  %v10477_v59 = vmul.f32 %v2803_v25, %v9983_v29  ;;  %15495 = vst [vmem:[#allocation40_spill] sm:$0xff] %v10492_v46  ;;  %v781_v60 = vld [vmem:[#allocation5 + $0x48] sm:$0xff]  ;;  %v782_v24 = vld [vmem:[#allocation5 + $0x30] sm:$0xff] }
 0x2aa   : > { %v8340_v4 = vpop.eup %8339  ;;  %8351 = vrcp.f32 %v2722_v44  ;;  %v2714_v29 = vand.u32 2147483648, %v10442_v36  ;;  %v10506_v16 = vpack.c.bf16 %v780_v49, %v779_v15  ;;  %v10515_v37 = vpack.c.bf16 %v782_v24, %v781_v60  ;;  %v788_v15 = vld [vmem:[#allocation5 + $0x58] sm:$0xff]  ;;  %v789_v60 = vld [vmem:[#allocation5] sm:$0xff]  ;;  %v790_v24 = vld [vmem:[#allocation5 + $0x8] sm:$0xff] }
 0x2ab   : > { %v8342_v58 = vpop.eup %8341  ;;  %v10480_v18 = vmul.f32 %v2805_v51, %v9991_v1  ;;  %8353 = vtanh.f32 %v2708_v33  ;;  %v2799_v62 = vmul.f32 %v8340_v4, %v8338_v17  ;;  %v10504_v11 = vpop.permute.xlu1 %1442  ;;  %v784_v51 = vld [vmem:[#allocation5 + $0x38] sm:$0xff] }
 0x2ac   : > { %8355 = vrcp.f32 %v2708_v33  ;;  %15496 = vst [vmem:[#allocation41_spill] sm:$0xff] %v10504_v11  ;;  %15497 = vst [vmem:[#allocation42_spill] sm:$0xff] %v10506_v16  ;;  %v10517_v25 = vpop.permute.xlu0 %1763  ;;  %v786_v33 = vld [vmem:[#allocation5 + $0x78] sm:$0xff] }
 0x2ad   : > { %v8344_v7 = vpop.eup %8343  ;;  %v10497_v34 = vpack.c.bf16 %v10480_v18, %v10477_v59  ;;  %15500 = vst [vmem:[#allocation45_spill] sm:$0xff] %v10515_v37  ;;  %15501 = vst [vmem:[#allocation46_spill] sm:$0xff] %v10517_v25 }
 0x2ae   : > { %7691 = vmatpush3.bf16.xpose.msra.mxu0 %v10446_v57  ;;  %v2801_v21 = vmul.f32 %v8344_v7, %v8342_v58  ;;  %v785_v58 = vld [vmem:[#allocation5 + $0x20] sm:$0xff] }
 0x2af   : > { %7692 = vmatprep.subr.bf16.mxu0 %v10470_v14  ;;  %v8346_v48 = vpop.eup %8345 }
 0x2b0   : > { %7723 = vmatpush3.bf16.xpose.msra.mxu1 %v1248_v54  ;;  %v8348_v38 = vpop.eup %8347  ;;  %v2724_v53 = vmul.f32 %v8346_v48, %v10439_v22  ;;  %v10531_v48 = vpop.permute.xlu0 %1773 }
 0x2b1   : > { %7724 = vmatprep.subr.bf16.mxu1 %v1247_v61  ;;  %v2710_v1 = vmul.f32 %v8348_v38, %v10442_v36  ;;  %15504 = vst [vmem:[#allocation48_spill] sm:$0xff] %v10531_v48  ;;  %v10538_v38 = vpack.c.bf16 %v786_v33, %v785_v58 }
 0x2b2   : > { %v2726_v54 = vsel %vm2725_vm13, %v10439_v22, %v2724_v53  ;;  %v10510_v22 = vmul.f32 %v2799_v62, %v9997_v2  ;;  %v783_v2 = vld [vmem:[#allocation5 + $0x70] sm:$0xff] }
 0x2b3   : > { %v2729_v19 = vsel %vm2727_vm14, %v2728_v52, %v2726_v54  ;;  %v2712_v43 = vsel %vm2711_vm15, %v10442_v36, %v2710_v1  ;;  %v10513_v36 = vmul.f32 %v2801_v21, %v10003_v6  ;;  %v10526_v6 = vpop.permute.xlu1 %1457  ;;  %v10534_v52 = vpack.c.bf16 %v784_v51, %v783_v2  ;;  %15506 = vst [vmem:[#allocation50_spill] sm:$0xff] %v10538_v38  ;;  %v15512_v51 = vld [vmem:[#allocation12_spill] sm:$0xff] }
 0x2b4   : > { %8357 = vtanh.f32 %v2729_v19  ;;  %v2715_v40 = vsel %vm2713_vm0, %v2714_v29, %v2712_v43  ;;  %15498 = vst [vmem:[#allocation43_spill] sm:$0xff] %v10510_v22  ;;  %15502 = vst [vmem:[#allocation47_spill] sm:$0xff] %v10526_v6  ;;  %v10772_v6 = vld [vmem:[%s9531_s17 + $0x8] sm:$0xff] }
 0x2b5   : > { %8359 = vrcp.f32 %v2729_v19  ;;  %15499 = vst [vmem:[#allocation44_spill] sm:$0xff] %v10513_v36  ;;  %v10522_v17 = vpack.c.bf16 %v10513_v36, %v10510_v22  ;;  %15505 = vst [vmem:[#allocation49_spill] sm:$0xff] %v10534_v52  ;;  %v787_v19 = vld [vmem:[#allocation5 + $0x18] sm:$0xff]  ;;  %v10676_v36 = vld [vmem:[%s9531_s17 + $0x40] sm:$0xff] }
 0x2b6   : > { %7693 = vmatpush3.bf16.xpose.msra.mxu0 %v10470_v14  ;;  %8361 = vtanh.f32 %v2715_v40  ;;  %v8350_v44 = vpop.eup %8349  ;;  %v10558_v2 = vpack.c.bf16 %v788_v15, %v787_v19  ;;  %v792_v19 = vld [vmem:[#allocation5 + $0x50] sm:$0xff] }
 0x2b7   : > { %7742 = vmatprep.subr.bf16.mxu0 %v10240_v45  ;;  %8363 = vrcp.f32 %v2715_v40  ;;  %v8352_v4 = vpop.eup %8351  ;;  %v10541_v1 = vpop.permute.xlu1 %1614  ;;  %v10598_v15 = vld [vmem:[%s9531_s17 + $0x70] sm:$0xff] }
 0x2b8   : > { %7725 = vmatpush3.bf16.xpose.msra.mxu1 %v1247_v61  ;;  %v15503_v61 = vmov 1065369472   ;;  %v8354_v7 = vpop.eup %8353  ;;  %v2795_v53 = vmul.f32 %v8352_v4, %v8350_v44  ;;  %15507 = vst [vmem:[#allocation51_spill] sm:$0xff] %v10541_v1  ;;  %15511 = vst [vmem:[#allocation55_spill] sm:$0xff] %v10558_v2  ;;  %v10564_v4 = vpack.c.bf16 %v790_v24, %v789_v60  ;;  %v10616_v24 = vld [vmem:[%s9531_s17 + $0x60] sm:$0xff] }
 0x2b9   : > { %7774 = vmatprep.subr.bf16.mxu1 %v10497_v34 }
 0x2ba   : > { %v10549_v43 = vmul.f32 %v2795_v53, %v10007_v5  ;;  %15514 = vst [vmem:[#allocation56_spill] sm:$0xff] %v10564_v4 }
 0x2bb   : > { %v10566_v58 = vpop.permute.xlu1 %1624 }
 0x2bc   : > { %15509 = vst [vmem:[#allocation53_spill] sm:$0xff] %v10549_v43  ;;  %15515 = vst [vmem:[#allocation57_spill] sm:$0xff] %v10566_v58 }
 0x2bd   : > { %7695 = vmatmul.mubr.bf16.vlgmr.msra.gmra.mxu0 %v10506_v16 }
 0x2be   : > { %7743 = vmatpush3.bf16.msra.mxu0 %v10240_v45  ;;  %7698 = vmatprep.mubr.bf16.mxu0 %v10515_v37  ;;  %v8356_v45 = vpop.eup %8355 }
 0x2bf   : > { %7727 = vmatmul.mubr.bf16.vlgmr.msra.gmra.mxu1 %v15503_v61  ;;  %7744 = vmatprep.subr.bf16.mxu0 %v10251_v39  ;;  %v2791_v62 = vmul.f32 %v8356_v45, %v8354_v7  ;;  %v15516_v7 = vld [vmem:[#allocation13_spill] sm:$0xff]  ;;  %v15518_v45 = vld [vmem:[#allocation11_spill] sm:$0xff] }
 0x2c0   : > { %7730 = vmatprep.mubr.bf16.mxu1 %v15503_v61  ;;  %7775 = vmatpush3.bf16.xpose.msra.mxu1 %v10497_v34  ;;  %v4019_v53 = vsub.s32 2, %v15518_v45 }
 0x2c1   : > { %7776 = vmatprep.subr.bf16.mxu1 %v10522_v17  ;;  %v8358_v29 = vpop.eup %8357  ;;  %v10561_v5 = vmul.f32 %v2791_v62, %v15512_v51 }
 0x2c2   : > { %7745 = vmatpush3.bf16.msra.mxu0 %v10251_v39  ;;  %v8360_v54 = vpop.eup %8359  ;;  %v10546_v39 = vpop.permute.xlu0 %1467 }
 0x2c3   : > { %7746 = vmatprep.subr.bf16.mxu0 %v10297_v47  ;;  %v8362_v21 = vpop.eup %8361  ;;  %15508 = vst [vmem:[#allocation52_spill] sm:$0xff] %v10546_v39  ;;  %v2797_v49 = vmul.f32 %v8360_v54, %v8358_v29  ;;  %15513 = vst [vmem:[#allocation12_spill] sm:$0xff] %v10561_v5  ;;  %v10588_v54 = vld [vmem:[%s15103_s3] sm:$0xf] }
 0x2c4   : > { %v8364_v40 = vpop.eup %8363  ;;  %v10591_v62 = vrot.slane %v10588_v54, %v4019_v53  ;;  %v10719_v39 = vld [vmem:[%s9531_s17 + $0x20] sm:$0xff] }
 0x2c5   : > { %7699 = vmatmul.mubr.bf16.gmra.mxu0 %v10534_v52  ;;  %v2793_v44 = vmul.f32 %v8364_v40, %v8362_v21  ;;  %v791_v21 = vld [vmem:[#allocation5 + $0x60] sm:$0xff]  ;;  %v10605_v40 = vld [vmem:[%s9531_s17 + $0x78] sm:$0xff] }
 0x2c6   : > { %7747 = vmatpush3.bf16.msra.mxu0 %v10297_v47  ;;  %7702 = vmatprep.mubr.bf16.mxu0 %v10538_v38  ;;  %v10556_v47 = vmul.f32 %v2797_v49, %v10015_v8  ;;  %v10577_v29 = vpop.permute.xlu0 %1472  ;;  %v10602_v49 = vadd.f32 %v10598_v15, %v10591_v62  ;;  %v10609_v60 = vadd.f32 %v10605_v40, %v10591_v62 }
 0x2c7   : > { %7731 = vmatmul.mubr.bf16.gmra.mxu1 %v15503_v61  ;;  %7748 = vmatprep.subr.bf16.mxu0 %v10350_v20  ;;  %v10573_v8 = vmul.f32 %v2793_v44, %v15516_v7  ;;  %15519 = vst [vmem:[#allocation11_spill] sm:$0xff] %v10577_v29  ;;  %v10620_v44 = vadd.f32 %v10616_v24, %v10591_v62  ;;  %v10750_v29 = vld [vmem:[%s9531_s17 + $0x18] sm:$0xff] }
 0x2c8   : > { %7734 = vmatprep.mubr.bf16.mxu1 %v15503_v61  ;;  %7777 = vmatpush3.bf16.xpose.msra.mxu1 %v10522_v17  ;;  %15510 = vst [vmem:[#allocation54_spill] sm:$0xff] %v10556_v47  ;;  %v10570_v33 = vpack.c.bf16 %v10556_v47, %v10549_v43  ;;  %15520 = vst [vmem:[#allocation58_spill] sm:$0xff] %v10602_v49  ;;  %v10622_v51 = vpack.c.bf16 %v792_v19, %v791_v21  ;;  %v10638_v19 = vld [vmem:[%s9531_s17 + $0x68] sm:$0xff] }
 0x2c9   : > { %15517 = vst [vmem:[#allocation13_spill] sm:$0xff] %v10573_v8  ;;  %15521 = vst [vmem:[#allocation59_spill] sm:$0xff] %v10609_v60  ;;  %v4051_v7 = vmul.f32 %v10602_v49, %v10602_v49  ;;  %v4052_v53 = vmul.f32 %v10609_v60, %v10609_v60  ;;  %v2942_v21 = vmul.f32 %v10480_v18, %v10480_v18  ;;  %v10647_v60 = vld [vmem:[%s9531_s17 + $0x50] sm:$0xff] }
 0x2ca   : > { %7749 = vmatpush3.bf16.msra.mxu0 %v10350_v20  ;;  %7778 = vmatprep.subr.bf16.mxu1 %v10570_v33  ;;  %v10583_v20 = vpack.c.bf16 %v10573_v8, %v10561_v5  ;;  %15523 = vst [vmem:[#allocation61_spill] sm:$0xff] %v10620_v44  ;;  %15524 = vst [vmem:[#allocation62_spill] sm:$0xff] %v10622_v51  ;;  %v10630_v8 = vpop.permute.xlu0 %1639  ;;  %v2941_v5 = vmul.f32 %v10477_v59, %v10477_v59 }
 0x2cb   : > { %7750 = vmatprep.subr.bf16.mxu0 %v10385_v50  ;;  %15525 = vst [vmem:[#allocation63_spill] sm:$0xff] %v10630_v8  ;;  %4081 = vadd.xlane.f32.xlu0 %v4051_v7  ;;  %v10642_v49 = vadd.f32 %v10638_v19, %v10591_v62  ;;  %v10651_v59 = vadd.f32 %v10647_v60, %v10591_v62  ;;  %v10657_v7 = vld [vmem:[%s9531_s17 + $0x58] sm:$0xff]  ;;  %v10730_v8 = vld [vmem:[%s9531_s17 + $0x28] sm:$0xff] }
 0x2cc   : > { %4083 = vadd.xlane.f32.xlu1 %v4052_v53  ;;  %v10661_v53 = vadd.f32 %v10657_v7, %v10591_v62  ;;  %v10668_v47 = vpack.c.bf16 %v2942_v21, %v2941_v5  ;;  %v15533_v21 = vld [vmem:[#allocation14_spill] sm:$0xff] }
 0x2cd   : > { %7703 = vmatmul.mubr.bf16.gmra.mxu0 %v10558_v2  ;;  %15526 = vst [vmem:[#allocation64_spill] sm:$0xff] %v10642_v49  ;;  %15527 = vst [vmem:[#allocation65_spill] sm:$0xff] %v10651_v59  ;;  %v4050_v18 = vmul.f32 %v10642_v49, %v10642_v49  ;;  %v4047_v49 = vmul.f32 %v10651_v59, %v10651_v59 }
 0x2ce   : > { %7751 = vmatpush3.bf16.msra.mxu0 %v10385_v50  ;;  %7706 = vmatprep.mubr.bf16.mxu0 %v10564_v4  ;;  %v10612_v50 = vpop.permute.xlu1 %1758  ;;  %15528 = vst [vmem:[#allocation66_spill] sm:$0xff] %v10661_v53  ;;  %15530 = vst [vmem:[#allocation68_spill] sm:$0xff] %v10668_v47  ;;  %v10670_v43 = vpop.permute.xlu0 %1649  ;;  %v4048_v5 = vmul.f32 %v10661_v53, %v10661_v53  ;;  %v10699_v53 = vld [vmem:[%s9531_s17 + $0x30] sm:$0xff] }
 0x2cf   : > { %7735 = vmatmul.mubr.bf16.gmra.mxu1 %v15503_v61  ;;  %7752 = vmatprep.subr.bf16.mxu0 %v10429_v12  ;;  %15522 = vst [vmem:[#allocation60_spill] sm:$0xff] %v10612_v50  ;;  %15531 = vst [vmem:[#allocation69_spill] sm:$0xff] %v10670_v43 }
 0x2d0   : > { %7738 = vmatprep.mubr.bf16.mxu1 %v15503_v61  ;;  %7779 = vmatpush3.bf16.xpose.msra.mxu1 %v10570_v33 }
 0x2d1   : > { %7780 = vmatprep.subr.bf16.mxu1 %v10583_v20  ;;  %4079 = vadd.xlane.f32.xlu1 %v4050_v18 }
 0x2d2   : > { %7753 = vmatpush3.bf16.msra.mxu0 %v10429_v12  ;;  %v4049_v12 = vmul.f32 %v10620_v44, %v10620_v44  ;;  %v10664_v44 = vpop.permute.xlu1 %1768  ;;  %v10714_v22 = vpop.permute.xlu0 %1783 }
 0x2d3   : > { %7754 = vmatprep.subr.bf16.mxu0 %v10446_v57  ;;  %15529 = vst [vmem:[#allocation67_spill] sm:$0xff] %v10664_v44  ;;  %15538 = vst [vmem:[#allocation75_spill] sm:$0xff] %v10714_v22 }
 0x2d4   : > { %4077 = vadd.xlane.f32.xlu0 %v4049_v12  ;;  %v10688_v12 = vld [vmem:[%s9531_s17 + $0x48] sm:$0xff] }
 0x2d5   : > { %7707 = vmatmul.mubr.bf16.gmra.mxu0 %v10622_v51  ;;  %v10692_v59 = vadd.f32 %v10688_v12, %v10591_v62  ;;  %4075 = vadd.xlane.f32.xlu1 %v4048_v5  ;;  %v10723_v5 = vadd.f32 %v10719_v39, %v10591_v62 }
 0x2d6   : > { %7755 = vmatpush3.bf16.msra.mxu0 %v10446_v57  ;;  %v10680_v57 = vadd.f32 %v10676_v36, %v10591_v62 }
 0x2d7   : > { %7739 = vmatmul.mubr.bf16.gmra.mxu1 %v15503_v61  ;;  %7756 = vmatprep.subr.bf16.mxu0 %v10470_v14  ;;  %15534 = vst [vmem:[#allocation71_spill] sm:$0xff] %v10692_v59  ;;  %v10694_v61 = vpop.permute.xlu1 %1462  ;;  %15539 = vst [vmem:[#allocation76_spill] sm:$0xff] %v10723_v5  ;;  %v4041_v22 = vmul.f32 %v10723_v5, %v10723_v5 }
 0x2d8   : > { %7781 = vmatpush3.bf16.xpose.msra.mxu1 %v10583_v20  ;;  %15532 = vst [vmem:[#allocation70_spill] sm:$0xff] %v10680_v57  ;;  %7790 = vmatprep.mubr.bf16.mxu1 %v15533_v21  ;;  %15535 = vst [vmem:[#allocation72_spill] sm:$0xff] %v10694_v61  ;;  %v4045_v18 = vmul.f32 %v10680_v57, %v10680_v57  ;;  %v4046_v21 = vmul.f32 %v10692_v59, %v10692_v59 }
 0x2d9   : > { %4073 = vadd.xlane.f32.xlu0 %v4047_v49 }
 0x2da   : > { %7757 = vmatpush3.bf16.msra.mxu0 %v10470_v14  ;;  %v10703_v14 = vadd.f32 %v10699_v53, %v10591_v62  ;;  %4071 = vadd.xlane.f32.xlu1 %v4046_v21  ;;  %v10741_v21 = vld [vmem:[%s9531_s17 + $0x10] sm:$0xff] }
 0x2db   : > { %7806 = vmatprep.subr.bf16.mxu0 %v10668_v47  ;;  %v10708_v47 = vld [vmem:[%s9531_s17 + $0x38] sm:$0xff]  ;;  %v10727_v61 = vpop.permute.xlu1 %1477 }
 0x2dc   : > { %15536 = vst [vmem:[#allocation73_spill] sm:$0xff] %v10703_v14  ;;  %v10712_v49 = vadd.f32 %v10708_v47, %v10591_v62  ;;  %v4043_v57 = vmul.f32 %v10703_v14, %v10703_v14  ;;  %15540 = vst [vmem:[#allocation77_spill] sm:$0xff] %v10727_v61  ;;  %v10736_v14 = vpop.permute.xlu0 %1793 }
 0x2dd   : > { %4069 = vadd.xlane.f32.xlu0 %v4045_v18  ;;  %v10734_v18 = vadd.f32 %v10730_v8, %v10591_v62  ;;  %15542 = vst [vmem:[#allocation79_spill] sm:$0xff] %v10736_v14  ;;  %v10754_v14 = vadd.f32 %v10750_v29, %v10591_v62 }
 0x2de   : > { %15537 = vst [vmem:[#allocation74_spill] sm:$0xff] %v10712_v49  ;;  %v4044_v59 = vmul.f32 %v10712_v49, %v10712_v49  ;;  %v10745_v49 = vadd.f32 %v10741_v21, %v10591_v62 }
 0x2df   : > { %15541 = vst [vmem:[#allocation78_spill] sm:$0xff] %v10734_v18  ;;  %v4042_v61 = vmul.f32 %v10734_v18, %v10734_v18  ;;  %15544 = vst [vmem:[#allocation81_spill] sm:$0xff] %v10754_v14  ;;  %v4040_v18 = vmul.f32 %v10754_v14, %v10754_v14 }
 0x2e0   : > { %15543 = vst [vmem:[#allocation80_spill] sm:$0xff] %v10745_v49  ;;  %4067 = vadd.xlane.f32.xlu1 %v4044_v59  ;;  %v4039_v5 = vmul.f32 %v10745_v49, %v10745_v49  ;;  %v10765_v59 = vadd.f32 %v10761_v35, %v10591_v62  ;;  %v10769_v43 = vpop.permute.xlu0 %1654  ;;  %v5474_v49 = vsub.s32 3, %v15518_v45 }
 0x2e1   : > { %4065 = vadd.xlane.f32.xlu0 %v4043_v57  ;;  %v10756_v57 = vpop.permute.xlu1 %1634  ;;  %15547 = vst [vmem:[#allocation84_spill] sm:$0xff] %v10769_v43 }
 0x2e2   : > { %15545 = vst [vmem:[#allocation82_spill] sm:$0xff] %v10756_v57  ;;  %15546 = vst [vmem:[#allocation83_spill] sm:$0xff] %v10765_v59  ;;  %v4037_v57 = vmul.f32 %v10765_v59, %v10765_v59  ;;  %v10784_v14 = vrot.slane %v10588_v54, %v5474_v49  ;;  %v10932_v59 = vld [vmem:[%s9533_s18 + $0x8] sm:$0xff] }
 0x2e4   : > { %4063 = vadd.xlane.f32.xlu1 %v4042_v61  ;;  %v10790_v25 = vadd.f32 %v10598_v15, %v10784_v14  ;;  %v10794_v45 = vadd.f32 %v10605_v40, %v10784_v14  ;;  %v10808_v15 = vadd.f32 %v10638_v19, %v10784_v14 }
 0x2e5   : > { %4061 = vadd.xlane.f32.xlu0 %v4041_v22  ;;  %v10776_v22 = vadd.f32 %v10772_v6, %v10591_v62  ;;  %v10786_v43 = vpop.permute.xlu1 %1644  ;;  %v10796_v62 = vpop.permute.xlu0 %1669 }
 0x2e6   : > { %15549 = vst [vmem:[#allocation86_spill] sm:$0xff] %v10786_v43  ;;  %15550 = vst [vmem:[#allocation87_spill] sm:$0xff] %v10790_v25  ;;  %v5506_v54 = vmul.f32 %v10790_v25, %v10790_v25  ;;  %v5507_v49 = vmul.f32 %v10794_v45, %v10794_v45 }
 0x2e7   : > { %15548 = vst [vmem:[#allocation85_spill] sm:$0xff] %v10776_v22  ;;  %v4038_v61 = vmul.f32 %v10776_v22, %v10776_v22  ;;  %15551 = vst [vmem:[#allocation88_spill] sm:$0xff] %v10794_v45 }
 0x2e8   : > { %4059 = vadd.xlane.f32.xlu1 %v4040_v18  ;;  %15552 = vst [vmem:[#allocation89_spill] sm:$0xff] %v10796_v62  ;;  %15554 = vst [vmem:[#allocation91_spill] sm:$0xff] %v10808_v15 }
 0x2e9   : > { %4057 = vadd.xlane.f32.xlu0 %v4039_v5  ;;  %v10800_v5 = vadd.f32 %v10616_v24, %v10784_v14  ;;  %v10810_v40 = vpop.permute.xlu1 %1778  ;;  %v10816_v24 = vadd.f32 %v10647_v60, %v10784_v14  ;;  %v10824_v19 = vpop.permute.xlu0 %1803 }
 0x2ea   : > { %15555 = vst [vmem:[#allocation92_spill] sm:$0xff] %v10810_v40  ;;  %15558 = vst [vmem:[#allocation95_spill] sm:$0xff] %v10824_v19 }
 0x2eb   : > { %15553 = vst [vmem:[#allocation90_spill] sm:$0xff] %v10800_v5  ;;  %v5504_v18 = vmul.f32 %v10800_v5, %v10800_v5  ;;  %15556 = vst [vmem:[#allocation93_spill] sm:$0xff] %v10816_v24  ;;  %v10830_v5 = vadd.f32 %v10676_v36, %v10784_v14  ;;  %v10846_v36 = vadd.f32 %v10699_v53, %v10784_v14 }
 0x2ec   : > { %4055 = vadd.xlane.f32.xlu1 %v4038_v61  ;;  %v10822_v61 = vadd.f32 %v10657_v7, %v10784_v14  ;;  %v10860_v53 = vadd.f32 %v10708_v47, %v10784_v14 }
 0x2ed   : > { %4053 = vadd.xlane.f32.xlu0 %v4037_v57  ;;  %v5505_v57 = vmul.f32 %v10808_v15, %v10808_v15  ;;  %15559 = vst [vmem:[#allocation96_spill] sm:$0xff] %v10830_v5  ;;  %v10838_v7 = vpop.permute.xlu1 %1788  ;;  %v10840_v15 = vpop.permute.xlu0 %1813  ;;  %15563 = vst [vmem:[#allocation100_spill] sm:$0xff] %v10846_v36 }
 0x2ee   : > { %15557 = vst [vmem:[#allocation94_spill] sm:$0xff] %v10822_v61  ;;  %v5503_v60 = vmul.f32 %v10822_v61, %v10822_v61  ;;  %15561 = vst [vmem:[#allocation98_spill] sm:$0xff] %v10838_v7 }
 0x2ef   : > { %15562 = vst [vmem:[#allocation99_spill] sm:$0xff] %v10840_v15  ;;  %15566 = vst [vmem:[#allocation103_spill] sm:$0xff] %v10860_v53 }
 0x2f0   : > { %5538 = vadd.xlane.f32.xlu1 %v5507_v49  ;;  %v10836_v49 = vadd.f32 %v10688_v12, %v10784_v14  ;;  %v5498_v12 = vmul.f32 %v10846_v36, %v10846_v36  ;;  %v5499_v36 = vmul.f32 %v10860_v53, %v10860_v53 }
 0x2f1   : > { %5536 = vadd.xlane.f32.xlu0 %v5506_v54  ;;  %v5502_v54 = vmul.f32 %v10816_v24, %v10816_v24  ;;  %v10850_v61 = vpop.permute.xlu1 %1659 }
 0x2f2   : > { %15560 = vst [vmem:[#allocation97_spill] sm:$0xff] %v10836_v49  ;;  %15564 = vst [vmem:[#allocation101_spill] sm:$0xff] %v10850_v61 }
 0x2f4   : > { %5534 = vadd.xlane.f32.xlu1 %v5505_v57  ;;  %v5501_v57 = vmul.f32 %v10836_v49, %v10836_v49 }
 0x2f5   : > { %5532 = vadd.xlane.f32.xlu0 %v5504_v18  ;;  %v5500_v18 = vmul.f32 %v10830_v5, %v10830_v5 }
 0x2f8   : > { %5530 = vadd.xlane.f32.xlu1 %v5503_v60  ;;  %v10864_v60 = vadd.f32 %v10719_v39, %v10784_v14  ;;  %v10879_v39 = vadd.f32 %v10730_v8, %v10784_v14  ;;  %v10893_v8 = vadd.f32 %v10750_v29, %v10784_v14 }
 0x2f9   : > { %5528 = vadd.xlane.f32.xlu0 %v5502_v54  ;;  %v10854_v54 = vpop.permute.xlu1 %1664 }
 0x2fa   : > { %15565 = vst [vmem:[#allocation102_spill] sm:$0xff] %v10854_v54  ;;  %15567 = vst [vmem:[#allocation104_spill] sm:$0xff] %v10864_v60 }
 0x2fb   : > { %15569 = vst [vmem:[#allocation106_spill] sm:$0xff] %v10879_v39  ;;  %15571 = vst [vmem:[#allocation108_spill] sm:$0xff] %v10893_v8 }
 0x2fc   : > { %5526 = vadd.xlane.f32.xlu1 %v5501_v57  ;;  %v5496_v57 = vmul.f32 %v10864_v60, %v10864_v60 }
 0x2fd   : > { %5524 = vadd.xlane.f32.xlu0 %v5500_v18  ;;  %v10872_v49 = vpop.permute.xlu1 %1798 }
 0x2fe   : > { %15568 = vst [vmem:[#allocation105_spill] sm:$0xff] %v10872_v49 }
 0x300   : > { %v2613_v24 = vpop.xlane.xlu0 %2612  ;;  %5522 = vadd.xlane.f32.xlu1 %v5499_v36 }
 0x301   : > { %5520 = vadd.xlane.f32.xlu0 %v5498_v12  ;;  %v10856_v45 = vmax.f32 %v2613_v24, 1e-24  ;;  %v10883_v24 = vadd.f32 %v10741_v21, %v10784_v14  ;;  %v10897_v21 = vadd.f32 %v10761_v35, %v10784_v14 }
 0x303   : > { %8365 = vrsqrt.f32 %v10856_v45  ;;  %15570 = vst [vmem:[#allocation107_spill] sm:$0xff] %v10883_v24  ;;  %v5494_v36 = vmul.f32 %v10883_v24, %v10883_v24  ;;  %15572 = vst [vmem:[#allocation109_spill] sm:$0xff] %v10897_v21  ;;  %v5492_v24 = vmul.f32 %v10897_v21, %v10897_v21  ;;  %vm2697_vm1 = vcmp.eq.f32.partialorder %v10856_v45, inf }
 0x304   : > { %v2607_v5 = vpop.xlane.xlu0 %2606  ;;  %vm2699_vm2 = vcmp.eq.f32.partialorder %v10856_v45, 0.0 }
 0x305   : > { %v10870_v12 = vmax.f32 %v2607_v5, 1e-24  ;;  %5516 = vadd.xlane.f32.xlu0 %v5496_v57  ;;  %v5497_v5 = vmul.f32 %v10879_v39, %v10879_v39  ;;  %v5495_v57 = vmul.f32 %v10893_v8, %v10893_v8  ;;  %v10906_v39 = vld [vmem:[%s9533_s18] sm:$0xff] }
 0x306   : > { %v2168_v29 = vand.u32 1, %v10906_v39 }
 0x307   : > { %8367 = vrsqrt.f32 %v10870_v12  ;;  %5518 = vadd.xlane.f32.xlu1 %v5497_v5  ;;  %v10910_v5 = vadd.f32 %v10772_v6, %v10784_v14  ;;  %vm2676_vm3 = vcmp.eq.f32.partialorder %v10870_v12, inf  ;;  %vm2678_vm5 = vcmp.eq.f32.partialorder %v10870_v12, 0.0 }
 0x308   : > { %v10915_v60 = vcvt.s32.f32 %v2168_v29 }
 0x309   : > { %v2603_v18 = vpop.xlane.xlu0 %2602  ;;  %5512 = vadd.xlane.f32.xlu0 %v5494_v36  ;;  %15574 = vst [vmem:[#allocation111_spill] sm:$0xff] %v10910_v5  ;;  %v5493_v35 = vmul.f32 %v10910_v5, %v10910_v5 }
 0x30a   : > { %v10875_v47 = vmax.f32 %v2603_v18, 1e-24  ;;  %v10899_v18 = vpop.permute.xlu1 %1808  ;;  %15575 = vst [vmem:[#allocation112_spill] sm:$0xff] %v10915_v60 }
 0x30b   : > { %15573 = vst [vmem:[#allocation110_spill] sm:$0xff] %v10899_v18  ;;  %5514 = vadd.xlane.f32.xlu1 %v5495_v57 }
 0x30c   : > { %8369 = vrsqrt.f32 %v10875_v47  ;;  %vm2662_vm4 = vcmp.eq.f32.partialorder %v10875_v47, inf  ;;  %vm2664_vm6 = vcmp.eq.f32.partialorder %v10875_v47, 0.0 }
 0x30d   : > { %v2599_v36 = vpop.xlane.xlu0 %2598  ;;  %5508 = vadd.xlane.f32.xlu0 %v5492_v24 }
 0x30e   : > { %v10917_v53 = vmax.f32 %v2599_v36, 1e-24  ;;  %v2700_v36 = vand.u32 2147483648, %v10856_v45 }
 0x30f   : > { %5510 = vadd.xlane.f32.xlu1 %v5493_v35 }
 0x310   : > { %v8366_v21 = vpop.eup %8365  ;;  %vm2648_vm11 = vcmp.eq.f32.partialorder %v10917_v53, inf  ;;  %vm2650_vm12 = vcmp.eq.f32.partialorder %v10917_v53, 0.0 }
 0x311   : > { %2345 = vadd.xlane.f32.xlu0 %v10915_v60  ;;  %v2696_v14 = vmul.f32 %v8366_v21, %v10856_v45  ;;  %v2679_v60 = vand.u32 2147483648, %v10870_v12 }
 0x313   : > { %v2698_v35 = vsel %vm2697_vm1, %v10856_v45, %v2696_v14 }
 0x314   : > { %v8368_v6 = vpop.eup %8367  ;;  %v2701_v45 = vsel %vm2699_vm2, %v2700_v36, %v2698_v35 }
 0x318   : > { %v2611_v8 = vpop.xlane.xlu1 %2610 }
 0x319   : > { %v2636_v25 = vmax.f32 %v2611_v8, 1e-24  ;;  %v8370_v29 = vpop.eup %8369  ;;  %v2675_v8 = vmul.f32 %v8368_v6, %v10870_v12  ;;  %v2169_v6 = vand.u32 1, %v10932_v59 }
 0x31a   : > { %v2661_v22 = vmul.f32 %v8370_v29, %v10875_v47  ;;  %v2665_v29 = vand.u32 2147483648, %v10875_v47 }
 0x31b   : > { %8371 = vrsqrt.f32 %v2636_v25  ;;  %v2677_v19 = vsel %vm2676_vm3, %v10870_v12, %v2675_v8  ;;  %v10945_v61 = vcvt.s32.f32 %v2169_v6  ;;  %vm2690_vm7 = vcmp.eq.f32.partialorder %v2636_v25, inf }
 0x31c   : > { %v2609_v24 = vpop.xlane.xlu1 %2608  ;;  %8373 = vrsqrt.f32 %v10917_v53  ;;  %v2663_v49 = vsel %vm2662_vm4, %v10875_v47, %v2661_v22  ;;  %v2680_v36 = vsel %vm2678_vm5, %v2679_v60, %v2677_v19  ;;  %v2693_v8 = vand.u32 2147483648, %v2636_v25 }
 0x31d   : > { %v2635_v57 = vmax.f32 %v2609_v24, 1e-24  ;;  %v10935_v24 = vld [vmem:[%s9533_s18 + $0x10] sm:$0xff]  ;;  %15576 = vst [vmem:[#allocation113_spill] sm:$0xff] %v10945_v61  ;;  %2347 = vadd.xlane.f32.xlu1 %v10945_v61  ;;  %v2666_v35 = vsel %vm2664_vm6, %v2665_v29, %v2663_v49  ;;  %vm2692_vm8 = vcmp.eq.f32.partialorder %v2636_v25, 0.0 }
 0x31e   : > { %v2170_v14 = vand.u32 1, %v10935_v24 }
 0x31f   : > { %8375 = vrsqrt.f32 %v2635_v57  ;;  %vm2683_vm9 = vcmp.eq.f32.partialorder %v2635_v57, inf  ;;  %v2686_v60 = vand.u32 2147483648, %v2635_v57  ;;  %vm2685_vm10 = vcmp.eq.f32.partialorder %v2635_v57, 0.0 }
 0x320   : > { %v2605_v21 = vpop.xlane.xlu1 %2604  ;;  %v10947_v15 = vcvt.s32.f32 %v2170_v14 }
 0x321   : > { %v10928_v5 = vmax.f32 %v2605_v21, 1e-24 }
 0x322   : > { %15577 = vst [vmem:[#allocation114_spill] sm:$0xff] %v10947_v15  ;;  %2349 = vadd.xlane.f32.xlu0 %v10947_v15  ;;  %v15580_v15 = vld [vmem:[#allocation15_spill] sm:$0xff] }
 0x323   : > { %8377 = vrsqrt.f32 %v10928_v5  ;;  %vm2669_vm13 = vcmp.eq.f32.partialorder %v10928_v5, inf  ;;  %vm2671_vm14 = vcmp.eq.f32.partialorder %v10928_v5, 0.0 }
 0x324   : > { %v2601_v21 = vpop.xlane.xlu1 %2600  ;;  %8379 = vtanh.f32 %v2701_v45 }
 0x325   : > { %v10951_v62 = vmax.f32 %v2601_v21, 1e-24 }
 0x327   : > { %8381 = vrsqrt.f32 %v10951_v62  ;;  %vm2655_vm15 = vcmp.eq.f32.partialorder %v10951_v62, inf  ;;  %vm2657_vm0 = vcmp.eq.f32.partialorder %v10951_v62, 0.0 }
 0x328   : > { %v8372_v12 = vpop.eup %8371  ;;  %8383 = vrcp.f32 %v2701_v45 }
 0x329   : > { %v8374_v6 = vpop.eup %8373  ;;  %v2689_v14 = vmul.f32 %v8372_v12, %v2636_v25  ;;  %8385 = vtanh.f32 %v2680_v36 }
 0x32a   : > { %8387 = vrcp.f32 %v2680_v36  ;;  %v2647_v21 = vmul.f32 %v8374_v6, %v10917_v53  ;;  %v2672_v36 = vand.u32 2147483648, %v10928_v5 }
 0x32b   : > { %v2691_v22 = vsel %vm2690_vm7, %v2636_v25, %v2689_v14  ;;  %8389 = vtanh.f32 %v2666_v35  ;;  %v2651_v25 = vand.u32 2147483648, %v10917_v53 }
 0x32c   : > { %v8376_v47 = vpop.eup %8375  ;;  %v2694_v19 = vsel %vm2692_vm8, %v2693_v8, %v2691_v22  ;;  %v2649_v12 = vsel %vm2648_vm11, %v10917_v53, %v2647_v21 }
 0x32d   : > { %8391 = vtanh.f32 %v2694_v19  ;;  %v2682_v61 = vmul.f32 %v8376_v47, %v2635_v57  ;;  %v2652_v14 = vsel %vm2650_vm12, %v2651_v25, %v2649_v12 }
 0x32e   : > { %8393 = vrcp.f32 %v2694_v19 }
 0x32f   : > { %v2684_v49 = vsel %vm2683_vm9, %v2635_v57, %v2682_v61  ;;  %8395 = vrcp.f32 %v2666_v35  ;;  %v10966_v61 = vld [vmem:[%s9533_s18 + $0x18] sm:$0xff]  ;;  %v10969_v57 = vld [vmem:[%s9533_s18 + $0x20] sm:$0xff] }
 0x330   : > { %v8378_v45 = vpop.eup %8377  ;;  %v2687_v29 = vsel %vm2685_vm10, %v2686_v60, %v2684_v49  ;;  %v2171_v22 = vand.u32 1, %v10966_v61  ;;  %v2172_v47 = vand.u32 1, %v10969_v57  ;;  %v2658_v60 = vand.u32 2147483648, %v10951_v62 }
 0x331   : > { %8397 = vtanh.f32 %v2687_v29  ;;  %v2668_v8 = vmul.f32 %v8378_v45, %v10928_v5  ;;  %v8380_v35 = vpop.eup %8379 }
 0x332   : > { %8399 = vrcp.f32 %v2687_v29  ;;  %v10978_v45 = vcvt.s32.f32 %v2171_v22 }
 0x333   : > { %v2670_v6 = vsel %vm2669_vm13, %v10928_v5, %v2668_v8  ;;  %v10980_v5 = vcvt.s32.f32 %v2172_v47 }
 0x334   : > { %v8382_v19 = vpop.eup %8381  ;;  %v2673_v53 = vsel %vm2671_vm14, %v2672_v36, %v2670_v6  ;;  %15578 = vst [vmem:[#allocation115_spill] sm:$0xff] %v10978_v45  ;;  %2351 = vadd.xlane.f32.xlu1 %v10978_v45  ;;  %v15582_v45 = vld [vmem:[#allocation17_spill] sm:$0xff] }
 0x335   : > { %v8384_v21 = vpop.eup %8383  ;;  %8401 = vtanh.f32 %v2673_v53  ;;  %v2654_v49 = vmul.f32 %v8382_v19, %v10951_v62  ;;  %15579 = vst [vmem:[#allocation116_spill] sm:$0xff] %v10980_v5  ;;  %2353 = vadd.xlane.f32.xlu0 %v10980_v5 }
 0x336   : > { %v8386_v25 = vpop.eup %8385  ;;  %8403 = vrcp.f32 %v2673_v53  ;;  %v2789_v6 = vmul.f32 %v8384_v21, %v8380_v35 }
 0x337   : > { %v8388_v29 = vpop.eup %8387  ;;  %v2656_v12 = vsel %vm2655_vm15, %v10951_v62, %v2654_v49  ;;  %8405 = vtanh.f32 %v2652_v14 }
 0x338   : > { %v8390_v36 = vpop.eup %8389  ;;  %v2659_v8 = vsel %vm2657_vm0, %v2658_v60, %v2656_v12  ;;  %8407 = vrcp.f32 %v2652_v14  ;;  %v10986_v18 = vmul.f32 %v2789_v6, %v15580_v15  ;;  %v2783_v62 = vmul.f32 %v8388_v29, %v8386_v25  ;;  %v15584_v60 = vld [vmem:[#allocation16_spill] sm:$0xff]  ;;  %v15586_v29 = vld [vmem:[#allocation19_spill] sm:$0xff] }
 0x339   : > { %8409 = vtanh.f32 %v2659_v8 }
 0x33a   : > { %v8392_v22 = vpop.eup %8391  ;;  %8411 = vrcp.f32 %v2659_v8  ;;  %15581 = vst [vmem:[#allocation15_spill] sm:$0xff] %v10986_v18  ;;  %v10996_v21 = vmul.f32 %v2783_v62, %v15584_v60  ;;  %v10999_v8 = vld [vmem:[%s9533_s18 + $0x28] sm:$0xff] }
 0x33b   : > { %v8394_v47 = vpop.eup %8393  ;;  %v2173_v15 = vand.u32 1, %v10999_v8 }
 0x33c   : > { %v8396_v19 = vpop.eup %8395  ;;  %v2787_v53 = vmul.f32 %v8394_v47, %v8392_v22  ;;  %15585 = vst [vmem:[#allocation16_spill] sm:$0xff] %v10996_v21  ;;  %v11002_v22 = vld [vmem:[%s9533_s18 + $0x30] sm:$0xff] }
 0x33d   : > { %v2779_v12 = vmul.f32 %v8396_v19, %v8390_v36  ;;  %v2174_v25 = vand.u32 1, %v11002_v22 }
 0x33e   : > { %v8398_v49 = vpop.eup %8397  ;;  %v10989_v54 = vmul.f32 %v2787_v53, %v15582_v45 }
 0x33f   : > { %v8400_v5 = vpop.eup %8399  ;;  %v11013_v36 = vcvt.s32.f32 %v2174_v25 }
 0x340   : > { %15583 = vst [vmem:[#allocation17_spill] sm:$0xff] %v10989_v54  ;;  %v10993_v35 = vpack.c.bf16 %v10986_v18, %v10989_v54  ;;  %v2785_v14 = vmul.f32 %v8400_v5, %v8398_v49  ;;  %v11011_v5 = vcvt.s32.f32 %v2173_v15  ;;  %v15588_v49 = vld [vmem:[#allocation18_spill] sm:$0xff] }
 0x341   : > { %v11020_v60 = vmul.f32 %v2779_v12, %v15588_v49  ;;  %2357 = vadd.xlane.f32.xlu0 %v11013_v36 }
 0x342   : > { %v8402_v45 = vpop.eup %8401  ;;  %7782 = vmatprep.subr.bf16.mxu1 %v10993_v35  ;;  %v11008_v6 = vmul.f32 %v2785_v14, %v15586_v29  ;;  %2355 = vadd.xlane.f32.xlu1 %v11011_v5 }
 0x343   : > { %v8404_v47 = vpop.eup %8403  ;;  %7783 = vmatpush3.bf16.xpose.msra.mxu1 %v10993_v35  ;;  %15589 = vst [vmem:[#allocation18_spill] sm:$0xff] %v11020_v60 }
 0x344   : > { %15587 = vst [vmem:[#allocation19_spill] sm:$0xff] %v11008_v6  ;;  %v8406_v19 = vpop.eup %8405  ;;  %v11017_v53 = vpack.c.bf16 %v11008_v6, %v10996_v21  ;;  %v2781_v62 = vmul.f32 %v8404_v47, %v8402_v45  ;;  %v15591_v47 = vld [vmem:[#allocation20_spill] sm:$0xff] }
 0x345   : > { %v8408_v18 = vpop.eup %8407 }
 0x346   : > { %v8410_v14 = vpop.eup %8409  ;;  %7784 = vmatprep.subr.bf16.mxu1 %v11017_v53  ;;  %v11026_v15 = vmul.f32 %v2781_v62, %v10345_v10  ;;  %v2775_v12 = vmul.f32 %v8408_v18, %v8406_v19  ;;  %v11046_v62 = vld [vmem:[%s9533_s18 + $0x38] sm:$0xff]  ;;  %v11049_v18 = vld [vmem:[%s9533_s18 + $0x40] sm:$0xff] }
 0x347   : > { %v8412_v25 = vpop.eup %8411  ;;  %v2175_v19 = vand.u32 1, %v11046_v62 }
 0x348   : > { %15590 = vst [vmem:[#allocation117_spill] sm:$0xff] %v11026_v15  ;;  %v11030_v45 = vpack.c.bf16 %v11026_v15, %v11020_v60  ;;  %v2777_v29 = vmul.f32 %v8412_v25, %v8410_v14  ;;  %v11035_v49 = vmul.f32 %v2775_v12, %v15591_v47  ;;  %v2176_v14 = vand.u32 1, %v11049_v18  ;;  %v859_v12 = vld [vmem:[%s9533_s18 + $0x48] sm:$0xff] }
 0x349   : > { %v2177_v47 = vand.u32 1, %v859_v12 }
 0x34a   : > { %15592 = vst [vmem:[#allocation20_spill] sm:$0xff] %v11035_v49  ;;  %v11038_v6 = vmul.f32 %v2777_v29, %v10372_v9  ;;  %v11054_v9 = vcvt.s32.f32 %v2175_v19  ;;  %v11056_v25 = vcvt.s32.f32 %v2176_v14  ;;  %v860_v29 = vld [vmem:[%s9533_s18 + $0x50] sm:$0xff] }
 0x34b   : > { %7785 = vmatpush3.bf16.xpose.msra.mxu1 %v11017_v53  ;;  %v2178_v19 = vand.u32 1, %v860_v29  ;;  %v11069_v14 = vcvt.s32.f32 %v2177_v47  ;;  %v863_v29 = vld [vmem:[%s9533_s18 + $0x68] sm:$0xff]  ;;  %v864_v47 = vld [vmem:[%s9533_s18 + $0x70] sm:$0xff] }
 0x34c   : > { %7786 = vmatprep.subr.bf16.mxu1 %v11030_v45  ;;  %15593 = vst [vmem:[#allocation118_spill] sm:$0xff] %v11038_v6  ;;  %v11042_v10 = vpack.c.bf16 %v11038_v6, %v11035_v49  ;;  %15594 = vst [vmem:[#allocation119_spill] sm:$0xff] %v11056_v25  ;;  %2359 = vadd.xlane.f32.xlu1 %v11054_v9 }
 0x34d   : > { %2361 = vadd.xlane.f32.xlu0 %v11056_v25  ;;  %15595 = vst [vmem:[#allocation120_spill] sm:$0xff] %v11069_v14  ;;  %v11071_v6 = vcvt.s32.f32 %v2178_v19  ;;  %v2182_v19 = vand.u32 1, %v864_v47  ;;  %v3609_v47 = vshra.s32 %v10932_v59, 1 }
 0x34f   : > { %15596 = vst [vmem:[#allocation121_spill] sm:$0xff] %v11071_v6 }
 0x350   : > { %2363 = vadd.xlane.f32.xlu1 %v11069_v14 }
 0x351   : > { %2365 = vadd.xlane.f32.xlu0 %v11071_v6 }
 0x353   : > { %7787 = vmatpush3.bf16.xpose.msra.mxu1 %v11030_v45 }
 0x354   : > { %7788 = vmatprep.subr.bf16.mxu1 %v11042_v10 }
 0x35b   : > { %7789 = vmatpush3.bf16.xpose.msra.mxu1 %v11042_v10 }
 0x35c   : > { %7838 = vmatprep.subr.bf16.mxu1 %v10497_v34 }
 0x362   : > { %7791 = vmatmul.mubr.bf16.vlgmr.msra.gmra.mxu1 %v10506_v16  ;;  %v861_v16 = vld [vmem:[%s9533_s18 + $0x58] sm:$0xff] }
 0x363   : > { %7839 = vmatpush3.bf16.msra.mxu1 %v10497_v34  ;;  %7794 = vmatprep.mubr.bf16.mxu1 %v10515_v37  ;;  %v862_v34 = vld [vmem:[%s9533_s18 + $0x60] sm:$0xff]  ;;  %v2179_v37 = vand.u32 1, %v861_v16  ;;  %v2181_v16 = vand.u32 1, %v863_v29 }
 0x364   : > { %7840 = vmatprep.subr.bf16.mxu1 %v10522_v17  ;;  %v2180_v49 = vand.u32 1, %v862_v34 }
 0x365   : > { %v11091_v34 = vcvt.s32.f32 %v2181_v16  ;;  %v11114_v16 = vand.u32 1, %v3609_v47  ;;  %v3614_v47 = vshra.s32 %v11002_v22, 1 }
 0x366   : > { %v11082_v12 = vcvt.s32.f32 %v2180_v49  ;;  %v865_v49 = vld [vmem:[%s9533_s18 + $0x78] sm:$0xff] }
 0x367   : > { %7841 = vmatpush3.bf16.msra.mxu1 %v10522_v17  ;;  %v11080_v17 = vcvt.s32.f32 %v2179_v37  ;;  %15599 = vst [vmem:[#allocation124_spill] sm:$0xff] %v11091_v34  ;;  %v11093_v37 = vcvt.s32.f32 %v2182_v19  ;;  %15603 = vst [vmem:[#allocation128_spill] sm:$0xff] %v11114_v16  ;;  %v15200_v19 = vcvt.s32.f32 %v11114_v16  ;;  %v3616_v16 = vshra.s32 %v11049_v18, 1 }
 0x368   : > { %7842 = vmatprep.subr.bf16.mxu1 %v10570_v33  ;;  %15598 = vst [vmem:[#allocation123_spill] sm:$0xff] %v11082_v12  ;;  %2369 = vadd.xlane.f32.xlu0 %v11082_v12 }
 0x369   : > { %15597 = vst [vmem:[#allocation122_spill] sm:$0xff] %v11080_v17  ;;  %2367 = vadd.xlane.f32.xlu1 %v11080_v17  ;;  %15600 = vst [vmem:[#allocation125_spill] sm:$0xff] %v11093_v37 }
 0x36a   : > { %7795 = vmatmul.mubr.bf16.gmra.mxu1 %v10534_v52 }
 0x36b   : > { %7843 = vmatpush3.bf16.msra.mxu1 %v10570_v33  ;;  %7798 = vmatprep.mubr.bf16.mxu1 %v10538_v38  ;;  %v3608_v33 = vshra.s32 %v10906_v39, 1  ;;  %v2183_v38 = vand.u32 1, %v865_v49  ;;  %v3610_v39 = vshra.s32 %v10935_v24, 1  ;;  %v3611_v24 = vshra.s32 %v10966_v61, 1 }
 0x36c   : > { %7844 = vmatprep.subr.bf16.mxu1 %v10583_v20  ;;  %2373 = vadd.xlane.f32.xlu0 %v11093_v37 }
 0x36d   : > { %2371 = vadd.xlane.f32.xlu1 %v11091_v34  ;;  %v11100_v52 = vand.u32 1, %v3608_v33  ;;  %v11103_v29 = vcvt.s32.f32 %v2183_v38  ;;  %v11116_v38 = vand.u32 1, %v3610_v39  ;;  %v11128_v33 = vand.u32 1, %v3611_v24 }
 0x36f   : > { %7845 = vmatpush3.bf16.msra.mxu1 %v10583_v20  ;;  %15601 = vst [vmem:[#allocation126_spill] sm:$0xff] %v11100_v52  ;;  %15602 = vst [vmem:[#allocation127_spill] sm:$0xff] %v11103_v29  ;;  %v15201_v20 = vcvt.s32.f32 %v11100_v52  ;;  %v15202_v59 = vcvt.s32.f32 %v11116_v38  ;;  %v15204_v61 = vcvt.s32.f32 %v11128_v33 }
 0x370   : > { %7846 = vmatprep.subr.bf16.mxu1 %v10993_v35  ;;  %15604 = vst [vmem:[#allocation129_spill] sm:$0xff] %v11116_v38  ;;  %15605 = vst [vmem:[#allocation130_spill] sm:$0xff] %v11128_v33 }
 0x371   : > { %2375 = vadd.xlane.f32.xlu1 %v11103_v29  ;;  %3800 = vadd.xlane.f32.xlu0 %v15201_v20 }
 0x372   : > { %7799 = vmatmul.mubr.bf16.gmra.mxu1 %v10558_v2 }
 0x373   : > { %7847 = vmatpush3.bf16.msra.mxu1 %v10993_v35  ;;  %7802 = vmatprep.mubr.bf16.mxu1 %v10564_v4  ;;  %v3612_v35 = vshra.s32 %v10969_v57, 1 }
 0x374   : > { %7848 = vmatprep.subr.bf16.mxu1 %v11017_v53 }
 0x375   : > { %3802 = vadd.xlane.f32.xlu1 %v15200_v19  ;;  %3804 = vadd.xlane.f32.xlu0 %v15202_v59  ;;  %v11130_v49 = vand.u32 1, %v3612_v35  ;;  %v11145_v35 = vand.u32 1, %v3614_v47  ;;  %v3615_v59 = vshra.s32 %v11046_v62, 1  ;;  %v11161_v62 = vand.u32 1, %v3616_v16 }
 0x377   : > { %7849 = vmatpush3.bf16.msra.mxu1 %v11017_v53  ;;  %15606 = vst [vmem:[#allocation131_spill] sm:$0xff] %v11130_v49  ;;  %v15206_v57 = vcvt.s32.f32 %v11130_v49  ;;  %v3613_v53 = vshra.s32 %v10999_v8, 1  ;;  %15608 = vst [vmem:[#allocation133_spill] sm:$0xff] %v11145_v35  ;;  %v11159_v52 = vand.u32 1, %v3615_v59 }
 0x378   : > { %7850 = vmatprep.subr.bf16.mxu1 %v11030_v45  ;;  %15611 = vst [vmem:[#allocation135_spill] sm:$0xff] %v11161_v62 }
 0x379   : > { %3806 = vadd.xlane.f32.xlu1 %v15204_v61  ;;  %3808 = vadd.xlane.f32.xlu0 %v15206_v57  ;;  %v11143_v24 = vand.u32 1, %v3613_v53  ;;  %v15609_v57 = vld [vmem:[#allocation22_spill] sm:$0xff]  ;;  %15610 = vst [vmem:[#allocation134_spill] sm:$0xff] %v11159_v52  ;;  %v15223_v15 = vcvt.s32.f32 %v11159_v52 }
 0x37a   : > { %7803 = vmatmul.mubr.bf16.gmra.mxu1 %v10622_v51 }
 0x37b   : > { %7851 = vmatpush3.bf16.msra.mxu1 %v11030_v45  ;;  %15607 = vst [vmem:[#allocation132_spill] sm:$0xff] %v11143_v24  ;;  %v15217_v22 = vcvt.s32.f32 %v11143_v24  ;;  %v15218_v45 = vcvt.s32.f32 %v11145_v35 }
 0x37c   : > { %7852 = vmatprep.subr.bf16.mxu1 %v11042_v10 }
 0x37d   : > { %v7696_v39 = vpop.f32.mrf.mxu0  ;;  %3810 = vadd.xlane.f32.xlu1 %v15217_v22  ;;  %3812 = vadd.xlane.f32.xlu0 %v15218_v45  ;;  %v15224_v22 = vcvt.s32.f32 %v11161_v62 }
 0x37e   : > { %v1354_v19 = vmul.f32 2.0, %v7696_v39 }
 0x37f   : > { %v1168_v20 = vpop.f32.mrf.mxu0  ;;  %v7728_v8 = vpop.f32.mrf.mxu1  ;;  %7853 = vmatpush3.bf16.msra.mxu1 %v11042_v10 }
 0x380   : > { %v1370_v61 = vadd.f32 1.0, %v1354_v19  ;;  %v1352_v49 = vmul.f32 2.0, %v1168_v20  ;;  %v1482_v53 = vmul.f32 %v7728_v8, %v15609_v57  ;;  %v15612_v19 = vld [vmem:[#allocation23_spill] sm:$0xff]  ;;  %v1818_v29 = vmul.f32 %v7728_v8, %v10451_v55 }
 0x381   : > { %v11153_v33 = vpop.f32.mrf.mxu0  ;;  %v1289_v47 = vpop.f32.mrf.mxu1  ;;  %3814 = vadd.xlane.f32.xlu1 %v15223_v15  ;;  %3816 = vadd.xlane.f32.xlu0 %v15224_v22  ;;  %v15624_v55 = vld [vmem:[#allocation79_spill] sm:$0xff] }
 0x382   : > { %v1368_v18 = vadd.f32 1.0, %v1352_v49  ;;  %v11163_v38 = vadd.f32 %v7728_v8, %v1370_v61  ;;  %v1498_v10 = vadd.f32 %v1482_v53, %v1370_v61  ;;  %v1480_v51 = vmul.f32 %v15612_v19, %v1289_v47 }
 0x383   : > { %v1171_v4 = vpop.f32.mrf.mxu0  ;;  %v11166_v2 = vpop.f32.mrf.mxu1  ;;  %v1355_v59 = vmul.f32 2.0, %v11153_v33 }
 0x384   : > { %8413 = vrcp.f32 %v1498_v10  ;;  %v1578_v45 = vmul.f32 2.0, %v11163_v38  ;;  %v11172_v16 = vadd.f32 %v1368_v18, %v1289_v47  ;;  %v1496_v49 = vadd.f32 %v1480_v51, %v1368_v18 }
 0x385   : > { %v1353_v24 = vmul.f32 2.0, %v1171_v4  ;;  %v1546_v61 = vmul.f32 %v11163_v38, %v11163_v38  ;;  %v11181_v10 = vpop.f32.mrf.mxu0  ;;  %v11183_v35 = vpop.f32.mrf.mxu1  ;;  %v1371_v21 = vadd.f32 1.0, %v1355_v59  ;;  %v1483_v52 = vmul.f32 %v11166_v2, %v10310_v3 }
 0x386   : > { %v1674_v53 = vmul.f32 %v10383_v0, %v1578_v45  ;;  %8415 = vrcp.f32 %v1496_v49  ;;  %v1576_v60 = vmul.f32 2.0, %v11172_v16  ;;  %v1544_v15 = vmul.f32 %v11172_v16, %v11172_v16 }
 0x387   : > { %v1369_v51 = vadd.f32 1.0, %v1353_v24  ;;  %v1562_v45 = vmul.f32 %v1546_v61, %v15609_v57  ;;  %v1184_v0 = vpop.f32.mrf.mxu0  ;;  %v11195_v49 = vpop.f32.mrf.mxu1  ;;  %v1499_v12 = vadd.f32 %v1483_v52, %v1371_v21 }
 0x388   : > { %v1690_v18 = vmul.f32 %v7696_v39, %v1674_v53  ;;  %v1672_v22 = vmul.f32 %v10337_v26, %v1576_v60  ;;  %v15613_v39 = vld [vmem:[#allocation21_spill] sm:$0xff]  ;;  %v11200_v53 = vadd.f32 %v11166_v2, %v1371_v21  ;;  %v1358_v60 = vmul.f32 2.0, %v11181_v10 }
 0x389   : > { %v11190_v62 = vadd.f32 %v1369_v51, %v11183_v35  ;;  %v1481_v24 = vmul.f32 %v15613_v39, %v11183_v35  ;;  %v1560_v61 = vmul.f32 %v1544_v15, %v15612_v19  ;;  %v1356_v34 = vmul.f32 2.0, %v1184_v0  ;;  %v11206_v37 = vpop.f32.mrf.mxu1 }
 0x38a   : > { %v1688_v54 = vmul.f32 %v1672_v22, %v1168_v20  ;;  %v1706_v59 = vadd.f32 %v1690_v18, %v1562_v45  ;;  %v11209_v45 = vpop.f32.mrf.mxu0  ;;  %v1579_v17 = vmul.f32 2.0, %v11200_v53  ;;  %v1374_v25 = vadd.f32 1.0, %v1358_v60 }
 0x38b   : > { %v1577_v26 = vmul.f32 2.0, %v11190_v62  ;;  %v1497_v57 = vadd.f32 %v1481_v24, %v1369_v51  ;;  %v1372_v18 = vadd.f32 1.0, %v1356_v34  ;;  %v1816_v15 = vmul.f32 %v10434_v41, %v1289_v47 }
 0x38c   : > { %v1704_v20 = vadd.f32 %v1688_v54, %v1560_v61  ;;  %v1834_v14 = vadd.f32 %v1818_v29, %v1706_v59  ;;  %v1545_v52 = vmul.f32 %v11190_v62, %v11190_v62  ;;  %v1486_v34 = vmul.f32 %v11195_v49, %v10420_v42 }
 0x38d   : > { %8417 = vrcp.f32 %v1497_v57  ;;  %v1673_v22 = vmul.f32 %v10361_v13, %v1577_v26  ;;  %v11218_v21 = vadd.f32 %v1372_v18, %v11206_v37  ;;  %v1484_v26 = vmul.f32 %v10466_v30, %v11206_v37 }
 0x38e   : > { %8419 = vrcp.f32 %v1499_v12  ;;  %v1359_v29 = vmul.f32 2.0, %v11209_v45  ;;  %v1832_v57 = vadd.f32 %v1816_v15, %v1704_v20  ;;  %v1675_v59 = vmul.f32 %v10413_v28, %v1579_v17  ;;  %v11234_v12 = vpop.f32.mrf.mxu0  ;;  %v11240_v15 = vpop.f32.mrf.mxu1 }
 0x38f   : > { %v1689_v8 = vmul.f32 %v1673_v22, %v1171_v4  ;;  %v1500_v47 = vadd.f32 %v1484_v26, %v1372_v18  ;;  %v11231_v60 = vadd.f32 %v11195_v49, %v1374_v25  ;;  %v1561_v13 = vmul.f32 %v1545_v52, %v15613_v39 }
 0x390   : > { %v1547_v20 = vmul.f32 %v11200_v53, %v11200_v53  ;;  %v1502_v22 = vadd.f32 %v1486_v34, %v1374_v25  ;;  %v1375_v18 = vadd.f32 1.0, %v1359_v29  ;;  %v1691_v28 = vmul.f32 %v11153_v33, %v1675_v59 }
 0x391   : > { %v11212_v6 = vpop.eup %8413  ;;  %8421 = vrcp.f32 %v1500_v47  ;;  %v1705_v17 = vadd.f32 %v1689_v8, %v1561_v13  ;;  %v1817_v47 = vmul.f32 %v10329_v63, %v11183_v35  ;;  %v1548_v25 = vmul.f32 %v11218_v21, %v11218_v21  ;;  %v11264_v63 = vpop.f32.mrf.mxu1 }
 0x392   : > { %v1850_v54 = vmul.f32 %v11212_v6, %v1834_v14  ;;  %v1580_v14 = vmul.f32 2.0, %v11218_v21  ;;  %v1487_v34 = vmul.f32 %v11240_v15, %v10485_v27  ;;  %v1563_v29 = vmul.f32 %v1547_v20, %v10310_v3 }
 0x393   : > { %v11226_v51 = vpop.eup %8415  ;;  %8423 = vrcp.f32 %v1502_v22  ;;  %v11257_v33 = vadd.f32 %v11240_v15, %v1375_v18  ;;  %v1833_v8 = vadd.f32 %v1817_v47, %v1705_v17  ;;  %v1564_v20 = vmul.f32 %v1548_v25, %v10466_v30 }
 0x394   : > { %v1866_v24 = vmul.f32 %v11212_v6, %v1850_v54  ;;  %v1848_v61 = vmul.f32 %v11226_v51, %v1832_v57  ;;  %v1676_v26 = vmul.f32 %v10541_v1, %v1580_v14  ;;  %v1357_v54 = vmul.f32 2.0, %v11234_v12  ;;  %v11262_v1 = vpop.f32.mrf.mxu0 }
 0x395   : > { %v1582_v57 = vmul.f32 2.0, %v11231_v60  ;;  %v1707_v35 = vadd.f32 %v1691_v28, %v1563_v29  ;;  %v1503_v22 = vadd.f32 %v1487_v34, %v1375_v18  ;;  %v1550_v28 = vmul.f32 %v11231_v60, %v11231_v60 }
 0x396   : > { %v1882_v4 = vmax.f32 %v1866_v24, 1e-24  ;;  %v1864_v52 = vmul.f32 %v11226_v51, %v1848_v61  ;;  %v1692_v24 = vmul.f32 %v1676_v26, %v1184_v0  ;;  %v1373_v59 = vadd.f32 1.0, %v1357_v54 }
 0x397   : > { %v1678_v61 = vmul.f32 %v10566_v58, %v1582_v57  ;;  %v1819_v0 = vmul.f32 %v11166_v2, %v10363_v56  ;;  %v1583_v17 = vmul.f32 2.0, %v11257_v33  ;;  %v1362_v57 = vmul.f32 2.0, %v11262_v1 }
 0x398   : > { %v11253_v13 = vmin.f32 %v1882_v4, 0.999998  ;;  %v1880_v4 = vmax.f32 %v1864_v52, 1e-24  ;;  %v1708_v54 = vadd.f32 %v1692_v24, %v1564_v20  ;;  %v11278_v52 = vadd.f32 %v1373_v59, %v11264_v63 }
 0x399   : > { %v1485_v18 = vmul.f32 %v10395_v32, %v11264_v63  ;;  %v1835_v47 = vadd.f32 %v1819_v0, %v1707_v35  ;;  %v1694_v25 = vmul.f32 %v11181_v10, %v1678_v61  ;;  %v1820_v29 = vmul.f32 %v10612_v50, %v11206_v37  ;;  %v11294_v61 = vpop.f32.mrf.mxu0 }
 0x39a   : > { %v11259_v14 = vpop.eup %8417  ;;  %8425 = vrsqrt.f32 %v11253_v13  ;;  %v11283_v2 = vmin.f32 %v1880_v4, 0.999998  ;;  %v1566_v20 = vmul.f32 %v1550_v28, %v10420_v42  ;;  %v1679_v58 = vmul.f32 %v10492_v46, %v1583_v17  ;;  %v11298_v4 = vpop.f32.mrf.mxu1 }
 0x39b   : > { %v1849_v41 = vmul.f32 %v11259_v14, %v1833_v8  ;;  %v11274_v26 = vpop.eup %8419  ;;  %8427 = vrcp.f32 %v1503_v22  ;;  %v1501_v30 = vadd.f32 %v1485_v18, %v1373_v59  ;;  %v1836_v35 = vadd.f32 %v1820_v29, %v1708_v54 }
 0x39c   : > { %v1851_v24 = vmul.f32 %v11274_v26, %v1835_v47  ;;  %v1378_v0 = vadd.f32 1.0, %v1362_v57  ;;  %v1581_v10 = vmul.f32 2.0, %v11278_v52  ;;  %v1551_v37 = vmul.f32 %v11257_v33, %v11257_v33 }
 0x39d   : > { %v1865_v34 = vmul.f32 %v11259_v14, %v1849_v41  ;;  %v1710_v41 = vadd.f32 %v1694_v25, %v1566_v20  ;;  %8429 = vrsqrt.f32 %v11283_v2  ;;  %v1822_v28 = vmul.f32 %v11195_v49, %v10664_v44 }
 0x39e   : > { %v11288_v8 = vpop.eup %8421  ;;  %v1867_v17 = vmul.f32 %v11274_v26, %v1851_v24  ;;  %v1695_v54 = vmul.f32 %v11209_v45, %v1679_v58  ;;  %8431 = vrcp.f32 %v1501_v30  ;;  %v1360_v57 = vmul.f32 2.0, %v11294_v61  ;;  %v11321_v45 = vpop.f32.mrf.mxu0 }
 0x39f   : > { %v1881_v22 = vmax.f32 %v1865_v34, 1e-24  ;;  %v1852_v59 = vmul.f32 %v11288_v8, %v1836_v35  ;;  %v1677_v47 = vmul.f32 %v10473_v23, %v1581_v10  ;;  %v11311_v25 = vadd.f32 %v11298_v4, %v1378_v0  ;;  %v11323_v24 = vpop.f32.mrf.mxu1 }
 0x3a0   : > { %v11307_v18 = vpop.eup %8423  ;;  %v1490_v34 = vmul.f32 %v11298_v4, %v10458_v31  ;;  %v1838_v49 = vadd.f32 %v1822_v28, %v1710_v41  ;;  %v1567_v29 = vmul.f32 %v1551_v37, %v10485_v27  ;;  %v1549_v30 = vmul.f32 %v11278_v52, %v11278_v52 }
 0x3a1   : > { %15614 = vst [vmem:[#allocation136_spill] sm:$0xff] %v11311_v25  ;;  %v11316_v20 = vmin.f32 %v1881_v22, 0.999998  ;;  %v1868_v58 = vmul.f32 %v11288_v8, %v1852_v59  ;;  %v1883_v35 = vmax.f32 %v1867_v17, 1e-24  ;;  %v1376_v50 = vadd.f32 1.0, %v1360_v57 }
 0x3a2   : > { %v1854_v10 = vmul.f32 %v11307_v18, %v1838_v49  ;;  %v1711_v23 = vadd.f32 %v1695_v54, %v1567_v29  ;;  %v1693_v41 = vmul.f32 %v1677_v47, %v11234_v12  ;;  %v1506_v37 = vadd.f32 %v1490_v34, %v1378_v0 }
 0x3a3   : > { %v1586_v22 = vmul.f32 2.0, %v11311_v25  ;;  %v1823_v28 = vmul.f32 %v11240_v15, %v10531_v48  ;;  %v1363_v59 = vmul.f32 2.0, %v11321_v45  ;;  %v1488_v27 = vmul.f32 %v10504_v11, %v11323_v24 }
 0x3a4   : > { %8433 = vrsqrt.f32 %v11316_v20  ;;  %v1884_v17 = vmax.f32 %v1868_v58, 1e-24  ;;  %v1565_v54 = vmul.f32 %v1549_v30, %v10395_v32  ;;  %v11337_v49 = vmin.f32 %v1883_v35, 0.999998  ;;  %v15616_v35 = vld [vmem:[#allocation46_spill] sm:$0xff] }
 0x3a5   : > { %v1870_v12 = vmul.f32 %v11307_v18, %v1854_v10  ;;  %v1839_v0 = vadd.f32 %v1823_v28, %v1711_v23  ;;  %v11341_v47 = vadd.f32 %v1376_v50, %v11323_v24  ;;  %8435 = vrcp.f32 %v1506_v37  ;;  %v11350_v10 = vpop.f32.mrf.mxu1 }
 0x3a6   : > { %v1709_v15 = vadd.f32 %v1693_v41, %v1565_v54  ;;  %v1682_v34 = vmul.f32 %v10786_v43, %v1586_v22  ;;  %v1379_v48 = vadd.f32 1.0, %v1363_v59  ;;  %v1504_v58 = vadd.f32 %v1488_v27, %v1376_v50  ;;  %v11362_v59 = vpop.f32.mrf.mxu0  ;;  %v15618_v54 = vld [vmem:[#allocation47_spill] sm:$0xff] }
 0x3a7   : > { %v8426_v46 = vpop.eup %8425  ;;  %15615 = vst [vmem:[#allocation137_spill] sm:$0xff] %v11341_v47  ;;  %v11345_v44 = vmin.f32 %v1884_v17, 0.999998  ;;  %v1821_v32 = vmul.f32 %v15616_v35, %v11264_v63  ;;  %8437 = vrsqrt.f32 %v11337_v49  ;;  %v1886_v41 = vmax.f32 %v1870_v12, 1e-24 }
 0x3a8   : > { %v11335_v57 = vpop.eup %8427  ;;  %v1927_v29 = vmul.f32 %v8426_v46, %v11253_v13  ;;  %vm1928_vm1 = vcmp.eq.f32.partialorder %v11253_v13, inf  ;;  %v1584_v37 = vmul.f32 2.0, %v11341_v47  ;;  %v1554_v50 = vmul.f32 %v11311_v25, %v11311_v25 }
 0x3a9   : > { %v1855_v30 = vmul.f32 %v11335_v57, %v1839_v0  ;;  %v1837_v27 = vadd.f32 %v1821_v32, %v1709_v15  ;;  %v1698_v22 = vmul.f32 %v11262_v1, %v1682_v34  ;;  %v1931_v28 = vand.u32 2147483648, %v11253_v13 }
 0x3aa   : > { %v8430_v23 = vpop.eup %8429  ;;  %v1929_v63 = vsel %vm1928_vm1, %v11253_v13, %v1927_v29  ;;  %8439 = vrcp.f32 %v1504_v58  ;;  %v11365_v17 = vadd.f32 %v11350_v10, %v1379_v48  ;;  %v1491_v12 = vmul.f32 %v11350_v10, %v15618_v54  ;;  %v15619_v29 = vld [vmem:[#allocation82_spill] sm:$0xff] }
 0x3ab   : > { %v11355_v46 = vpop.eup %8431  ;;  %8441 = vrsqrt.f32 %v11345_v44  ;;  %v1871_v32 = vmul.f32 %v11335_v57, %v1855_v30  ;;  %v1913_v0 = vmul.f32 %v8430_v23, %v11283_v2  ;;  %vm1930_vm2 = vcmp.eq.f32.partialorder %v11253_v13, 0.0 }
 0x3ac   : > { %15617 = vst [vmem:[#allocation138_spill] sm:$0xff] %v11365_v17  ;;  %v11373_v1 = vmin.f32 %v1886_v41, 0.999998  ;;  %v1853_v15 = vmul.f32 %v11355_v46, %v1837_v27  ;;  %v1932_v34 = vsel %vm1930_vm2, %v1931_v28, %v1929_v63  ;;  %v1680_v58 = vmul.f32 %v15619_v29, %v1584_v37 }
 0x3ad   : > { %v1570_v43 = vmul.f32 %v1554_v50, %v10458_v31  ;;  %v1361_v35 = vmul.f32 2.0, %v11362_v59  ;;  %v1507_v42 = vadd.f32 %v1491_v12, %v1379_v48  ;;  %vm1914_vm3 = vcmp.eq.f32.partialorder %v11283_v2, inf }
 0x3ae   : > { %vm1916_vm4 = vcmp.eq.f32.partialorder %v11283_v2, 0.0  ;;  %v1552_v30 = vmul.f32 %v11341_v47, %v11341_v47  ;;  %v1587_v13 = vmul.f32 2.0, %v11365_v17  ;;  %v1887_v23 = vmax.f32 %v1871_v32, 1e-24  ;;  %v11392_v32 = vpop.f32.mrf.mxu0 }
 0x3af   : > { %v1915_v41 = vsel %vm1914_vm3, %v11283_v2, %v1913_v0  ;;  %v1714_v27 = vadd.f32 %v1698_v22, %v1570_v43  ;;  %v2042_v63 = vsub.f32 1.0, %v1932_v34  ;;  %8443 = vrsqrt.f32 %v11373_v1 }
 0x3b0   : > { %v1917_v50 = vand.u32 2147483648, %v11283_v2  ;;  %v1869_v48 = vmul.f32 %v11355_v46, %v1853_v15  ;;  %v1696_v28 = vmul.f32 %v1680_v58, %v11294_v61  ;;  %v1826_v12 = vmul.f32 %v11298_v4, %v10838_v7  ;;  %v15620_v15 = vld [vmem:[#allocation69_spill] sm:$0xff]  ;;  %v11407_v7 = vpop.f32.mrf.mxu1 }
 0x3b1   : > { %v8434_v37 = vpop.eup %8433  ;;  %vm1921_vm5 = vcmp.eq.f32.partialorder %v11316_v20, inf  ;;  %v1377_v29 = vadd.f32 1.0, %v1361_v35  ;;  %8445 = vrcp.f32 %v1507_v42  ;;  %vm1923_vm6 = vcmp.eq.f32.partialorder %v11316_v20, 0.0 }
 0x3b2   : > { %v11394_v43 = vpop.eup %8435  ;;  %v11398_v22 = vsel %vm1916_vm4, %v1917_v50, %v1915_v41  ;;  %v1924_v0 = vand.u32 2147483648, %v11316_v20  ;;  %v1568_v61 = vmul.f32 %v1552_v30, %v10504_v11  ;;  %v1683_v4 = vmul.f32 %v15620_v15, %v1587_v13  ;;  %v11429_v11 = vpop.f32.mrf.mxu1 }
 0x3b3   : > { %v11404_v58 = vmin.f32 %v1887_v23, 0.999998  ;;  %v1842_v35 = vadd.f32 %v1826_v12, %v1714_v27  ;;  %v1920_v42 = vmul.f32 %v8434_v37, %v11316_v20  ;;  %8447 = vrcp.f32 %v2042_v63 }
 0x3b4   : > { %v1885_v31 = vmax.f32 %v1869_v48, 1e-24  ;;  %v1712_v2 = vadd.f32 %v1696_v28, %v1568_v61  ;;  %v1555_v41 = vmul.f32 %v11365_v17, %v11365_v17  ;;  %v1366_v50 = vmul.f32 2.0, %v11392_v32  ;;  %v8438_v56 = vpop.eup %8437  ;;  %v15622_v48 = vld [vmem:[#allocation34_spill] sm:$0xff] }
 0x3b5   : > { %v2040_v30 = vsub.f32 1.0, %v11398_v22  ;;  %v1858_v13 = vmul.f32 %v11394_v43, %v1842_v35  ;;  %8449 = vrcp.f32 %v1932_v34  ;;  %v11415_v23 = vadd.f32 %v1377_v29, %v11407_v7 }
 0x3b6   : > { %v1824_v27 = vmul.f32 %v10810_v40, %v11323_v24  ;;  %v1699_v63 = vmul.f32 %v11321_v45, %v1683_v4  ;;  %v1382_v37 = vadd.f32 1.0, %v1366_v50  ;;  %v1489_v28 = vmul.f32 %v15622_v48, %v11407_v7 }
 0x3b7   : > { %15621 = vst [vmem:[#allocation139_spill] sm:$0xff] %v11415_v23  ;;  %v11422_v12 = vpop.eup %8439  ;;  %8451 = vrsqrt.f32 %v11404_v58  ;;  %v1922_v61 = vsel %vm1921_vm5, %v11316_v20, %v1920_v42  ;;  %v2026_v35 = vadd.f32 1.0, %v1932_v34  ;;  %v1585_v15 = vmul.f32 2.0, %v11415_v23 }
 0x3b8   : > { %15623 = vst [vmem:[#allocation140_spill] sm:$0xff] %v11422_v12  ;;  %v8442_v24 = vpop.eup %8441  ;;  %v11431_v40 = vmin.f32 %v1885_v31, 0.999998  ;;  %v1840_v45 = vadd.f32 %v1824_v27, %v1712_v2  ;;  %v1571_v4 = vmul.f32 %v1555_v41, %v15618_v54  ;;  %v1505_v50 = vadd.f32 %v1489_v28, %v1377_v29  ;;  %v15626_v31 = vld [vmem:[#allocation11_spill] sm:$0xff] }
 0x3b9   : > { %8453 = vrcp.f32 %v2040_v30  ;;  %v1874_v39 = vmul.f32 %v11394_v43, %v1858_v13  ;;  %v1827_v3 = vmul.f32 %v11350_v10, %v15624_v55  ;;  %v1934_v42 = vmul.f32 %v8438_v56, %v11337_v49  ;;  %v15627_v30 = vld [vmem:[#allocation63_spill] sm:$0xff]  ;;  %v11452_v56 = vpop.f32.mrf.mxu0 }
 0x3ba   : > { %v1856_v34 = vmul.f32 %v11422_v12, %v1840_v45  ;;  %v1715_v19 = vadd.f32 %v1699_v63, %v1571_v4  ;;  %v11440_v17 = vadd.f32 %v11429_v11, %v1382_v37  ;;  %v1494_v2 = vmul.f32 %v11429_v11, %v15626_v31  ;;  %v15629_v45 = vld [vmem:[#allocation102_spill] sm:$0xff] }
 0x3bb   : > { %v11446_v29 = vsel %vm1923_vm6, %v1924_v0, %v1922_v61  ;;  %v1941_v41 = vmul.f32 %v8442_v24, %v11345_v44  ;;  %8455 = vrcp.f32 %v1505_v50  ;;  %v1681_v10 = vmul.f32 %v15627_v30, %v1585_v15 }
 0x3bc   : > { %15625 = vst [vmem:[#allocation141_spill] sm:$0xff] %v11440_v17  ;;  %8457 = vrsqrt.f32 %v11431_v40  ;;  %vm1935_vm7 = vcmp.eq.f32.partialorder %v11337_v49, inf  ;;  %v1510_v13 = vadd.f32 %v1494_v2, %v1382_v37  ;;  %v1590_v27 = vmul.f32 2.0, %v11440_v17  ;;  %v8444_v63 = vpop.eup %8443 }
 0x3bd   : > { %v1890_v28 = vmax.f32 %v1874_v39, 1e-24  ;;  %v1936_v20 = vsel %vm1935_vm7, %v11337_v49, %v1934_v42  ;;  %vm1942_vm8 = vcmp.eq.f32.partialorder %v11345_v44, inf  ;;  %v1553_v0 = vmul.f32 %v11415_v23, %v11415_v23 }
 0x3be   : > { %v11459_v61 = vpop.eup %8445  ;;  %v1872_v15 = vmul.f32 %v11422_v12, %v1856_v34  ;;  %v1843_v24 = vadd.f32 %v1827_v3, %v1715_v19  ;;  %8459 = vrcp.f32 %v1510_v13  ;;  %v1686_v4 = vmul.f32 %v15629_v45, %v1590_v27 }
 0x3bf   : > { %15628 = vst [vmem:[#allocation142_spill] sm:$0xff] %v11459_v61  ;;  %v1938_v37 = vand.u32 2147483648, %v11337_v49  ;;  %v1943_v50 = vsel %vm1942_vm8, %v11345_v44, %v1941_v41  ;;  %v1697_v39 = vmul.f32 %v1681_v10, %v11362_v59  ;;  %v1364_v42 = vmul.f32 2.0, %v11452_v56  ;;  %v11477_v41 = vpop.f32.mrf.mxu0 }
 0x3c0   : > { %v8448_v2 = vpop.eup %8447  ;;  %v1859_v30 = vmul.f32 %v11459_v61, %v1843_v24  ;;  %vm1937_vm9 = vcmp.eq.f32.partialorder %v11337_v49, 0.0  ;;  %v1945_v55 = vand.u32 2147483648, %v11345_v44  ;;  %v1558_v3 = vmul.f32 %v11440_v17, %v11440_v17  ;;  %v11491_v17 = vpop.f32.mrf.mxu1 }
 0x3c1   : > { %v2041_v19 = vsub.f32 1.0, %v11446_v29  ;;  %v11473_v34 = vsel %vm1937_vm9, %v1938_v37, %v1936_v20  ;;  %vm1944_vm10 = vcmp.eq.f32.partialorder %v11345_v44, 0.0  ;;  %v1569_v59 = vmul.f32 %v1553_v0, %v15622_v48 }
 0x3c2   : > { %v11479_v10 = vpop.eup %8449  ;;  %v11481_v13 = vmin.f32 %v1890_v28, 0.999998  ;;  %v1888_v49 = vmax.f32 %v1872_v15, 1e-24  ;;  %v11483_v27 = vsel %vm1944_vm10, %v1945_v55, %v1943_v50  ;;  %v1702_v24 = vmul.f32 %v11392_v32, %v1686_v4  ;;  %v15630_v32 = vld [vmem:[#allocation75_spill] sm:$0xff] }
 0x3c3   : > { %8461 = vrcp.f32 %v11398_v22  ;;  %v2061_v45 = vmul.f32 %v8448_v2, %v2026_v35  ;;  %v1713_v20 = vadd.f32 %v1697_v39, %v1569_v59  ;;  %v1380_v37 = vadd.f32 1.0, %v1364_v42  ;;  %v11496_v35 = vpop.xlane.xlu0 %4081  ;;  %v15633_v2 = vld [vmem:[#allocation72_spill] sm:$0xff] }
 0x3c4   : > { %v8452_v54 = vpop.eup %8451  ;;  %v1875_v44 = vmul.f32 %v11459_v61, %v1859_v30  ;;  %v2043_v0 = vsub.f32 1.0, %v11473_v34  ;;  %v1574_v48 = vmul.f32 %v1558_v3, %v15626_v31  ;;  %v1367_v28 = vmul.f32 2.0, %v11477_v41  ;;  %15631 = vst [vmem:[#allocation143_spill] sm:$0xff] %v11496_v35 }
 0x3c5   : > { %8463 = vrcp.f32 %v2041_v19  ;;  %v2044_v55 = vsub.f32 1.0, %v11483_v27  ;;  %v1825_v15 = vmul.f32 %v15630_v32, %v11407_v7  ;;  %v11499_v30 = vmin.f32 %v1888_v49, 0.999998  ;;  %v15635_v7 = vld [vmem:[#allocation110_spill] sm:$0xff] }
 0x3c6   : > { %v8454_v4 = vpop.eup %8453  ;;  %8465 = vrsqrt.f32 %v11481_v13  ;;  %v1718_v50 = vadd.f32 %v1702_v24, %v1574_v48  ;;  %v11502_v42 = vadd.f32 %v1380_v37, %v11491_v17  ;;  %v1492_v3 = vmul.f32 %v15633_v2, %v11491_v17 }
 0x3c7   : > { %8467 = vlog2.f32 %v2061_v45  ;;  %v1841_v39 = vadd.f32 %v1825_v15, %v1713_v20  ;;  %v1891_v59 = vmax.f32 %v1875_v44, 1e-24  ;;  %v1830_v32 = vmul.f32 %v11429_v11, %v15635_v7  ;;  %v11515_v44 = vpop.f32.mrf.mxu1 }
 0x3c8   : > { %15632 = vst [vmem:[#allocation144_spill] sm:$0xff] %v11502_v42  ;;  %v11506_v19 = vpop.eup %8455  ;;  %8469 = vrcp.f32 %v2043_v0  ;;  %v1383_v31 = vadd.f32 1.0, %v1367_v28  ;;  %v1955_v45 = vmul.f32 %v8444_v63, %v11373_v1  ;;  %v1508_v49 = vadd.f32 %v1492_v3, %v1380_v37  ;;  %v11522_v63 = vpop.xlane.xlu1 %4083 }
 0x3c9   : > { %15634 = vst [vmem:[#allocation145_spill] sm:$0xff] %v11506_v19  ;;  %v8458_v35 = vpop.eup %8457  ;;  %8471 = vrcp.f32 %v2044_v55  ;;  %v1857_v48 = vmul.f32 %v11506_v19, %v1841_v39  ;;  %v2024_v24 = vadd.f32 1.0, %v11398_v22  ;;  %v1846_v20 = vadd.f32 %v1830_v32, %v1718_v50  ;;  %15637 = vst [vmem:[#allocation147_spill] sm:$0xff] %v11522_v63  ;;  %v11524_v37 = vpop.xlane.xlu0 %4077  ;;  %v15639_v32 = vld [vmem:[#allocation84_spill] sm:$0xff]  ;;  %v15641_v63 = vld [vmem:[#allocation77_spill] sm:$0xff] }
 0x3ca   : > { %8473 = vrsqrt.f32 %v11499_v30  ;;  %v1588_v15 = vmul.f32 2.0, %v11502_v42  ;;  %v2025_v11 = vadd.f32 1.0, %v11446_v29  ;;  %vm1956_vm11 = vcmp.eq.f32.partialorder %v11373_v1, inf  ;;  %15638 = vst [vmem:[#allocation148_spill] sm:$0xff] %v11524_v37 }
 0x3cb   : > { %v11517_v0 = vpop.eup %8459  ;;  %v1873_v28 = vmul.f32 %v11506_v19, %v1857_v48  ;;  %8475 = vrcp.f32 %v1508_v49  ;;  %v11526_v22 = vmin.f32 %v1891_v59, 0.999998  ;;  %v11531_v39 = vadd.f32 %v11515_v44, %v1383_v31  ;;  %v11536_v49 = vpop.f32.mrf.mxu0 }
 0x3cc   : > { %15636 = vst [vmem:[#allocation146_spill] sm:$0xff] %v11517_v0  ;;  %v1862_v55 = vmul.f32 %v11517_v0, %v1846_v20  ;;  %v1684_v50 = vmul.f32 %v15639_v32, %v1588_v15  ;;  %v1957_v7 = vsel %vm1956_vm11, %v11373_v1, %v1955_v45  ;;  %v1556_v48 = vmul.f32 %v11502_v42, %v11502_v42 }
 0x3cd   : > { %15640 = vst [vmem:[#allocation149_spill] sm:$0xff] %v11531_v39  ;;  %v1889_v3 = vmax.f32 %v1873_v28, 1e-24  ;;  %v1495_v37 = vmul.f32 %v11515_v44, %v15641_v63  ;;  %v1948_v20 = vmul.f32 %v8458_v35, %v11431_v40  ;;  %vm1958_vm12 = vcmp.eq.f32.partialorder %v11373_v1, 0.0 }
 0x3ce   : > { %v1878_v59 = vmul.f32 %v11517_v0, %v1862_v55  ;;  %v1959_v15 = vand.u32 2147483648, %v11373_v1  ;;  %v1700_v45 = vmul.f32 %v1684_v50, %v11452_v56  ;;  %v1591_v42 = vmul.f32 2.0, %v11531_v39  ;;  %v11560_v56 = vpop.xlane.xlu0 %4073 }
 0x3cf   : > { %v11544_v32 = vmin.f32 %v1889_v3, 0.999998  ;;  %v1511_v28 = vadd.f32 %v1495_v37, %v1383_v31  ;;  %8477 = vrsqrt.f32 %v11526_v22  ;;  %v1365_v55 = vmul.f32 2.0, %v11536_v49  ;;  %v11558_v31 = vpop.xlane.xlu1 %4079  ;;  %15643 = vst [vmem:[#allocation151_spill] sm:$0xff] %v11560_v56  ;;  %v15644_v3 = vld [vmem:[#allocation89_spill] sm:$0xff] }
 0x3d0   : > { %v11548_v23 = vpop.eup %8461  ;;  %v11551_v19 = vsel %vm1958_vm12, %v1959_v15, %v1957_v7  ;;  %v1962_v35 = vmul.f32 %v8452_v54, %v11404_v58  ;;  %v2057_v0 = vmul.f32 %v8454_v4, %v2024_v24  ;;  %vm1949_vm13 = vcmp.eq.f32.partialorder %v11431_v40, inf  ;;  %15642 = vst [vmem:[#allocation150_spill] sm:$0xff] %v11558_v31 }
 0x3d1   : > { %8479 = vrsqrt.f32 %v11544_v32  ;;  %v1572_v1 = vmul.f32 %v1556_v48, %v15633_v2  ;;  %v1950_v50 = vsel %vm1949_vm13, %v11431_v40, %v1948_v20  ;;  %v1952_v7 = vand.u32 2147483648, %v11431_v40 }
 0x3d2   : > { %v8464_v37 = vpop.eup %8463  ;;  %8481 = vrcp.f32 %v1511_v28  ;;  %v1687_v15 = vmul.f32 %v15644_v3, %v1591_v42  ;;  %v1894_v4 = vmax.f32 %v1878_v59, 1e-24  ;;  %v2046_v24 = vsub.f32 1.0, %v11551_v19  ;;  %v15645_v59 = vld [vmem:[#allocation105_spill] sm:$0xff] }
 0x3d3   : > { %v11565_v54 = vpop.eup %8465  ;;  %v1716_v47 = vadd.f32 %v1700_v45, %v1572_v1  ;;  %vm1963_vm14 = vcmp.eq.f32.partialorder %v11404_v58, inf  ;;  %vm1951_vm15 = vcmp.eq.f32.partialorder %v11431_v40, 0.0  ;;  %v1381_v2 = vadd.f32 1.0, %v1365_v55  ;;  %v11582_v55 = vpop.f32.mrf.mxu1 }
 0x3d4   : > { %v8468_v48 = vpop.eup %8467  ;;  %v1559_v20 = vmul.f32 %v11531_v39, %v11531_v39  ;;  %v1964_v56 = vsel %vm1963_vm14, %v11404_v58, %v1962_v35  ;;  %8483 = vrcp.f32 %v11446_v29  ;;  %v11574_v42 = vsel %vm1951_vm15, %v1952_v7, %v1950_v50  ;;  %v11590_v7 = vpop.xlane.xlu0 %4069 }
 0x3d5   : > { %v8470_v28 = vpop.eup %8469  ;;  %v1828_v3 = vmul.f32 %v15645_v59, %v11491_v17  ;;  %v1966_v45 = vand.u32 2147483648, %v11404_v58  ;;  %v2059_v31 = vmul.f32 %v8464_v37, %v2025_v11  ;;  %8485 = vrcp.f32 %v11473_v34  ;;  %v11588_v17 = vpop.xlane.xlu1 %4075  ;;  %15647 = vst [vmem:[#allocation153_spill] sm:$0xff] %v11590_v7 }
 0x3d6   : > { %v8472_v1 = vpop.eup %8471  ;;  %v1703_v40 = vmul.f32 %v11477_v41, %v1687_v15  ;;  %vm1965_vm0 = vcmp.eq.f32.partialorder %v11404_v58, 0.0  ;;  %v11584_v39 = vmin.f32 %v1894_v4, 0.999998  ;;  %8487 = vrcp.f32 %v2046_v24  ;;  %15646 = vst [vmem:[#allocation152_spill] sm:$0xff] %v11588_v17 }
 0x3d7   : > { %v8474_v35 = vpop.eup %8473  ;;  %v1844_v29 = vadd.f32 %v1828_v3, %v1716_v47  ;;  %v11586_v50 = vsel %vm1965_vm0, %v1966_v45, %v1964_v56  ;;  %8489 = vlog2.f32 %v2057_v0  ;;  %v2045_v41 = vsub.f32 1.0, %v11574_v42  ;;  %v15650_v56 = vld [vmem:[#allocation52_spill] sm:$0xff] }
 0x3d8   : > { %v11592_v11 = vpop.eup %8475  ;;  %v1575_v58 = vmul.f32 %v1559_v20, %v15641_v63  ;;  %v11597_v37 = vadd.f32 %v1381_v2, %v11582_v55  ;;  %8491 = vrcp.f32 %v11483_v27  ;;  %v1493_v3 = vmul.f32 %v15650_v56, %v11582_v55  ;;  %v15651_v63 = vld [vmem:[#allocation99_spill] sm:$0xff] }
 0x3d9   : > { %15648 = vst [vmem:[#allocation154_spill] sm:$0xff] %v11592_v11  ;;  %v1860_v47 = vmul.f32 %v11592_v11, %v1844_v29  ;;  %8493 = vlog2.f32 %v2059_v31  ;;  %v2027_v15 = vadd.f32 1.0, %v11473_v34  ;;  %v2047_v0 = vsub.f32 1.0, %v11586_v50 }
 0x3da   : > { %15649 = vst [vmem:[#allocation155_spill] sm:$0xff] %v11597_v37  ;;  %v1719_v4 = vadd.f32 %v1703_v40, %v1575_v58  ;;  %8495 = vrsqrt.f32 %v11584_v39  ;;  %v1509_v20 = vadd.f32 %v1493_v3, %v1381_v2  ;;  %v1831_v59 = vmul.f32 %v11515_v44, %v15651_v63  ;;  %v11612_v40 = vpop.xlane.xlu1 %4071  ;;  %v11614_v58 = vpop.xlane.xlu0 %4065 }
 0x3db   : > { %v1876_v24 = vmul.f32 %v11592_v11, %v1860_v47  ;;  %v2063_v45 = vmul.f32 %v8470_v28, %v2027_v15  ;;  %8497 = vrcp.f32 %v2045_v41  ;;  %v1589_v29 = vmul.f32 2.0, %v11597_v37  ;;  %15652 = vst [vmem:[#allocation156_spill] sm:$0xff] %v11612_v40  ;;  %15653 = vst [vmem:[#allocation157_spill] sm:$0xff] %v11614_v58  ;;  %v15654_v41 = vld [vmem:[#allocation101_spill] sm:$0xff]  ;;  %v9262_v58 = vld [vmem:[%s9533_s18 + $0x48] sm:$0xff] }
 0x3dc   : > { %v8478_v7 = vpop.eup %8477  ;;  %v2028_v31 = vadd.f32 1.0, %v11483_v27  ;;  %v1969_v34 = vmul.f32 %v8474_v35, %v11499_v30  ;;  %8499 = vrcp.f32 %v1509_v20  ;;  %v11616_v2 = vmul.f32 0.6931472, %v8468_v48  ;;  %v9263_v40 = vld [vmem:[%s9533_s18 + $0x50] sm:$0xff] }
 0x3dd   : > { %v1892_v17 = vmax.f32 %v1876_v24, 1e-24  ;;  %v1847_v28 = vadd.f32 %v1831_v59, %v1719_v4  ;;  %8501 = vrcp.f32 %v2047_v0  ;;  %v1685_v44 = vmul.f32 %v15654_v41, %v1589_v29 }
 0x3de   : > { %v8480_v47 = vpop.eup %8479  ;;  %v2030_v15 = vadd.f32 1.0, %v11551_v19  ;;  %v1557_v35 = vmul.f32 %v11597_v37, %v11597_v37  ;;  %v1983_v24 = vmul.f32 %v11565_v54, %v11481_v13  ;;  %8503 = vlog2.f32 %v2063_v45 }
 0x3df   : > { %v11619_v3 = vpop.eup %8481  ;;  %v11622_v27 = vmin.f32 %v1892_v17, 0.999998  ;;  %vm1970_vm1 = vcmp.eq.f32.partialorder %v11499_v30, inf  ;;  %v1976_v59 = vmul.f32 %v8480_v47, %v11544_v32  ;;  %v2065_v4 = vmul.f32 %v8472_v1, %v2028_v31  ;;  %v11646_v31 = vpop.xlane.xlu1 %4067 }
 0x3e0   : > { %15655 = vst [vmem:[#allocation158_spill] sm:$0xff] %v11619_v3  ;;  %v1863_v48 = vmul.f32 %v11619_v3, %v1847_v28  ;;  %v1971_v0 = vsel %vm1970_vm1, %v11499_v30, %v1969_v34  ;;  %v1701_v17 = vmul.f32 %v1685_v44, %v11536_v49  ;;  %v1973_v54 = vand.u32 2147483648, %v11499_v30  ;;  %15656 = vst [vmem:[#allocation159_spill] sm:$0xff] %v11646_v31  ;;  %v11648_v34 = vpop.xlane.xlu0 %4061 }
 0x3e1   : > { %8505 = vrsqrt.f32 %v11622_v27  ;;  %v11634_v20 = vpop.eup %8483  ;;  %vm1984_vm2 = vcmp.eq.f32.partialorder %v11481_v13, inf  ;;  %v1990_v45 = vmul.f32 %v8478_v7, %v11526_v22  ;;  %vm1972_vm3 = vcmp.eq.f32.partialorder %v11499_v30, 0.0  ;;  %15657 = vst [vmem:[#allocation160_spill] sm:$0xff] %v11648_v34 }
 0x3e2   : > { %v1879_v29 = vmul.f32 %v11619_v3, %v1863_v48  ;;  %v11640_v28 = vpop.eup %8485  ;;  %v1573_v1 = vmul.f32 %v1557_v35, %v15650_v56  ;;  %vm1977_vm4 = vcmp.eq.f32.partialorder %v11544_v32, inf  ;;  %v1985_v49 = vsel %vm1984_vm2, %v11481_v13, %v1983_v24 }
 0x3e3   : > { %v8488_v47 = vpop.eup %8487  ;;  %v11650_v48 = vsel %vm1972_vm3, %v1973_v54, %v1971_v0  ;;  %v1978_v7 = vsel %vm1977_vm4, %v11544_v32, %v1976_v59  ;;  %v1987_v41 = vand.u32 2147483648, %v11481_v13  ;;  %v1980_v35 = vand.u32 2147483648, %v11544_v32 }
 0x3e4   : > { %v1895_v44 = vmax.f32 %v1879_v29, 1e-24  ;;  %v8490_v63 = vpop.eup %8489  ;;  %v1717_v30 = vadd.f32 %v1701_v17, %v1573_v1  ;;  %vm1986_vm5 = vcmp.eq.f32.partialorder %v11481_v13, 0.0  ;;  %vm1991_vm6 = vcmp.eq.f32.partialorder %v11526_v22, inf  ;;  %v15658_v17 = vld [vmem:[#allocation95_spill] sm:$0xff] }
 0x3e5   : > { %v11657_v24 = vpop.eup %8491  ;;  %vm1979_vm7 = vcmp.eq.f32.partialorder %v11544_v32, 0.0  ;;  %v11662_v0 = vsel %vm1986_vm5, %v1987_v41, %v1985_v49  ;;  %v1992_v59 = vsel %vm1991_vm6, %v11526_v22, %v1990_v45  ;;  %v2069_v54 = vmul.f32 %v8488_v47, %v2030_v15  ;;  %v11681_v49 = vpop.xlane.xlu0 %4057 }
 0x3e6   : > { %v11659_v56 = vmin.f32 %v1895_v44, 0.999998  ;;  %v11665_v29 = vpop.eup %8493  ;;  %v1829_v1 = vmul.f32 %v15658_v17, %v11582_v55  ;;  %v11669_v34 = vsel %vm1979_vm7, %v1980_v35, %v1978_v7  ;;  %v1994_v13 = vand.u32 2147483648, %v11526_v22  ;;  %v11679_v55 = vpop.xlane.xlu1 %4063  ;;  %15660 = vst [vmem:[#allocation162_spill] sm:$0xff] %v11681_v49 }
 0x3e7   : > { %v8496_v31 = vpop.eup %8495  ;;  %v2048_v44 = vsub.f32 1.0, %v11650_v48  ;;  %vm1993_vm8 = vcmp.eq.f32.partialorder %v11526_v22, 0.0  ;;  %v2050_v15 = vsub.f32 1.0, %v11662_v0  ;;  %15659 = vst [vmem:[#allocation161_spill] sm:$0xff] %v11679_v55  ;;  %v2089_v7 = vmul.f32 0.6931472, %v8490_v63 }
 0x3e8   : > { %8507 = vrsqrt.f32 %v11659_v56  ;;  %v8498_v32 = vpop.eup %8497  ;;  %v1845_v41 = vadd.f32 %v1829_v1, %v1717_v30  ;;  %v11677_v45 = vsel %vm1993_vm8, %v1994_v13, %v1992_v59  ;;  %v2029_v35 = vadd.f32 1.0, %v11574_v42 }
 0x3e9   : > { %8509 = vrcp.f32 %v11551_v19  ;;  %v11683_v47 = vpop.eup %8499  ;;  %v2049_v22 = vsub.f32 1.0, %v11669_v34  ;;  %v2122_v19 = vmul.f32 0.5, %v11616_v2  ;;  %v2011_v59 = vmul.f32 %v8496_v31, %v11584_v39 }
 0x3ea   : > { %15661 = vst [vmem:[#allocation163_spill] sm:$0xff] %v11683_v47  ;;  %8511 = vlog2.f32 %v2065_v4  ;;  %v8502_v17 = vpop.eup %8501  ;;  %v1861_v30 = vmul.f32 %v11683_v47, %v1845_v41  ;;  %v2031_v1 = vadd.f32 1.0, %v11586_v50  ;;  %v2051_v13 = vsub.f32 1.0, %v11677_v45 }
 0x3eb   : > { %8513 = vlog2.f32 %v2069_v54  ;;  %vm2012_vm9 = vcmp.eq.f32.partialorder %v11584_v39, inf  ;;  %v8504_v63 = vpop.eup %8503  ;;  %v2015_v2 = vand.u32 2147483648, %v11584_v39  ;;  %v11696_v31 = vmul.f32 0.5, %v2089_v7 }
 0x3ec   : > { %8515 = vrcp.f32 %v2048_v44  ;;  %v1877_v4 = vmul.f32 %v11683_v47, %v1861_v30  ;;  %v2013_v49 = vsel %vm2012_vm9, %v11584_v39, %v2011_v59  ;;  %v2071_v41 = vmul.f32 %v8502_v17, %v2031_v1  ;;  %v11705_v59 = vpop.xlane.xlu0 %4053  ;;  %v9268_v47 = vld [vmem:[%s9533_s18 + $0x78] sm:$0xff] }
 0x3ed   : > { %8517 = vrcp.f32 %v2050_v15  ;;  %vm2014_vm10 = vcmp.eq.f32.partialorder %v11584_v39, 0.0  ;;  %vm1998_vm11 = vcmp.eq.f32.partialorder %v11622_v27, inf  ;;  %v11703_v15 = vpop.xlane.xlu1 %4059  ;;  %15663 = vst [vmem:[#allocation165_spill] sm:$0xff] %v11705_v59  ;;  %v3617_v7 = vshra.s32 %v9262_v58, 1 }
 0x3ee   : > { %v8506_v54 = vpop.eup %8505  ;;  %8519 = vrcp.f32 %v2049_v22  ;;  %v1893_v44 = vmax.f32 %v1877_v4, 1e-24  ;;  %v11701_v30 = vsel %vm2014_vm10, %v2015_v2, %v2013_v49  ;;  %15662 = vst [vmem:[#allocation164_spill] sm:$0xff] %v11703_v15  ;;  %v3618_v17 = vshra.s32 %v9263_v40, 1  ;;  %v9264_v22 = vld [vmem:[%s9533_s18 + $0x58] sm:$0xff] }
 0x3ef   : > { %v1997_v55 = vmul.f32 %v8506_v54, %v11622_v27  ;;  %8521 = vrcp.f32 %v2051_v13  ;;  %v3619_v1 = vshra.s32 %v9264_v22, 1  ;;  %vm2000_vm12 = vcmp.eq.f32.partialorder %v11622_v27, 0.0  ;;  %v9265_v13 = vld [vmem:[%s9533_s18 + $0x60] sm:$0xff] }
 0x3f0   : > { %v11710_v39 = vmin.f32 %v1893_v44, 0.999998  ;;  %v2001_v49 = vand.u32 2147483648, %v11622_v27  ;;  %v2054_v2 = vsub.f32 1.0, %v11701_v30  ;;  %v11716_v54 = vand.u32 1, %v3617_v7 }
 0x3f1   : > { %v1999_v4 = vsel %vm1998_vm11, %v11622_v27, %v1997_v55  ;;  %v11718_v59 = vand.u32 1, %v3618_v17  ;;  %v3620_v58 = vshra.s32 %v9265_v13, 1  ;;  %v2154_v40 = vmul.f32 %v11479_v10, %v2122_v19  ;;  %v11732_v19 = vpop.xlane.xlu1 %4055  ;;  %v11734_v17 = vpop.xlane.xlu0 %5536 }
 0x3f2   : > { %15664 = vst [vmem:[#allocation166_spill] sm:$0xff] %v11716_v54  ;;  %8523 = vrsqrt.f32 %v11710_v39  ;;  %v11723_v44 = vsel %vm2000_vm12, %v2001_v49, %v1999_v4  ;;  %v11725_v22 = vand.u32 1, %v3619_v1  ;;  %v2091_v55 = vmul.f32 0.6931472, %v11665_v29  ;;  %15667 = vst [vmem:[#allocation169_spill] sm:$0xff] %v11732_v19  ;;  %v9266_v49 = vld [vmem:[%s9533_s18 + $0x68] sm:$0xff] }
 0x3f3   : > { %15665 = vst [vmem:[#allocation167_spill] sm:$0xff] %v11718_v59  ;;  %v2095_v15 = vmul.f32 0.6931472, %v8504_v63  ;;  %v2067_v27 = vmul.f32 %v8498_v32, %v2029_v35  ;;  %8525 = vlog2.f32 %v2071_v41  ;;  %vm2019_vm13 = vcmp.eq.f32.partialorder %v11659_v56, inf  ;;  %15668 = vst [vmem:[#allocation170_spill] sm:$0xff] %v11734_v17 }
 0x3f4   : > { %15666 = vst [vmem:[#allocation168_spill] sm:$0xff] %v11725_v22  ;;  %vm2021_vm14 = vcmp.eq.f32.partialorder %v11659_v56, 0.0  ;;  %v15307_v7 = vcvt.s32.f32 %v11716_v54  ;;  %v15309_v10 = vcvt.s32.f32 %v11718_v59  ;;  %v2052_v29 = vsub.f32 1.0, %v11723_v44  ;;  %v9269_v54 = vld [vmem:[%s9533_s18] sm:$0xff]  ;;  %v15672_v59 = vld [vmem:[#allocation114_spill] sm:$0xff] }
 0x3f5   : > { %v8508_v37 = vpop.eup %8507  ;;  %8527 = vrcp.f32 %v2054_v2  ;;  %v11740_v35 = vand.u32 1, %v3620_v58  ;;  %v2022_v41 = vand.u32 2147483648, %v11659_v56  ;;  %v3621_v13 = vshra.s32 %v9266_v49, 1  ;;  %v9267_v2 = vld [vmem:[%s9533_s18 + $0x70] sm:$0xff] }
 0x3f6   : > { %v11736_v1 = vpop.eup %8509  ;;  %v2018_v32 = vmul.f32 %v8508_v37, %v11659_v56  ;;  %3818 = vadd.xlane.f32.xlu1 %v15307_v7  ;;  %3820 = vadd.xlane.f32.xlu0 %v15309_v10  ;;  %v3622_v17 = vshra.s32 %v9267_v2, 1  ;;  %v3623_v3 = vshra.s32 %v9268_v47, 1  ;;  %v5063_v7 = vshra.s32 %v9269_v54, 2 }
 0x3f7   : > { %15669 = vst [vmem:[#allocation171_spill] sm:$0xff] %v11740_v35  ;;  %v11742_v63 = vpop.eup %8511  ;;  %v15314_v19 = vcvt.s32.f32 %v11740_v35  ;;  %8529 = vlog2.f32 %v2067_v27  ;;  %v11762_v49 = vand.u32 1, %v3621_v13  ;;  %v11767_v61 = vmul.f32 %v15672_v59, %v2154_v40  ;;  %v9271_v59 = vld [vmem:[%s9533_s18 + $0x10] sm:$0xff] }
 0x3f8   : > { %v8514_v37 = vpop.eup %8513  ;;  %v2020_v58 = vsel %vm2019_vm13, %v11659_v56, %v2018_v32  ;;  %v11764_v2 = vand.u32 1, %v3622_v17  ;;  %v2032_v32 = vadd.f32 1.0, %v11650_v48  ;;  %8531 = vrcp.f32 %v2052_v29  ;;  %v11780_v17 = vpop.xlane.xlu1 %5538 }
 0x3f9   : > { %v8516_v11 = vpop.eup %8515  ;;  %v11760_v10 = vsel %vm2021_vm14, %v2022_v41, %v2020_v58  ;;  %15670 = vst [vmem:[#allocation172_spill] sm:$0xff] %v11762_v49  ;;  %v2123_v27 = vmul.f32 0.5, %v2095_v15  ;;  %v2034_v56 = vadd.f32 1.0, %v11662_v0  ;;  %v15673_v41 = vcvt.s32.f32 %v11725_v22  ;;  %15674 = vst [vmem:[#allocation114_spill] sm:$0xff] %v11780_v17  ;;  %v11782_v29 = vpop.xlane.xlu0 %5532 }
 0x3fa   : > { %15671 = vst [vmem:[#allocation173_spill] sm:$0xff] %v11764_v2  ;;  %v8518_v4 = vpop.eup %8517  ;;  %v2055_v47 = vsub.f32 1.0, %v11760_v10  ;;  %3824 = vadd.xlane.f32.xlu0 %v15314_v19  ;;  %15675 = vst [vmem:[#allocation174_spill] sm:$0xff] %v11782_v29  ;;  %v2073_v13 = vmul.f32 %v8516_v11, %v2032_v32  ;;  %v11784_v15 = vand.u32 1, %v3623_v3  ;;  %v11786_v58 = vand.u32 1, %v5063_v7  ;;  %v9270_v19 = vld [vmem:[%s9533_s18 + $0x8] sm:$0xff] }
 0x3fb   : > { %v11771_v54 = vpop.eup %8519  ;;  %3822 = vadd.xlane.f32.xlu1 %v15673_v41  ;;  %v2121_v41 = vmul.f32 0.5, %v2091_v55  ;;  %v2077_v35 = vmul.f32 %v8518_v4, %v2034_v56  ;;  %v5064_v12 = vshra.s32 %v9270_v19, 2  ;;  %v5065_v25 = vshra.s32 %v9271_v59, 2  ;;  %v9272_v11 = vld [vmem:[%s9533_s18 + $0x18] sm:$0xff] }
 0x3fc   : > { %8533 = vrcp.f32 %v2055_v47  ;;  %15676 = vst [vmem:[#allocation175_spill] sm:$0xff] %v11784_v15  ;;  %15677 = vst [vmem:[#allocation176_spill] sm:$0xff] %v11786_v58  ;;  %v8522_v22 = vpop.eup %8521  ;;  %v2035_v40 = vadd.f32 1.0, %v11677_v45  ;;  %v5066_v32 = vshra.s32 %v9272_v11, 2  ;;  %v15678_v3 = vcvt.s32.f32 %v11762_v49  ;;  %v9273_v47 = vld [vmem:[%s9533_s18 + $0x20] sm:$0xff] }
 0x3fd   : > { %8535 = vrcp.f32 %v11586_v50  ;;  %v15679_v7 = vcvt.s32.f32 %v11764_v2  ;;  %v15317_v55 = vcvt.s32.f32 %v11786_v58  ;;  %v11799_v4 = vand.u32 1, %v5064_v12  ;;  %v11808_v12 = vpop.xlane.xlu1 %5534 }
 0x3fe   : > { %v11801_v19 = vand.u32 1, %v5065_v25  ;;  %v5067_v50 = vshra.s32 %v9273_v47, 2  ;;  %v2155_v59 = vmul.f32 %v11640_v28, %v2123_v27  ;;  %v2101_v29 = vmul.f32 0.6931472, %v8514_v37  ;;  %15682 = vst [vmem:[#allocation179_spill] sm:$0xff] %v11808_v12  ;;  %v11810_v25 = vpop.xlane.xlu0 %5528  ;;  %v9274_v37 = vld [vmem:[%s9533_s18 + $0x28] sm:$0xff] }
 0x3ff   : > { %3826 = vadd.xlane.f32.xlu1 %v15678_v3  ;;  %3828 = vadd.xlane.f32.xlu0 %v15679_v7  ;;  %15680 = vst [vmem:[#allocation177_spill] sm:$0xff] %v11799_v4  ;;  %v8524_v56 = vpop.eup %8523  ;;  %8537 = vlog2.f32 %v2073_v13  ;;  %v2079_v11 = vmul.f32 %v8522_v22, %v2035_v40  ;;  %v2033_v3 = vadd.f32 1.0, %v11669_v34  ;;  %vm2005_vm15 = vcmp.eq.f32.partialorder %v11710_v39, inf  ;;  %15683 = vst [vmem:[#allocation180_spill] sm:$0xff] %v11810_v25 }
 0x400   : > { %15681 = vst [vmem:[#allocation178_spill] sm:$0xff] %v11801_v19  ;;  %v8526_v17 = vpop.eup %8525  ;;  %8539 = vlog2.f32 %v2077_v35  ;;  %v2004_v7 = vmul.f32 %v8524_v56, %v11710_v39  ;;  %vm2007_vm0 = vcmp.eq.f32.partialorder %v11710_v39, 0.0  ;;  %v2008_v47 = vand.u32 2147483648, %v11710_v39 }
 0x401   : > { %v11814_v28 = vand.u32 1, %v5066_v32  ;;  %v5068_v22 = vshra.s32 %v9274_v37, 2  ;;  %v15685_v35 = vcvt.s32.f32 %v11784_v15  ;;  %v15318_v13 = vcvt.s32.f32 %v11799_v4 }
 0x402   : > { %v8528_v27 = vpop.eup %8527  ;;  %v2006_v40 = vsel %vm2005_vm15, %v11710_v39, %v2004_v7  ;;  %v11824_v25 = vand.u32 1, %v5067_v50  ;;  %v2126_v12 = vmul.f32 0.5, %v2101_v29  ;;  %8541 = vlog2.f32 %v2079_v11 }
 0x403   : > { %15684 = vst [vmem:[#allocation181_spill] sm:$0xff] %v11814_v28  ;;  %3830 = vadd.xlane.f32.xlu1 %v15685_v35  ;;  %5255 = vadd.xlane.f32.xlu0 %v15317_v55  ;;  %v11826_v32 = vsel %vm2007_vm0, %v2008_v47, %v2006_v40  ;;  %v2038_v37 = vadd.f32 1.0, %v11701_v30  ;;  %v2152_v39 = vmul.f32 %v11548_v23, %v11696_v31  ;;  %8543 = vrcp.f32 %v11574_v42 }
 0x404   : > { %15686 = vst [vmem:[#allocation182_spill] sm:$0xff] %v11824_v25  ;;  %v2153_v7 = vmul.f32 %v11634_v20, %v2121_v41  ;;  %v2053_v35 = vsub.f32 1.0, %v11826_v32  ;;  %v8530_v55 = vpop.eup %8529  ;;  %v2097_v56 = vmul.f32 0.6931472, %v11742_v63  ;;  %v2075_v50 = vmul.f32 %v11771_v54, %v2033_v3  ;;  %v11848_v63 = vpop.xlane.xlu1 %5530  ;;  %v15691_v41 = vld [vmem:[#allocation115_spill] sm:$0xff] }
 0x405   : > { %v2085_v29 = vmul.f32 %v8528_v27, %v2038_v37  ;;  %v8532_v47 = vpop.eup %8531  ;;  %v15687_v23 = vcvt.s32.f32 %v11801_v19  ;;  %v11842_v20 = vand.u32 1, %v5068_v22  ;;  %v11846_v31 = vmul.f32 %v11212_v6, %v11767_v61  ;;  %15689 = vst [vmem:[#allocation184_spill] sm:$0xff] %v11848_v63  ;;  %v11850_v54 = vpop.xlane.xlu0 %5524  ;;  %v15693_v22 = vld [vmem:[#allocation113_spill] sm:$0xff] }
 0x406   : > { %8545 = vrcp.f32 %v2053_v35  ;;  %15690 = vst [vmem:[#allocation185_spill] sm:$0xff] %v11850_v54  ;;  %v2203_v3 = vmul.f32 %v15691_v41, %v2155_v59  ;;  %v2158_v27 = vmul.f32 %v11736_v1, %v2126_v12  ;;  %v2103_v40 = vmul.f32 0.6931472, %v8526_v17 }
 0x407   : > { %5257 = vadd.xlane.f32.xlu1 %v15318_v13  ;;  %5259 = vadd.xlane.f32.xlu0 %v15687_v23  ;;  %15688 = vst [vmem:[#allocation183_spill] sm:$0xff] %v11842_v20  ;;  %v2036_v37 = vadd.f32 1.0, %v11723_v44  ;;  %v15692_v23 = vld [vmem:[#allocation112_spill] sm:$0xff]  ;;  %v2201_v42 = vmul.f32 %v15693_v22, %v2153_v7  ;;  %8547 = vrcp.f32 %v11662_v0  ;;  %v2039_v6 = vadd.f32 1.0, %v11760_v10 }
 0x408   : > { %v2200_v13 = vmul.f32 %v15692_v23, %v2152_v39  ;;  %v2124_v61 = vmul.f32 0.5, %v2097_v56  ;;  %v2099_v11 = vmul.f32 0.6931472, %v8530_v55  ;;  %8549 = vlog2.f32 %v2075_v50 }
 0x409   : > { %v8534_v35 = vpop.eup %8533  ;;  %v2081_v4 = vmul.f32 %v8532_v47, %v2036_v37  ;;  %8551 = vlog2.f32 %v2085_v29  ;;  %v15694_v1 = vcvt.s32.f32 %v11814_v28  ;;  %v15695_v17 = vcvt.s32.f32 %v11824_v25  ;;  %v11872_v47 = vpop.xlane.xlu1 %5526  ;;  %v2420_v25 = vld [vmem:[#allocation2 + $0x38] sm:$0xff] }
 0x40a   : > { %v8536_v58 = vpop.eup %8535  ;;  %v2087_v59 = vmul.f32 %v8534_v35, %v2039_v6  ;;  %v15321_v12 = vcvt.s32.f32 %v11842_v20  ;;  %v2250_v0 = vmul.f32 %v11846_v31, %v11163_v38  ;;  %v2206_v39 = vmul.f32 %v11013_v36, %v2158_v27  ;;  %15696 = vst [vmem:[#allocation115_spill] sm:$0xff] %v11872_v47  ;;  %v11874_v41 = vpop.xlane.xlu0 %5520  ;;  %v15698_v36 = vld [vmem:[#allocation43_spill] sm:$0xff]  ;;  %v15699_v27 = vld [vmem:[#allocation44_spill] sm:$0xff]  ;;  %v9286_v47 = vld [vmem:[%s9533_s18 + $0x10] sm:$0xff] }
 0x40b   : > { %5261 = vadd.xlane.f32.xlu1 %v15694_v1  ;;  %5263 = vadd.xlane.f32.xlu0 %v15695_v17  ;;  %v2127_v56 = vmul.f32 0.5, %v2103_v40  ;;  %8553 = vrcp.f32 %v11650_v48  ;;  %v2219_v55 = vmul.f32 %v11274_v26, %v2203_v3  ;;  %v2216_v50 = vmul.f32 %v11226_v51, %v2200_v13  ;;  %15697 = vst [vmem:[#allocation112_spill] sm:$0xff] %v11874_v41  ;;  %v15700_v35 = vld [vmem:[#allocation116_spill] sm:$0xff]  ;;  %v9285_v41 = vld [vmem:[%s9533_s18 + $0x78] sm:$0xff] }
 0x40c   : > { %v8538_v7 = vpop.eup %8537  ;;  %8555 = vrcp.f32 %v11677_v45  ;;  %v2217_v29 = vmul.f32 %v11259_v14, %v2201_v42  ;;  %v2156_v38 = vmul.f32 %v11657_v24, %v2124_v61  ;;  %v2939_v48 = vmul.f32 %v15698_v36, %v15698_v36  ;;  %v15705_v36 = vld [vmem:[#allocation54_spill] sm:$0xff] }
 0x40d   : > { %v8540_v37 = vpop.eup %8539  ;;  %8557 = vlog2.f32 %v2081_v4  ;;  %v2940_v26 = vmul.f32 %v15699_v27, %v15699_v27  ;;  %v2125_v3 = vmul.f32 0.5, %v2099_v11  ;;  %v2251_v51 = vmul.f32 %v2219_v55, %v11200_v53 }
 0x40e   : > { %8559 = vlog2.f32 %v2087_v59  ;;  %v2159_v14 = vmul.f32 %v8536_v58, %v2127_v56  ;;  %v11885_v45 = vmul.f32 %v11307_v18, %v2206_v39  ;;  %v2109_v4 = vmul.f32 0.6931472, %v8540_v37  ;;  %v11891_v58 = vpop.xlane.xlu1 %5522  ;;  %v11893_v18 = vpop.xlane.xlu0 %5516 }
 0x40f   : > { %5265 = vadd.xlane.f32.xlu1 %v15321_v12  ;;  %2268 = vadd.xlane.f32.xlu0 %v2250_v0  ;;  %v8542_v24 = vpop.eup %8541  ;;  %v2248_v13 = vmul.f32 %v2216_v50, %v11172_v16  ;;  %v2425_v42 = vpack.c.bf16 %v2217_v29, %v2216_v50  ;;  %v2204_v23 = vmul.f32 %v15700_v35, %v2156_v38  ;;  %v2105_v6 = vmul.f32 0.6931472, %v8538_v7  ;;  %v15704_v38 = vld [vmem:[#allocation53_spill] sm:$0xff] }
 0x410   : > { %v8544_v40 = vpop.eup %8543  ;;  %v2949_v11 = vpack.c.bf16 %v2940_v26, %v2939_v48  ;;  %v2037_v61 = vadd.f32 1.0, %v11826_v32  ;;  %v2426_v53 = vpack.c.bf16 %v2219_v55, %v11846_v31  ;;  %15701 = vst [vmem:[#allocation113_spill] sm:$0xff] %v11891_v58  ;;  %15702 = vst [vmem:[#allocation43_spill] sm:$0xff] %v11893_v18  ;;  %v2207_v16 = vmul.f32 %v11054_v9, %v2159_v14  ;;  %v15703_v55 = vld [vmem:[#allocation68_spill] sm:$0xff]  ;;  %v9284_v18 = vld [vmem:[%s9533_s18] sm:$0xff] }
 0x411   : > { %v2157_v22 = vmul.f32 %v8544_v40, %v2125_v3  ;;  %8561 = vrcp.f32 %v11669_v34  ;;  %v2111_v1 = vmul.f32 0.6931472, %v8542_v24  ;;  %7758 = vmatprep.mubr.bf16.mxu0 %v2425_v42  ;;  %v2254_v17 = vmul.f32 %v11885_v45, %v11231_v60  ;;  %v15708_v42 = vld [vmem:[#allocation121_spill] sm:$0xff] }
 0x412   : > { %v2130_v0 = vmul.f32 0.5, %v2109_v4  ;;  %8563 = vrcp.f32 %v11701_v30  ;;  %7759 = vmatmul.mubr.bf16.vlgmr.msra.gmra.mxu0 %v2426_v53  ;;  %v2249_v31 = vmul.f32 %v2217_v29, %v11190_v62  ;;  %v2220_v7 = vmul.f32 %v11288_v8, %v2204_v23  ;;  %v11911_v48 = vpop.xlane.xlu1 %5518 }
 0x413   : > { %2264 = vadd.xlane.f32.xlu0 %v2248_v13  ;;  %2270 = vadd.xlane.f32.xlu1 %v2251_v51  ;;  %v8546_v59 = vpop.eup %8545  ;;  %v2205_v34 = vmul.f32 %v11011_v5, %v2157_v22  ;;  %v2128_v50 = vmul.f32 0.5, %v2105_v6  ;;  %8565 = vrcp.f32 %v11723_v44  ;;  %v2131_v37 = vmul.f32 0.5, %v2111_v1  ;;  %15706 = vst [vmem:[#allocation44_spill] sm:$0xff] %v11911_v48  ;;  %v11913_v44 = vpop.xlane.xlu0 %5512  ;;  %v15709_v6 = vld [vmem:[#allocation119_spill] sm:$0xff] }
 0x414   : > { %v2083_v39 = vmul.f32 %v8546_v59, %v2037_v61  ;;  %v8548_v56 = vpop.eup %8547  ;;  %7807 = vmatpush3.bf16.xpose.msra.mxu0 %v15703_v55  ;;  %v2223_v30 = vmul.f32 %v11335_v57, %v2207_v16  ;;  %v2937_v8 = vmul.f32 %v15704_v38, %v15704_v38  ;;  %v2938_v5 = vmul.f32 %v15705_v36, %v15705_v36  ;;  %v15714_v55 = vld [vmem:[#allocation13_spill] sm:$0xff] }
 0x415   : > { %v8550_v9 = vpop.eup %8549  ;;  %7808 = vmatprep.subr.bf16.mxu0 %v2949_v11  ;;  %v2162_v29 = vmul.f32 %v8548_v56, %v2130_v0  ;;  %15707 = vst [vmem:[#allocation116_spill] sm:$0xff] %v11913_v44  ;;  %v2252_v3 = vmul.f32 %v2220_v7, %v11218_v21  ;;  %vm2312_vm1 = vcmask 7168   ;;  %v6520_v54 = vshra.s32 %v9286_v47, 3 }
 0x416   : > { %v8552_v60 = vpop.eup %8551  ;;  %8567 = vlog2.f32 %v2083_v39  ;;  %v2107_v26 = vmul.f32 0.6931472, %v8550_v9  ;;  %v2255_v24 = vmul.f32 %v2223_v30, %v11257_v33  ;;  %v2948_v35 = vpack.c.bf16 %v2938_v5, %v2937_v8  ;;  %v11920_v16 = vpop.xlane.xlu1 %5514 }
 0x417   : > { %2266 = vadd.xlane.f32.xlu1 %v2249_v31  ;;  %2276 = vadd.xlane.f32.xlu0 %v2254_v17  ;;  %8569 = vrcp.f32 %v11760_v10  ;;  %v2117_v14 = vmul.f32 0.6931472, %v8552_v60  ;;  %v2221_v10 = vmul.f32 %v11355_v46, %v2205_v34  ;;  %v2210_v40 = vmul.f32 %v15708_v42, %v2162_v29  ;;  %15710 = vst [vmem:[#allocation68_spill] sm:$0xff] %v11920_v16  ;;  %v11922_v33 = vpop.xlane.xlu0 %5508  ;;  %v15712_v46 = vld [vmem:[#allocation122_spill] sm:$0xff]  ;;  %v15713_v31 = vld [vmem:[#allocation12_spill] sm:$0xff] }
 0x418   : > { %v8554_v62 = vpop.eup %8553  ;;  %v2129_v23 = vmul.f32 0.5, %v2107_v26  ;;  %15711 = vst [vmem:[#allocation53_spill] sm:$0xff] %v11922_v33  ;;  %v2428_v17 = vpack.c.bf16 %v2223_v30, %v11885_v45  ;;  %v2935_v56 = vmul.f32 %v15713_v31, %v15713_v31  ;;  %8571 = vrcp.f32 %v11826_v32  ;;  %v15717_v29 = vld [vmem:[#allocation142_spill] sm:$0xff]  ;;  %v15719_v32 = vld [vmem:[#allocation120_spill] sm:$0xff] }
 0x419   : > { %v8556_v27 = vpop.eup %8555  ;;  %v2160_v57 = vmul.f32 %v8554_v62, %v2128_v50  ;;  %v2134_v21 = vmul.f32 0.5, %v2117_v14  ;;  %v2427_v59 = vpack.c.bf16 %v2221_v10, %v2220_v7  ;;  %v2253_v39 = vmul.f32 %v2221_v10, %v11278_v52  ;;  %v15716_v52 = vld [vmem:[#allocation140_spill] sm:$0xff]  ;;  %v15721_v10 = vld [vmem:[#allocation137_spill] sm:$0xff]  ;;  %v15722_v42 = vld [vmem:[#allocation138_spill] sm:$0xff] }
 0x41a   : > { %v8558_v51 = vpop.eup %8557  ;;  %v2163_v13 = vmul.f32 %v8556_v27, %v2131_v37  ;;  %v2936_v7 = vmul.f32 %v15714_v55, %v15714_v55  ;;  %v15715_v37 = vld [vmem:[#allocation136_spill] sm:$0xff]  ;;  %v11936_v5 = vpop.xlane.xlu1 %5510  ;;  %v15728_v55 = vld [vmem:[#allocation141_spill] sm:$0xff] }
 0x41b   : > { %v8560_v4 = vpop.eup %8559  ;;  %2272 = vadd.xlane.f32.xlu0 %v2252_v3  ;;  %2278 = vadd.xlane.f32.xlu1 %v2255_v24  ;;  %v2113_v22 = vmul.f32 0.6931472, %v8558_v51  ;;  %v2208_v61 = vmul.f32 %v15709_v6, %v2160_v57  ;;  %15718 = vst [vmem:[#allocation54_spill] sm:$0xff] %v11936_v5  ;;  %v11938_v27 = vpop.xlane.xlu0 %2345  ;;  %v15720_v57 = vld [vmem:[#allocation125_spill] sm:$0xff]  ;;  %v2418_v5 = vld [vmem:[#allocation2 + $0x20] sm:$0xff] }
 0x41c   : > { %7809 = vmatpush3.bf16.xpose.msra.mxu0 %v2949_v11  ;;  %v2119_v53 = vmul.f32 0.6931472, %v8560_v4  ;;  %v2211_v1 = vmul.f32 %v15712_v46, %v2163_v13  ;;  %7762 = vmatprep.mubr.bf16.mxu0 %v2427_v59  ;;  %v2226_v11 = vmul.f32 %v11394_v43, %v2210_v40  ;;  %v2947_v36 = vpack.c.bf16 %v2936_v7, %v2935_v56  ;;  %v15724_v6 = vld [vmem:[#allocation145_spill] sm:$0xff]  ;;  %v15726_v59 = vld [vmem:[#allocation146_spill] sm:$0xff] }
 0x41d   : > { %7810 = vmatprep.subr.bf16.mxu0 %v2948_v35  ;;  %v2132_v50 = vmul.f32 0.5, %v2113_v22  ;;  %7763 = vmatmul.mubr.bf16.gmra.mxu0 %v2428_v17  ;;  %v2224_v62 = vmul.f32 %v15716_v52, %v2208_v61 }
 0x41e   : > { %v8562_v0 = vpop.eup %8561  ;;  %v2135_v45 = vmul.f32 0.5, %v2119_v53  ;;  %v2258_v30 = vmul.f32 %v2226_v11, %v15715_v37  ;;  %v2227_v38 = vmul.f32 %v15717_v29, %v2211_v1 }
 0x41f   : > { %v8564_v9 = vpop.eup %8563  ;;  %v2161_v34 = vmul.f32 %v8562_v0, %v2129_v23  ;;  %2274 = vadd.xlane.f32.xlu1 %v2253_v39  ;;  %v2256_v4 = vmul.f32 %v2224_v62, %v15721_v10  ;;  %v15723_v23 = vld [vmem:[#allocation123_spill] sm:$0xff]  ;;  %v11950_v1 = vpop.xlane.xlu0 %2349 }
 0x420   : > { %v2166_v60 = vmul.f32 %v8564_v9, %v2134_v21  ;;  %v8566_v43 = vpop.eup %8565  ;;  %2284 = vadd.xlane.f32.xlu0 %v2258_v30  ;;  %v2259_v40 = vmul.f32 %v2227_v38, %v15722_v42  ;;  %v15725_v21 = vld [vmem:[#allocation127_spill] sm:$0xff]  ;;  %v2430_v56 = vpack.c.bf16 %v2227_v38, %v2226_v11  ;;  %v15729_v9 = vld [vmem:[#allocation154_spill] sm:$0xff]  ;;  %v15732_v11 = vld [vmem:[#allocation149_spill] sm:$0xff] }
 0x421   : > { %v2209_v3 = vmul.f32 %v15719_v32, %v2161_v34  ;;  %v2164_v51 = vmul.f32 %v8566_v43, %v2132_v50  ;;  %v15727_v39 = vld [vmem:[#allocation139_spill] sm:$0xff]  ;;  %v15733_v38 = vld [vmem:[#allocation124_spill] sm:$0xff] }
 0x422   : > { %v2214_v14 = vmul.f32 %v15720_v57, %v2166_v60  ;;  %v15730_v60 = vld [vmem:[#allocation158_spill] sm:$0xff]  ;;  %v15734_v32 = vld [vmem:[#allocation163_spill] sm:$0xff] }
 0x423   : > { %v8568_v8 = vpop.eup %8567  ;;  %v2212_v22 = vmul.f32 %v15723_v23, %v2164_v51  ;;  %2286 = vadd.xlane.f32.xlu1 %v2259_v40  ;;  %v2225_v61 = vmul.f32 %v15724_v6, %v2209_v3  ;;  %v11958_v52 = vpop.xlane.xlu0 %2353  ;;  %v15735_v51 = vld [vmem:[#allocation17_spill] sm:$0xff]  ;;  %v15738_v6 = vmov 1065369472  }
 0x424   : > { %v8570_v26 = vpop.eup %8569  ;;  %7811 = vmatpush3.bf16.xpose.msra.mxu0 %v2948_v35  ;;  %v2115_v13 = vmul.f32 0.6931472, %v8568_v8  ;;  %2280 = vadd.xlane.f32.xlu0 %v2256_v4  ;;  %v2230_v46 = vmul.f32 %v15726_v59, %v2214_v14  ;;  %v11948_v35 = vpop.xlane.xlu1 %2347  ;;  %v2933_v57 = vmul.f32 %v15735_v51, %v15735_v51  ;;  %v15736_v14 = vld [vmem:[#allocation15_spill] sm:$0xff]  ;;  %v2331_v51 = vld [vmem:[#allocation4 + $0x10] sm:$0xff] }
 0x425   : > { %v2167_v24 = vmul.f32 %v8570_v26, %v2135_v45  ;;  %7812 = vmatprep.subr.bf16.mxu0 %v2947_v36  ;;  %v2429_v0 = vpack.c.bf16 %v2225_v61, %v2224_v62  ;;  %v2257_v31 = vmul.f32 %v2225_v61, %v15727_v39  ;;  %v2228_v34 = vmul.f32 %v15729_v9, %v2212_v22  ;;  %v8572_v50 = vpop.eup %8571  ;;  %v15731_v62 = vld [vmem:[#allocation144_spill] sm:$0xff]  ;;  %v15737_v4 = vld [vmem:[#allocation155_spill] sm:$0xff] }
 0x426   : > { %v2133_v17 = vmul.f32 0.5, %v2115_v13  ;;  %v2262_v7 = vmul.f32 %v2230_v46, %v15728_v55  ;;  %v15739_v61 = vld [vmem:[#allocation16_spill] sm:$0xff] }
 0x427   : > { %v2215_v53 = vmul.f32 %v15725_v21, %v2167_v24  ;;  %7766 = vmatprep.mubr.bf16.mxu0 %v2429_v0  ;;  %2282 = vadd.xlane.f32.xlu1 %v2257_v31  ;;  %v2260_v43 = vmul.f32 %v2228_v34, %v15731_v62  ;;  %v2358_v26 = vpop.xlane.xlu0 %2357  ;;  %v2934_v24 = vmul.f32 %v15736_v14, %v15736_v14 }
 0x428   : > { %v2165_v37 = vmul.f32 %v8572_v50, %v2133_v17  ;;  %7767 = vmatmul.mubr.bf16.gmra.mxu0 %v2430_v56  ;;  %2292 = vadd.xlane.f32.xlu0 %v2262_v7  ;;  %v11956_v30 = vpop.xlane.xlu1 %2351  ;;  %v2931_v21 = vmul.f32 %v15739_v61, %v15739_v61  ;;  %v15741_v56 = vld [vmem:[#allocation18_spill] sm:$0xff]  ;;  %v15742_v7 = vld [vmem:[#allocation117_spill] sm:$0xff]  ;;  %v2337_v61 = vld [vmem:[#allocation4 + $0x40] sm:$0xff] }
 0x429   : > { %v2231_v45 = vmul.f32 %v15730_v60, %v2215_v53  ;;  %v2946_v40 = vpack.c.bf16 %v2934_v24, %v2933_v57  ;;  %v15740_v53 = vld [vmem:[#allocation19_spill] sm:$0xff]  ;;  %v2929_v55 = vmul.f32 %v15741_v56, %v15741_v56  ;;  %v2930_v9 = vmul.f32 %v15742_v7, %v15742_v7  ;;  %v2332_v57 = vld [vmem:[#allocation4 + $0x18] sm:$0xff] }
 0x42a   : > { %v2213_v8 = vmul.f32 %v15733_v38, %v2165_v37  ;;  %v2932_v59 = vmul.f32 %v15740_v53, %v15740_v53  ;;  %v15743_v37 = vld [vmem:[#allocation20_spill] sm:$0xff]  ;;  %v2340_v7 = vld [vmem:[#allocation4 + $0x58] sm:$0xff] }
 0x42b   : > { %v2263_v29 = vmul.f32 %v2231_v45, %v15732_v11  ;;  %v2432_v42 = vpack.c.bf16 %v2231_v45, %v2230_v46  ;;  %v2362_v22 = vpop.xlane.xlu0 %2361  ;;  %v2944_v60 = vpack.c.bf16 %v2930_v9, %v2929_v55  ;;  %v2329_v45 = vld [vmem:[#allocation4] sm:$0xff]  ;;  %v2927_v62 = vmul.f32 %v15743_v37, %v15743_v37  ;;  %v2338_v53 = vld [vmem:[#allocation4 + $0x48] sm:$0xff] }
 0x42c   : > { %7813 = vmatpush3.bf16.xpose.msra.mxu0 %v2947_v36  ;;  %2288 = vadd.xlane.f32.xlu0 %v2260_v43  ;;  %v2356_v36 = vpop.xlane.xlu1 %2355  ;;  %v2229_v3 = vmul.f32 %v15734_v32, %v2213_v8  ;;  %v2945_v39 = vpack.c.bf16 %v2932_v59, %v2931_v21  ;;  %v15744_v43 = vld [vmem:[#allocation118_spill] sm:$0xff]  ;;  %v2377_v32 = vadd.f32 %v11938_v27, %v2329_v45  ;;  %v2339_v59 = vld [vmem:[#allocation4 + $0x50] sm:$0xff]  ;;  %v2342_v45 = vld [vmem:[#allocation4 + $0x68] sm:$0xff] }
 0x42d   : > { %2294 = vadd.xlane.f32.xlu1 %v2263_v29  ;;  %7814 = vmatprep.subr.bf16.mxu0 %v2946_v40  ;;  %v2928_v11 = vmul.f32 %v15744_v43, %v15744_v43  ;;  %v2379_v21 = vadd.f32 %v11950_v1, %v2331_v51  ;;  %v2380_v27 = vadd.f32 %v11956_v30, %v2332_v57 }
 0x42e   : > { %v2431_v10 = vpack.c.bf16 %v2229_v3, %v2228_v34  ;;  %v2261_v13 = vmul.f32 %v2229_v3, %v15737_v4  ;;  %2393 = vst.msk [vmem:[#allocation4] sm:$0xff] %vm2312_vm1, %v2377_v32  ;;  %v2330_v3 = vld [vmem:[#allocation4 + $0x8] sm:$0xff]  ;;  %v2385_v9 = vadd.f32 %v2362_v22, %v2337_v61 }
 0x42f   : > { %v2366_v0 = vpop.xlane.xlu0 %2365  ;;  %v2943_v8 = vpack.c.bf16 %v2928_v11, %v2927_v62  ;;  %v2334_v4 = vld [vmem:[#allocation4 + $0x28] sm:$0xff]  ;;  %2395 = vst.msk [vmem:[#allocation4 + $0x10] sm:$0xff] %vm2312_vm1, %v2379_v21  ;;  %2396 = vst.msk [vmem:[#allocation4 + $0x18] sm:$0xff] %vm2312_vm1, %v2380_v27  ;;  %v15745_v27 = vld [vmem:[#allocation14_spill] sm:$0xff] }
 0x430   : > { %7770 = vmatprep.mubr.bf16.mxu0 %v2431_v10  ;;  %v2360_v23 = vpop.xlane.xlu1 %2359  ;;  %v2333_v10 = vld [vmem:[#allocation4 + $0x20] sm:$0xff]  ;;  %v2382_v56 = vadd.f32 %v2356_v36, %v2334_v4  ;;  %v2387_v30 = vadd.f32 %v2366_v0, %v2339_v59  ;;  %2401 = vst.msk [vmem:[#allocation4 + $0x40] sm:$0xff] %vm2312_vm1, %v2385_v9 }
 0x431   : > { %2290 = vadd.xlane.f32.xlu1 %v2261_v13  ;;  %7771 = vmatmul.mubr.bf16.gmra.mxu0 %v2432_v42  ;;  %v2335_v13 = vld [vmem:[#allocation4 + $0x30] sm:$0xff]  ;;  %v2378_v42 = vadd.f32 %v11948_v35, %v2330_v3 }
 0x432   : > { %7822 = vmatprep.mubr.bf16.mxu0 %v15738_v6  ;;  %v2383_v55 = vadd.f32 %v2358_v26, %v2335_v13  ;;  %2398 = vst.msk [vmem:[#allocation4 + $0x28] sm:$0xff] %vm2312_vm1, %v2382_v56  ;;  %2403 = vst.msk [vmem:[#allocation4 + $0x50] sm:$0xff] %vm2312_vm1, %v2387_v30 }
 0x433   : > { %v2370_v31 = vpop.xlane.xlu0 %2369  ;;  %2394 = vst.msk [vmem:[#allocation4 + $0x8] sm:$0xff] %vm2312_vm1, %v2378_v42 }
 0x434   : > { %7815 = vmatpush3.bf16.xpose.msra.mxu0 %v2946_v40  ;;  %v2364_v17 = vpop.xlane.xlu1 %2363  ;;  %v2336_v40 = vld [vmem:[#allocation4 + $0x38] sm:$0xff]  ;;  %2399 = vst.msk [vmem:[#allocation4 + $0x30] sm:$0xff] %vm2312_vm1, %v2383_v55 }
 0x435   : > { %7816 = vmatprep.subr.bf16.mxu0 %v2945_v39  ;;  %v2384_v35 = vadd.f32 %v2360_v23, %v2336_v40  ;;  %v2386_v1 = vadd.f32 %v2364_v17, %v2338_v53  ;;  %v2343_v23 = vld [vmem:[#allocation4 + $0x70] sm:$0xff]  ;;  %v2344_v17 = vld [vmem:[#allocation4 + $0x78] sm:$0xff]  ;;  %v3784_v37 = vld [vmem:[#allocation4] sm:$0xff] }
 0x436   : > { %v3786_v32 = vld [vmem:[#allocation4 + $0x10] sm:$0xff]  ;;  %v3787_v57 = vld [vmem:[#allocation4 + $0x18] sm:$0xff] }
 0x437   : > { %v2374_v50 = vpop.xlane.xlu0 %2373  ;;  %2400 = vst.msk [vmem:[#allocation4 + $0x38] sm:$0xff] %vm2312_vm1, %v2384_v35  ;;  %2402 = vst.msk [vmem:[#allocation4 + $0x48] sm:$0xff] %vm2312_vm1, %v2386_v1 }
 0x438   : > { %v2368_v46 = vpop.xlane.xlu1 %2367  ;;  %v2391_v62 = vadd.f32 %v2374_v50, %v2343_v23 }
 0x439   : > { %v2388_v26 = vadd.f32 %v2368_v46, %v2340_v7  ;;  %v3789_v50 = vld [vmem:[#allocation4 + $0x28] sm:$0xff]  ;;  %v3794_v59 = vld [vmem:[#allocation4 + $0x50] sm:$0xff] }
 0x43a   : > { %v3785_v46 = vld [vmem:[#allocation4 + $0x8] sm:$0xff]  ;;  %2407 = vst.msk [vmem:[#allocation4 + $0x70] sm:$0xff] %vm2312_vm1, %v2391_v62 }
 0x43b   : > { %v3801_v38 = vpop.xlane.xlu0 %3800  ;;  %2404 = vst.msk [vmem:[#allocation4 + $0x58] sm:$0xff] %vm2312_vm1, %v2388_v26 }
 0x43c   : > { %7817 = vmatpush3.bf16.xpose.msra.mxu0 %v2945_v39  ;;  %v2372_v34 = vpop.xlane.xlu1 %2371  ;;  %v2381_v39 = vadd.f32 %v11958_v52, %v2333_v10  ;;  %v3832_v11 = vadd.f32 %v3801_v38, %v3784_v37  ;;  %v3792_v10 = vld [vmem:[#allocation4 + $0x40] sm:$0xff] }
 0x43d   : > { %7818 = vmatprep.subr.bf16.mxu0 %v2944_v60  ;;  %v2390_v0 = vadd.f32 %v2372_v34, %v2342_v45 }
 0x43e   : > { %2397 = vst.msk [vmem:[#allocation4 + $0x20] sm:$0xff] %vm2312_vm1, %v2381_v39  ;;  %3848 = vst.msk [vmem:[#allocation4] sm:$0xff] %vm2312_vm1, %v3832_v11  ;;  %v3793_v53 = vld [vmem:[#allocation4 + $0x48] sm:$0xff] }
 0x43f   : > { %v3805_v24 = vpop.xlane.xlu0 %3804  ;;  %2406 = vst.msk [vmem:[#allocation4 + $0x68] sm:$0xff] %vm2312_vm1, %v2390_v0  ;;  %v15747_v0 = vld [vmem:[#allocation147_spill] sm:$0xff] }
 0x440   : > { %v2376_v29 = vpop.xlane.xlu1 %2375  ;;  %v12028_v37 = vmax.f32 %v15747_v0, 1e-24 }
 0x441   : > { %v2392_v43 = vadd.f32 %v2376_v29, %v2344_v17  ;;  %v3790_v29 = vld [vmem:[#allocation4 + $0x30] sm:$0xff] }
 0x442   : > { %v3795_v35 = vld [vmem:[#allocation4 + $0x58] sm:$0xff]  ;;  %v3798_v23 = vld [vmem:[#allocation4 + $0x70] sm:$0xff]  ;;  %vm4208_vm4 = vcmp.eq.f32.partialorder %v12028_v37, inf  ;;  %vm4210_vm5 = vcmp.eq.f32.partialorder %v12028_v37, 0.0 }
 0x443   : > { %v3809_v36 = vpop.xlane.xlu0 %3808  ;;  %2408 = vst.msk [vmem:[#allocation4 + $0x78] sm:$0xff] %vm2312_vm1, %v2392_v43 }
 0x444   : > { %7819 = vmatpush3.bf16.xpose.msra.mxu0 %v2944_v60  ;;  %v3803_v14 = vpop.xlane.xlu1 %3802  ;;  %v2341_v60 = vld [vmem:[#allocation4 + $0x60] sm:$0xff] }
 0x445   : > { %7820 = vmatprep.subr.bf16.mxu0 %v2943_v8  ;;  %v2389_v22 = vadd.f32 %v2370_v31, %v2341_v60  ;;  %v3834_v31 = vadd.f32 %v3805_v24, %v3786_v32  ;;  %v3788_v34 = vld [vmem:[#allocation4 + $0x20] sm:$0xff] }
 0x446   : > { %v3836_v4 = vadd.f32 %v3809_v36, %v3788_v34  ;;  %v3797_v26 = vld [vmem:[#allocation4 + $0x68] sm:$0xff]  ;;  %v5239_v11 = vld [vmem:[#allocation4] sm:$0xff] }
 0x447   : > { %2405 = vst.msk [vmem:[#allocation4 + $0x60] sm:$0xff] %vm2312_vm1, %v2389_v22  ;;  %v3813_v51 = vpop.xlane.xlu0 %3812  ;;  %3850 = vst.msk [vmem:[#allocation4 + $0x10] sm:$0xff] %vm2312_vm1, %v3834_v31 }
 0x448   : > { %v3807_v52 = vpop.xlane.xlu1 %3806  ;;  %v3838_v13 = vadd.f32 %v3813_v51, %v3790_v29  ;;  %3852 = vst.msk [vmem:[#allocation4 + $0x20] sm:$0xff] %vm2312_vm1, %v3836_v4 }
 0x449   : > { %v3835_v38 = vadd.f32 %v3807_v52, %v3787_v57  ;;  %v15746_v52 = vld [vmem:[#allocation143_spill] sm:$0xff] }
 0x44a   : > { %3854 = vst.msk [vmem:[#allocation4 + $0x30] sm:$0xff] %vm2312_vm1, %v3838_v13  ;;  %v12023_v36 = vmax.f32 %v15746_v52, 1e-24 }
 0x44b   : > { %3851 = vst.msk [vmem:[#allocation4 + $0x18] sm:$0xff] %vm2312_vm1, %v3835_v38  ;;  %v3817_v40 = vpop.xlane.xlu0 %3816 }
 0x44c   : > { %7821 = vmatpush3.bf16.xpose.msra.mxu0 %v2943_v8  ;;  %v3833_v8 = vadd.f32 %v3803_v14, %v3785_v46  ;;  %v3811_v3 = vpop.xlane.xlu1 %3810  ;;  %v3791_v14 = vld [vmem:[#allocation4 + $0x38] sm:$0xff]  ;;  %v3840_v21 = vadd.f32 %v3817_v40, %v3792_v10  ;;  %8573 = vrsqrt.f32 %v12023_v36  ;;  %vm4201_vm2 = vcmp.eq.f32.partialorder %v12023_v36, inf }
 0x44d   : > { %v3837_v24 = vadd.f32 %v3811_v3, %v3789_v50  ;;  %v3799_v46 = vld [vmem:[#allocation4 + $0x78] sm:$0xff]  ;;  %8575 = vrsqrt.f32 %v12028_v37  ;;  %vm4203_vm3 = vcmp.eq.f32.partialorder %v12023_v36, 0.0 }
 0x44e   : > { %3849 = vst.msk [vmem:[#allocation4 + $0x8] sm:$0xff] %vm2312_vm1, %v3833_v8  ;;  %3856 = vst.msk [vmem:[#allocation4 + $0x40] sm:$0xff] %vm2312_vm1, %v3840_v21  ;;  %v3796_v9 = vld [vmem:[#allocation4 + $0x60] sm:$0xff]  ;;  %v5241_v57 = vld [vmem:[#allocation4 + $0x10] sm:$0xff] }
 0x44f   : > { %3853 = vst.msk [vmem:[#allocation4 + $0x28] sm:$0xff] %vm2312_vm1, %v3837_v24  ;;  %v5243_v24 = vld [vmem:[#allocation4 + $0x20] sm:$0xff]  ;;  %v15749_v40 = vld [vmem:[#allocation150_spill] sm:$0xff] }
 0x450   : > { %v3815_v42 = vpop.xlane.xlu1 %3814 }
 0x451   : > { %v3839_v61 = vadd.f32 %v3815_v42, %v3791_v14  ;;  %v15748_v14 = vld [vmem:[#allocation148_spill] sm:$0xff] }
 0x452   : > { %v12037_v10 = vmax.f32 %v15748_v14, 1e-24  ;;  %v5242_v4 = vld [vmem:[#allocation4 + $0x18] sm:$0xff]  ;;  %v2236_v14 = vld [vmem:[#allocation3 + $0x20] sm:$0xff] }
 0x453   : > { %7823 = vmatmul.mubr.bf16.vlgmr.msra.gmra.mxu0 %v15738_v6  ;;  %3855 = vst.msk [vmem:[#allocation4 + $0x38] sm:$0xff] %vm2312_vm1, %v3839_v61  ;;  %v12042_v61 = vmax.f32 %v15749_v40, 1e-24 }
 0x454   : > { %7826 = vmatprep.mubr.bf16.mxu0 %v15738_v6  ;;  %8577 = vrsqrt.f32 %v12037_v10  ;;  %vm4187_vm6 = vcmp.eq.f32.partialorder %v12037_v10, inf  ;;  %vm4189_vm7 = vcmp.eq.f32.partialorder %v12037_v10, 0.0 }
 0x455   : > { %v5240_v31 = vld [vmem:[#allocation4 + $0x8] sm:$0xff]  ;;  %8579 = vrsqrt.f32 %v12042_v61  ;;  %vm4194_vm8 = vcmp.eq.f32.partialorder %v12042_v61, inf  ;;  %vm4196_vm9 = vcmp.eq.f32.partialorder %v12042_v61, 0.0 }
 0x45b   : > { %7827 = vmatmul.mubr.bf16.gmra.mxu0 %v15738_v6 }
 0x45c   : > { %7830 = vmatprep.mubr.bf16.mxu0 %v15738_v6 }
 0x463   : > { %7831 = vmatmul.mubr.bf16.gmra.mxu0 %v15738_v6 }
 0x464   : > { %7834 = vmatprep.mubr.bf16.mxu0 %v15738_v6 }
 0x46b   : > { %7835 = vmatmul.mubr.bf16.gmra.mxu0 %v15738_v6 }
 0x46c   : > { %7886 = vmatprep.mubr.bf16.mxu0 %v15745_v27 }
 0x47f   : > { %v3819_v39 = vpop.xlane.xlu1 %3818  ;;  %v3821_v56 = vpop.xlane.xlu0 %3820 }
 0x480   : > { %v3841_v55 = vadd.f32 %v3819_v39, %v3793_v53  ;;  %v3842_v7 = vadd.f32 %v3821_v56, %v3794_v59  ;;  %v5244_v59 = vld [vmem:[#allocation4 + $0x28] sm:$0xff]  ;;  %v2234_v39 = vld [vmem:[#allocation3 + $0x10] sm:$0xff]  ;;  %v8574_v56 = vpop.eup %8573 }
 0x482   : > { %3857 = vst.msk [vmem:[#allocation4 + $0x48] sm:$0xff] %vm2312_vm1, %v3841_v55  ;;  %3858 = vst.msk [vmem:[#allocation4 + $0x50] sm:$0xff] %vm2312_vm1, %v3842_v7 }
 0x483   : > { %v3825_v1 = vpop.xlane.xlu0 %3824 }
 0x484   : > { %v3823_v60 = vpop.xlane.xlu1 %3822  ;;  %v3844_v45 = vadd.f32 %v3825_v1, %v3796_v9  ;;  %v4200_v1 = vmul.f32 %v8574_v56, %v12023_v36 }
 0x485   : > { %v3843_v30 = vadd.f32 %v3823_v60, %v3795_v35  ;;  %v8576_v60 = vpop.eup %8575 }
 0x486   : > { %3860 = vst.msk [vmem:[#allocation4 + $0x60] sm:$0xff] %vm2312_vm1, %v3844_v45  ;;  %v2235_v45 = vld [vmem:[#allocation3 + $0x18] sm:$0xff] }
 0x487   : > { %3859 = vst.msk [vmem:[#allocation4 + $0x58] sm:$0xff] %vm2312_vm1, %v3843_v30  ;;  %v2232_v30 = vld [vmem:[#allocation3] sm:$0xff] }
 0x488   : > { %v3827_v22 = vpop.xlane.xlu1 %3826  ;;  %v3829_v17 = vpop.xlane.xlu0 %3828 }
 0x489   : > { %v3845_v62 = vadd.f32 %v3827_v22, %v3797_v26  ;;  %v3846_v43 = vadd.f32 %v3829_v17, %v3798_v23  ;;  %v4204_v23 = vand.u32 2147483648, %v12023_v36  ;;  %v4207_v22 = vmul.f32 %v8576_v60, %v12028_v37 }
 0x48b   : > { %3861 = vst.msk [vmem:[#allocation4 + $0x68] sm:$0xff] %vm2312_vm1, %v3845_v62  ;;  %3862 = vst.msk [vmem:[#allocation4 + $0x70] sm:$0xff] %vm2312_vm1, %v3846_v43  ;;  %v4202_v62 = vsel %vm4201_vm2, %v12023_v36, %v4200_v1  ;;  %v2233_v43 = vld [vmem:[#allocation3 + $0x8] sm:$0xff]  ;;  %v2242_v1 = vld [vmem:[#allocation3 + $0x50] sm:$0xff] }
 0x48c   : > { %v3831_v8 = vpop.xlane.xlu1 %3830  ;;  %v5256_v32 = vpop.xlane.xlu0 %5255 }
 0x48d   : > { %v3847_v3 = vadd.f32 %v3831_v8, %v3799_v46  ;;  %v5287_v51 = vadd.f32 %v5256_v32, %v5239_v11  ;;  %v15750_v46 = vld [vmem:[#allocation151_spill] sm:$0xff]  ;;  %v2238_v8 = vld [vmem:[#allocation3 + $0x30] sm:$0xff]  ;;  %v4211_v32 = vand.u32 2147483648, %v12028_v37 }
 0x48e   : > { %v12058_v11 = vmax.f32 %v15750_v46, 1e-24  ;;  %v2243_v46 = vld [vmem:[#allocation3 + $0x58] sm:$0xff] }
 0x48f   : > { %3863 = vst.msk [vmem:[#allocation4 + $0x78] sm:$0xff] %vm2312_vm1, %v3847_v3  ;;  %5303 = vst.msk [vmem:[#allocation4] sm:$0xff] %vm2312_vm1, %v5287_v51  ;;  %v4205_v51 = vsel %vm4203_vm3, %v4204_v23, %v4202_v62  ;;  %v2240_v62 = vld [vmem:[#allocation3 + $0x40] sm:$0xff] }
 0x490   : > { %v5258_v34 = vpop.xlane.xlu1 %5257  ;;  %v5260_v50 = vpop.xlane.xlu0 %5259  ;;  %8581 = vrsqrt.f32 %v12058_v11  ;;  %vm4173_vm10 = vcmp.eq.f32.partialorder %v12058_v11, inf  ;;  %vm4175_vm11 = vcmp.eq.f32.partialorder %v12058_v11, 0.0 }
 0x491   : > { %v5288_v29 = vadd.f32 %v5258_v34, %v5240_v31  ;;  %v5289_v38 = vadd.f32 %v5260_v50, %v5241_v57  ;;  %v4209_v31 = vsel %vm4208_vm4, %v12028_v37, %v4207_v22  ;;  %v15751_v34 = vld [vmem:[#allocation152_spill] sm:$0xff]  ;;  %8583 = vtanh.f32 %v4205_v51 }
 0x492   : > { %v12066_v50 = vmax.f32 %v15751_v34, 1e-24  ;;  %8585 = vrcp.f32 %v4205_v51 }
 0x493   : > { %5304 = vst.msk [vmem:[#allocation4 + $0x8] sm:$0xff] %vm2312_vm1, %v5288_v29  ;;  %5305 = vst.msk [vmem:[#allocation4 + $0x10] sm:$0xff] %vm2312_vm1, %v5289_v38  ;;  %v8578_v38 = vpop.eup %8577 }
 0x494   : > { %v5262_v13 = vpop.xlane.xlu1 %5261  ;;  %v5264_v42 = vpop.xlane.xlu0 %5263  ;;  %8587 = vrsqrt.f32 %v12066_v50  ;;  %vm4180_vm12 = vcmp.eq.f32.partialorder %v12066_v50, inf  ;;  %vm4182_vm13 = vcmp.eq.f32.partialorder %v12066_v50, 0.0 }
 0x495   : > { %v5290_v21 = vadd.f32 %v5262_v13, %v5242_v4  ;;  %v5291_v53 = vadd.f32 %v5264_v42, %v5243_v24  ;;  %v4212_v4 = vsel %vm4210_vm5, %v4211_v32, %v4209_v31  ;;  %v2239_v24 = vld [vmem:[#allocation3 + $0x38] sm:$0xff]  ;;  %v8580_v37 = vpop.eup %8579  ;;  %v4186_v42 = vmul.f32 %v8578_v38, %v12037_v10 }
 0x496   : > { %8589 = vtanh.f32 %v4212_v4 }
 0x497   : > { %5306 = vst.msk [vmem:[#allocation4 + $0x18] sm:$0xff] %vm2312_vm1, %v5290_v21  ;;  %5307 = vst.msk [vmem:[#allocation4 + $0x20] sm:$0xff] %vm2312_vm1, %v5291_v53  ;;  %8591 = vrcp.f32 %v4212_v4  ;;  %v4188_v56 = vsel %vm4187_vm6, %v12037_v10, %v4186_v42  ;;  %v4176_v4 = vand.u32 2147483648, %v12058_v11  ;;  %v15755_v42 = vld [vmem:[#allocation159_spill] sm:$0xff] }
 0x498   : > { %v5266_v55 = vpop.xlane.xlu1 %5265  ;;  %v2269_v7 = vpop.xlane.xlu0 %2268 }
 0x499   : > { %v5292_v35 = vadd.f32 %v5266_v55, %v5244_v59  ;;  %v2298_v9 = vadd.f32 %v2269_v7, %v2234_v39  ;;  %v4190_v59 = vand.u32 2147483648, %v12037_v10  ;;  %v4193_v39 = vmul.f32 %v8580_v37, %v12042_v61  ;;  %v15752_v55 = vld [vmem:[#allocation153_spill] sm:$0xff] }
 0x49a   : > { %v12082_v7 = vmax.f32 %v15752_v55, 1e-24 }
 0x49b   : > { %5308 = vst.msk [vmem:[#allocation4 + $0x28] sm:$0xff] %vm2312_vm1, %v5292_v35  ;;  %2315 = vst.msk [vmem:[#allocation3 + $0x10] sm:$0xff] %vm2312_vm1, %v2298_v9  ;;  %v2237_v35 = vld [vmem:[#allocation3 + $0x28] sm:$0xff]  ;;  %v4197_v9 = vand.u32 2147483648, %v12042_v61 }
 0x49c   : > { %v2265_v52 = vpop.xlane.xlu0 %2264  ;;  %v2271_v26 = vpop.xlane.xlu1 %2270  ;;  %8593 = vrsqrt.f32 %v12082_v7  ;;  %vm4159_vm14 = vcmp.eq.f32.partialorder %v12082_v7, inf  ;;  %vm4161_vm15 = vcmp.eq.f32.partialorder %v12082_v7, 0.0 }
 0x49d   : > { %v2296_v17 = vadd.f32 %v2265_v52, %v2232_v30  ;;  %v2299_v0 = vadd.f32 %v2271_v26, %v2235_v45  ;;  %v4191_v30 = vsel %vm4189_vm7, %v4190_v59, %v4188_v56  ;;  %v4195_v45 = vsel %vm4194_vm8, %v12042_v61, %v4193_v39  ;;  %v15753_v26 = vld [vmem:[#allocation156_spill] sm:$0xff] }
 0x49e   : > { %v12089_v10 = vmax.f32 %v15753_v26, 1e-24  ;;  %8595 = vtanh.f32 %v4191_v30  ;;  %v4183_v39 = vand.u32 2147483648, %v12066_v50 }
 0x49f   : > { %2313 = vst.msk [vmem:[#allocation3] sm:$0xff] %vm2312_vm1, %v2296_v17  ;;  %2316 = vst.msk [vmem:[#allocation3 + $0x18] sm:$0xff] %vm2312_vm1, %v2299_v0  ;;  %v8582_v17 = vpop.eup %8581  ;;  %v4198_v0 = vsel %vm4196_vm9, %v4197_v9, %v4195_v45  ;;  %8597 = vrcp.f32 %v4191_v30  ;;  %v15756_v9 = vld [vmem:[#allocation58_spill] sm:$0xff] }
 0x4a0   : > { %v2267_v3 = vpop.xlane.xlu1 %2266  ;;  %v2277_v57 = vpop.xlane.xlu0 %2276  ;;  %8599 = vrsqrt.f32 %v12089_v10  ;;  %vm4166_vm0 = vcmp.eq.f32.partialorder %v12089_v10, inf  ;;  %vm4168_vm2 = vcmp.eq.f32.partialorder %v12089_v10, 0.0 }
 0x4a1   : > { %v2297_v36 = vadd.f32 %v2267_v3, %v2233_v43  ;;  %v2302_v29 = vadd.f32 %v2277_v57, %v2238_v8  ;;  %v8584_v43 = vpop.eup %8583  ;;  %8601 = vtanh.f32 %v4198_v0 }
 0x4a2   : > { %v8586_v61 = vpop.eup %8585  ;;  %8603 = vrcp.f32 %v4198_v0  ;;  %v2247_v0 = vld [vmem:[#allocation3 + $0x78] sm:$0xff] }
 0x4a3   : > { %2314 = vst.msk [vmem:[#allocation3 + $0x8] sm:$0xff] %vm2312_vm1, %v2297_v36  ;;  %2319 = vst.msk [vmem:[#allocation3 + $0x30] sm:$0xff] %vm2312_vm1, %v2302_v29  ;;  %v8588_v32 = vpop.eup %8587  ;;  %v4172_v36 = vmul.f32 %v8582_v17, %v12058_v11  ;;  %v15754_v29 = vld [vmem:[#allocation157_spill] sm:$0xff] }
 0x4a4   : > { %v2273_v13 = vpop.xlane.xlu0 %2272  ;;  %v2279_v21 = vpop.xlane.xlu1 %2278  ;;  %v12098_v38 = vmax.f32 %v15754_v29, 1e-24  ;;  %v4162_v29 = vand.u32 2147483648, %v12082_v7 }
 0x4a5   : > { %v2300_v40 = vadd.f32 %v2273_v13, %v2236_v14  ;;  %v2303_v53 = vadd.f32 %v2279_v21, %v2239_v24  ;;  %v8590_v31 = vpop.eup %8589  ;;  %v2241_v14 = vld [vmem:[#allocation3 + $0x48] sm:$0xff]  ;;  %v4179_v24 = vmul.f32 %v8588_v32, %v12066_v50  ;;  %v2246_v13 = vld [vmem:[#allocation3 + $0x70] sm:$0xff]  ;;  %v4174_v37 = vsel %vm4173_vm10, %v12058_v11, %v4172_v36 }
 0x4a6   : > { %v8592_v34 = vpop.eup %8591  ;;  %8605 = vrsqrt.f32 %v12098_v38  ;;  %vm4145_vm3 = vcmp.eq.f32.partialorder %v12098_v38, inf  ;;  %vm4147_vm5 = vcmp.eq.f32.partialorder %v12098_v38, 0.0 }
 0x4a7   : > { %2317 = vst.msk [vmem:[#allocation3 + $0x20] sm:$0xff] %vm2312_vm1, %v2300_v40  ;;  %2320 = vst.msk [vmem:[#allocation3 + $0x38] sm:$0xff] %vm2312_vm1, %v2303_v53  ;;  %v12107_v40 = vmax.f32 %v15755_v42, 1e-24  ;;  %v4258_v53 = vmul.f32 %v8586_v61, %v8584_v43  ;;  %v4260_v59 = vmul.f32 %v8592_v34, %v8590_v31  ;;  %v4181_v26 = vsel %vm4180_vm12, %v12066_v50, %v4179_v24  ;;  %v2245_v24 = vld [vmem:[#allocation3 + $0x68] sm:$0xff] }
 0x4a8   : > { %v2275_v60 = vpop.xlane.xlu1 %2274  ;;  %v4184_v50 = vsel %vm4182_vm13, %v4183_v39, %v4181_v26 }
 0x4a9   : > { %v2301_v52 = vadd.f32 %v2275_v60, %v2237_v35  ;;  %v2285_v23 = vpop.xlane.xlu0 %2284  ;;  %v12112_v60 = vmul.f32 %v4258_v53, %v15756_v9  ;;  %v8594_v45 = vpop.eup %8593  ;;  %8607 = vrsqrt.f32 %v12107_v40  ;;  %v15760_v53 = vld [vmem:[#allocation162_spill] sm:$0xff]  ;;  %v15762_v9 = vld [vmem:[#allocation64_spill] sm:$0xff]  ;;  %vm4152_vm4 = vcmp.eq.f32.partialorder %v12107_v40, inf }
 0x4aa   : > { %v2306_v22 = vadd.f32 %v2285_v23, %v2242_v1  ;;  %v15757_v1 = vld [vmem:[#allocation59_spill] sm:$0xff]  ;;  %v4158_v61 = vmul.f32 %v8594_v45, %v12082_v7  ;;  %vm4154_vm6 = vcmp.eq.f32.partialorder %v12107_v40, 0.0 }
 0x4ab   : > { %2318 = vst.msk [vmem:[#allocation3 + $0x28] sm:$0xff] %vm2312_vm1, %v2301_v52  ;;  %v12115_v30 = vmul.f32 %v4260_v59, %v15757_v1  ;;  %v4177_v52 = vsel %vm4175_vm11, %v4176_v4, %v4174_v37  ;;  %v2244_v23 = vld [vmem:[#allocation3 + $0x60] sm:$0xff]  ;;  %v12152_v59 = vmax.f32 %v15760_v53, 1e-24 }
 0x4ac   : > { %2323 = vst.msk [vmem:[#allocation3 + $0x50] sm:$0xff] %vm2312_vm1, %v2306_v22  ;;  %v2287_v51 = vpop.xlane.xlu1 %2286  ;;  %v15758_v22 = vld [vmem:[#allocation160_spill] sm:$0xff]  ;;  %8609 = vtanh.f32 %v4177_v52 }
 0x4ad   : > { %v2281_v8 = vpop.xlane.xlu0 %2280  ;;  %v2307_v57 = vadd.f32 %v2287_v51, %v2243_v46  ;;  %v12126_v17 = vmax.f32 %v15758_v22, 1e-24  ;;  %v12131_v11 = vpack.c.bf16 %v12115_v30, %v12112_v60  ;;  %8611 = vrcp.f32 %v4177_v52  ;;  %v15759_v51 = vld [vmem:[#allocation161_spill] sm:$0xff]  ;;  %v15763_v52 = vld [vmem:[#allocation164_spill] sm:$0xff] }
 0x4ae   : > { %v2304_v3 = vadd.f32 %v2281_v8, %v2240_v62  ;;  %v8596_v62 = vpop.eup %8595  ;;  %v12137_v31 = vmax.f32 %v15759_v51, 1e-24  ;;  %v12162_v26 = vmax.f32 %v15763_v52, 1e-24  ;;  %v4148_v51 = vand.u32 2147483648, %v12098_v38  ;;  %v15767_v52 = vld [vmem:[#allocation66_spill] sm:$0xff] }
 0x4af   : > { %2324 = vst.msk [vmem:[#allocation3 + $0x58] sm:$0xff] %vm2312_vm1, %v2307_v57  ;;  %v8598_v46 = vpop.eup %8597  ;;  %7870 = vmatprep.subr.bf16.mxu0 %v12131_v11  ;;  %8613 = vrsqrt.f32 %v12126_v17  ;;  %vm4131_vm7 = vcmp.eq.f32.partialorder %v12126_v17, inf  ;;  %vm4133_vm8 = vcmp.eq.f32.partialorder %v12126_v17, 0.0  ;;  %vm4117_vm11 = vcmp.eq.f32.partialorder %v12152_v59, inf }
 0x4b0   : > { %2321 = vst.msk [vmem:[#allocation3 + $0x40] sm:$0xff] %vm2312_vm1, %v2304_v3  ;;  %v2283_v21 = vpop.xlane.xlu1 %2282  ;;  %v8600_v3 = vpop.eup %8599  ;;  %7871 = vmatpush3.bf16.xpose.msra.mxu0 %v12131_v11  ;;  %8615 = vtanh.f32 %v4184_v50  ;;  %vm4138_vm9 = vcmp.eq.f32.partialorder %v12137_v31, inf  ;;  %vm4140_vm10 = vcmp.eq.f32.partialorder %v12137_v31, 0.0  ;;  %vm4124_vm12 = vcmp.eq.f32.partialorder %v12162_v26, inf }
 0x4b1   : > { %v2305_v56 = vadd.f32 %v2283_v21, %v2241_v14  ;;  %v2293_v55 = vpop.xlane.xlu0 %2292  ;;  %v8602_v57 = vpop.eup %8601  ;;  %8617 = vrcp.f32 %v4184_v50  ;;  %v4160_v14 = vsel %vm4159_vm14, %v12082_v7, %v4158_v61  ;;  %v4165_v4 = vmul.f32 %v8600_v3, %v12089_v10  ;;  %v15765_v50 = vld [vmem:[#allocation169_spill] sm:$0xff] }
 0x4b2   : > { %v2310_v35 = vadd.f32 %v2293_v55, %v2246_v13  ;;  %v8604_v34 = vpop.eup %8603  ;;  %8619 = vrsqrt.f32 %v12137_v31  ;;  %v4254_v13 = vmul.f32 %v8598_v46, %v8596_v62  ;;  %v4163_v42 = vsel %vm4161_vm15, %v4162_v29, %v4160_v14  ;;  %v15761_v55 = vld [vmem:[#allocation61_spill] sm:$0xff] }
 0x4b3   : > { %2322 = vst.msk [vmem:[#allocation3 + $0x48] sm:$0xff] %vm2312_vm1, %v2305_v56  ;;  %v4256_v37 = vmul.f32 %v8604_v34, %v8602_v57  ;;  %v4169_v21 = vand.u32 2147483648, %v12089_v10  ;;  %v4167_v7 = vsel %vm4166_vm0, %v12089_v10, %v4165_v4  ;;  %v8606_v45 = vpop.eup %8605  ;;  %8621 = vtanh.f32 %v4163_v42 }
 0x4b4   : > { %2327 = vst.msk [vmem:[#allocation3 + $0x70] sm:$0xff] %vm2312_vm1, %v2310_v35  ;;  %v12156_v35 = vmul.f32 %v4254_v13, %v15761_v55  ;;  %8623 = vrsqrt.f32 %v12152_v59  ;;  %v12178_v61 = vmax.f32 %v15765_v50, 1e-24  ;;  %v4155_v29 = vand.u32 2147483648, %v12107_v40  ;;  %v2409_v55 = vld [vmem:[#allocation2 + $0x30] sm:$0xff] }
 0x4b5   : > { %v2289_v43 = vpop.xlane.xlu0 %2288  ;;  %v12159_v1 = vmul.f32 %v4256_v37, %v15762_v9  ;;  %v4170_v10 = vsel %vm4168_vm2, %v4169_v21, %v4167_v7  ;;  %8625 = vrcp.f32 %v4163_v42  ;;  %v2411_v21 = vld [vmem:[#allocation2 + $0x58] sm:$0xff]  ;;  %v15766_v9 = vld [vmem:[#allocation65_spill] sm:$0xff]  ;;  %vm4119_vm13 = vcmp.eq.f32.partialorder %v12152_v59, 0.0 }
 0x4b6   : > { %v2308_v8 = vadd.f32 %v2289_v43, %v2244_v23  ;;  %v2295_v32 = vpop.xlane.xlu1 %2294  ;;  %v8608_v22 = vpop.eup %8607  ;;  %v4144_v43 = vmul.f32 %v8606_v45, %v12098_v38  ;;  %8627 = vrsqrt.f32 %v12162_v26  ;;  %vm4126_vm14 = vcmp.eq.f32.partialorder %v12162_v26, 0.0 }
 0x4b7   : > { %v2311_v36 = vadd.f32 %v2295_v32, %v2247_v0  ;;  %v12167_v23 = vpack.c.bf16 %v12159_v1, %v12156_v35  ;;  %v15764_v0 = vld [vmem:[#allocation165_spill] sm:$0xff]  ;;  %8629 = vtanh.f32 %v4170_v10  ;;  %v4151_v32 = vmul.f32 %v8608_v22, %v12107_v40 }
 0x4b8   : > { %2325 = vst.msk [vmem:[#allocation3 + $0x60] sm:$0xff] %vm2312_vm1, %v2308_v8  ;;  %v12171_v62 = vmax.f32 %v15764_v0, 1e-24  ;;  %v4146_v57 = vsel %vm4145_vm3, %v12098_v38, %v4144_v43  ;;  %v4141_v0 = vand.u32 2147483648, %v12137_v31  ;;  %vm4110_vm0 = vcmp.eq.f32.partialorder %v12178_v61, inf }
 0x4b9   : > { %2328 = vst.msk [vmem:[#allocation3 + $0x78] sm:$0xff] %vm2312_vm1, %v2311_v36  ;;  %7872 = vmatprep.subr.bf16.mxu0 %v12167_v23  ;;  %v8610_v46 = vpop.eup %8609  ;;  %v4153_v4 = vsel %vm4152_vm4, %v12107_v40, %v4151_v32  ;;  %v2412_v32 = vld [vmem:[#allocation2 + $0x18] sm:$0xff]  ;;  %vm4112_vm3 = vcmp.eq.f32.partialorder %v12178_v61, 0.0 }
 0x4ba   : > { %v2291_v39 = vpop.xlane.xlu1 %2290  ;;  %7873 = vmatpush3.bf16.xpose.msra.mxu0 %v12167_v23  ;;  %v8612_v8 = vpop.eup %8611  ;;  %8631 = vrsqrt.f32 %v12171_v62  ;;  %v4156_v37 = vsel %vm4154_vm6, %v4155_v29, %v4153_v4  ;;  %v2410_v4 = vld [vmem:[#allocation2] sm:$0xff]  ;;  %vm4103_vm15 = vcmp.eq.f32.partialorder %v12171_v62, inf  ;;  %vm4105_vm2 = vcmp.eq.f32.partialorder %v12171_v62, 0.0 }
 0x4bb   : > { %v2309_v56 = vadd.f32 %v2291_v39, %v2245_v24  ;;  %8633 = vrcp.f32 %v4170_v10  ;;  %v4149_v24 = vsel %vm4147_vm5, %v4148_v51, %v4146_v57  ;;  %v4250_v38 = vmul.f32 %v8612_v8, %v8610_v46 }
 0x4bc   : > { %v8614_v3 = vpop.eup %8613  ;;  %8635 = vrsqrt.f32 %v12178_v61  ;;  %v4134_v39 = vand.u32 2147483648, %v12126_v17 }
 0x4bd   : > { %2326 = vst.msk [vmem:[#allocation3 + $0x68] sm:$0xff] %vm2312_vm1, %v2309_v56  ;;  %v8616_v36 = vpop.eup %8615  ;;  %v4130_v13 = vmul.f32 %v8614_v3, %v12126_v17  ;;  %8637 = vtanh.f32 %v4149_v24  ;;  %v12199_v45 = vmul.f32 %v4250_v38, %v15766_v9  ;;  %v4120_v38 = vand.u32 2147483648, %v12152_v59 }
 0x4be   : > { %v8618_v34 = vpop.eup %8617  ;;  %8639 = vrcp.f32 %v4149_v24 }
 0x4bf   : > { %v8620_v14 = vpop.eup %8619  ;;  %v4252_v53 = vmul.f32 %v8618_v34, %v8616_v36  ;;  %v4132_v40 = vsel %vm4131_vm7, %v12126_v17, %v4130_v13  ;;  %8641 = vtanh.f32 %v4156_v37 }
 0x4c0   : > { %v4137_v42 = vmul.f32 %v8620_v14, %v12137_v31  ;;  %v8622_v7 = vpop.eup %8621  ;;  %8643 = vrcp.f32 %v4156_v37  ;;  %v4135_v36 = vsel %vm4133_vm8, %v4134_v39, %v4132_v40 }
 0x4c1   : > { %v12202_v22 = vmul.f32 %v4252_v53, %v15767_v52  ;;  %v8624_v10 = vpop.eup %8623  ;;  %8645 = vtanh.f32 %v4135_v36 }
 0x4c2   : > { %v8626_v46 = vpop.eup %8625  ;;  %v4139_v50 = vsel %vm4138_vm9, %v12137_v31, %v4137_v42  ;;  %v4116_v29 = vmul.f32 %v8624_v10, %v12152_v59  ;;  %8647 = vrcp.f32 %v4135_v36  ;;  %v15771_v36 = vld [vmem:[#allocation71_spill] sm:$0xff] }
 0x4c3   : > { %15768 = vst [vmem:[#allocation121_spill] sm:$0xff] %v12202_v22  ;;  %v12209_v3 = vpack.c.bf16 %v12202_v22, %v12199_v45  ;;  %v8628_v51 = vpop.eup %8627  ;;  %v4142_v24 = vsel %vm4140_vm10, %v4141_v0, %v4139_v50  ;;  %v4246_v52 = vmul.f32 %v8626_v46, %v8622_v7  ;;  %v4113_v46 = vand.u32 2147483648, %v12178_v61  ;;  %v15841_v22 = vld [vmem:[#allocation32_spill] sm:$0xff] }
 0x4c4   : > { %v8630_v34 = vpop.eup %8629  ;;  %v4123_v17 = vmul.f32 %v8628_v51, %v12162_v26  ;;  %8649 = vtanh.f32 %v4142_v24  ;;  %v4118_v39 = vsel %vm4117_vm11, %v12152_v59, %v4116_v29  ;;  %v2415_v59 = vld [vmem:[#allocation2 + $0x8] sm:$0xff] }
 0x4c5   : > { %7874 = vmatprep.subr.bf16.mxu0 %v12209_v3  ;;  %8651 = vrcp.f32 %v4142_v24  ;;  %v4121_v0 = vsel %vm4119_vm13, %v4120_v38, %v4118_v39 }
 0x4c6   : > { %7875 = vmatpush3.bf16.xpose.msra.mxu0 %v12209_v3  ;;  %8653 = vtanh.f32 %v4121_v0 }
 0x4c7   : > { %v8632_v31 = vpop.eup %8631  ;;  %8655 = vrcp.f32 %v4121_v0 }
 0x4c8   : > { %v8634_v37 = vpop.eup %8633  ;;  %v4102_v40 = vmul.f32 %v8632_v31, %v12171_v62 }
 0x4c9   : > { %v4248_v10 = vmul.f32 %v8634_v37, %v8630_v34 }
 0x4d2   : > { %v7760_v56 = vpop.f32.mrf.mxu0 }
 0x4d3   : > { %v2532_v43 = vadd.f32 %v7760_v56, %v2411_v21  ;;  %v8636_v21 = vpop.eup %8635  ;;  %v4127_v56 = vand.u32 2147483648, %v12162_v26 }
 0x4d4   : > { %v2467_v8 = vpop.f32.mrf.mxu0  ;;  %v4109_v9 = vmul.f32 %v8636_v21, %v12178_v61  ;;  %v8638_v50 = vpop.eup %8637  ;;  %v12250_v21 = vld [vmem:[%s9533_s18 + $0x30] sm:$0xff] }
 0x4d5   : > { %2548 = vst [vmem:[#allocation2 + $0x58] sm:$0xff] %v2532_v43  ;;  %v2530_v57 = vadd.f32 %v2467_v8, %v2409_v55  ;;  %v4125_v55 = vsel %vm4124_vm12, %v12162_v26, %v4123_v17  ;;  %v4106_v43 = vand.u32 2147483648, %v12171_v62  ;;  %v4104_v8 = vsel %vm4103_vm15, %v12171_v62, %v4102_v40  ;;  %v8640_v29 = vpop.eup %8639  ;;  %v2414_v62 = vld [vmem:[#allocation2 + $0x68] sm:$0xff] }
 0x4d6   : > { %v7761_v14 = vpop.f32.mrf.mxu0  ;;  %v4128_v7 = vsel %vm4126_vm14, %v4127_v56, %v4125_v55  ;;  %v4111_v31 = vsel %vm4110_vm0, %v12178_v61, %v4109_v9  ;;  %v5069_v38 = vshra.s32 %v12250_v21, 2  ;;  %v12256_v56 = vpop.f32.mrf.mxu1 }
 0x4d7   : > { %2546 = vst [vmem:[#allocation2 + $0x30] sm:$0xff] %v2530_v57  ;;  %v2533_v13 = vadd.f32 %v7761_v14, %v2412_v32  ;;  %v15769_v32 = vld [vmem:[#allocation70_spill] sm:$0xff]  ;;  %v12236_v57 = vmul.f32 %v4248_v10, %v15771_v36  ;;  %v2413_v14 = vld [vmem:[#allocation2 + $0x50] sm:$0xff]  ;;  %v4107_v26 = vsel %vm4105_vm2, %v4106_v43, %v4104_v8  ;;  %8657 = vtanh.f32 %v4128_v7 }
 0x4d8   : > { %v2470_v42 = vpop.f32.mrf.mxu0  ;;  %v12233_v51 = vmul.f32 %v4246_v52, %v15769_v32  ;;  %8659 = vrcp.f32 %v4128_v7  ;;  %v4114_v39 = vsel %vm4112_vm3, %v4113_v46, %v4111_v31  ;;  %v12259_v55 = vand.u32 1, %v5069_v38  ;;  %v12267_v32 = vld [vmem:[%s9533_s18 + $0x38] sm:$0xff]  ;;  %v12276_v31 = vpop.f32.mrf.mxu1 }
 0x4d9   : > { %2549 = vst [vmem:[#allocation2 + $0x18] sm:$0xff] %v2533_v13  ;;  %v2531_v53 = vadd.f32 %v2470_v42, %v2410_v4  ;;  %15772 = vst [vmem:[#allocation122_spill] sm:$0xff] %v12236_v57  ;;  %v8642_v4 = vpop.eup %8641  ;;  %v2416_v42 = vld [vmem:[#allocation2 + $0x48] sm:$0xff]  ;;  %8661 = vtanh.f32 %v4107_v26  ;;  %v4242_v52 = vmul.f32 %v8640_v29, %v8638_v50  ;;  %v5070_v36 = vshra.s32 %v12267_v32, 2  ;;  %v15774_v50 = vld [vmem:[#allocation73_spill] sm:$0xff] }
 0x4da   : > { %15770 = vst [vmem:[#allocation119_spill] sm:$0xff] %v12233_v51  ;;  %v12245_v13 = vpack.c.bf16 %v12236_v57, %v12233_v51  ;;  %v8644_v37 = vpop.eup %8643  ;;  %15773 = vst [vmem:[#allocation12_spill] sm:$0xff] %v12259_v55  ;;  %8663 = vrcp.f32 %v4107_v26  ;;  %v15322_v61 = vcvt.s32.f32 %v12259_v55  ;;  %v15839_v51 = vld [vmem:[#allocation28_spill] sm:$0xff] }
 0x4db   : > { %2547 = vst [vmem:[#allocation2] sm:$0xff] %v2531_v53  ;;  %v4244_v10 = vmul.f32 %v8644_v37, %v8642_v4  ;;  %v8646_v0 = vpop.eup %8645  ;;  %8665 = vtanh.f32 %v4114_v39  ;;  %v12271_v29 = vmul.f32 %v4242_v52, %v15774_v50  ;;  %v12282_v37 = vand.u32 1, %v5070_v36  ;;  %v12299_v52 = vpop.f32.mrf.mxu1 }
 0x4dc   : > { %7876 = vmatprep.subr.bf16.mxu0 %v12245_v13  ;;  %v8648_v7 = vpop.eup %8647  ;;  %8667 = vrcp.f32 %v4114_v39  ;;  %5267 = vadd.xlane.f32.xlu0 %v15322_v61 }
 0x4dd   : > { %v7764_v34 = vpop.f32.mrf.mxu0  ;;  %7877 = vmatpush3.bf16.xpose.msra.mxu0 %v12245_v13  ;;  %15775 = vst [vmem:[#allocation13_spill] sm:$0xff] %v12271_v29  ;;  %v8650_v4 = vpop.eup %8649  ;;  %15779 = vst [vmem:[#allocation142_spill] sm:$0xff] %v12282_v37  ;;  %v15327_v38 = vcvt.s32.f32 %v12282_v37 }
 0x4de   : > { %v2536_v24 = vadd.f32 %v7764_v34, %v2415_v59  ;;  %v12263_v59 = vld [vmem:[%s9533_s18 + $0x40] sm:$0xff]  ;;  %v15776_v34 = vld [vmem:[#allocation74_spill] sm:$0xff]  ;;  %v8652_v26 = vpop.eup %8651  ;;  %v12326_v61 = vpop.f32.mrf.mxu1 }
 0x4df   : > { %v2483_v17 = vpop.f32.mrf.mxu0  ;;  %v5071_v8 = vshra.s32 %v12263_v59, 2  ;;  %5269 = vadd.xlane.f32.xlu1 %v15327_v38  ;;  %v4240_v36 = vmul.f32 %v8652_v26, %v8650_v4  ;;  %v15782_v38 = vld [vmem:[#allocation76_spill] sm:$0xff] }
 0x4e0   : > { %2552 = vst [vmem:[#allocation2 + $0x8] sm:$0xff] %v2536_v24  ;;  %v2534_v53 = vadd.f32 %v2483_v17, %v2413_v14  ;;  %v12274_v14 = vmul.f32 %v4244_v10, %v15776_v34  ;;  %v2417_v34 = vld [vmem:[#allocation2 + $0x40] sm:$0xff] }
 0x4e1   : > { %v7765_v40 = vpop.f32.mrf.mxu0  ;;  %v12280_v24 = vand.u32 1, %v5071_v8  ;;  %v4238_v8 = vmul.f32 %v8648_v7, %v8646_v0  ;;  %v15784_v7 = vld [vmem:[#allocation78_spill] sm:$0xff] }
 0x4e2   : > { %2550 = vst [vmem:[#allocation2 + $0x50] sm:$0xff] %v2534_v53  ;;  %v2537_v9 = vadd.f32 %v7765_v40, %v2416_v42  ;;  %15777 = vst [vmem:[#allocation136_spill] sm:$0xff] %v12274_v14  ;;  %v12286_v17 = vpack.c.bf16 %v12274_v14, %v12271_v29  ;;  %v12291_v53 = vld [vmem:[%s9533_s18 + $0x50] sm:$0xff]  ;;  %v12295_v40 = vld [vmem:[%s9533_s18 + $0x48] sm:$0xff]  ;;  %v12324_v4 = vmul.f32 %v4240_v36, %v15784_v7 }
 0x4e3   : > { %v2486_v43 = vpop.f32.mrf.mxu0  ;;  %15778 = vst [vmem:[#allocation140_spill] sm:$0xff] %v12280_v24  ;;  %v15324_v42 = vcvt.s32.f32 %v12280_v24  ;;  %v5073_v39 = vshra.s32 %v12291_v53, 2  ;;  %v12313_v24 = vld [vmem:[%s9533_s18 + $0x60] sm:$0xff]  ;;  %v12321_v0 = vmul.f32 %v4238_v8, %v15782_v38 }
 0x4e4   : > { %2553 = vst [vmem:[#allocation2 + $0x48] sm:$0xff] %v2537_v9  ;;  %v2535_v46 = vadd.f32 %v2486_v43, %v2414_v62  ;;  %v5072_v62 = vshra.s32 %v12295_v40, 2  ;;  %7878 = vmatprep.subr.bf16.mxu0 %v12286_v17  ;;  %v2419_v9 = vld [vmem:[#allocation2 + $0x10] sm:$0xff]  ;;  %15785 = vst [vmem:[#allocation138_spill] sm:$0xff] %v12324_v4  ;;  %v15835_v29 = vld [vmem:[#allocation35_spill] sm:$0xff] }
 0x4e5   : > { %5271 = vadd.xlane.f32.xlu0 %v15324_v42  ;;  %7879 = vmatpush3.bf16.xpose.msra.mxu0 %v12286_v17  ;;  %v12304_v10 = vand.u32 1, %v5073_v39  ;;  %v5075_v42 = vshra.s32 %v12313_v24, 2  ;;  %v12317_v39 = vld [vmem:[%s9533_s18 + $0x58] sm:$0xff]  ;;  %15783 = vst [vmem:[#allocation137_spill] sm:$0xff] %v12321_v0  ;;  %v12338_v36 = vpack.c.bf16 %v12324_v4, %v12321_v0 }
 0x4e6   : > { %2551 = vst [vmem:[#allocation2 + $0x68] sm:$0xff] %v2535_v46  ;;  %v12306_v43 = vand.u32 1, %v5072_v62  ;;  %v8654_v46 = vpop.eup %8653  ;;  %v5074_v62 = vshra.s32 %v12317_v39, 2 }
 0x4e7   : > { %15780 = vst [vmem:[#allocation120_spill] sm:$0xff] %v12304_v10  ;;  %v8656_v20 = vpop.eup %8655  ;;  %v15786_v55 = vcvt.s32.f32 %v12304_v10  ;;  %v12330_v28 = vand.u32 1, %v5075_v42  ;;  %v12340_v10 = vpop.f32.mrf.mxu1  ;;  %7880 = vmatprep.subr.bf16.mxu0 %v12338_v36 }
 0x4e8   : > { %15781 = vst [vmem:[#allocation125_spill] sm:$0xff] %v12306_v43  ;;  %v7768_v50 = vpop.f32.mrf.mxu0  ;;  %v8658_v26 = vpop.eup %8657  ;;  %v12332_v19 = vand.u32 1, %v5074_v62  ;;  %v15789_v8 = vcvt.s32.f32 %v12306_v43  ;;  %v9282_v62 = vld [vmem:[%s9533_s18 + $0x70] sm:$0xff] }
 0x4e9   : > { %v2540_v37 = vadd.f32 %v7768_v50, %v2419_v9  ;;  %5275 = vadd.xlane.f32.xlu0 %v15786_v55  ;;  %15787 = vst [vmem:[#allocation123_spill] sm:$0xff] %v12330_v28  ;;  %v8660_v9 = vpop.eup %8659  ;;  %v15335_v55 = vcvt.s32.f32 %v12330_v28  ;;  %v5077_v33 = vshra.s32 %v9282_v62, 2  ;;  %v6518_v28 = vshra.s32 %v9284_v18, 3  ;;  %v12360_v58 = vpop.f32.mrf.mxu1  ;;  %v9287_v18 = vld [vmem:[%s9533_s18 + $0x8] sm:$0xff] }
 0x4ea   : > { %v2499_v12 = vpop.f32.mrf.mxu0  ;;  %15788 = vst [vmem:[#allocation145_spill] sm:$0xff] %v12332_v19  ;;  %5273 = vadd.xlane.f32.xlu1 %v15789_v8  ;;  %v8662_v50 = vpop.eup %8661 }
 0x4eb   : > { %2556 = vst [vmem:[#allocation2 + $0x10] sm:$0xff] %v2540_v37  ;;  %v2538_v38 = vadd.f32 %v2499_v12, %v2417_v34  ;;  %v12346_v37 = vld [vmem:[%s9533_s18 + $0x68] sm:$0xff]  ;;  %v8664_v34 = vpop.eup %8663  ;;  %v12353_v62 = vand.u32 1, %v5077_v33 }
 0x4ec   : > { %v7769_v7 = vpop.f32.mrf.mxu0  ;;  %v5076_v12 = vshra.s32 %v12346_v37, 2  ;;  %v8666_v43 = vpop.eup %8665  ;;  %v4230_v47 = vmul.f32 %v8664_v34, %v8662_v50  ;;  %v15803_v50 = vld [vmem:[#allocation85_spill] sm:$0xff] }
 0x4ed   : > { %2554 = vst [vmem:[#allocation2 + $0x40] sm:$0xff] %v2538_v38  ;;  %v2541_v8 = vadd.f32 %v7769_v7, %v2420_v25  ;;  %5279 = vadd.xlane.f32.xlu0 %v15335_v55  ;;  %7881 = vmatpush3.bf16.xpose.msra.mxu0 %v12338_v36  ;;  %15790 = vst [vmem:[#allocation127_spill] sm:$0xff] %v12353_v62  ;;  %v8668_v44 = vpop.eup %8667  ;;  %v15792_v25 = vcvt.s32.f32 %v12332_v19  ;;  %v4234_v38 = vmul.f32 %v8656_v20, %v8654_v46  ;;  %v2422_v19 = vld [vmem:[#allocation2 + $0x70] sm:$0xff] }
 0x4ee   : > { %v2502_v16 = vpop.f32.mrf.mxu0  ;;  %v12355_v42 = vand.u32 1, %v5076_v12  ;;  %v4236_v7 = vmul.f32 %v8660_v9, %v8658_v26  ;;  %v15337_v55 = vcvt.s32.f32 %v12353_v62  ;;  %v5078_v12 = vshra.s32 %v9285_v41, 2 }
 0x4ef   : > { %2557 = vst [vmem:[#allocation2 + $0x38] sm:$0xff] %v2541_v8  ;;  %v2539_v48 = vadd.f32 %v2502_v16, %v2418_v5  ;;  %5277 = vadd.xlane.f32.xlu1 %v15792_v25  ;;  %v15793_v16 = vld [vmem:[#allocation80_spill] sm:$0xff]  ;;  %v15795_v8 = vld [vmem:[#allocation81_spill] sm:$0xff]  ;;  %v12372_v46 = vand.u32 1, %v6518_v28  ;;  %v6519_v26 = vshra.s32 %v9287_v18, 3  ;;  %v12379_v41 = vand.u32 1, %v6520_v54 }
 0x4f0   : > { %15791 = vst [vmem:[#allocation146_spill] sm:$0xff] %v12355_v42  ;;  %v15336_v33 = vcvt.s32.f32 %v12355_v42  ;;  %v12367_v5 = vmul.f32 %v4234_v38, %v15793_v16  ;;  %v12370_v20 = vmul.f32 %v4236_v7, %v15795_v8  ;;  %v12377_v9 = vand.u32 1, %v5078_v12  ;;  %v2423_v25 = vld [vmem:[#allocation2 + $0x78] sm:$0xff]  ;;  %v9288_v16 = vld [vmem:[%s9533_s18 + $0x20] sm:$0xff]  ;;  %v12391_v8 = vpop.f32.mrf.mxu1  ;;  %v2424_v54 = vld [vmem:[#allocation2 + $0x28] sm:$0xff] }
 0x4f1   : > { %2555 = vst [vmem:[#allocation2 + $0x20] sm:$0xff] %v2539_v48  ;;  %15797 = vst [vmem:[#allocation154_spill] sm:$0xff] %v12372_v46  ;;  %5283 = vadd.xlane.f32.xlu0 %v15337_v55  ;;  %v4232_v48 = vmul.f32 %v8668_v44, %v8666_v43  ;;  %v12388_v7 = vand.u32 1, %v6519_v26  ;;  %v6522_v12 = vshra.s32 %v9288_v16, 3  ;;  %v15801_v44 = vld [vmem:[#allocation83_spill] sm:$0xff]  ;;  %v7772_v18 = vpop.f32.mrf.mxu0  ;;  %v9289_v55 = vld [vmem:[%s9533_s18 + $0x18] sm:$0xff]  ;;  %v15805_v42 = vcvt.s32.f32 %v12372_v46 }
 0x4f2   : > { %15794 = vst [vmem:[#allocation139_spill] sm:$0xff] %v12367_v5  ;;  %15796 = vst [vmem:[#allocation141_spill] sm:$0xff] %v12370_v20  ;;  %v12385_v28 = vpack.c.bf16 %v12370_v20, %v12367_v5  ;;  %v12395_v43 = vmul.f32 %v4230_v47, %v15801_v44  ;;  %v6521_v38 = vshra.s32 %v9289_v55, 3  ;;  %v2544_v16 = vadd.f32 %v7772_v18, %v2423_v25  ;;  %v12419_v62 = vpop.f32.mrf.mxu1 }
 0x4f3   : > { %15798 = vst [vmem:[#allocation158_spill] sm:$0xff] %v12377_v9  ;;  %15799 = vst [vmem:[#allocation144_spill] sm:$0xff] %v12379_v41  ;;  %5281 = vadd.xlane.f32.xlu1 %v15336_v33  ;;  %v12398_v34 = vmul.f32 %v4232_v48, %v15803_v50  ;;  %v2421_v33 = vld [vmem:[#allocation2 + $0x60] sm:$0xff]  ;;  %v12410_v48 = vand.u32 1, %v6522_v12  ;;  %v6524_v44 = vshra.s32 %v12250_v21, 3  ;;  %v2515_v50 = vpop.f32.mrf.mxu0  ;;  %v15807_v26 = vcvt.s32.f32 %v12377_v9 }
 0x4f4   : > { %15800 = vst [vmem:[#allocation149_spill] sm:$0xff] %v12388_v7  ;;  %15802 = vst [vmem:[#allocation124_spill] sm:$0xff] %v12395_v43  ;;  %7882 = vmatprep.subr.bf16.mxu0 %v12385_v28  ;;  %v12416_v25 = vand.u32 1, %v6521_v38  ;;  %v2542_v46 = vadd.f32 %v2515_v50, %v2421_v33  ;;  %v4396_v21 = vmul.f32 %v12112_v60, %v12112_v60  ;;  %v15809_v38 = vcvt.s32.f32 %v12379_v41 }
 0x4f5   : > { %15804 = vst [vmem:[#allocation163_spill] sm:$0xff] %v12398_v34  ;;  %6710 = vadd.xlane.f32.xlu0 %v15805_v42  ;;  %7883 = vmatpush3.bf16.xpose.msra.mxu0 %v12385_v28  ;;  %v12408_v47 = vpack.c.bf16 %v12398_v34, %v12395_v43  ;;  %15806 = vst [vmem:[#allocation17_spill] sm:$0xff] %v12410_v48  ;;  %v9290_v42 = vld [vmem:[%s9533_s18 + $0x28] sm:$0xff]  ;;  %v7773_v12 = vpop.f32.mrf.mxu0  ;;  %v12429_v33 = vand.u32 1, %v6524_v44  ;;  %v6526_v50 = vshra.s32 %v12263_v59, 3  ;;  %v15811_v9 = vcvt.s32.f32 %v12388_v7  ;;  %v15828_v34 = vld [vmem:[#allocation62_spill] sm:$0xff] }
 0x4f6   : > { %15808 = vst [vmem:[#allocation15_spill] sm:$0xff] %v12416_v25  ;;  %v6523_v18 = vshra.s32 %v9290_v42, 3  ;;  %2560 = vst [vmem:[#allocation2 + $0x78] sm:$0xff] %v2544_v16  ;;  %v2545_v55 = vadd.f32 %v7773_v12, %v2424_v54  ;;  %v15346_v16 = vcvt.s32.f32 %v12410_v48  ;;  %v15352_v60 = vcvt.s32.f32 %v12416_v25  ;;  %v12440_v12 = vpop.f32.mrf.mxu1  ;;  %v15829_v43 = vld [vmem:[#allocation23_spill] sm:$0xff] }
 0x4f7   : > { %5285 = vadd.xlane.f32.xlu1 %v15807_v26  ;;  %7884 = vmatprep.subr.bf16.mxu0 %v12408_v47  ;;  %v4397_v26 = vmul.f32 %v12115_v30, %v12115_v30  ;;  %2558 = vst [vmem:[#allocation2 + $0x60] sm:$0xff] %v2542_v46  ;;  %15810 = vst [vmem:[#allocation155_spill] sm:$0xff] %v12429_v33  ;;  %v2518_v42 = vpop.f32.mrf.mxu0  ;;  %v6525_v30 = vshra.s32 %v12267_v32, 3  ;;  %v15351_v59 = vcvt.s32.f32 %v12429_v33  ;;  %v6528_v32 = vshra.s32 %v12291_v53, 3 }
 0x4f8   : > { %v12435_v63 = vand.u32 1, %v6523_v18  ;;  %2561 = vst [vmem:[#allocation2 + $0x28] sm:$0xff] %v2545_v55  ;;  %v2543_v54 = vadd.f32 %v2518_v42, %v2422_v19  ;;  %v6527_v55 = vshra.s32 %v12295_v40, 3  ;;  %v12457_v18 = vpop.f32.mrf.mxu1  ;;  %v6530_v53 = vshra.s32 %v12313_v24, 3 }
 0x4f9   : > { %6714 = vadd.xlane.f32.xlu0 %v15809_v38  ;;  %v12438_v46 = vpack.c.bf16 %v4397_v26, %v4396_v21  ;;  %v12454_v44 = vand.u32 1, %v6525_v30  ;;  %v12462_v26 = vand.u32 1, %v6528_v32  ;;  %v6529_v40 = vshra.s32 %v12317_v39, 3  ;;  %v15818_v30 = vld [vmem:[#allocation42_spill] sm:$0xff] }
 0x4fa   : > { %15812 = vst [vmem:[#allocation16_spill] sm:$0xff] %v12435_v63  ;;  %2559 = vst [vmem:[#allocation2 + $0x70] sm:$0xff] %v2543_v54  ;;  %v15343_v19 = vcvt.s32.f32 %v12435_v63  ;;  %v12471_v42 = vpop.f32.mrf.mxu1  ;;  %v12478_v54 = vand.u32 1, %v6530_v53 }
 0x4fb   : > { %6712 = vadd.xlane.f32.xlu1 %v15811_v9  ;;  %15813 = vst [vmem:[#allocation19_spill] sm:$0xff] %v12438_v46  ;;  %7902 = vmatprep.subr.bf16.mxu1 %v12438_v46  ;;  %v12447_v9 = vand.u32 1, %v6526_v50  ;;  %15815 = vst [vmem:[#allocation117_spill] sm:$0xff] %v12454_v44  ;;  %v15345_v38 = vcvt.s32.f32 %v12454_v44  ;;  %v12468_v50 = vand.u32 1, %v6527_v55  ;;  %v15348_v24 = vcvt.s32.f32 %v12462_v26 }
 0x4fc   : > { %15816 = vst [vmem:[#allocation20_spill] sm:$0xff] %v12462_v26  ;;  %15819 = vst [vmem:[#allocation143_spill] sm:$0xff] %v12478_v54  ;;  %v12484_v39 = vand.u32 1, %v6529_v40  ;;  %v12486_v55 = vpop.f32.mrf.mxu1  ;;  %v3056_v26 = vmul.f32 2.0, %v12457_v18  ;;  %v3059_v63 = vmul.f32 2.0, %v12471_v42 }
 0x4fd   : > { %6718 = vadd.xlane.f32.xlu0 %v15346_v16  ;;  %7885 = vmatpush3.bf16.xpose.msra.mxu0 %v12408_v47  ;;  %15814 = vst [vmem:[#allocation18_spill] sm:$0xff] %v12447_v9  ;;  %v15344_v21 = vcvt.s32.f32 %v12447_v9  ;;  %15817 = vst [vmem:[#allocation118_spill] sm:$0xff] %v12468_v50  ;;  %v15347_v32 = vcvt.s32.f32 %v12468_v50  ;;  %v15823_v16 = vld [vmem:[#allocation49_spill] sm:$0xff]  ;;  %v3058_v9 = vmul.f32 2.0, %v12440_v12  ;;  %v3057_v25 = vmul.f32 2.0, %v12486_v55 }
 0x4fe   : > { %7934 = vmatprep.subr.bf16.mxu0 %v12131_v11  ;;  %15820 = vst [vmem:[#allocation147_spill] sm:$0xff] %v12484_v39  ;;  %v15350_v53 = vcvt.s32.f32 %v12484_v39  ;;  %v12498_v40 = vpop.f32.mrf.mxu1  ;;  %v3053_v39 = vmul.f32 2.0, %v12419_v62 }
 0x4ff   : > { %6716 = vadd.xlane.f32.xlu1 %v15352_v60  ;;  %v3052_v60 = vmul.f32 2.0, %v12360_v58  ;;  %v3062_v41 = vmul.f32 2.0, %v12498_v40  ;;  %v12567_v20 = vadd.f32 1.0, %v3057_v25 }
 0x501   : > { %6722 = vadd.xlane.f32.xlu0 %v15351_v59  ;;  %v3054_v59 = vmul.f32 2.0, %v12340_v10 }
 0x503   : > { %6720 = vadd.xlane.f32.xlu1 %v15343_v19  ;;  %v15821_v19 = vld [vmem:[#allocation45_spill] sm:$0xff]  ;;  %v12536_v7 = vadd.f32 1.0, %v3054_v59 }
 0x504   : > { %7887 = vmatmul.mubr.bf16.vlgmr.msra.gmra.mxu0 %v15818_v30  ;;  %v12558_v30 = vadd.f32 1.0, %v3059_v63  ;;  %v15830_v63 = vld [vmem:[#allocation29_spill] sm:$0xff] }
 0x505   : > { %6726 = vadd.xlane.f32.xlu0 %v15344_v21  ;;  %7935 = vmatpush3.bf16.msra.mxu0 %v12131_v11  ;;  %v15349_v11 = vcvt.s32.f32 %v12478_v54  ;;  %v6531_v21 = vshra.s32 %v12346_v37, 3  ;;  %v12510_v37 = vpop.f32.mrf.mxu1  ;;  %v3055_v54 = vmul.f32 2.0, %v12391_v8 }
 0x506   : > { %7936 = vmatprep.subr.bf16.mxu0 %v12167_v23  ;;  %7890 = vmatprep.mubr.bf16.mxu0 %v15821_v19  ;;  %v12556_v19 = vadd.f32 1.0, %v3056_v26 }
 0x507   : > { %6724 = vadd.xlane.f32.xlu1 %v15345_v38  ;;  %v12500_v38 = vand.u32 1, %v6531_v21  ;;  %v3050_v21 = vmul.f32 2.0, %v12256_v56 }
 0x509   : > { %6730 = vadd.xlane.f32.xlu0 %v15348_v24  ;;  %7937 = vmatpush3.bf16.msra.mxu0 %v12167_v23  ;;  %15822 = vst [vmem:[#allocation148_spill] sm:$0xff] %v12500_v38  ;;  %v15355_v23 = vcvt.s32.f32 %v12500_v38  ;;  %v3048_v24 = vmul.f32 2.0, %v12276_v31  ;;  %v15826_v38 = vld [vmem:[#allocation56_spill] sm:$0xff] }
 0x50a   : > { %7938 = vmatprep.subr.bf16.mxu0 %v12209_v3 }
 0x50b   : > { %6728 = vadd.xlane.f32.xlu1 %v15347_v32  ;;  %v15824_v32 = vld [vmem:[#allocation50_spill] sm:$0xff]  ;;  %v3064_v50 = vadd.f32 1.0, %v3048_v24  ;;  %v12540_v24 = vadd.f32 1.0, %v3055_v54 }
 0x50c   : > { %7891 = vmatmul.mubr.bf16.gmra.mxu0 %v15823_v16  ;;  %v12554_v16 = vadd.f32 1.0, %v3058_v9  ;;  %v12569_v9 = vadd.f32 1.0, %v3062_v41  ;;  %v15832_v41 = vld [vmem:[#allocation24_spill] sm:$0xff] }
 0x50d   : > { %6734 = vadd.xlane.f32.xlu0 %v15349_v11  ;;  %7939 = vmatpush3.bf16.msra.mxu0 %v12209_v3  ;;  %v12519_v3 = vpop.f32.mrf.mxu1  ;;  %v3051_v11 = vmul.f32 2.0, %v12299_v52 }
 0x50e   : > { %7940 = vmatprep.subr.bf16.mxu0 %v12245_v13  ;;  %7894 = vmatprep.mubr.bf16.mxu0 %v15824_v32  ;;  %v15827_v32 = vld [vmem:[#allocation22_spill] sm:$0xff]  ;;  %v3063_v59 = vmul.f32 2.0, %v12519_v3 }
 0x50f   : > { %6732 = vadd.xlane.f32.xlu1 %v15350_v53  ;;  %v3049_v53 = vmul.f32 2.0, %v12326_v61  ;;  %v12534_v44 = vpop.f32.mrf.mxu1  ;;  %v3067_v48 = vadd.f32 1.0, %v3051_v11 }
 0x511   : > { %7941 = vmatpush3.bf16.msra.mxu0 %v12245_v13  ;;  %v15825_v13 = vld [vmem:[#allocation55_spill] sm:$0xff]  ;;  %v3065_v33 = vadd.f32 1.0, %v3049_v53  ;;  %v12552_v53 = vadd.f32 1.0, %v3053_v39 }
 0x512   : > { %7942 = vmatprep.subr.bf16.mxu0 %v12286_v17 }
 0x513   : > { %6736 = vadd.xlane.f32.xlu1 %v15355_v23  ;;  %v3066_v23 = vadd.f32 1.0, %v3050_v21  ;;  %v7824_v21 = vpop.f32.mrf.mxu0 }
 0x514   : > { %7895 = vmatmul.mubr.bf16.gmra.mxu0 %v15825_v13  ;;  %v3098_v11 = vmul.f32 %v7824_v21, %v15827_v32 }
 0x515   : > { %7943 = vmatpush3.bf16.msra.mxu0 %v12286_v17  ;;  %7898 = vmatprep.mubr.bf16.mxu0 %v15826_v38  ;;  %v12538_v17 = vadd.f32 1.0, %v3052_v60  ;;  %v3060_v38 = vmul.f32 2.0, %v12510_v37  ;;  %v12546_v13 = vadd.f32 %v7824_v21, %v3066_v23  ;;  %v3061_v60 = vmul.f32 2.0, %v12534_v44  ;;  %v2985_v54 = vpop.f32.mrf.mxu0 }
 0x516   : > { %7944 = vmatprep.subr.bf16.mxu0 %v12338_v36  ;;  %v12563_v49 = vadd.f32 %v3064_v50, %v2985_v54  ;;  %v3096_v15 = vmul.f32 %v2985_v54, %v15829_v43 }
 0x517   : > { %v3162_v27 = vmul.f32 %v12546_v13, %v12546_v13  ;;  %v3194_v6 = vmul.f32 2.0, %v12546_v13  ;;  %v7825_v39 = vpop.f32.mrf.mxu0  ;;  %v12571_v26 = vadd.f32 1.0, %v3060_v38  ;;  %v12577_v5 = vadd.f32 1.0, %v3061_v60  ;;  %v15834_v60 = vld [vmem:[#allocation26_spill] sm:$0xff] }
 0x518   : > { %v3192_v4 = vmul.f32 2.0, %v12563_v49  ;;  %v12581_v25 = vadd.f32 %v7825_v39, %v3067_v48  ;;  %v3099_v0 = vmul.f32 %v7825_v39, %v15832_v41  ;;  %v3259_v46 = vmul.f32 %v7825_v39, %v15839_v51 }
 0x519   : > { %7945 = vmatpush3.bf16.msra.mxu0 %v12338_v36  ;;  %v3114_v36 = vadd.f32 %v3098_v11, %v3066_v23  ;;  %v3210_v23 = vmul.f32 %v3194_v6, %v15830_v63  ;;  %v12575_v11 = vadd.f32 1.0, %v3063_v59  ;;  %v2988_v38 = vpop.f32.mrf.mxu0  ;;  %v3178_v2 = vmul.f32 %v3162_v27, %v15827_v32 }
 0x51a   : > { %7946 = vmatprep.subr.bf16.mxu0 %v12385_v28  ;;  %15831 = vst [vmem:[#allocation150_spill] sm:$0xff] %v12581_v25  ;;  %v3160_v6 = vmul.f32 %v12563_v49, %v12563_v49  ;;  %v12588_v59 = vadd.f32 %v3065_v33, %v2988_v38  ;;  %v3258_v27 = vmul.f32 %v7824_v21, %v15835_v29 }
 0x51b   : > { %8669 = vrcp.f32 %v3114_v36  ;;  %v3208_v36 = vmul.f32 %v3192_v4, %v15834_v60  ;;  %v7828_v63 = vpop.f32.mrf.mxu0 }
 0x51c   : > { %7899 = vmatmul.mubr.bf16.gmra.mxu0 %v15828_v34  ;;  %v3112_v34 = vadd.f32 %v3096_v15, %v3064_v50  ;;  %15833 = vst [vmem:[#allocation151_spill] sm:$0xff] %v12588_v59  ;;  %v3115_v15 = vadd.f32 %v3099_v0, %v3067_v48  ;;  %v3163_v50 = vmul.f32 %v12581_v25, %v12581_v25  ;;  %v3193_v0 = vmul.f32 2.0, %v12588_v59 }
 0x51d   : > { %7947 = vmatpush3.bf16.msra.mxu0 %v12385_v28  ;;  %v3226_v28 = vmul.f32 %v12256_v56, %v3210_v23  ;;  %v3195_v56 = vmul.f32 2.0, %v12581_v25  ;;  %v15836_v23 = vld [vmem:[#allocation21_spill] sm:$0xff]  ;;  %v3224_v57 = vmul.f32 %v3208_v36, %v12276_v31  ;;  %v3161_v4 = vmul.f32 %v12588_v59, %v12588_v59  ;;  %v15840_v31 = vld [vmem:[#allocation27_spill] sm:$0xff] }
 0x51e   : > { %7948 = vmatprep.subr.bf16.mxu0 %v12408_v47  ;;  %8671 = vrcp.f32 %v3112_v34  ;;  %v3097_v32 = vmul.f32 %v2988_v38, %v15836_v23  ;;  %v12601_v34 = vpop.f32.mrf.mxu0  ;;  %v3176_v48 = vmul.f32 %v3160_v6, %v15829_v43  ;;  %v3179_v60 = vmul.f32 %v3163_v50, %v15832_v41 }
 0x51f   : > { %v3242_v14 = vadd.f32 %v3226_v28, %v3178_v2  ;;  %8673 = vrcp.f32 %v3115_v15  ;;  %v15838_v28 = vld [vmem:[#allocation31_spill] sm:$0xff]  ;;  %v3209_v36 = vmul.f32 %v3193_v0, %v15840_v31  ;;  %v12610_v15 = vadd.f32 %v7828_v63, %v12536_v7  ;;  %v15844_v0 = vld [vmem:[#allocation57_spill] sm:$0xff] }
 0x520   : > { %v3211_v21 = vmul.f32 %v3195_v56, %v15838_v28  ;;  %v3113_v29 = vadd.f32 %v3097_v32, %v3065_v33  ;;  %v3240_v25 = vadd.f32 %v3224_v57, %v3176_v48  ;;  %v3102_v6 = vmul.f32 %v7828_v63, %v15841_v22  ;;  %v7829_v50 = vpop.f32.mrf.mxu0  ;;  %v15845_v48 = vld [vmem:[#allocation67_spill] sm:$0xff] }
 0x521   : > { %7949 = vmatpush3.bf16.msra.mxu0 %v12408_v47  ;;  %v15837_v47 = vld [vmem:[#allocation33_spill] sm:$0xff]  ;;  %v3274_v43 = vadd.f32 %v3258_v27, %v3242_v14  ;;  %v3225_v33 = vmul.f32 %v3209_v36, %v12326_v61  ;;  %v3198_v32 = vmul.f32 2.0, %v12610_v15  ;;  %v3166_v56 = vmul.f32 %v12610_v15, %v12610_v15 }
 0x522   : > { %v3256_v2 = vmul.f32 %v2985_v54, %v15837_v47  ;;  %v3227_v59 = vmul.f32 %v12299_v52, %v3211_v21  ;;  %8675 = vrcp.f32 %v3113_v29  ;;  %v3177_v54 = vmul.f32 %v3161_v4, %v15836_v23  ;;  %v15842_v29 = vld [vmem:[#allocation37_spill] sm:$0xff] }
 0x523   : > { %v3118_v39 = vadd.f32 %v3102_v6, %v12536_v7  ;;  %v12622_v57 = vadd.f32 %v12538_v17, %v12601_v34  ;;  %v3100_v52 = vmul.f32 %v12601_v34, %v15842_v29  ;;  %v15843_v27 = vld [vmem:[#allocation25_spill] sm:$0xff]  ;;  %v3214_v61 = vmul.f32 %v3198_v32, %v15844_v0 }
 0x524   : > { %v3243_v14 = vadd.f32 %v3227_v59, %v3179_v60  ;;  %v3257_v4 = vmul.f32 %v2988_v38, %v15843_v27  ;;  %v3262_v21 = vmul.f32 %v7828_v63, %v15845_v48  ;;  %v3272_v36 = vadd.f32 %v3256_v2, %v3240_v25  ;;  %v3004_v60 = vpop.f32.mrf.mxu0  ;;  %v15847_v2 = vld [vmem:[#allocation39_spill] sm:$0xff]  ;;  %v15850_v27 = vld [vmem:[#allocation40_spill] sm:$0xff] }
 0x525   : > { %v3241_v31 = vadd.f32 %v3225_v33, %v3177_v54  ;;  %8677 = vrcp.f32 %v3118_v39  ;;  %v3116_v7 = vadd.f32 %v3100_v52, %v12538_v17  ;;  %v3230_v51 = vmul.f32 %v12340_v10, %v3214_v61  ;;  %v15848_v33 = vld [vmem:[#allocation51_spill] sm:$0xff] }
 0x526   : > { %v3164_v28 = vmul.f32 %v12622_v57, %v12622_v57  ;;  %v3196_v59 = vmul.f32 2.0, %v12622_v57  ;;  %v12637_v38 = vadd.f32 %v7829_v50, %v12540_v24  ;;  %v3182_v25 = vmul.f32 %v3166_v56, %v15841_v22 }
 0x527   : > { %8679 = vrcp.f32 %v3116_v7  ;;  %v3103_v17 = vmul.f32 %v7829_v50, %v15847_v2  ;;  %v3275_v54 = vadd.f32 %v3259_v46, %v3243_v14  ;;  %v3273_v48 = vadd.f32 %v3257_v4, %v3241_v31 }
 0x528   : > { %v12630_v6 = vpop.eup %8669  ;;  %15846 = vst [vmem:[#allocation152_spill] sm:$0xff] %v12637_v38  ;;  %v3212_v32 = vmul.f32 %v3196_v59, %v15848_v33  ;;  %v3167_v10 = vmul.f32 %v12637_v38, %v12637_v38  ;;  %v3199_v39 = vmul.f32 2.0, %v12637_v38  ;;  %v12651_v56 = vadd.f32 %v12552_v53, %v3004_v60 }
 0x529   : > { %v3290_v63 = vmul.f32 %v12630_v6, %v3274_v43  ;;  %v3119_v43 = vadd.f32 %v3103_v17, %v12540_v24  ;;  %v3246_v46 = vadd.f32 %v3230_v51, %v3182_v25  ;;  %v3180_v14 = vmul.f32 %v3164_v28, %v15842_v29 }
 0x52a   : > { %15849 = vst [vmem:[#allocation153_spill] sm:$0xff] %v12651_v56  ;;  %v3228_v59 = vmul.f32 %v3212_v32, %v12360_v58  ;;  %v3215_v22 = vmul.f32 %v3199_v39, %v15850_v27  ;;  %v3165_v58 = vmul.f32 %v12651_v56, %v12651_v56  ;;  %v3197_v25 = vmul.f32 2.0, %v12651_v56  ;;  %v7832_v32 = vpop.f32.mrf.mxu0 }
 0x52b   : > { %v12646_v52 = vpop.eup %8671  ;;  %v3306_v61 = vmul.f32 %v12630_v6, %v3290_v63  ;;  %8681 = vrcp.f32 %v3119_v43  ;;  %v15851_v63 = vld [vmem:[#allocation30_spill] sm:$0xff] }
 0x52c   : > { %v3288_v7 = vmul.f32 %v12646_v52, %v3272_v36  ;;  %v12656_v33 = vpop.eup %8673  ;;  %v3101_v31 = vmul.f32 %v3004_v60, %v15851_v63  ;;  %v3244_v17 = vadd.f32 %v3228_v59, %v3180_v14  ;;  %v3183_v36 = vmul.f32 %v3167_v10, %v15847_v2  ;;  %v15854_v59 = vld [vmem:[#allocation38_spill] sm:$0xff] }
 0x52d   : > { %v3322_v0 = vmax.f32 %v3306_v61, 1e-24  ;;  %v3291_v4 = vmul.f32 %v12656_v33, %v3275_v54  ;;  %v3231_v51 = vmul.f32 %v12391_v8, %v3215_v22  ;;  %v3278_v2 = vadd.f32 %v3262_v21, %v3246_v46  ;;  %v15857_v46 = vld [vmem:[#allocation36_spill] sm:$0xff] }
 0x52e   : > { %v3304_v24 = vmul.f32 %v12646_v52, %v3288_v7  ;;  %v3117_v28 = vadd.f32 %v3101_v31, %v12552_v53  ;;  %v15852_v7 = vld [vmem:[#allocation60_spill] sm:$0xff]  ;;  %v3213_v31 = vmul.f32 %v3197_v25, %v15854_v59 }
 0x52f   : > { %v12668_v39 = vpop.eup %8675  ;;  %v12670_v61 = vmin.f32 %v3322_v0, 0.999998  ;;  %v3307_v54 = vmul.f32 %v12656_v33, %v3291_v4  ;;  %v3260_v10 = vmul.f32 %v12601_v34, %v15852_v7  ;;  %v3247_v8 = vadd.f32 %v3231_v51, %v3183_v36  ;;  %v15853_v53 = vld [vmem:[#allocation48_spill] sm:$0xff]  ;;  %v3017_v34 = vpop.f32.mrf.mxu0  ;;  %v15856_v36 = vld [vmem:[#allocation46_spill] sm:$0xff] }
 0x530   : > { %v3320_v43 = vmax.f32 %v3304_v24, 1e-24  ;;  %v3289_v22 = vmul.f32 %v12668_v39, %v3273_v48  ;;  %v3263_v14 = vmul.f32 %v7829_v50, %v15853_v53  ;;  %8683 = vrcp.f32 %v3117_v28 }
 0x531   : > { %v3323_v27 = vmax.f32 %v3307_v54, 1e-24  ;;  %v3276_v29 = vadd.f32 %v3260_v10, %v3244_v17  ;;  %v3181_v24 = vmul.f32 %v3165_v58, %v15851_v63  ;;  %v12683_v4 = vadd.f32 %v7832_v32, %v12554_v16 }
 0x532   : > { %v12678_v47 = vmin.f32 %v3320_v43, 0.999998  ;;  %v3305_v0 = vmul.f32 %v12668_v39, %v3289_v22  ;;  %v12685_v48 = vpop.eup %8677  ;;  %8685 = vrsqrt.f32 %v12670_v61  ;;  %v3229_v50 = vmul.f32 %v3213_v31, %v12419_v62  ;;  %v15860_v31 = vld [vmem:[#allocation86_spill] sm:$0xff] }
 0x533   : > { %15855 = vst [vmem:[#allocation156_spill] sm:$0xff] %v12683_v4  ;;  %v3261_v21 = vmul.f32 %v3004_v60, %v15856_v36  ;;  %v3106_v17 = vmul.f32 %v7832_v32, %v15857_v46  ;;  %v12691_v51 = vmin.f32 %v3323_v27, 0.999998  ;;  %v3294_v25 = vmul.f32 %v12685_v48, %v3278_v2  ;;  %v15859_v2 = vld [vmem:[#allocation98_spill] sm:$0xff]  ;;  %v7833_v36 = vpop.f32.mrf.mxu0 }
 0x534   : > { %v3321_v28 = vmax.f32 %v3305_v0, 1e-24  ;;  %v3279_v58 = vadd.f32 %v3263_v14, %v3247_v8  ;;  %v12694_v43 = vpop.eup %8679  ;;  %v3170_v10 = vmul.f32 %v12683_v4, %v12683_v4  ;;  %v3202_v22 = vmul.f32 2.0, %v12683_v4  ;;  %v15861_v0 = vld [vmem:[#allocation41_spill] sm:$0xff] }
 0x535   : > { %v3122_v54 = vadd.f32 %v3106_v17, %v12554_v16  ;;  %v12701_v62 = vadd.f32 %v12556_v19, %v3017_v34  ;;  %8687 = vrsqrt.f32 %v12678_v47  ;;  %v3310_v27 = vmul.f32 %v12685_v48, %v3294_v25 }
 0x536   : > { %v3292_v60 = vmul.f32 %v12694_v43, %v3276_v29  ;;  %v3266_v8 = vmul.f32 %v7832_v32, %v15859_v2  ;;  %v3245_v14 = vadd.f32 %v3229_v50, %v3181_v24  ;;  %v3218_v16 = vmul.f32 %v3202_v22, %v15860_v31  ;;  %v15865_v2 = vld [vmem:[#allocation92_spill] sm:$0xff] }
 0x537   : > { %15858 = vst [vmem:[#allocation157_spill] sm:$0xff] %v12701_v62  ;;  %8689 = vrcp.f32 %v3122_v54  ;;  %v3104_v17 = vmul.f32 %v3017_v34, %v15861_v0  ;;  %v12710_v59 = vmin.f32 %v3321_v28, 0.999998  ;;  %v3326_v53 = vmax.f32 %v3310_v27, 1e-24 }
 0x538   : > { %8691 = vrsqrt.f32 %v12691_v51  ;;  %v3308_v7 = vmul.f32 %v12694_v43, %v3292_v60  ;;  %v12713_v63 = vpop.eup %8681  ;;  %v3186_v29 = vmul.f32 %v3170_v10, %v15857_v46  ;;  %v3234_v32 = vmul.f32 %v12440_v12, %v3218_v16  ;;  %v15862_v60 = vld [vmem:[#allocation82_spill] sm:$0xff]  ;;  %v3020_v12 = vpop.f32.mrf.mxu0  ;;  %v15864_v16 = vld [vmem:[#allocation47_spill] sm:$0xff] }
 0x539   : > { %v3120_v24 = vadd.f32 %v3104_v17, %v12556_v19  ;;  %v3200_v50 = vmul.f32 2.0, %v12701_v62  ;;  %v12719_v25 = vmin.f32 %v3326_v53, 0.999998  ;;  %v3295_v22 = vmul.f32 %v12713_v63, %v3279_v58 }
 0x53a   : > { %v3324_v54 = vmax.f32 %v3308_v7, 1e-24  ;;  %v3168_v28 = vmul.f32 %v12701_v62, %v12701_v62  ;;  %v3250_v27 = vadd.f32 %v3234_v32, %v3186_v29  ;;  %v12726_v10 = vadd.f32 %v7833_v36, %v12558_v30 }
 0x53b   : > { %8693 = vrcp.f32 %v3120_v24  ;;  %v3216_v31 = vmul.f32 %v3200_v50, %v15862_v60  ;;  %v3311_v19 = vmul.f32 %v12713_v63, %v3295_v22  ;;  %v3277_v53 = vadd.f32 %v3261_v21, %v3245_v14 }
 0x53c   : > { %15863 = vst [vmem:[#allocation159_spill] sm:$0xff] %v12726_v10  ;;  %8695 = vrsqrt.f32 %v12710_v59  ;;  %v3107_v7 = vmul.f32 %v7833_v36, %v15864_v16  ;;  %v12731_v17 = vmin.f32 %v3324_v54, 0.999998  ;;  %v3264_v29 = vmul.f32 %v3017_v34, %v15865_v2  ;;  %v7836_v34 = vpop.f32.mrf.mxu0 }
 0x53d   : > { %v3232_v58 = vmul.f32 %v3216_v31, %v12457_v18  ;;  %v3203_v32 = vmul.f32 2.0, %v12726_v10  ;;  %v12736_v24 = vpop.eup %8683  ;;  %v3327_v50 = vmax.f32 %v3311_v19, 1e-24  ;;  %v3184_v60 = vmul.f32 %v3168_v28, %v15861_v0  ;;  %v15867_v18 = vld [vmem:[#allocation69_spill] sm:$0xff]  ;;  %v15869_v28 = vld [vmem:[#allocation34_spill] sm:$0xff] }
 0x53e   : > { %15866 = vst [vmem:[#allocation58_spill] sm:$0xff] %v12736_v24  ;;  %v3123_v46 = vadd.f32 %v3107_v7, %v12558_v30  ;;  %v3171_v21 = vmul.f32 %v12726_v10, %v12726_v10  ;;  %8697 = vrsqrt.f32 %v12719_v25  ;;  %v3293_v14 = vmul.f32 %v12736_v24, %v3277_v53  ;;  %v15870_v53 = vld [vmem:[#allocation79_spill] sm:$0xff] }
 0x53f   : > { %v3282_v54 = vadd.f32 %v3266_v8, %v3250_v27  ;;  %v3219_v31 = vmul.f32 %v3203_v32, %v15867_v18  ;;  %v12745_v22 = vpop.eup %8685  ;;  %v3248_v2 = vadd.f32 %v3232_v58, %v3184_v60  ;;  %v12748_v19 = vadd.f32 %v12567_v20, %v3020_v12 }
 0x540   : > { %8699 = vrcp.f32 %v3123_v46  ;;  %v3105_v30 = vmul.f32 %v3020_v12, %v15869_v28  ;;  %v12752_v7 = vmin.f32 %v3327_v50, 0.999998  ;;  %v3309_v0 = vmul.f32 %v12736_v24, %v3293_v14  ;;  %v15872_v14 = vld [vmem:[#allocation11_spill] sm:$0xff] }
 0x541   : > { %15868 = vst [vmem:[#allocation59_spill] sm:$0xff] %v12748_v19  ;;  %8701 = vrsqrt.f32 %v12731_v17  ;;  %v3267_v8 = vmul.f32 %v7833_v36, %v15870_v53  ;;  %v3187_v27 = vmul.f32 %v3171_v21, %v15864_v16  ;;  %v3169_v46 = vmul.f32 %v12748_v19, %v12748_v19  ;;  %v3033_v36 = vpop.f32.mrf.mxu0  ;;  %v15875_v16 = vld [vmem:[#allocation75_spill] sm:$0xff] }
 0x542   : > { %v3121_v32 = vadd.f32 %v3105_v30, %v12567_v20  ;;  %v3201_v60 = vmul.f32 2.0, %v12748_v19  ;;  %v12761_v58 = vpop.eup %8687  ;;  %v3325_v18 = vmax.f32 %v3309_v0, 1e-24  ;;  %v3235_v23 = vmul.f32 %v12471_v42, %v3219_v31  ;;  %v15874_v20 = vld [vmem:[#allocation63_spill] sm:$0xff] }
 0x543   : > { %v12765_v50 = vadd.f32 %v7836_v34, %v12569_v9  ;;  %v3110_v41 = vmul.f32 %v7836_v34, %v15872_v14  ;;  %v3280_v21 = vadd.f32 %v3264_v29, %v3248_v2  ;;  %v3265_v10 = vmul.f32 %v3020_v12, %v15875_v16  ;;  %v7837_v56 = vpop.f32.mrf.mxu0 }
 0x544   : > { %v12768_v53 = vpop.eup %8689  ;;  %8703 = vrcp.f32 %v3121_v32  ;;  %v3217_v30 = vmul.f32 %v3201_v60, %v15874_v20  ;;  %v3185_v0 = vmul.f32 %v3169_v46, %v15869_v28  ;;  %v12778_v62 = vmin.f32 %v3325_v18, 0.999998  ;;  %v15877_v60 = vld [vmem:[#allocation110_spill] sm:$0xff]  ;;  %v15878_v20 = vld [vmem:[#allocation72_spill] sm:$0xff] }
 0x545   : > { %15871 = vst [vmem:[#allocation160_spill] sm:$0xff] %v12765_v50  ;;  %15873 = vst [vmem:[#allocation161_spill] sm:$0xff] %v12768_v53  ;;  %v12772_v19 = vpop.eup %8691  ;;  %8705 = vrsqrt.f32 %v12752_v7  ;;  %v3298_v42 = vmul.f32 %v12768_v53, %v3282_v54  ;;  %v3126_v31 = vadd.f32 %v3110_v41, %v12569_v9  ;;  %v3206_v2 = vmul.f32 2.0, %v12765_v50  ;;  %v15879_v41 = vld [vmem:[#allocation102_spill] sm:$0xff] }
 0x546   : > { %v3233_v4 = vmul.f32 %v3217_v30, %v12486_v55  ;;  %v12783_v29 = vadd.f32 %v12571_v26, %v3033_v36  ;;  %v3251_v32 = vadd.f32 %v3235_v23, %v3187_v27  ;;  %v3270_v16 = vmul.f32 %v7836_v34, %v15877_v60  ;;  %v15881_v60 = vld [vmem:[#allocation84_spill] sm:$0xff] }
 0x547   : > { %v3314_v12 = vmul.f32 %v12768_v53, %v3298_v42  ;;  %v3108_v54 = vmul.f32 %v3033_v36, %v15878_v20  ;;  %8707 = vrcp.f32 %v3126_v31  ;;  %v3174_v55 = vmul.f32 %v12765_v50, %v12765_v50  ;;  %v15882_v53 = vld [vmem:[#allocation77_spill] sm:$0xff] }
 0x548   : > { %15876 = vst [vmem:[#allocation162_spill] sm:$0xff] %v12783_v29  ;;  %v12788_v46 = vpop.eup %8693  ;;  %v3249_v9 = vadd.f32 %v3233_v4, %v3185_v0  ;;  %v3222_v18 = vmul.f32 %v3206_v2, %v15879_v41  ;;  %v3172_v34 = vmul.f32 %v12783_v29, %v12783_v29  ;;  %8709 = vrsqrt.f32 %v12778_v62 }
 0x549   : > { %v12793_v30 = vpop.eup %8695  ;;  %v3330_v28 = vmax.f32 %v3314_v12, 1e-24  ;;  %v3296_v42 = vmul.f32 %v12788_v46, %v3280_v21  ;;  %v3124_v23 = vadd.f32 %v3108_v54, %v12571_v26  ;;  %v3204_v27 = vmul.f32 2.0, %v12783_v29  ;;  %v15880_v12 = vld [vmem:[#allocation105_spill] sm:$0xff] }
 0x54a   : > { %v3238_v4 = vmul.f32 %v12498_v40, %v3222_v18  ;;  %v12803_v0 = vadd.f32 %v7837_v56, %v12575_v11  ;;  %v3283_v2 = vadd.f32 %v3267_v8, %v3251_v32  ;;  %v3268_v21 = vmul.f32 %v3033_v36, %v15880_v12  ;;  %v3036_v18 = vpop.f32.mrf.mxu0 }
 0x54b   : > { %v3312_v31 = vmul.f32 %v12788_v46, %v3296_v42  ;;  %8711 = vrcp.f32 %v3124_v23  ;;  %v12807_v41 = vpop.eup %8697  ;;  %v3281_v26 = vadd.f32 %v3265_v10, %v3249_v9  ;;  %v3190_v54 = vmul.f32 %v3174_v55, %v15872_v14 }
 0x54c   : > { %v3220_v50 = vmul.f32 %v3204_v27, %v15881_v60  ;;  %v3111_v40 = vmul.f32 %v7837_v56, %v15882_v53  ;;  %v12814_v24 = vmin.f32 %v3330_v28, 0.999998  ;;  %v3188_v8 = vmul.f32 %v3172_v34, %v15878_v20  ;;  %v15883_v27 = vld [vmem:[#allocation89_spill] sm:$0xff] }
 0x54d   : > { %v12812_v29 = vpop.eup %8699  ;;  %v3328_v38 = vmax.f32 %v3312_v31, 1e-24  ;;  %v3207_v32 = vmul.f32 2.0, %v12803_v0  ;;  %v3254_v9 = vadd.f32 %v3238_v4, %v3190_v54  ;;  %v3175_v28 = vmul.f32 %v12803_v0, %v12803_v0 }
 0x54e   : > { %v12818_v36 = vpop.eup %8701  ;;  %v3299_v10 = vmul.f32 %v12812_v29, %v3283_v2  ;;  %v3236_v55 = vmul.f32 %v3220_v50, %v12510_v37  ;;  %v3127_v42 = vadd.f32 %v3111_v40, %v12575_v11  ;;  %v12829_v34 = vadd.f32 %v12577_v5, %v3036_v18  ;;  %v15885_v2 = vld [vmem:[#allocation52_spill] sm:$0xff] }
 0x54f   : > { %v12823_v23 = vmin.f32 %v3328_v38, 0.999998  ;;  %v3223_v31 = vmul.f32 %v3207_v32, %v15883_v27  ;;  %v3109_v4 = vmul.f32 %v3036_v18, %v15885_v2  ;;  %v3191_v27 = vmul.f32 %v3175_v28, %v15882_v53 }
 0x550   : > { %15884 = vst [vmem:[#allocation61_spill] sm:$0xff] %v12829_v34  ;;  %v3315_v60 = vmul.f32 %v12812_v29, %v3299_v10  ;;  %v3252_v12 = vadd.f32 %v3236_v55, %v3188_v8  ;;  %8713 = vrcp.f32 %v3127_v42  ;;  %v3173_v11 = vmul.f32 %v12829_v34, %v12829_v34  ;;  %v15886_v8 = vld [vmem:[#allocation99_spill] sm:$0xff] }
 0x551   : > { %v12833_v54 = vpop.eup %8703  ;;  %8715 = vrsqrt.f32 %v12814_v24  ;;  %v3239_v37 = vmul.f32 %v12519_v3, %v3223_v31  ;;  %v3205_v38 = vmul.f32 2.0, %v12829_v34  ;;  %v3271_v10 = vmul.f32 %v7837_v56, %v15886_v8  ;;  %v15887_v3 = vld [vmem:[#allocation101_spill] sm:$0xff] }
 0x552   : > { %v12840_v50 = vpop.eup %8705  ;;  %v3331_v40 = vmax.f32 %v3315_v60, 1e-24  ;;  %v3297_v32 = vmul.f32 %v12833_v54, %v3281_v26  ;;  %v3125_v55 = vadd.f32 %v3109_v4, %v12577_v5  ;;  %8717 = vrsqrt.f32 %v12823_v23  ;;  %v15888_v4 = vld [vmem:[#allocation95_spill] sm:$0xff] }
 0x553   : > { %v3286_v42 = vadd.f32 %v3270_v16, %v3254_v9  ;;  %v3221_v31 = vmul.f32 %v3205_v38, %v15887_v3  ;;  %v3284_v14 = vadd.f32 %v3268_v21, %v3252_v12  ;;  %v3367_v60 = vmul.f32 %v12745_v22, %v12670_v61 }
 0x554   : > { %v3313_v20 = vmul.f32 %v12833_v54, %v3297_v32  ;;  %8719 = vrcp.f32 %v3125_v55  ;;  %v12851_v34 = vpop.eup %8707  ;;  %v3255_v26 = vadd.f32 %v3239_v37, %v3191_v27  ;;  %v3189_v56 = vmul.f32 %v3173_v11, %v15885_v2 }
 0x555   : > { %v3237_v5 = vmul.f32 %v3221_v31, %v12534_v44  ;;  %vm3368_vm4 = vcmp.eq.f32.partialorder %v12670_v61, inf  ;;  %v12856_v16 = vmin.f32 %v3331_v40, 0.999998  ;;  %v3302_v28 = vmul.f32 %v12851_v34, %v3286_v42  ;;  %v12860_v21 = vpop.eup %8709 }
 0x556   : > { %v3329_v9 = vmax.f32 %v3313_v20, 1e-24  ;;  %v3369_v12 = vsel %vm3368_vm4, %v12670_v61, %v3367_v60  ;;  %v3269_v22 = vmul.f32 %v3036_v18, %v15888_v4  ;;  %vm3370_vm5 = vcmp.eq.f32.partialorder %v12670_v61, 0.0 }
 0x557   : > { %v3371_v27 = vand.u32 2147483648, %v12670_v61  ;;  %v3353_v44 = vmul.f32 %v12761_v58, %v12678_v47  ;;  %v3318_v20 = vmul.f32 %v12851_v34, %v3302_v28  ;;  %v3253_v38 = vadd.f32 %v3237_v5, %v3189_v56 }
 0x558   : > { %v12867_v37 = vpop.eup %8711  ;;  %v12869_v11 = vmin.f32 %v3329_v9, 0.999998  ;;  %vm3354_vm6 = vcmp.eq.f32.partialorder %v12678_v47, inf  ;;  %v3357_v55 = vand.u32 2147483648, %v12678_v47  ;;  %8721 = vrsqrt.f32 %v12856_v16 }
 0x559   : > { %v3300_v40 = vmul.f32 %v12867_v37, %v3284_v14  ;;  %v3372_v32 = vsel %vm3370_vm5, %v3371_v27, %v3369_v12  ;;  %v3355_v18 = vsel %vm3354_vm6, %v12678_v47, %v3353_v44  ;;  %v3334_v61 = vmax.f32 %v3318_v20, 1e-24 }
 0x55a   : > { %v3482_v58 = vsub.f32 1.0, %v3372_v32  ;;  %vm3356_vm7 = vcmp.eq.f32.partialorder %v12678_v47, 0.0  ;;  %8723 = vrsqrt.f32 %v12869_v11  ;;  %v3374_v14 = vmul.f32 %v12772_v19, %v12691_v51 }
 0x55b   : > { %v3316_v42 = vmul.f32 %v12867_v37, %v3300_v40  ;;  %v12880_v31 = vsel %vm3356_vm7, %v3357_v55, %v3355_v18  ;;  %v3287_v60 = vadd.f32 %v3271_v10, %v3255_v26  ;;  %v3285_v56 = vadd.f32 %v3269_v22, %v3253_v38 }
 0x55c   : > { %8725 = vrcp.f32 %v3482_v58  ;;  %v3480_v5 = vsub.f32 1.0, %v12880_v31  ;;  %v12887_v28 = vmin.f32 %v3334_v61, 0.999998  ;;  %vm3375_vm8 = vcmp.eq.f32.partialorder %v12691_v51, inf }
 0x55d   : > { %v12885_v9 = vpop.eup %8713  ;;  %v3332_v12 = vmax.f32 %v3316_v42, 1e-24  ;;  %8727 = vrcp.f32 %v3372_v32  ;;  %v3376_v19 = vsel %vm3375_vm8, %v12691_v51, %v3374_v14  ;;  %v3378_v10 = vand.u32 2147483648, %v12691_v51 }
 0x55e   : > { %v12890_v47 = vpop.eup %8715  ;;  %v3303_v27 = vmul.f32 %v12885_v9, %v3287_v60  ;;  %8729 = vrcp.f32 %v12880_v31  ;;  %vm3377_vm9 = vcmp.eq.f32.partialorder %v12691_v51, 0.0  ;;  %v3360_v22 = vmul.f32 %v12793_v30, %v12710_v59 }
 0x55f   : > { %v12896_v26 = vmin.f32 %v3332_v12, 0.999998  ;;  %8731 = vrcp.f32 %v3480_v5  ;;  %v12901_v44 = vpop.eup %8717  ;;  %v12904_v38 = vsel %vm3377_vm9, %v3378_v10, %v3376_v19  ;;  %vm3361_vm10 = vcmp.eq.f32.partialorder %v12710_v59, inf }
 0x560   : > { %v3319_v20 = vmul.f32 %v12885_v9, %v3303_v27  ;;  %v3364_v40 = vand.u32 2147483648, %v12710_v59  ;;  %8733 = vrsqrt.f32 %v12887_v28  ;;  %v3483_v55 = vsub.f32 1.0, %v12904_v38 }
 0x561   : > { %v12908_v18 = vpop.eup %8719  ;;  %v3362_v51 = vsel %vm3361_vm10, %v12710_v59, %v3360_v22  ;;  %vm3363_vm11 = vcmp.eq.f32.partialorder %v12710_v59, 0.0  ;;  %8735 = vrsqrt.f32 %v12896_v26  ;;  %v3395_v14 = vmul.f32 %v12807_v41, %v12719_v25 }
 0x562   : > { %15889 = vst [vmem:[#allocation64_spill] sm:$0xff] %v12908_v18  ;;  %v3335_v30 = vmax.f32 %v3319_v20, 1e-24  ;;  %v3301_v61 = vmul.f32 %v12908_v18, %v3285_v56  ;;  %v3365_v58 = vsel %vm3363_vm11, %v3364_v40, %v3362_v51  ;;  %8737 = vrcp.f32 %v3483_v55 }
 0x563   : > { %v3481_v42 = vsub.f32 1.0, %v3365_v58  ;;  %8739 = vrcp.f32 %v12904_v38  ;;  %vm3396_vm12 = vcmp.eq.f32.partialorder %v12719_v25, inf  ;;  %v3466_v59 = vadd.f32 1.0, %v3372_v32 }
 0x564   : > { %v12918_v60 = vmin.f32 %v3335_v30, 0.999998  ;;  %v3317_v5 = vmul.f32 %v12908_v18, %v3301_v61  ;;  %v3397_v12 = vsel %vm3396_vm12, %v12719_v25, %v3395_v14  ;;  %v3399_v56 = vand.u32 2147483648, %v12719_v25 }
 0x565   : > { %8741 = vrcp.f32 %v3481_v42  ;;  %vm3398_vm13 = vcmp.eq.f32.partialorder %v12719_v25, 0.0  ;;  %v3381_v41 = vmul.f32 %v12818_v36, %v12731_v17  ;;  %v12928_v19 = vpop.eup %8721  ;;  %vm3382_vm14 = vcmp.eq.f32.partialorder %v12731_v17, inf }
 0x566   : > { %v3333_v27 = vmax.f32 %v3317_v5, 1e-24  ;;  %8743 = vrcp.f32 %v3365_v58  ;;  %v12931_v10 = vsel %vm3398_vm13, %v3399_v56, %v3397_v12  ;;  %v3402_v32 = vmul.f32 %v12840_v50, %v12752_v7  ;;  %v12947_v50 = vpop.xlane.xlu0 %5267 }
 0x567   : > { %8745 = vrsqrt.f32 %v12918_v60  ;;  %v12936_v22 = vpop.eup %8723  ;;  %v3486_v25 = vsub.f32 1.0, %v12931_v10  ;;  %vm3384_vm15 = vcmp.eq.f32.partialorder %v12731_v17, 0.0  ;;  %v3385_v36 = vand.u32 2147483648, %v12731_v17 }
 0x568   : > { %v12938_v20 = vmin.f32 %v3333_v27, 0.999998  ;;  %8747 = vrcp.f32 %v12931_v10  ;;  %v3383_v55 = vsel %vm3382_vm14, %v12731_v17, %v3381_v41  ;;  %vm3403_vm0 = vcmp.eq.f32.partialorder %v12752_v7, inf  ;;  %v12961_v27 = vpop.xlane.xlu1 %5269 }
 0x569   : > { %v8726_v40 = vpop.eup %8725  ;;  %v3406_v51 = vand.u32 2147483648, %v12752_v7  ;;  %v12951_v42 = vsel %vm3384_vm15, %v3385_v36, %v3383_v55  ;;  %v3404_v14 = vsel %vm3403_vm0, %v12752_v7, %v3402_v32  ;;  %vm3405_vm2 = vcmp.eq.f32.partialorder %v12752_v7, 0.0 }
 0x56a   : > { %v12949_v30 = vpop.eup %8727  ;;  %v3501_v61 = vmul.f32 %v8726_v40, %v3466_v59  ;;  %v3464_v12 = vadd.f32 1.0, %v12880_v31  ;;  %8749 = vrcp.f32 %v3486_v25  ;;  %v3484_v17 = vsub.f32 1.0, %v12951_v42 }
 0x56b   : > { %v12955_v5 = vpop.eup %8729  ;;  %v12959_v56 = vsel %vm3405_vm2, %v3406_v51, %v3404_v14  ;;  %v3388_v32 = vmul.f32 %v12860_v21, %v12778_v62  ;;  %vm3389_vm3 = vcmp.eq.f32.partialorder %v12778_v62, inf  ;;  %v4394_v31 = vmul.f32 %v12156_v35, %v12156_v35 }
 0x56c   : > { %v8732_v41 = vpop.eup %8731  ;;  %8751 = vlog2.f32 %v3501_v61  ;;  %v3487_v59 = vsub.f32 1.0, %v12959_v56  ;;  %v3392_v40 = vand.u32 2147483648, %v12778_v62  ;;  %v3467_v21 = vadd.f32 1.0, %v12904_v38 }
 0x56d   : > { %v3497_v36 = vmul.f32 %v8732_v41, %v3464_v12  ;;  %8753 = vrcp.f32 %v3484_v17  ;;  %v12967_v7 = vpop.eup %8733  ;;  %v3390_v25 = vsel %vm3389_vm3, %v12778_v62, %v3388_v32  ;;  %vm3391_vm4 = vcmp.eq.f32.partialorder %v12778_v62, 0.0 }
 0x56e   : > { %8755 = vrsqrt.f32 %v12938_v20  ;;  %v12974_v55 = vpop.eup %8735  ;;  %v3423_v51 = vmul.f32 %v12890_v47, %v12814_v24  ;;  %v12980_v61 = vpop.xlane.xlu0 %5271  ;;  %v3465_v12 = vadd.f32 1.0, %v3365_v58  ;;  %v4395_v35 = vmul.f32 %v12159_v1, %v12159_v1 }
 0x56f   : > { %8757 = vlog2.f32 %v3497_v36  ;;  %v8738_v14 = vpop.eup %8737  ;;  %v3393_v17 = vsel %vm3391_vm4, %v3392_v40, %v3390_v25  ;;  %vm3424_vm5 = vcmp.eq.f32.partialorder %v12814_v24, inf  ;;  %v3427_v62 = vand.u32 2147483648, %v12814_v24 }
 0x570   : > { %8759 = vrcp.f32 %v3487_v59  ;;  %v12984_v41 = vpop.eup %8739  ;;  %v3503_v32 = vmul.f32 %v8738_v14, %v3467_v21  ;;  %v3485_v36 = vsub.f32 1.0, %v3393_v17  ;;  %v3425_v58 = vsel %vm3424_vm5, %v12814_v24, %v3423_v51 }
 0x571   : > { %8761 = vrcp.f32 %v12951_v42  ;;  %vm3426_vm6 = vcmp.eq.f32.partialorder %v12814_v24, 0.0  ;;  %v3409_v1 = vmul.f32 %v12901_v44, %v12823_v23  ;;  %vm3410_vm7 = vcmp.eq.f32.partialorder %v12823_v23, inf }
 0x572   : > { %v8742_v47 = vpop.eup %8741  ;;  %8763 = vlog2.f32 %v3503_v32  ;;  %v3428_v40 = vsel %vm3426_vm6, %v3427_v62, %v3425_v58  ;;  %v13000_v14 = vpack.c.bf16 %v4395_v35, %v4394_v31  ;;  %v3470_v24 = vadd.f32 1.0, %v12931_v10 }
 0x573   : > { %v12988_v38 = vpop.xlane.xlu1 %5273  ;;  %v12995_v59 = vpop.eup %8743  ;;  %v3499_v25 = vmul.f32 %v8742_v47, %v3465_v12  ;;  %8765 = vrcp.f32 %v3485_v36  ;;  %v3490_v4 = vsub.f32 1.0, %v3428_v40  ;;  %v3411_v51 = vsel %vm3410_vm7, %v12823_v23, %v3409_v1 }
 0x574   : > { %v12998_v21 = vpop.eup %8745  ;;  %v3413_v44 = vand.u32 2147483648, %v12823_v23  ;;  %v3430_v32 = vmul.f32 %v12928_v19, %v12856_v16  ;;  %v13007_v12 = vpop.xlane.xlu0 %5275  ;;  %vm3412_vm8 = vcmp.eq.f32.partialorder %v12823_v23, 0.0  ;;  %vm3431_vm9 = vcmp.eq.f32.partialorder %v12856_v16, inf }
 0x575   : > { %8767 = vlog2.f32 %v3499_v25  ;;  %v13009_v62 = vpop.eup %8747  ;;  %v3434_v31 = vand.u32 2147483648, %v12856_v16  ;;  %vm3433_vm10 = vcmp.eq.f32.partialorder %v12856_v16, 0.0  ;;  %v3416_v10 = vmul.f32 %v12936_v22, %v12869_v11 }
 0x576   : > { %8769 = vrcp.f32 %v3490_v4  ;;  %v3414_v35 = vsel %vm3412_vm8, %v3413_v44, %v3411_v51  ;;  %v3432_v36 = vsel %vm3431_vm9, %v12856_v16, %v3430_v32  ;;  %v3468_v58 = vadd.f32 1.0, %v12951_v42 }
 0x577   : > { %v8750_v47 = vpop.eup %8749  ;;  %8771 = vrcp.f32 %v12959_v56  ;;  %v3488_v23 = vsub.f32 1.0, %v3414_v35  ;;  %v13022_v4 = vsel %vm3433_vm10, %v3434_v31, %v3432_v36  ;;  %v3471_v51 = vadd.f32 1.0, %v12959_v56 }
 0x578   : > { %v13018_v19 = vpop.xlane.xlu1 %5277  ;;  %v3509_v25 = vmul.f32 %v8750_v47, %v3470_v24  ;;  %8773 = vrcp.f32 %v3393_v17  ;;  %v3491_v16 = vsub.f32 1.0, %v13022_v4  ;;  %v13028_v22 = vmul.f32 %v12199_v45, %v12199_v45  ;;  %v13035_v36 = vpop.xlane.xlu0 %5279 }
 0x579   : > { %v8752_v1 = vpop.eup %8751  ;;  %8775 = vrcp.f32 %v3488_v23  ;;  %vm3417_vm11 = vcmp.eq.f32.partialorder %v12869_v11, inf  ;;  %v3420_v56 = vand.u32 2147483648, %v12869_v11  ;;  %vm3419_vm12 = vcmp.eq.f32.partialorder %v12869_v11, 0.0 }
 0x57a   : > { %v8754_v44 = vpop.eup %8753  ;;  %v3533_v32 = vmul.f32 0.6931472, %v8752_v1  ;;  %8777 = vlog2.f32 %v3509_v25  ;;  %v3418_v24 = vsel %vm3417_vm11, %v12869_v11, %v3416_v10  ;;  %v3469_v1 = vadd.f32 1.0, %v3393_v17 }
 0x57b   : > { %v13031_v42 = vpop.eup %8755  ;;  %v3505_v31 = vmul.f32 %v8754_v44, %v3468_v58  ;;  %8779 = vrcp.f32 %v3491_v16  ;;  %v13038_v8 = vsel %vm3419_vm12, %v3420_v56, %v3418_v24  ;;  %v3451_v58 = vmul.f32 %v12967_v7, %v12887_v28  ;;  %v15890_v24 = vld [vmem:[#allocation129_spill] sm:$0xff] }
 0x57c   : > { %v8758_v47 = vpop.eup %8757  ;;  %v3562_v3 = vmul.f32 0.5, %v3533_v32  ;;  %v13042_v25 = vpop.xlane.xlu1 %5281  ;;  %v3489_v32 = vsub.f32 1.0, %v13038_v8  ;;  %v3474_v11 = vadd.f32 1.0, %v3428_v40  ;;  %vm3452_vm13 = vcmp.eq.f32.partialorder %v12887_v28, inf }
 0x57d   : > { %v8760_v45 = vpop.eup %8759  ;;  %v3529_v23 = vmul.f32 0.6931472, %v8758_v47  ;;  %8781 = vlog2.f32 %v3505_v31  ;;  %v15891_v56 = vcvt.s32.f32 %v15890_v24  ;;  %v3472_v7 = vadd.f32 1.0, %v3414_v35 }
 0x57e   : > { %v3594_v10 = vmul.f32 %v12949_v30, %v3562_v3  ;;  %v3511_v44 = vmul.f32 %v8760_v45, %v3471_v51  ;;  %8783 = vrcp.f32 %v3428_v40  ;;  %v13046_v17 = vpop.eup %8761  ;;  %v3453_v2 = vsel %vm3452_vm13, %v12887_v28, %v3451_v58 }
 0x57f   : > { %v3560_v16 = vmul.f32 0.5, %v3529_v23  ;;  %8785 = vrcp.f32 %v3414_v35  ;;  %v8764_v31 = vpop.eup %8763  ;;  %v3455_v45 = vand.u32 2147483648, %v12887_v28  ;;  %v13054_v23 = vpop.xlane.xlu0 %5283  ;;  %vm3454_vm14 = vcmp.eq.f32.partialorder %v12887_v28, 0.0 }
 0x580   : > { %v3658_v47 = vmul.f32 %v15891_v56, %v3594_v10  ;;  %8787 = vlog2.f32 %v3511_v44  ;;  %v8766_v3 = vpop.eup %8765  ;;  %v3535_v51 = vmul.f32 0.6931472, %v8764_v31  ;;  %v3437_v35 = vmul.f32 %v12974_v55, %v12896_v26  ;;  %v15892_v10 = vld [vmem:[#allocation126_spill] sm:$0xff]  ;;  %v13066_v24 = vpop.xlane.xlu1 %5285 }
 0x581   : > { %v3592_v30 = vmul.f32 %v12955_v5, %v3560_v16  ;;  %8789 = vrcp.f32 %v3489_v32  ;;  %v3507_v18 = vmul.f32 %v8766_v3, %v3469_v1  ;;  %v15893_v44 = vcvt.s32.f32 %v15892_v10 }
 0x582   : > { %v8768_v40 = vpop.eup %8767  ;;  %v13057_v53 = vmul.f32 %v12630_v6, %v3658_v47  ;;  %v3563_v16 = vmul.f32 0.5, %v3535_v51  ;;  %v13064_v31 = vsel %vm3454_vm14, %v3455_v45, %v3453_v2  ;;  %vm3438_vm15 = vcmp.eq.f32.partialorder %v12896_v26, inf  ;;  %v15894_v51 = vld [vmem:[#allocation130_spill] sm:$0xff] }
 0x583   : > { %v8770_v58 = vpop.eup %8769  ;;  %v3656_v5 = vmul.f32 %v15893_v44, %v3592_v30  ;;  %v3531_v32 = vmul.f32 0.6931472, %v8768_v40  ;;  %8791 = vlog2.f32 %v3507_v18  ;;  %v3494_v3 = vsub.f32 1.0, %v13064_v31 }
 0x584   : > { %v3706_v6 = vmul.f32 %v13057_v53, %v12546_v13  ;;  %v3517_v1 = vmul.f32 %v8770_v58, %v3474_v11  ;;  %v13071_v28 = vpop.eup %8771  ;;  %v3595_v56 = vmul.f32 %v12984_v41, %v3563_v16  ;;  %v3475_v30 = vadd.f32 1.0, %v13022_v4  ;;  %v13085_v41 = vpop.xlane.xlu0 %6710 }
 0x585   : > { %v3672_v55 = vmul.f32 %v12646_v52, %v3656_v5  ;;  %v3561_v47 = vmul.f32 0.5, %v3531_v32  ;;  %v13076_v2 = vpop.eup %8773  ;;  %v3439_v13 = vsel %vm3438_vm15, %v12896_v26, %v3437_v35  ;;  %v3441_v18 = vand.u32 2147483648, %v12896_v26  ;;  %v15896_v32 = vld [vmem:[#allocation128_spill] sm:$0xff] }
 0x586   : > { %3724 = vadd.xlane.f32.xlu0 %v3706_v6  ;;  %8793 = vlog2.f32 %v3517_v1  ;;  %v8776_v11 = vpop.eup %8775  ;;  %v15895_v45 = vcvt.s32.f32 %v15894_v51  ;;  %vm3440_vm0 = vcmp.eq.f32.partialorder %v12896_v26, 0.0  ;;  %v15897_v6 = vcvt.s32.f32 %v15896_v32 }
 0x587   : > { %v3593_v52 = vmul.f32 %v12995_v59, %v3561_v47  ;;  %8795 = vrcp.f32 %v3494_v3  ;;  %v8778_v58 = vpop.eup %8777  ;;  %v3704_v10 = vmul.f32 %v3672_v55, %v12563_v49  ;;  %v3513_v44 = vmul.f32 %v8776_v11, %v3472_v7  ;;  %v15898_v49 = vld [vmem:[#allocation121_spill] sm:$0xff] }
 0x588   : > { %v3659_v40 = vmul.f32 %v15895_v45, %v3595_v56  ;;  %8797 = vrcp.f32 %v13022_v4  ;;  %v13089_v35 = vsel %vm3440_vm0, %v3441_v18, %v3439_v13  ;;  %v8780_v5 = vpop.eup %8779  ;;  %v3541_v59 = vmul.f32 0.6931472, %v8778_v58  ;;  %v13096_v56 = vpop.xlane.xlu1 %6712  ;;  %v15899_v13 = vld [vmem:[#allocation150_spill] sm:$0xff] }
 0x589   : > { %v3657_v1 = vmul.f32 %v15897_v6, %v3593_v52  ;;  %v3458_v26 = vmul.f32 %v12998_v21, %v12918_v60  ;;  %v13100_v7 = vmul.f32 %v15898_v49, %v15898_v49  ;;  %8799 = vlog2.f32 %v3513_v44 }
 0x58a   : > { %v3675_v16 = vmul.f32 %v12656_v33, %v3659_v40  ;;  %v8782_v47 = vpop.eup %8781  ;;  %3720 = vadd.xlane.f32.xlu0 %v3704_v10  ;;  %v3519_v4 = vmul.f32 %v8780_v5, %v3475_v30  ;;  %v3492_v3 = vsub.f32 1.0, %v13089_v35  ;;  %v3566_v51 = vmul.f32 0.5, %v3541_v59 }
 0x58b   : > { %v13103_v33 = vpop.eup %8783  ;;  %v3673_v11 = vmul.f32 %v12668_v39, %v3657_v1  ;;  %v3473_v21 = vadd.f32 1.0, %v13038_v8  ;;  %v3537_v52 = vmul.f32 0.6931472, %v8782_v47  ;;  %vm3459_vm2 = vcmp.eq.f32.partialorder %v12918_v60, inf  ;;  %v13114_v39 = vpop.xlane.xlu0 %6714  ;;  %v15902_v47 = vld [vmem:[#allocation151_spill] sm:$0xff] }
 0x58c   : > { %v3707_v18 = vmul.f32 %v3675_v16, %v15899_v13  ;;  %v13108_v45 = vpop.eup %8785  ;;  %v3881_v40 = vpack.c.bf16 %v3675_v16, %v13057_v53  ;;  %8801 = vlog2.f32 %v3519_v4  ;;  %v3598_v10 = vmul.f32 %v13009_v62, %v3566_v51  ;;  %v15900_v16 = vld [vmem:[#allocation133_spill] sm:$0xff]  ;;  %v15903_v51 = vld [vmem:[#allocation19_spill] sm:$0xff] }
 0x58d   : > { %v8788_v30 = vpop.eup %8787  ;;  %v3880_v58 = vpack.c.bf16 %v3673_v11, %v3672_v55  ;;  %8803 = vrcp.f32 %v3492_v3  ;;  %v3460_v44 = vsel %vm3459_vm2, %v12918_v60, %v3458_v26  ;;  %v3564_v32 = vmul.f32 0.5, %v3537_v52  ;;  %v13123_v26 = vpop.xlane.xlu1 %6716 }
 0x58e   : > { %3726 = vadd.xlane.f32.xlu1 %v3707_v18  ;;  %v8790_v5 = vpop.eup %8789  ;;  %v3543_v6 = vmul.f32 0.6931472, %v8788_v30  ;;  %vm3461_vm3 = vcmp.eq.f32.partialorder %v12918_v60, 0.0  ;;  %v3462_v53 = vand.u32 2147483648, %v12918_v60  ;;  %v15901_v1 = vcvt.s32.f32 %v15900_v16 }
 0x58f   : > { %7854 = vmatprep.mubr.bf16.mxu1 %v3880_v58  ;;  %v3705_v55 = vmul.f32 %v3673_v11, %v15902_v47  ;;  %v3515_v49 = vmul.f32 %v8790_v5, %v3473_v21  ;;  %v3444_v62 = vmul.f32 %v13031_v42, %v12938_v20  ;;  %v3596_v4 = vmul.f32 %v13046_v17, %v3564_v32  ;;  %v15904_v17 = vld [vmem:[#allocation131_spill] sm:$0xff]  ;;  %v13144_v5 = vpop.xlane.xlu0 %6718 }
 0x590   : > { %v3662_v59 = vmul.f32 %v15901_v1, %v3598_v10  ;;  %7855 = vmatmul.mubr.bf16.vlgmr.msra.gmra.mxu1 %v3881_v40  ;;  %v3567_v3 = vmul.f32 0.5, %v3543_v6  ;;  %v3478_v13 = vadd.f32 1.0, %v13064_v31  ;;  %v13127_v18 = vsel %vm3461_vm3, %v3462_v53, %v3460_v44  ;;  %v8792_v60 = vpop.eup %8791  ;;  %v15906_v53 = vld [vmem:[#allocation134_spill] sm:$0xff] }
 0x591   : > { %7903 = vmatpush3.bf16.xpose.msra.mxu1 %v15903_v51  ;;  %8805 = vlog2.f32 %v3515_v49  ;;  %v3495_v42 = vsub.f32 1.0, %v13127_v18  ;;  %vm3445_vm4 = vcmp.eq.f32.partialorder %v12938_v20, inf  ;;  %v15905_v11 = vcvt.s32.f32 %v15904_v17  ;;  %v13154_v49 = vpop.xlane.xlu1 %6720 }
 0x592   : > { %v13131_v52 = vmul.f32 %v12685_v48, %v3662_v59  ;;  %3722 = vadd.xlane.f32.xlu1 %v3705_v55  ;;  %7904 = vmatprep.subr.bf16.mxu1 %v13000_v14  ;;  %v3599_v40 = vmul.f32 %v13071_v28, %v3567_v3  ;;  %v3539_v30 = vmul.f32 0.6931472, %v8792_v60  ;;  %vm3447_vm5 = vcmp.eq.f32.partialorder %v12938_v20, 0.0 }
 0x593   : > { %v3660_v21 = vmul.f32 %v15905_v11, %v3596_v4  ;;  %v8794_v58 = vpop.eup %8793  ;;  %8807 = vrcp.f32 %v3495_v42  ;;  %v3446_v10 = vsel %vm3445_vm4, %v12938_v20, %v3444_v62  ;;  %v3448_v44 = vand.u32 2147483648, %v12938_v20  ;;  %v15909_v42 = vld [vmem:[#allocation132_spill] sm:$0xff] }
 0x594   : > { %v3710_v48 = vmul.f32 %v13131_v52, %v12610_v15  ;;  %v8796_v32 = vpop.eup %8795  ;;  %v15907_v16 = vcvt.s32.f32 %v15906_v53  ;;  %v3565_v1 = vmul.f32 0.5, %v3539_v30  ;;  %v3549_v59 = vmul.f32 0.6931472, %v8794_v58  ;;  %v15912_v30 = vld [vmem:[#allocation122_spill] sm:$0xff]  ;;  %v13172_v58 = vpop.xlane.xlu0 %6722 }
 0x595   : > { %v3676_v6 = vmul.f32 %v12694_v43, %v3660_v21  ;;  %v8798_v47 = vpop.eup %8797  ;;  %8809 = vrcp.f32 %v13038_v8  ;;  %v3525_v15 = vmul.f32 %v8796_v32, %v3478_v13  ;;  %v13152_v55 = vsel %vm3447_vm5, %v3448_v44, %v3446_v10  ;;  %v15908_v13 = vld [vmem:[#allocation152_spill] sm:$0xff]  ;;  %v15913_v10 = vld [vmem:[#allocation58_spill] sm:$0xff]  ;;  %v15914_v44 = vld [vmem:[#allocation167_spill] sm:$0xff] }
 0x596   : > { %v3663_v28 = vmul.f32 %v15907_v16, %v3599_v40  ;;  %3732 = vadd.xlane.f32.xlu0 %v3710_v48  ;;  %v3597_v43 = vmul.f32 %v13076_v2, %v3565_v1  ;;  %v3570_v4 = vmul.f32 0.5, %v3549_v59  ;;  %v8800_v3 = vpop.eup %8799  ;;  %v4403_v51 = vpack.c.bf16 %v13100_v7, %v13028_v22  ;;  %v13178_v1 = vpop.xlane.xlu1 %6724 }
 0x597   : > { %v3708_v60 = vmul.f32 %v3676_v6, %v12622_v57  ;;  %8811 = vlog2.f32 %v3525_v15  ;;  %v3493_v8 = vsub.f32 1.0, %v13152_v55  ;;  %v15910_v17 = vcvt.s32.f32 %v15909_v42  ;;  %v15916_v15 = vld [vmem:[#allocation161_spill] sm:$0xff] }
 0x598   : > { %v3679_v62 = vmul.f32 %v12713_v63, %v3663_v28  ;;  %v3602_v21 = vmul.f32 %v13103_v33, %v3570_v4  ;;  %v15911_v63 = vld [vmem:[#allocation119_spill] sm:$0xff]  ;;  %v3545_v57 = vmul.f32 0.6931472, %v8800_v3  ;;  %v4391_v22 = vmul.f32 %v15912_v30, %v15912_v30  ;;  %v15917_v4 = vld [vmem:[#allocation153_spill] sm:$0xff] }
 0x599   : > { %v3661_v11 = vmul.f32 %v15910_v17, %v3597_v43  ;;  %v4390_v2 = vmul.f32 %v15911_v63, %v15911_v63  ;;  %v8802_v40 = vpop.eup %8801  ;;  %7905 = vmatpush3.bf16.xpose.msra.mxu1 %v13000_v14  ;;  %v3476_v7 = vadd.f32 1.0, %v13089_v35  ;;  %8813 = vrcp.f32 %v3493_v8  ;;  %v5245_v8 = vld [vmem:[#allocation4 + $0x30] sm:$0xff]  ;;  %v5247_v17 = vld [vmem:[#allocation4 + $0x40] sm:$0xff] }
 0x59a   : > { %v3711_v20 = vmul.f32 %v3679_v62, %v15908_v13  ;;  %3728 = vadd.xlane.f32.xlu0 %v3708_v60  ;;  %v8804_v48 = vpop.eup %8803  ;;  %7906 = vmatprep.subr.bf16.mxu1 %v4403_v51  ;;  %v15915_v32 = vcvt.s32.f32 %v15914_v44  ;;  %v3551_v16 = vmul.f32 0.6931472, %v8802_v40  ;;  %v3568_v28 = vmul.f32 0.5, %v3545_v57  ;;  %v5249_v57 = vld [vmem:[#allocation4 + $0x50] sm:$0xff]  ;;  %v15922_v44 = vld [vmem:[#allocation168_spill] sm:$0xff] }
 0x59b   : > { %v3677_v33 = vmul.f32 %v15913_v10, %v3661_v11  ;;  %8815 = vrcp.f32 %v13064_v31  ;;  %v3521_v14 = vmul.f32 %v8804_v48, %v3476_v7  ;;  %v3883_v13 = vpack.c.bf16 %v3679_v62, %v13131_v52  ;;  %v5246_v31 = vld [vmem:[#allocation4 + $0x38] sm:$0xff]  ;;  %v15919_v52 = vld [vmem:[#allocation135_spill] sm:$0xff]  ;;  %v15921_v30 = vld [vmem:[#allocation13_spill] sm:$0xff] }
 0x59c   : > { %3734 = vadd.xlane.f32.xlu1 %v3711_v20  ;;  %v3666_v53 = vmul.f32 %v15915_v32, %v3602_v21  ;;  %v3571_v60 = vmul.f32 0.5, %v3551_v16  ;;  %v3600_v20 = vmul.f32 %v13108_v45, %v3568_v28  ;;  %v13186_v42 = vpack.c.bf16 %v4391_v22, %v4390_v2  ;;  %v15918_v21 = vld [vmem:[#allocation156_spill] sm:$0xff]  ;;  %v5251_v10 = vld [vmem:[#allocation4 + $0x60] sm:$0xff] }
 0x59d   : > { %v3882_v59 = vpack.c.bf16 %v3677_v33, %v3676_v6  ;;  %v3709_v3 = vmul.f32 %v3677_v33, %v15917_v4  ;;  %8817 = vlog2.f32 %v3521_v14  ;;  %v3479_v40 = vadd.f32 1.0, %v13127_v18  ;;  %v5248_v48 = vld [vmem:[#allocation4 + $0x48] sm:$0xff]  ;;  %v5250_v33 = vld [vmem:[#allocation4 + $0x58] sm:$0xff] }
 0x59e   : > { %v13181_v43 = vmul.f32 %v15916_v15, %v3666_v53  ;;  %v8806_v11 = vpop.eup %8805  ;;  %v3603_v63 = vmul.f32 %v8798_v47, %v3571_v60  ;;  %8819 = vrcp.f32 %v13089_v35  ;;  %v15920_v45 = vcvt.s32.f32 %v15919_v52  ;;  %v13199_v47 = vpop.xlane.xlu0 %6726  ;;  %v15924_v16 = vld [vmem:[#allocation136_spill] sm:$0xff]  ;;  %v5253_v15 = vld [vmem:[#allocation4 + $0x70] sm:$0xff] }
 0x59f   : > { %7858 = vmatprep.mubr.bf16.mxu1 %v3882_v59  ;;  %v3547_v2 = vmul.f32 0.6931472, %v8806_v11  ;;  %v13196_v22 = vmul.f32 %v15921_v30, %v15921_v30  ;;  %v5293_v7 = vadd.f32 %v12947_v50, %v5245_v8  ;;  %v15923_v32 = vcvt.s32.f32 %v15922_v44  ;;  %v5252_v8 = vld [vmem:[#allocation4 + $0x68] sm:$0xff] }
 0x5a0   : > { %v3714_v6 = vmul.f32 %v13181_v43, %v15918_v21  ;;  %3730 = vadd.xlane.f32.xlu1 %v3709_v3  ;;  %7859 = vmatmul.mubr.bf16.gmra.mxu1 %v3883_v13  ;;  %v3664_v62 = vmul.f32 %v15920_v45, %v3600_v20  ;;  %v8808_v35 = vpop.eup %8807  ;;  %v13205_v28 = vmul.f32 %v15924_v16, %v15924_v16  ;;  %v6694_v13 = vld [vmem:[#allocation4] sm:$0xff]  ;;  %v13214_v20 = vpop.xlane.xlu1 %6728  ;;  %v15925_v21 = vld [vmem:[#allocation157_spill] sm:$0xff]  ;;  %v6699_v52 = vld [vmem:[#allocation4 + $0x28] sm:$0xff] }
 0x5a1   : > { %v3667_v53 = vmul.f32 %v15923_v32, %v3603_v63  ;;  %v5295_v14 = vadd.f32 %v12980_v61, %v5247_v17  ;;  %v5294_v59 = vadd.f32 %v12961_v27, %v5246_v31  ;;  %v3569_v4 = vmul.f32 0.5, %v3547_v2  ;;  %7907 = vmatpush3.bf16.xpose.msra.mxu1 %v4403_v51  ;;  %5309 = vst.msk [vmem:[#allocation4 + $0x30] sm:$0xff] %vm2312_vm1, %v5293_v7  ;;  %v5254_v51 = vld [vmem:[#allocation4 + $0x78] sm:$0xff]  ;;  %v6696_v17 = vld [vmem:[#allocation4 + $0x10] sm:$0xff]  ;;  %v6695_v31 = vld [vmem:[#allocation4 + $0x8] sm:$0xff] }
 0x5a2   : > { %3740 = vadd.xlane.f32.xlu0 %v3714_v6  ;;  %v13210_v50 = vmul.f32 %v12788_v46, %v3664_v62  ;;  %v3527_v3 = vmul.f32 %v8808_v35, %v3479_v40  ;;  %v5297_v60 = vadd.f32 %v13007_v12, %v5249_v57  ;;  %v8810_v11 = vpop.eup %8809  ;;  %7908 = vmatprep.subr.bf16.mxu1 %v13186_v42  ;;  %v6698_v40 = vld [vmem:[#allocation4 + $0x20] sm:$0xff]  ;;  %v6697_v57 = vld [vmem:[#allocation4 + $0x18] sm:$0xff]  ;;  %v6731_v35 = vpop.xlane.xlu0 %6730 }
 0x5a3   : > { %v13217_v61 = vmul.f32 %v12812_v29, %v3667_v53  ;;  %5311 = vst.msk [vmem:[#allocation4 + $0x40] sm:$0xff] %vm2312_vm1, %v5295_v14  ;;  %5310 = vst.msk [vmem:[#allocation4 + $0x38] sm:$0xff] %vm2312_vm1, %v5294_v59  ;;  %v5296_v46 = vadd.f32 %v12988_v38, %v5248_v48  ;;  %v5299_v27 = vadd.f32 %v13035_v36, %v5251_v10  ;;  %v15926_v45 = vld [vmem:[#allocation159_spill] sm:$0xff] }
 0x5a4   : > { %v5298_v12 = vadd.f32 %v13018_v19, %v5250_v33  ;;  %v3712_v6 = vmul.f32 %v13210_v50, %v15925_v21  ;;  %v3601_v29 = vmul.f32 %v8810_v11, %v3569_v4  ;;  %8821 = vlog2.f32 %v3527_v3  ;;  %5313 = vst.msk [vmem:[#allocation4 + $0x50] sm:$0xff] %vm2312_vm1, %v5297_v60  ;;  %v8812_v38 = vpop.eup %8811  ;;  %v6733_v14 = vpop.xlane.xlu1 %6732  ;;  %v15930_v11 = vld [vmem:[#allocation173_spill] sm:$0xff] }
 0x5a5   : > { %v5301_v63 = vadd.f32 %v13054_v23, %v5253_v15  ;;  %v3715_v36 = vmul.f32 %v13217_v61, %v15926_v45  ;;  %v3477_v19 = vadd.f32 1.0, %v13152_v55  ;;  %5312 = vst.msk [vmem:[#allocation4 + $0x48] sm:$0xff] %vm2312_vm1, %v5296_v46  ;;  %5315 = vst.msk [vmem:[#allocation4 + $0x60] sm:$0xff] %vm2312_vm1, %v5299_v27  ;;  %v5300_v62 = vadd.f32 %v13042_v25, %v5252_v8  ;;  %v15927_v23 = vld [vmem:[#allocation166_spill] sm:$0xff]  ;;  %v15934_v45 = vld [vmem:[#allocation160_spill] sm:$0xff] }
 0x5a6   : > { %5314 = vst.msk [vmem:[#allocation4 + $0x58] sm:$0xff] %vm2312_vm1, %v5298_v12  ;;  %v6742_v2 = vadd.f32 %v13085_v41, %v6694_v13  ;;  %3736 = vadd.xlane.f32.xlu0 %v3712_v6  ;;  %v15928_v30 = vcvt.s32.f32 %v15927_v23  ;;  %v3557_v48 = vmul.f32 0.6931472, %v8812_v38  ;;  %v5302_v10 = vadd.f32 %v13066_v24, %v5254_v51  ;;  %v8814_v44 = vpop.eup %8813  ;;  %v15932_v12 = vld [vmem:[#allocation137_spill] sm:$0xff] }
 0x5a7   : > { %5317 = vst.msk [vmem:[#allocation4 + $0x70] sm:$0xff] %vm2312_vm1, %v5301_v63  ;;  %v6744_v33 = vadd.f32 %v13114_v39, %v6696_v17  ;;  %3742 = vadd.xlane.f32.xlu1 %v3715_v36  ;;  %5316 = vst.msk [vmem:[#allocation4 + $0x68] sm:$0xff] %vm2312_vm1, %v5300_v62  ;;  %v6743_v25 = vadd.f32 %v13096_v56, %v6695_v31  ;;  %v6746_v41 = vadd.f32 %v13144_v5, %v6698_v40  ;;  %v15929_v5 = vld [vmem:[#allocation59_spill] sm:$0xff]  ;;  %v6735_v31 = vpop.xlane.xlu0 %6734 }
 0x5a8   : > { %v3665_v7 = vmul.f32 %v15928_v30, %v3601_v29  ;;  %6758 = vst.msk [vmem:[#allocation4] sm:$0xff] %vm2312_vm1, %v6742_v2  ;;  %v6745_v32 = vadd.f32 %v13123_v26, %v6697_v57  ;;  %v6747_v53 = vadd.f32 %v13154_v49, %v6699_v52  ;;  %v3574_v24 = vmul.f32 0.5, %v3557_v48  ;;  %5318 = vst.msk [vmem:[#allocation4 + $0x78] sm:$0xff] %vm2312_vm1, %v5302_v10  ;;  %v8816_v59 = vpop.eup %8815  ;;  %v6737_v52 = vpop.xlane.xlu1 %6736  ;;  %v15937_v10 = vld [vmem:[#allocation139_spill] sm:$0xff] }
 0x5a9   : > { %8823 = vrcp.f32 %v13127_v18  ;;  %v3523_v39 = vmul.f32 %v8814_v44, %v3477_v19  ;;  %6760 = vst.msk [vmem:[#allocation4 + $0x10] sm:$0xff] %vm2312_vm1, %v6744_v33  ;;  %v4401_v56 = vpack.c.bf16 %v13205_v28, %v13196_v22  ;;  %6759 = vst.msk [vmem:[#allocation4 + $0x8] sm:$0xff] %vm2312_vm1, %v6743_v25  ;;  %7909 = vmatpush3.bf16.xpose.msra.mxu1 %v13186_v42  ;;  %v15931_v46 = vcvt.s32.f32 %v15930_v11  ;;  %v15939_v25 = vld [vmem:[#allocation162_spill] sm:$0xff] }
 0x5aa   : > { %v3681_v16 = vmul.f32 %v12833_v54, %v3665_v7  ;;  %6762 = vst.msk [vmem:[#allocation4 + $0x20] sm:$0xff] %vm2312_vm1, %v6746_v41  ;;  %6761 = vst.msk [vmem:[#allocation4 + $0x18] sm:$0xff] %vm2312_vm1, %v6745_v32  ;;  %v6700_v54 = vld [vmem:[#allocation4 + $0x30] sm:$0xff]  ;;  %v3606_v18 = vmul.f32 %v8816_v59, %v3574_v24  ;;  %v6702_v15 = vld [vmem:[#allocation4 + $0x40] sm:$0xff]  ;;  %v8818_v22 = vpop.eup %8817  ;;  %v3885_v28 = vpack.c.bf16 %v13217_v61, %v13181_v43 }
 0x5ab   : > { %6763 = vst.msk [vmem:[#allocation4 + $0x28] sm:$0xff] %vm2312_vm1, %v6747_v53  ;;  %8825 = vlog2.f32 %v3523_v39  ;;  %v6701_v4 = vld [vmem:[#allocation4 + $0x38] sm:$0xff]  ;;  %7910 = vmatprep.subr.bf16.mxu1 %v4401_v56  ;;  %v6748_v3 = vadd.f32 %v13172_v58, %v6700_v54  ;;  %v6750_v60 = vadd.f32 %v13199_v47, %v6702_v15  ;;  %v8820_v13 = vpop.eup %8819  ;;  %v3553_v42 = vmul.f32 0.6931472, %v8818_v22  ;;  %v15943_v15 = vld [vmem:[#allocation163_spill] sm:$0xff]  ;;  %v15944_v22 = vld [vmem:[#allocation172_spill] sm:$0xff] }
 0x5ac   : > { %v3884_v26 = vpack.c.bf16 %v3681_v16, %v13210_v50  ;;  %v3713_v49 = vmul.f32 %v3681_v16, %v15929_v5  ;;  %v6749_v8 = vadd.f32 %v13178_v1, %v6701_v4  ;;  %v6704_v50 = vld [vmem:[#allocation4 + $0x50] sm:$0xff]  ;;  %v3670_v27 = vmul.f32 %v15931_v46, %v3606_v18  ;;  %v6703_v43 = vld [vmem:[#allocation4 + $0x48] sm:$0xff]  ;;  %v6706_v61 = vld [vmem:[#allocation4 + $0x60] sm:$0xff] }
 0x5ad   : > { %v4386_v51 = vmul.f32 %v15932_v12, %v15932_v12  ;;  %v6752_v17 = vadd.f32 %v6731_v35, %v6704_v50  ;;  %v6705_v58 = vld [vmem:[#allocation4 + $0x58] sm:$0xff]  ;;  %6764 = vst.msk [vmem:[#allocation4 + $0x30] sm:$0xff] %vm2312_vm1, %v6748_v3  ;;  %6766 = vst.msk [vmem:[#allocation4 + $0x40] sm:$0xff] %vm2312_vm1, %v6750_v60  ;;  %v6751_v21 = vadd.f32 %v13214_v20, %v6703_v43  ;;  %v3572_v40 = vmul.f32 0.5, %v3553_v42  ;;  %v15938_v35 = vld [vmem:[#allocation141_spill] sm:$0xff] }
 0x5ae   : > { %7862 = vmatprep.mubr.bf16.mxu1 %v3884_v26  ;;  %3738 = vadd.xlane.f32.xlu1 %v3713_v49  ;;  %v15933_v47 = vld [vmem:[#allocation138_spill] sm:$0xff]  ;;  %6765 = vst.msk [vmem:[#allocation4 + $0x38] sm:$0xff] %vm2312_vm1, %v6749_v8  ;;  %v6754_v6 = vadd.f32 %v6735_v31, %v6706_v61  ;;  %v6753_v29 = vadd.f32 %v6733_v14, %v6705_v58  ;;  %8827 = vrcp.f32 %v13152_v55  ;;  %v6707_v57 = vld [vmem:[#allocation4 + $0x68] sm:$0xff]  ;;  %v15940_v16 = vld [vmem:[#allocation175_spill] sm:$0xff] }
 0x5af   : > { %7863 = vmatmul.mubr.bf16.gmra.mxu1 %v3885_v28  ;;  %v4387_v1 = vmul.f32 %v15933_v47, %v15933_v47  ;;  %v3686_v63 = vmul.f32 %v12851_v34, %v3670_v27  ;;  %6768 = vst.msk [vmem:[#allocation4 + $0x50] sm:$0xff] %vm2312_vm1, %v6752_v17  ;;  %6767 = vst.msk [vmem:[#allocation4 + $0x48] sm:$0xff] %vm2312_vm1, %v6751_v21  ;;  %v6755_v38 = vadd.f32 %v6737_v52, %v6707_v57  ;;  %v15935_v34 = vld [vmem:[#allocation171_spill] sm:$0xff]  ;;  %v15942_v5 = vld [vmem:[#allocation124_spill] sm:$0xff] }
 0x5b0   : > { %6770 = vst.msk [vmem:[#allocation4 + $0x60] sm:$0xff] %vm2312_vm1, %v6754_v6  ;;  %6769 = vst.msk [vmem:[#allocation4 + $0x58] sm:$0xff] %vm2312_vm1, %v6753_v29  ;;  %v3604_v36 = vmul.f32 %v8820_v13, %v3572_v40  ;;  %v15936_v55 = vcvt.s32.f32 %v15935_v34  ;;  %v4384_v33 = vmul.f32 %v15937_v10, %v15937_v10  ;;  %v4385_v44 = vmul.f32 %v15938_v35, %v15938_v35  ;;  %v15946_v60 = vld [vmem:[#allocation64_spill] sm:$0xff]  ;;  %v15947_v13 = vld [vmem:[#allocation61_spill] sm:$0xff] }
 0x5b1   : > { %v3718_v20 = vmul.f32 %v3686_v63, %v15934_v45  ;;  %v8822_v19 = vpop.eup %8821  ;;  %v4400_v62 = vpack.c.bf16 %v4387_v1, %v4386_v51  ;;  %6771 = vst.msk [vmem:[#allocation4 + $0x68] sm:$0xff] %vm2312_vm1, %v6755_v38  ;;  %7911 = vmatpush3.bf16.xpose.msra.mxu1 %v4401_v56  ;;  %v15941_v24 = vcvt.s32.f32 %v15940_v16  ;;  %v4382_v49 = vmul.f32 %v15942_v5, %v15942_v5  ;;  %v15949_v27 = vld [vmem:[#allocation14_spill] sm:$0xff]  ;;  %v3690_v43 = vld [vmem:[#allocation3 + $0x10] sm:$0xff]  ;;  %v3688_v1 = vld [vmem:[#allocation3] sm:$0xff] }
 0x5b2   : > { %v3668_v2 = vmul.f32 %v15936_v55, %v3604_v36  ;;  %v3559_v23 = vmul.f32 0.6931472, %v8822_v19  ;;  %v4399_v59 = vpack.c.bf16 %v4385_v44, %v4384_v33  ;;  %v4383_v4 = vmul.f32 %v15943_v15, %v15943_v15  ;;  %v15950_v42 = vld [vmem:[#allocation170_spill] sm:$0xff]  ;;  %v15953_v40 = vld [vmem:[#allocation179_spill] sm:$0xff]  ;;  %v3689_v38 = vld [vmem:[#allocation3 + $0x8] sm:$0xff] }
 0x5b3   : > { %3748 = vadd.xlane.f32.xlu0 %v3718_v20  ;;  %7912 = vmatprep.subr.bf16.mxu1 %v4400_v62  ;;  %v15945_v28 = vcvt.s32.f32 %v15944_v22  ;;  %v5554_v12 = vmax.f32 %v15950_v42, 1e-24  ;;  %v15951_v51 = vld [vmem:[#allocation114_spill] sm:$0xff]  ;;  %v13322_v57 = vmax.f32 %v15953_v40, 1e-24  ;;  %v15954_v34 = vld [vmem:[#allocation180_spill] sm:$0xff] }
 0x5b4   : > { %v3684_v30 = vmul.f32 %v12867_v37, %v3668_v2  ;;  %v3575_v7 = vmul.f32 0.5, %v3559_v23  ;;  %v5555_v17 = vmax.f32 %v15951_v51, 1e-24  ;;  %v15952_v58 = vld [vmem:[#allocation174_spill] sm:$0xff]  ;;  %v13328_v55 = vmax.f32 %v15954_v34, 1e-24 }
 0x5b5   : > { %8829 = vrsqrt.f32 %v5554_v12  ;;  %v13317_v47 = vmax.f32 %v15952_v58, 1e-24  ;;  %v3691_v29 = vld [vmem:[#allocation3 + $0x18] sm:$0xff]  ;;  %v3694_v2 = vld [vmem:[#allocation3 + $0x30] sm:$0xff]  ;;  %vm5656_vm6 = vcmp.eq.f32.partialorder %v5554_v12, inf  ;;  %v5659_v10 = vand.u32 2147483648, %v5554_v12 }
 0x5b6   : > { %v8824_v48 = vpop.eup %8823  ;;  %v3716_v41 = vmul.f32 %v3684_v30, %v15939_v25  ;;  %8831 = vrsqrt.f32 %v5555_v17  ;;  %vm5658_vm7 = vcmp.eq.f32.partialorder %v5554_v12, 0.0  ;;  %vm5663_vm8 = vcmp.eq.f32.partialorder %v5555_v17, inf  ;;  %v3692_v44 = vld [vmem:[#allocation3 + $0x20] sm:$0xff]  ;;  %v15959_v42 = vld [vmem:[#allocation113_spill] sm:$0xff]  ;;  %v3699_v58 = vld [vmem:[#allocation3 + $0x58] sm:$0xff] }
 0x5b7   : > { %v3607_v32 = vmul.f32 %v8824_v48, %v3575_v7  ;;  %8833 = vrsqrt.f32 %v13317_v47  ;;  %v15955_v7 = vld [vmem:[#allocation184_spill] sm:$0xff]  ;;  %vm5665_vm9 = vcmp.eq.f32.partialorder %v5555_v17, 0.0  ;;  %vm5642_vm10 = vcmp.eq.f32.partialorder %v13317_v47, inf  ;;  %v15957_v15 = vld [vmem:[#allocation115_spill] sm:$0xff] }
 0x5b8   : > { %v8826_v53 = vpop.eup %8825  ;;  %3744 = vadd.xlane.f32.xlu0 %v3716_v41  ;;  %8835 = vrsqrt.f32 %v13322_v57  ;;  %v13331_v48 = vmax.f32 %v15955_v7, 1e-24  ;;  %vm5644_vm11 = vcmp.eq.f32.partialorder %v13317_v47, 0.0  ;;  %vm5649_vm12 = vcmp.eq.f32.partialorder %v13322_v57, inf  ;;  %v3696_v51 = vld [vmem:[#allocation3 + $0x40] sm:$0xff] }
 0x5b9   : > { %v3671_v39 = vmul.f32 %v15941_v24, %v3607_v32  ;;  %v3555_v14 = vmul.f32 0.6931472, %v8826_v53  ;;  %7913 = vmatpush3.bf16.xpose.msra.mxu1 %v4400_v62  ;;  %8837 = vrsqrt.f32 %v13328_v55  ;;  %v3695_v32 = vld [vmem:[#allocation3 + $0x38] sm:$0xff]  ;;  %v5666_v24 = vand.u32 2147483648, %v5555_v17 }
 0x5ba   : > { %7914 = vmatprep.subr.bf16.mxu1 %v4399_v59  ;;  %8839 = vrsqrt.f32 %v13331_v48  ;;  %vm5651_vm13 = vcmp.eq.f32.partialorder %v13322_v57, 0.0  ;;  %vm5628_vm14 = vcmp.eq.f32.partialorder %v13328_v55, inf  ;;  %vm5635_vm15 = vcmp.eq.f32.partialorder %v13331_v48, inf }
 0x5bb   : > { %v3687_v37 = vmul.f32 %v12885_v9, %v3671_v39  ;;  %v3573_v56 = vmul.f32 0.5, %v3555_v14  ;;  %v8828_v54 = vpop.eup %8827  ;;  %v4398_v9 = vpack.c.bf16 %v4383_v4, %v4382_v49  ;;  %v13344_v4 = vmax.f32 %v15957_v15, 1e-24 }
 0x5bc   : > { %vm5630_vm0 = vcmp.eq.f32.partialorder %v13328_v55, 0.0  ;;  %vm5637_vm2 = vcmp.eq.f32.partialorder %v13331_v48, 0.0 }
 0x5bd   : > { %v3719_v26 = vmul.f32 %v3687_v37, %v12803_v0  ;;  %v3605_v18 = vmul.f32 %v8828_v54, %v3573_v56  ;;  %v3887_v46 = vpack.c.bf16 %v3687_v37, %v3686_v63  ;;  %v15948_v0 = vmov 1065369472   ;;  %v15956_v37 = vld [vmem:[#allocation185_spill] sm:$0xff] }
 0x5be   : > { %v13338_v56 = vmax.f32 %v15956_v37, 1e-24  ;;  %vm5621_vm4 = vcmp.eq.f32.partialorder %v13344_v4, inf }
 0x5bf   : > { %3750 = vadd.xlane.f32.xlu1 %v3719_v26  ;;  %v3669_v3 = vmul.f32 %v15945_v28, %v3605_v18  ;;  %v3693_v26 = vld [vmem:[#allocation3 + $0x28] sm:$0xff]  ;;  %v3698_v28 = vld [vmem:[#allocation3 + $0x50] sm:$0xff] }
 0x5c0   : > { %vm5614_vm3 = vcmp.eq.f32.partialorder %v13338_v56, inf  ;;  %vm5616_vm5 = vcmp.eq.f32.partialorder %v13338_v56, 0.0 }
 0x5c1   : > { %v3685_v8 = vmul.f32 %v15946_v60, %v3669_v3  ;;  %7915 = vmatpush3.bf16.xpose.msra.mxu1 %v4399_v59  ;;  %v5645_v60 = vand.u32 2147483648, %v13317_v47 }
 0x5c2   : > { %7916 = vmatprep.subr.bf16.mxu1 %v4398_v9  ;;  %v8830_v20 = vpop.eup %8829 }
 0x5c3   : > { %v3886_v50 = vpack.c.bf16 %v3685_v8, %v3684_v30  ;;  %v3717_v11 = vmul.f32 %v3685_v8, %v15947_v13  ;;  %v8832_v19 = vpop.eup %8831  ;;  %v5655_v62 = vmul.f32 %v8830_v20, %v5554_v12  ;;  %v15958_v13 = vld [vmem:[#allocation112_spill] sm:$0xff] }
 0x5c4   : > { %v5662_v33 = vmul.f32 %v8832_v19, %v5555_v17  ;;  %v8834_v16 = vpop.eup %8833  ;;  %v15962_v20 = vld [vmem:[#allocation116_spill] sm:$0xff] }
 0x5c5   : > { %7866 = vmatprep.mubr.bf16.mxu1 %v3886_v50  ;;  %3746 = vadd.xlane.f32.xlu1 %v3717_v11  ;;  %v5657_v35 = vsel %vm5656_vm6, %v5554_v12, %v5655_v62  ;;  %v5641_v54 = vmul.f32 %v8834_v16, %v13317_v47  ;;  %v8836_v5 = vpop.eup %8835  ;;  %v13355_v11 = vmax.f32 %v15958_v13, 1e-24  ;;  %v13362_v12 = vmax.f32 %v15959_v42, 1e-24  ;;  %v3697_v19 = vld [vmem:[#allocation3 + $0x48] sm:$0xff] }
 0x5c6   : > { %7867 = vmatmul.mubr.bf16.gmra.mxu1 %v3887_v46  ;;  %v5660_v14 = vsel %vm5658_vm7, %v5659_v10, %v5657_v35  ;;  %v5664_v59 = vsel %vm5663_vm8, %v5555_v17, %v5662_v33  ;;  %v5648_v50 = vmul.f32 %v8836_v5, %v13322_v57  ;;  %v5638_v35 = vand.u32 2147483648, %v13331_v48  ;;  %v15967_v13 = vld [vmem:[#allocation88_spill] sm:$0xff] }
 0x5c7   : > { %7918 = vmatprep.mubr.bf16.mxu1 %v15948_v0  ;;  %8841 = vtanh.f32 %v5660_v14  ;;  %v5667_v49 = vsel %vm5665_vm9, %v5666_v24, %v5664_v59  ;;  %vm5623_vm6 = vcmp.eq.f32.partialorder %v13344_v4, 0.0  ;;  %vm5600_vm7 = vcmp.eq.f32.partialorder %v13355_v11, inf }
 0x5c8   : > { %8843 = vrcp.f32 %v5660_v14  ;;  %vm5602_vm8 = vcmp.eq.f32.partialorder %v13355_v11, 0.0  ;;  %vm5607_vm9 = vcmp.eq.f32.partialorder %v13362_v12, inf }
 0x5c9   : > { %7917 = vmatpush3.bf16.xpose.msra.mxu1 %v4398_v9  ;;  %8845 = vrsqrt.f32 %v13338_v56  ;;  %v5643_v9 = vsel %vm5642_vm10, %v13317_v47, %v5641_v54  ;;  %vm5609_vm10 = vcmp.eq.f32.partialorder %v13362_v12, 0.0 }
 0x5ca   : > { %8847 = vtanh.f32 %v5667_v49  ;;  %v5646_v46 = vsel %vm5644_vm11, %v5645_v60, %v5643_v9  ;;  %v15966_v9 = vld [vmem:[#allocation87_spill] sm:$0xff] }
 0x5cb   : > { %8849 = vrsqrt.f32 %v13344_v4 }
 0x5cc   : > { %8851 = vrcp.f32 %v5667_v49 }
 0x5cd   : > { %8853 = vrsqrt.f32 %v13355_v11 }
 0x5ce   : > { %8855 = vtanh.f32 %v5646_v46 }
 0x5cf   : > { %8857 = vrsqrt.f32 %v13362_v12 }
 0x5d0   : > { %7919 = vmatmul.mubr.bf16.vlgmr.msra.gmra.mxu1 %v15948_v0  ;;  %8859 = vrcp.f32 %v5646_v46 }
 0x5d1   : > { %7922 = vmatprep.mubr.bf16.mxu1 %v15948_v0 }
 0x5d8   : > { %7923 = vmatmul.mubr.bf16.gmra.mxu1 %v15948_v0 }
 0x5d9   : > { %7926 = vmatprep.mubr.bf16.mxu1 %v15948_v0 }
 0x5e0   : > { %7927 = vmatmul.mubr.bf16.gmra.mxu1 %v15948_v0 }
 0x5e1   : > { %7930 = vmatprep.mubr.bf16.mxu1 %v15948_v0 }
 0x5e8   : > { %7931 = vmatmul.mubr.bf16.gmra.mxu1 %v15948_v0 }
 0x5e9   : > { %7982 = vmatprep.mubr.bf16.mxu1 %v15949_v27  ;;  %v5652_v27 = vand.u32 2147483648, %v13322_v57 }
 0x60f   : > { %v3725_v61 = vpop.xlane.xlu0 %3724 }
 0x610   : > { %v3754_v31 = vadd.f32 %v3725_v61, %v3690_v43  ;;  %v8838_v43 = vpop.eup %8837  ;;  %v5650_v61 = vsel %vm5649_vm12, %v13322_v57, %v5648_v50 }
 0x611   : > { %v5627_v40 = vmul.f32 %v8838_v43, %v13328_v55 }
 0x612   : > { %3770 = vst.msk [vmem:[#allocation3 + $0x10] sm:$0xff] %vm2312_vm1, %v3754_v31 }
 0x613   : > { %v3721_v21 = vpop.xlane.xlu0 %3720  ;;  %v5629_v10 = vsel %vm5628_vm14, %v13328_v55, %v5627_v40 }
 0x614   : > { %v3752_v6 = vadd.f32 %v3721_v21, %v3688_v1  ;;  %v15960_v1 = vld [vmem:[#allocation43_spill] sm:$0xff] }
 0x615   : > { %v13368_v21 = vmax.f32 %v15960_v1, 1e-24 }
 0x616   : > { %3768 = vst.msk [vmem:[#allocation3] sm:$0xff] %vm2312_vm1, %v3752_v6 }
 0x617   : > { %v3727_v63 = vpop.xlane.xlu1 %3726  ;;  %8861 = vrsqrt.f32 %v13368_v21  ;;  %vm5586_vm11 = vcmp.eq.f32.partialorder %v13368_v21, inf  ;;  %vm5588_vm12 = vcmp.eq.f32.partialorder %v13368_v21, 0.0 }
 0x618   : > { %v3755_v52 = vadd.f32 %v3727_v63, %v3691_v29  ;;  %v8840_v29 = vpop.eup %8839  ;;  %v5653_v63 = vsel %vm5651_vm13, %v5652_v27, %v5650_v61 }
 0x619   : > { %v8842_v34 = vpop.eup %8841  ;;  %8863 = vtanh.f32 %v5653_v63 }
 0x61a   : > { %3771 = vst.msk [vmem:[#allocation3 + $0x18] sm:$0xff] %vm2312_vm1, %v3755_v52  ;;  %v15961_v52 = vld [vmem:[#allocation44_spill] sm:$0xff]  ;;  %v8844_v7 = vpop.eup %8843 }
 0x61b   : > { %v3723_v45 = vpop.xlane.xlu1 %3722  ;;  %v13374_v57 = vmax.f32 %v15961_v52, 1e-24  ;;  %v8846_v33 = vpop.eup %8845  ;;  %v5713_v49 = vmul.f32 %v8844_v7, %v8842_v34 }
 0x61c   : > { %v3753_v36 = vadd.f32 %v3723_v45, %v3689_v38  ;;  %v5631_v38 = vand.u32 2147483648, %v13328_v55  ;;  %v5634_v45 = vmul.f32 %v8840_v29, %v13331_v48  ;;  %v5613_v24 = vmul.f32 %v8846_v33, %v13338_v56 }
 0x61d   : > { %8865 = vrsqrt.f32 %v13374_v57  ;;  %v13415_v50 = vmul.f32 %v5713_v49, %v15966_v9  ;;  %vm5593_vm13 = vcmp.eq.f32.partialorder %v13374_v57, inf  ;;  %vm5595_vm14 = vcmp.eq.f32.partialorder %v13374_v57, 0.0 }
 0x61e   : > { %3769 = vst.msk [vmem:[#allocation3 + $0x8] sm:$0xff] %vm2312_vm1, %v3753_v36  ;;  %v13382_v36 = vmax.f32 %v15962_v20, 1e-24  ;;  %8867 = vrcp.f32 %v5653_v63  ;;  %v5632_v55 = vsel %vm5630_vm0, %v5631_v38, %v5629_v10  ;;  %v5610_v63 = vand.u32 2147483648, %v13362_v12 }
 0x61f   : > { %v3733_v23 = vpop.xlane.xlu0 %3732 }
 0x620   : > { %v3758_v30 = vadd.f32 %v3733_v23, %v3694_v2  ;;  %v15963_v2 = vld [vmem:[#allocation68_spill] sm:$0xff]  ;;  %8869 = vrsqrt.f32 %v13382_v36  ;;  %vm5574_vm0 = vcmp.eq.f32.partialorder %v13382_v36, 0.0 }
 0x621   : > { %v13386_v23 = vmax.f32 %v15963_v2, 1e-24  ;;  %v3703_v2 = vld [vmem:[#allocation3 + $0x78] sm:$0xff] }
 0x622   : > { %3774 = vst.msk [vmem:[#allocation3 + $0x30] sm:$0xff] %vm2312_vm1, %v3758_v30 }
 0x623   : > { %v3729_v25 = vpop.xlane.xlu0 %3728  ;;  %8871 = vrsqrt.f32 %v13386_v23 }
 0x624   : > { %v3756_v41 = vadd.f32 %v3729_v25, %v3692_v44  ;;  %v15964_v44 = vld [vmem:[#allocation53_spill] sm:$0xff] }
 0x625   : > { %v3735_v53 = vpop.xlane.xlu1 %3734  ;;  %v13393_v25 = vmax.f32 %v15964_v44, 1e-24 }
 0x626   : > { %v3759_v39 = vadd.f32 %v3735_v53, %v3695_v32  ;;  %3772 = vst.msk [vmem:[#allocation3 + $0x20] sm:$0xff] %vm2312_vm1, %v3756_v41  ;;  %v8848_v41 = vpop.eup %8847  ;;  %v5636_v32 = vsel %vm5635_vm15, %v13331_v48, %v5634_v45  ;;  %v5617_v48 = vand.u32 2147483648, %v13338_v56  ;;  %v5589_v45 = vand.u32 2147483648, %v13368_v21 }
 0x627   : > { %v8850_v53 = vpop.eup %8849  ;;  %v5639_v59 = vsel %vm5637_vm2, %v5638_v35, %v5636_v32  ;;  %8873 = vrsqrt.f32 %v13393_v25  ;;  %vm5572_vm15 = vcmp.eq.f32.partialorder %v13382_v36, inf  ;;  %vm5579_vm2 = vcmp.eq.f32.partialorder %v13386_v23, inf }
 0x628   : > { %3775 = vst.msk [vmem:[#allocation3 + $0x38] sm:$0xff] %vm2312_vm1, %v3759_v39  ;;  %v8852_v16 = vpop.eup %8851  ;;  %v3702_v39 = vld [vmem:[#allocation3 + $0x70] sm:$0xff]  ;;  %8875 = vtanh.f32 %v5632_v55 }
 0x629   : > { %v3731_v18 = vpop.xlane.xlu1 %3730  ;;  %v8854_v54 = vpop.eup %8853  ;;  %8877 = vrcp.f32 %v5632_v55  ;;  %v5715_v15 = vmul.f32 %v8852_v16, %v8848_v41  ;;  %v15968_v16 = vld [vmem:[#allocation90_spill] sm:$0xff] }
 0x62a   : > { %v3757_v22 = vadd.f32 %v3731_v18, %v3693_v26  ;;  %v5620_v26 = vmul.f32 %v8850_v53, %v13344_v4  ;;  %v15965_v18 = vld [vmem:[#allocation54_spill] sm:$0xff]  ;;  %8879 = vtanh.f32 %v5639_v59 }
 0x62b   : > { %v3741_v3 = vpop.xlane.xlu0 %3740  ;;  %v13406_v5 = vmax.f32 %v15965_v18, 1e-24  ;;  %8881 = vrcp.f32 %v5639_v59  ;;  %v13418_v46 = vmul.f32 %v5715_v15, %v15967_v13  ;;  %v5582_v15 = vand.u32 2147483648, %v13386_v23 }
 0x62c   : > { %v3762_v8 = vadd.f32 %v3741_v3, %v3698_v28  ;;  %3773 = vst.msk [vmem:[#allocation3 + $0x28] sm:$0xff] %vm2312_vm1, %v3757_v22  ;;  %v8856_v22 = vpop.eup %8855  ;;  %v5615_v28 = vsel %vm5614_vm3, %v13338_v56, %v5613_v24  ;;  %v5624_v3 = vand.u32 2147483648, %v13344_v4  ;;  %v5622_v42 = vsel %vm5621_vm4, %v13344_v4, %v5620_v26  ;;  %v3700_v56 = vld [vmem:[#allocation3 + $0x60] sm:$0xff] }
 0x62d   : > { %v8858_v60 = vpop.eup %8857  ;;  %8883 = vrsqrt.f32 %v13406_v5  ;;  %v5618_v43 = vsel %vm5616_vm5, %v5617_v48, %v5615_v28  ;;  %v5575_v48 = vand.u32 2147483648, %v13382_v36  ;;  %vm5581_vm3 = vcmp.eq.f32.partialorder %v13386_v23, 0.0 }
 0x62e   : > { %3778 = vst.msk [vmem:[#allocation3 + $0x50] sm:$0xff] %vm2312_vm1, %v3762_v8  ;;  %v5599_v8 = vmul.f32 %v8854_v54, %v13355_v11  ;;  %v8860_v27 = vpop.eup %8859  ;;  %v5606_v4 = vmul.f32 %v8858_v60, %v13362_v12  ;;  %8885 = vtanh.f32 %v5618_v43  ;;  %vm5558_vm4 = vcmp.eq.f32.partialorder %v13393_v25, inf }
 0x62f   : > { %v3737_v17 = vpop.xlane.xlu0 %3736  ;;  %8887 = vrcp.f32 %v5618_v43  ;;  %v5709_v10 = vmul.f32 %v8860_v27, %v8856_v22  ;;  %v3701_v22 = vld [vmem:[#allocation3 + $0x68] sm:$0xff]  ;;  %v5561_v13 = vand.u32 2147483648, %v13393_v25  ;;  %vm5565_vm5 = vcmp.eq.f32.partialorder %v13406_v5, inf }
 0x630   : > { %v3760_v31 = vadd.f32 %v3737_v17, %v3696_v51  ;;  %v3743_v47 = vpop.xlane.xlu1 %3742  ;;  %v8862_v17 = vpop.eup %8861  ;;  %v5601_v29 = vsel %vm5600_vm7, %v13355_v11, %v5599_v8  ;;  %vm5567_vm7 = vcmp.eq.f32.partialorder %v13406_v5, 0.0 }
 0x631   : > { %v3763_v6 = vadd.f32 %v3743_v47, %v3699_v58  ;;  %v8864_v58 = vpop.eup %8863  ;;  %v5603_v47 = vand.u32 2147483648, %v13355_v11  ;;  %v5585_v52 = vmul.f32 %v8862_v17, %v13368_v21  ;;  %v5596_v11 = vand.u32 2147483648, %v13374_v57  ;;  %v3866_v17 = vld [vmem:[#allocation2 + $0x58] sm:$0xff] }
 0x632   : > { %3776 = vst.msk [vmem:[#allocation3 + $0x40] sm:$0xff] %vm2312_vm1, %v3760_v31  ;;  %v13426_v31 = vpack.c.bf16 %v13418_v46, %v13415_v50  ;;  %v8866_v1 = vpop.eup %8865  ;;  %v13461_v24 = vmul.f32 %v5709_v10, %v15968_v16  ;;  %v3865_v10 = vld [vmem:[#allocation2] sm:$0xff] }
 0x633   : > { %3779 = vst.msk [vmem:[#allocation3 + $0x58] sm:$0xff] %vm2312_vm1, %v3763_v6  ;;  %v5625_v6 = vsel %vm5623_vm6, %v5624_v3, %v5622_v42  ;;  %v8868_v40 = vpop.eup %8867  ;;  %v5592_v34 = vmul.f32 %v8866_v1, %v13374_v57  ;;  %v5587_v44 = vsel %vm5586_vm11, %v13368_v21, %v5585_v52  ;;  %vm5560_vm6 = vcmp.eq.f32.partialorder %v13393_v25, 0.0 }
 0x634   : > { %7966 = vmatprep.subr.bf16.mxu1 %v13426_v31  ;;  %v8870_v38 = vpop.eup %8869  ;;  %8889 = vtanh.f32 %v5625_v6  ;;  %v5711_v33 = vmul.f32 %v8868_v40, %v8864_v58  ;;  %v5590_v54 = vsel %vm5588_vm12, %v5589_v45, %v5587_v44  ;;  %v5568_v52 = vand.u32 2147483648, %v13406_v5 }
 0x635   : > { %7967 = vmatpush3.bf16.xpose.msra.mxu1 %v13426_v31  ;;  %v8872_v20 = vpop.eup %8871  ;;  %8891 = vrcp.f32 %v5625_v6  ;;  %v5571_v41 = vmul.f32 %v8870_v38, %v13382_v36 }
 0x636   : > { %v8874_v35 = vpop.eup %8873  ;;  %v5578_v55 = vmul.f32 %v8872_v20, %v13386_v23 }
 0x637   : > { %v3739_v62 = vpop.xlane.xlu1 %3738  ;;  %v8876_v32 = vpop.eup %8875  ;;  %v5573_v49 = vsel %vm5572_vm15, %v13382_v36, %v5571_v41  ;;  %v5557_v9 = vmul.f32 %v8874_v35, %v13393_v25 }
 0x638   : > { %v3761_v30 = vadd.f32 %v3739_v62, %v3697_v19  ;;  %v5604_v19 = vsel %vm5602_vm8, %v5603_v47, %v5601_v29  ;;  %v5608_v62 = vsel %vm5607_vm9, %v13362_v12, %v5606_v4  ;;  %v8878_v59 = vpop.eup %8877  ;;  %v5580_v60 = vsel %vm5579_vm2, %v13386_v23, %v5578_v55  ;;  %v15970_v47 = vld [vmem:[#allocation93_spill] sm:$0xff]  ;;  %v15971_v4 = vld [vmem:[#allocation94_spill] sm:$0xff]  ;;  %v15973_v55 = vld [vmem:[#allocation96_spill] sm:$0xff] }
 0x639   : > { %v5611_v53 = vsel %vm5609_vm10, %v5610_v63, %v5608_v62  ;;  %8893 = vtanh.f32 %v5604_v19  ;;  %v8880_v12 = vpop.eup %8879  ;;  %v5705_v27 = vmul.f32 %v8878_v59, %v8876_v32  ;;  %v5559_v23 = vsel %vm5558_vm4, %v13393_v25, %v5557_v9  ;;  %v3864_v29 = vld [vmem:[#allocation2 + $0x30] sm:$0xff]  ;;  %v3867_v62 = vld [vmem:[#allocation2 + $0x18] sm:$0xff] }
 0x63a   : > { %3777 = vst.msk [vmem:[#allocation3 + $0x48] sm:$0xff] %vm2312_vm1, %v3761_v30  ;;  %8895 = vrcp.f32 %v5604_v19  ;;  %v8882_v18 = vpop.eup %8881 }
 0x63b   : > { %8897 = vtanh.f32 %v5611_v53  ;;  %v8884_v21 = vpop.eup %8883  ;;  %v5707_v42 = vmul.f32 %v8882_v18, %v8880_v12  ;;  %v13501_v36 = vmul.f32 %v5705_v27, %v15970_v47  ;;  %v3868_v27 = vld [vmem:[#allocation2 + $0x50] sm:$0xff] }
 0x63c   : > { %v3749_v14 = vpop.xlane.xlu0 %3748  ;;  %8899 = vrcp.f32 %v5611_v53 }
 0x63d   : > { %v3766_v37 = vadd.f32 %v3749_v14, %v3702_v39  ;;  %v15969_v39 = vld [vmem:[#allocation91_spill] sm:$0xff]  ;;  %8901 = vtanh.f32 %v5590_v54  ;;  %v13504_v1 = vmul.f32 %v5707_v42, %v15971_v4  ;;  %v3871_v4 = vld [vmem:[#allocation2 + $0x48] sm:$0xff] }
 0x63e   : > { %v13464_v14 = vmul.f32 %v5711_v33, %v15969_v39  ;;  %8903 = vrcp.f32 %v5590_v54  ;;  %v15975_v39 = vld [vmem:[#allocation97_spill] sm:$0xff] }
 0x63f   : > { %3782 = vst.msk [vmem:[#allocation3 + $0x70] sm:$0xff] %vm2312_vm1, %v3766_v37  ;;  %v5594_v37 = vsel %vm5593_vm13, %v13374_v57, %v5592_v34  ;;  %v5576_v57 = vsel %vm5574_vm0, %v5575_v48, %v5573_v49  ;;  %15972 = vst [vmem:[#allocation164_spill] sm:$0xff] %v13504_v1  ;;  %v13513_v45 = vpack.c.bf16 %v13504_v1, %v13501_v36 }
 0x640   : > { %v13476_v26 = vpack.c.bf16 %v13464_v14, %v13461_v24  ;;  %v5597_v3 = vsel %vm5595_vm14, %v5596_v11, %v5594_v37 }
 0x641   : > { %v3745_v51 = vpop.xlane.xlu0 %3744  ;;  %8905 = vtanh.f32 %v5597_v3 }
 0x642   : > { %v3764_v61 = vadd.f32 %v3745_v51, %v3700_v56  ;;  %7968 = vmatprep.subr.bf16.mxu1 %v13476_v26  ;;  %v5583_v56 = vsel %vm5581_vm3, %v5582_v15, %v5580_v60  ;;  %v5564_v51 = vmul.f32 %v8884_v21, %v13406_v5  ;;  %8907 = vrcp.f32 %v5597_v3 }
 0x643   : > { %7969 = vmatpush3.bf16.xpose.msra.mxu1 %v13476_v26  ;;  %8909 = vtanh.f32 %v5576_v57 }
 0x644   : > { %3780 = vst.msk [vmem:[#allocation3 + $0x60] sm:$0xff] %vm2312_vm1, %v3764_v61  ;;  %v8886_v61 = vpop.eup %8885  ;;  %8911 = vrcp.f32 %v5576_v57  ;;  %v5566_v19 = vsel %vm5565_vm5, %v13406_v5, %v5564_v51  ;;  %7970 = vmatprep.subr.bf16.mxu1 %v13513_v45 }
 0x645   : > { %v8888_v6 = vpop.eup %8887  ;;  %8913 = vtanh.f32 %v5583_v56  ;;  %v5569_v44 = vsel %vm5567_vm7, %v5568_v52, %v5566_v19 }
 0x646   : > { %v8890_v40 = vpop.eup %8889  ;;  %8915 = vrcp.f32 %v5583_v56  ;;  %v5701_v11 = vmul.f32 %v8888_v6, %v8886_v61  ;;  %v15977_v56 = vld [vmem:[#allocation100_spill] sm:$0xff] }
 0x647   : > { %v8892_v20 = vpop.eup %8891 }
 0x648   : > { %v3751_v30 = vpop.xlane.xlu1 %3750  ;;  %v8894_v35 = vpop.eup %8893  ;;  %v5703_v41 = vmul.f32 %v8892_v20, %v8890_v40  ;;  %v13528_v16 = vmul.f32 %v5701_v11, %v15973_v55  ;;  %v3869_v40 = vld [vmem:[#allocation2 + $0x68] sm:$0xff] }
 0x649   : > { %v3767_v7 = vadd.f32 %v3751_v30, %v3703_v2  ;;  %v13519_v2 = vpop.f32.mrf.mxu0  ;;  %v5562_v30 = vsel %vm5560_vm6, %v5561_v13, %v5559_v23  ;;  %v8896_v32 = vpop.eup %8895 }
 0x64a   : > { %8917 = vtanh.f32 %v5562_v30  ;;  %v8898_v25 = vpop.eup %8897  ;;  %15974 = vst [vmem:[#allocation165_spill] sm:$0xff] %v13528_v16  ;;  %v13531_v59 = vmul.f32 %v5703_v41, %v15975_v39  ;;  %v5697_v3 = vmul.f32 %v8896_v32, %v8894_v35  ;;  %v15981_v35 = vld [vmem:[#allocation104_spill] sm:$0xff]  ;;  %v15985_v41 = vld [vmem:[#allocation107_spill] sm:$0xff] }
 0x64b   : > { %3783 = vst.msk [vmem:[#allocation3 + $0x78] sm:$0xff] %vm2312_vm1, %v3767_v7  ;;  %7971 = vmatpush3.bf16.xpose.msra.mxu1 %v13513_v45  ;;  %v13525_v53 = vpop.f32.mrf.mxu0  ;;  %8919 = vrcp.f32 %v5562_v30  ;;  %v8900_v37 = vpop.eup %8899 }
 0x64c   : > { %15976 = vst [vmem:[#allocation169_spill] sm:$0xff] %v13531_v59  ;;  %8921 = vtanh.f32 %v5569_v44  ;;  %v8902_v12 = vpop.eup %8901  ;;  %v13535_v54 = vpack.c.bf16 %v13531_v59, %v13528_v16  ;;  %v5699_v60 = vmul.f32 %v8900_v37, %v8898_v25  ;;  %v13544_v51 = vmul.f32 %v5697_v3, %v15977_v56  ;;  %v15987_v25 = vld [vmem:[#allocation108_spill] sm:$0xff]  ;;  %v3872_v3 = vld [vmem:[#allocation2 + $0x40] sm:$0xff] }
 0x64d   : > { %8923 = vrcp.f32 %v5569_v44  ;;  %v8904_v48 = vpop.eup %8903  ;;  %v13537_v18 = vpop.f32.mrf.mxu0  ;;  %v5852_v37 = vmul.f32 %v13418_v46, %v13418_v46 }
 0x64e   : > { %v3747_v28 = vpop.xlane.xlu1 %3746  ;;  %v8906_v49 = vpop.eup %8905  ;;  %7972 = vmatprep.subr.bf16.mxu1 %v13535_v54  ;;  %15978 = vst [vmem:[#allocation65_spill] sm:$0xff] %v13544_v51 }
 0x64f   : > { %v3765_v8 = vadd.f32 %v3747_v28, %v3701_v22  ;;  %v8908_v15 = vpop.eup %8907  ;;  %v3870_v28 = vld [vmem:[#allocation2 + $0x8] sm:$0xff]  ;;  %v13541_v13 = vpop.f32.mrf.mxu0 }
 0x650   : > { %v7856_v43 = vpop.f32.mrf.mxu1  ;;  %v8910_v22 = vpop.eup %8909  ;;  %v5695_v20 = vmul.f32 %v8908_v15, %v8906_v49 }
 0x651   : > { %3781 = vst.msk [vmem:[#allocation3 + $0x68] sm:$0xff] %vm2312_vm1, %v3765_v8  ;;  %v3987_v58 = vadd.f32 %v7856_v43, %v3866_v17  ;;  %v8912_v8 = vpop.eup %8911  ;;  %v15979_v17 = vld [vmem:[#allocation103_spill] sm:$0xff]  ;;  %v13549_v47 = vpop.f32.mrf.mxu0 }
 0x652   : > { %v3922_v63 = vpop.f32.mrf.mxu1  ;;  %v8914_v57 = vpop.eup %8913  ;;  %v13547_v43 = vmul.f32 %v5699_v60, %v15979_v17  ;;  %v5689_v19 = vmul.f32 %v8912_v8, %v8910_v22  ;;  %v3875_v17 = vld [vmem:[#allocation2 + $0x38] sm:$0xff] }
 0x653   : > { %4003 = vst [vmem:[#allocation2 + $0x58] sm:$0xff] %v3987_v58  ;;  %v3985_v38 = vadd.f32 %v3922_v63, %v3864_v29  ;;  %7973 = vmatpush3.bf16.xpose.msra.mxu1 %v13535_v54  ;;  %v8916_v61 = vpop.eup %8915 }
 0x654   : > { %v7857_v34 = vpop.f32.mrf.mxu1  ;;  %15980 = vst [vmem:[#allocation66_spill] sm:$0xff] %v13547_v43  ;;  %v13553_v23 = vpack.c.bf16 %v13547_v43, %v13544_v51  ;;  %v13568_v32 = vmul.f32 %v5689_v19, %v15985_v41  ;;  %v15995_v41 = vld [vmem:[#allocation45_spill] sm:$0xff] }
 0x655   : > { %4001 = vst [vmem:[#allocation2 + $0x30] sm:$0xff] %v3985_v38  ;;  %v3988_v7 = vadd.f32 %v7857_v34, %v3867_v62  ;;  %v5693_v38 = vmul.f32 %v8904_v48, %v8902_v12  ;;  %v5691_v62 = vmul.f32 %v8916_v61, %v8914_v57  ;;  %v15990_v57 = vld [vmem:[#allocation109_spill] sm:$0xff] }
 0x656   : > { %v3925_v33 = vpop.f32.mrf.mxu1  ;;  %7974 = vmatprep.subr.bf16.mxu1 %v13553_v23  ;;  %15986 = vst [vmem:[#allocation73_spill] sm:$0xff] %v13568_v32 }
 0x657   : > { %4004 = vst [vmem:[#allocation2 + $0x18] sm:$0xff] %v3988_v7  ;;  %v3986_v5 = vadd.f32 %v3925_v33, %v3865_v10  ;;  %v8918_v63 = vpop.eup %8917  ;;  %v13556_v7 = vpop.f32.mrf.mxu0  ;;  %v5851_v10 = vmul.f32 %v13415_v50, %v13415_v50  ;;  %v13562_v44 = vmul.f32 %v5693_v38, %v15981_v35  ;;  %v13571_v55 = vmul.f32 %v5691_v62, %v15987_v25  ;;  %v3878_v62 = vld [vmem:[#allocation2 + $0x78] sm:$0xff] }
 0x658   : > { %v8920_v34 = vpop.eup %8919 }
 0x659   : > { %4002 = vst [vmem:[#allocation2] sm:$0xff] %v3986_v5  ;;  %v8922_v33 = vpop.eup %8921  ;;  %15982 = vst [vmem:[#allocation70_spill] sm:$0xff] %v13562_v44  ;;  %v15983_v5 = vld [vmem:[#allocation106_spill] sm:$0xff]  ;;  %v13579_v12 = vpop.f32.mrf.mxu0  ;;  %v13581_v48 = vpack.c.bf16 %v5852_v37, %v5851_v10  ;;  %v13586_v49 = vpack.c.bf16 %v13571_v55, %v13568_v32  ;;  %v5685_v15 = vmul.f32 %v8920_v34, %v8918_v63 }
 0x65a   : > { %v13565_v11 = vmul.f32 %v5695_v20, %v15983_v5  ;;  %15988 = vst [vmem:[#allocation74_spill] sm:$0xff] %v13571_v55  ;;  %v8924_v39 = vpop.eup %8923  ;;  %v15994_v10 = vld [vmem:[#allocation42_spill] sm:$0xff] }
 0x65b   : > { %7975 = vmatpush3.bf16.xpose.msra.mxu1 %v13553_v23  ;;  %15989 = vst [vmem:[#allocation76_spill] sm:$0xff] %v13581_v48  ;;  %v5687_v22 = vmul.f32 %v8924_v39, %v8922_v33  ;;  %7998 = vmatprep.subr.bf16.mxu0 %v13581_v48  ;;  %v13589_v8 = vpop.f32.mrf.mxu0  ;;  %v3876_v33 = vld [vmem:[#allocation2 + $0x60] sm:$0xff]  ;;  %v3879_v39 = vld [vmem:[#allocation2 + $0x28] sm:$0xff] }
 0x65c   : > { %15984 = vst [vmem:[#allocation71_spill] sm:$0xff] %v13565_v11  ;;  %v13577_v50 = vpack.c.bf16 %v13565_v11, %v13562_v44  ;;  %v16001_v11 = vld [vmem:[#allocation55_spill] sm:$0xff] }
 0x65e   : > { %7976 = vmatprep.subr.bf16.mxu1 %v13577_v50 }
 0x660   : > { %v7860_v21 = vpop.f32.mrf.mxu1 }
 0x661   : > { %v3991_v9 = vadd.f32 %v7860_v21, %v3870_v28  ;;  %v3874_v28 = vld [vmem:[#allocation2 + $0x10] sm:$0xff] }
 0x662   : > { %v3938_v42 = vpop.f32.mrf.mxu1 }
 0x663   : > { %4007 = vst [vmem:[#allocation2 + $0x8] sm:$0xff] %v3991_v9  ;;  %v3989_v58 = vadd.f32 %v3938_v42, %v3868_v27  ;;  %7977 = vmatpush3.bf16.xpose.msra.mxu1 %v13577_v50  ;;  %v13594_v27 = vmul.f32 %v5685_v15, %v15990_v57  ;;  %v15992_v42 = vld [vmem:[#allocation111_spill] sm:$0xff]  ;;  %v4509_v57 = vmul.f32 2.0, %v13549_v47 }
 0x664   : > { %v7861_v6 = vpop.f32.mrf.mxu1  ;;  %7978 = vmatprep.subr.bf16.mxu1 %v13586_v49  ;;  %v13597_v56 = vmul.f32 %v5687_v22, %v15992_v42  ;;  %v4505_v22 = vmul.f32 2.0, %v13519_v2  ;;  %v4507_v42 = vmul.f32 2.0, %v13556_v7 }
 0x665   : > { %4005 = vst [vmem:[#allocation2 + $0x50] sm:$0xff] %v3989_v58  ;;  %v3992_v29 = vadd.f32 %v7861_v6, %v3871_v4  ;;  %15991 = vst [vmem:[#allocation78_spill] sm:$0xff] %v13594_v27  ;;  %v3873_v4 = vld [vmem:[#allocation2 + $0x20] sm:$0xff] }
 0x666   : > { %v3941_v52 = vpop.f32.mrf.mxu1  ;;  %15993 = vst [vmem:[#allocation80_spill] sm:$0xff] %v13597_v56 }
 0x667   : > { %4008 = vst [vmem:[#allocation2 + $0x48] sm:$0xff] %v3992_v29  ;;  %v3990_v30 = vadd.f32 %v3941_v52, %v3869_v40  ;;  %v13599_v29 = vpop.f32.mrf.mxu0  ;;  %v13603_v40 = vpack.c.bf16 %v13597_v56, %v13594_v27 }
 0x669   : > { %4006 = vst [vmem:[#allocation2 + $0x68] sm:$0xff] %v3990_v30  ;;  %v13605_v52 = vpop.f32.mrf.mxu0 }
 0x66b   : > { %7979 = vmatpush3.bf16.xpose.msra.mxu1 %v13586_v49  ;;  %v13609_v38 = vpop.f32.mrf.mxu0 }
 0x66c   : > { %7980 = vmatprep.subr.bf16.mxu1 %v13603_v40 }
 0x66d   : > { %v13611_v20 = vpop.f32.mrf.mxu0 }
 0x66f   : > { %v7864_v21 = vpop.f32.mrf.mxu1  ;;  %v13615_v19 = vpop.f32.mrf.mxu0 }
 0x670   : > { %v3995_v46 = vadd.f32 %v7864_v21, %v3874_v28  ;;  %v4503_v28 = vmul.f32 2.0, %v13525_v53  ;;  %v3877_v21 = vld [vmem:[#allocation2 + $0x70] sm:$0xff] }
 0x671   : > { %v3954_v60 = vpop.f32.mrf.mxu1  ;;  %v13618_v5 = vpop.f32.mrf.mxu0 }
 0x672   : > { %4011 = vst [vmem:[#allocation2 + $0x10] sm:$0xff] %v3995_v46  ;;  %v3993_v9 = vadd.f32 %v3954_v60, %v3872_v3  ;;  %v4506_v3 = vmul.f32 2.0, %v13537_v18 }
 0x673   : > { %v7865_v61 = vpop.f32.mrf.mxu1  ;;  %7981 = vmatpush3.bf16.xpose.msra.mxu1 %v13603_v40  ;;  %v13626_v60 = vpop.f32.mrf.mxu0 }
 0x674   : > { %4009 = vst [vmem:[#allocation2 + $0x40] sm:$0xff] %v3993_v9  ;;  %v3996_v58 = vadd.f32 %v7865_v61, %v3875_v17  ;;  %8030 = vmatprep.subr.bf16.mxu1 %v13426_v31  ;;  %v4504_v9 = vmul.f32 2.0, %v13541_v13  ;;  %v4510_v17 = vmul.f32 2.0, %v13579_v12  ;;  %v4521_v61 = vadd.f32 1.0, %v4505_v22 }
 0x675   : > { %v3957_v6 = vpop.f32.mrf.mxu1 }
 0x676   : > { %4012 = vst [vmem:[#allocation2 + $0x38] sm:$0xff] %v3996_v58  ;;  %v3994_v63 = vadd.f32 %v3957_v6, %v3873_v4  ;;  %v4519_v58 = vadd.f32 1.0, %v4503_v28  ;;  %v15996_v4 = vld [vmem:[#allocation49_spill] sm:$0xff]  ;;  %v4508_v6 = vmul.f32 2.0, %v13589_v8  ;;  %v15998_v28 = vld [vmem:[#allocation22_spill] sm:$0xff] }
 0x678   : > { %4010 = vst [vmem:[#allocation2 + $0x20] sm:$0xff] %v3994_v63  ;;  %v4511_v63 = vmul.f32 2.0, %v13605_v52 }
 0x67a   : > { %7983 = vmatmul.mubr.bf16.vlgmr.msra.gmra.mxu1 %v15994_v10  ;;  %v4522_v10 = vadd.f32 1.0, %v4506_v3 }
 0x67b   : > { %8031 = vmatpush3.bf16.msra.mxu1 %v13426_v31  ;;  %7986 = vmatprep.mubr.bf16.mxu1 %v15995_v41  ;;  %v13647_v41 = vadd.f32 1.0, %v4507_v42  ;;  %v13664_v42 = vadd.f32 1.0, %v4511_v63 }
 0x67c   : > { %8032 = vmatprep.subr.bf16.mxu1 %v13476_v26 }
 0x67f   : > { %8033 = vmatpush3.bf16.msra.mxu1 %v13476_v26  ;;  %v4513_v26 = vmul.f32 2.0, %v13599_v29 }
 0x680   : > { %8034 = vmatprep.subr.bf16.mxu1 %v13513_v45 }
 0x682   : > { %7987 = vmatmul.mubr.bf16.gmra.mxu1 %v15996_v4 }
 0x683   : > { %8035 = vmatpush3.bf16.msra.mxu1 %v13513_v45  ;;  %v4515_v45 = vmul.f32 2.0, %v13618_v5 }
 0x684   : > { %8036 = vmatprep.subr.bf16.mxu1 %v13535_v54 }
 0x686   : > { %v7868_v34 = vpop.f32.mrf.mxu1 }
 0x687   : > { %v3999_v30 = vadd.f32 %v7868_v34, %v3878_v62  ;;  %v4514_v62 = vmul.f32 2.0, %v13609_v38  ;;  %v13639_v34 = vpop.f32.mrf.mxu0  ;;  %8037 = vmatpush3.bf16.msra.mxu1 %v13535_v54  ;;  %v16000_v54 = vld [vmem:[#allocation29_spill] sm:$0xff] }
 0x688   : > { %v3970_v35 = vpop.f32.mrf.mxu1  ;;  %v4516_v3 = vmul.f32 2.0, %v13639_v34  ;;  %8038 = vmatprep.subr.bf16.mxu1 %v13553_v23 }
 0x689   : > { %4015 = vst [vmem:[#allocation2 + $0x78] sm:$0xff] %v3999_v30  ;;  %v3997_v25 = vadd.f32 %v3970_v35, %v3876_v33  ;;  %v15997_v30 = vld [vmem:[#allocation50_spill] sm:$0xff]  ;;  %v13643_v33 = vadd.f32 1.0, %v4504_v9  ;;  %v13645_v35 = vadd.f32 1.0, %v4509_v57  ;;  %v13660_v9 = vadd.f32 1.0, %v4508_v6  ;;  %v15999_v6 = vld [vmem:[#allocation23_spill] sm:$0xff] }
 0x68a   : > { %v7869_v37 = vpop.f32.mrf.mxu1  ;;  %7990 = vmatprep.mubr.bf16.mxu1 %v15997_v30  ;;  %v13662_v57 = vadd.f32 1.0, %v4513_v26  ;;  %v13685_v32 = vadd.f32 1.0, %v4516_v3 }
 0x68b   : > { %4013 = vst [vmem:[#allocation2 + $0x60] sm:$0xff] %v3997_v25  ;;  %v4000_v15 = vadd.f32 %v7869_v37, %v3879_v39  ;;  %v13650_v39 = vadd.f32 1.0, %v4510_v17  ;;  %v4512_v37 = vmul.f32 2.0, %v13611_v20  ;;  %v13666_v17 = vadd.f32 1.0, %v4514_v62  ;;  %7991 = vmatmul.mubr.bf16.gmra.mxu1 %v16001_v11 }
 0x68c   : > { %v3973_v46 = vpop.f32.mrf.mxu1  ;;  %v13680_v62 = vadd.f32 1.0, %v4515_v45  ;;  %8039 = vmatpush3.bf16.msra.mxu1 %v13553_v23  ;;  %v16004_v45 = vld [vmem:[#allocation56_spill] sm:$0xff] }
 0x68d   : > { %4016 = vst [vmem:[#allocation2 + $0x28] sm:$0xff] %v4000_v15  ;;  %v3998_v31 = vadd.f32 %v3973_v46, %v3877_v21  ;;  %v4517_v15 = vmul.f32 2.0, %v13615_v19  ;;  %v4518_v46 = vmul.f32 2.0, %v13626_v60  ;;  %v13676_v55 = vadd.f32 1.0, %v4512_v37  ;;  %v16003_v37 = vld [vmem:[#allocation24_spill] sm:$0xff]  ;;  %7994 = vmatprep.mubr.bf16.mxu1 %v16004_v45  ;;  %8040 = vmatprep.subr.bf16.mxu1 %v13577_v50 }
 0x68f   : > { %4014 = vst [vmem:[#allocation2 + $0x70] sm:$0xff] %v3998_v31  ;;  %v13678_v63 = vadd.f32 1.0, %v4517_v15 }
 0x690   : > { %v7920_v25 = vpop.f32.mrf.mxu1  ;;  %8041 = vmatpush3.bf16.msra.mxu1 %v13577_v50 }
 0x691   : > { %v13655_v22 = vadd.f32 %v7920_v25, %v4521_v61  ;;  %v4553_v21 = vmul.f32 %v7920_v25, %v15998_v28  ;;  %8042 = vmatprep.subr.bf16.mxu1 %v13586_v49 }
 0x692   : > { %v4440_v31 = vpop.f32.mrf.mxu1 }
 0x693   : > { %v4569_v4 = vadd.f32 %v4553_v21, %v4521_v61  ;;  %v4617_v30 = vmul.f32 %v13655_v22, %v13655_v22  ;;  %v4649_v0 = vmul.f32 2.0, %v13655_v22  ;;  %v13672_v56 = vadd.f32 %v4519_v58, %v4440_v31 }
 0x694   : > { %v4551_v27 = vmul.f32 %v4440_v31, %v15999_v6  ;;  %v7921_v26 = vpop.f32.mrf.mxu1  ;;  %v13683_v21 = vadd.f32 1.0, %v4518_v46  ;;  %8043 = vmatpush3.bf16.msra.mxu1 %v13586_v49  ;;  %v16018_v49 = vld [vmem:[#allocation67_spill] sm:$0xff] }
 0x695   : > { %8925 = vrcp.f32 %v4569_v4  ;;  %v4665_v61 = vmul.f32 %v4649_v0, %v16000_v54  ;;  %v4647_v43 = vmul.f32 2.0, %v13672_v56  ;;  %v13689_v51 = vadd.f32 %v7921_v26, %v4522_v10  ;;  %8044 = vmatprep.subr.bf16.mxu1 %v13603_v40 }
 0x696   : > { %v4567_v44 = vadd.f32 %v4551_v27, %v4519_v58  ;;  %v4554_v59 = vmul.f32 %v7921_v26, %v16003_v37  ;;  %v4443_v15 = vpop.f32.mrf.mxu1  ;;  %v4633_v0 = vmul.f32 %v4617_v30, %v15998_v28  ;;  %v4615_v3 = vmul.f32 %v13672_v56, %v13672_v56  ;;  %v16006_v27 = vld [vmem:[#allocation26_spill] sm:$0xff]  ;;  %v16007_v30 = vld [vmem:[#allocation35_spill] sm:$0xff] }
 0x697   : > { %16002 = vst [vmem:[#allocation81_spill] sm:$0xff] %v13689_v51  ;;  %v4681_v46 = vmul.f32 %v13519_v2, %v4665_v61  ;;  %v13699_v11 = vadd.f32 %v13643_v33, %v4443_v15  ;;  %v4663_v58 = vmul.f32 %v4647_v43, %v16006_v27  ;;  %v4618_v23 = vmul.f32 %v13689_v51, %v13689_v51  ;;  %v16008_v61 = vld [vmem:[#allocation21_spill] sm:$0xff] }
 0x698   : > { %8927 = vrcp.f32 %v4567_v44  ;;  %v4570_v4 = vadd.f32 %v4554_v59, %v4522_v10  ;;  %v7924_v45 = vpop.f32.mrf.mxu1  ;;  %v4713_v28 = vmul.f32 %v7920_v25, %v16007_v30  ;;  %v4650_v2 = vmul.f32 2.0, %v13689_v51  ;;  %v16012_v51 = vld [vmem:[#allocation27_spill] sm:$0xff]  ;;  %8045 = vmatpush3.bf16.msra.mxu1 %v13603_v40 }
 0x699   : > { %16005 = vst [vmem:[#allocation83_spill] sm:$0xff] %v13699_v11  ;;  %v4697_v54 = vadd.f32 %v4681_v46, %v4633_v0  ;;  %v4552_v16 = vmul.f32 %v4443_v15, %v16008_v61  ;;  %v4679_v48 = vmul.f32 %v4663_v58, %v13525_v53  ;;  %v4616_v44 = vmul.f32 %v13699_v11, %v13699_v11  ;;  %v16009_v0 = vld [vmem:[#allocation33_spill] sm:$0xff]  ;;  %v16010_v46 = vld [vmem:[#allocation31_spill] sm:$0xff]  ;;  %v16011_v58 = vld [vmem:[#allocation28_spill] sm:$0xff] }
 0x69a   : > { %8929 = vrcp.f32 %v4570_v4  ;;  %v4648_v43 = vmul.f32 2.0, %v13699_v11  ;;  %v13712_v59 = vpop.f32.mrf.mxu1  ;;  %v4631_v10 = vmul.f32 %v4615_v3, %v15999_v6  ;;  %v4711_v25 = vmul.f32 %v4440_v31, %v16009_v0  ;;  %v16013_v31 = vld [vmem:[#allocation32_spill] sm:$0xff] }
 0x69b   : > { %v4666_v30 = vmul.f32 %v4650_v2, %v16010_v46  ;;  %v4568_v27 = vadd.f32 %v4552_v16, %v13643_v33  ;;  %v4634_v53 = vmul.f32 %v4618_v23, %v16003_v37  ;;  %v4714_v4 = vmul.f32 %v7921_v26, %v16011_v58  ;;  %v16014_v2 = vld [vmem:[#allocation62_spill] sm:$0xff] }
 0x69c   : > { %v4664_v11 = vmul.f32 %v4648_v43, %v16012_v51  ;;  %v13724_v1 = vadd.f32 %v7924_v45, %v13645_v35  ;;  %v4695_v50 = vadd.f32 %v4679_v48, %v4631_v10  ;;  %v4557_v0 = vmul.f32 %v7924_v45, %v16013_v31  ;;  %7995 = vmatmul.mubr.bf16.gmra.mxu1 %v16014_v2  ;;  %v7925_v58 = vpop.f32.mrf.mxu1 }
 0x69d   : > { %v4682_v3 = vmul.f32 %v13537_v18, %v4666_v30  ;;  %8931 = vrcp.f32 %v4568_v27  ;;  %v4729_v16 = vadd.f32 %v4713_v28, %v4697_v54  ;;  %v4632_v33 = vmul.f32 %v4616_v44, %v16008_v61  ;;  %v16015_v27 = vld [vmem:[#allocation37_spill] sm:$0xff] }
 0x69e   : > { %v4680_v23 = vmul.f32 %v4664_v11, %v13541_v13  ;;  %v4653_v26 = vmul.f32 2.0, %v13724_v1  ;;  %v4573_v43 = vadd.f32 %v4557_v0, %v13645_v35  ;;  %v4621_v18 = vmul.f32 %v13724_v1, %v13724_v1  ;;  %v16016_v54 = vld [vmem:[#allocation25_spill] sm:$0xff] }
 0x69f   : > { %v13738_v48 = vadd.f32 %v13647_v41, %v13712_v59  ;;  %v4555_v28 = vmul.f32 %v13712_v59, %v16015_v27  ;;  %v4698_v13 = vadd.f32 %v4682_v3, %v4634_v53  ;;  %v4712_v11 = vmul.f32 %v4443_v15, %v16016_v54  ;;  %v16017_v30 = vld [vmem:[#allocation57_spill] sm:$0xff]  ;;  %v4459_v3 = vpop.f32.mrf.mxu1 }
 0x6a0   : > { %v4669_v44 = vmul.f32 %v4653_v26, %v16017_v30  ;;  %v4717_v10 = vmul.f32 %v7924_v45, %v16018_v49  ;;  %v4727_v35 = vadd.f32 %v4711_v25, %v4695_v50  ;;  %v4696_v0 = vadd.f32 %v4680_v23, %v4632_v33  ;;  %v16023_v30 = vld [vmem:[#allocation40_spill] sm:$0xff] }
 0x6a1   : > { %8933 = vrcp.f32 %v4573_v43  ;;  %v4571_v2 = vadd.f32 %v4555_v28, %v13647_v41  ;;  %v4619_v61 = vmul.f32 %v13738_v48, %v13738_v48  ;;  %v4651_v53 = vmul.f32 2.0, %v13738_v48  ;;  %v16020_v41 = vld [vmem:[#allocation39_spill] sm:$0xff] }
 0x6a2   : > { %v13747_v51 = vpop.eup %8925  ;;  %v4685_v46 = vmul.f32 %v13549_v47, %v4669_v44  ;;  %v13754_v15 = vadd.f32 %v7925_v58, %v13650_v39  ;;  %v4637_v25 = vmul.f32 %v4621_v18, %v16013_v31  ;;  %v4558_v50 = vmul.f32 %v7925_v58, %v16020_v41  ;;  %v16021_v47 = vld [vmem:[#allocation51_spill] sm:$0xff] }
 0x6a3   : > { %v4745_v45 = vmul.f32 %v13747_v51, %v4729_v16  ;;  %8935 = vrcp.f32 %v4571_v2  ;;  %v4730_v33 = vadd.f32 %v4714_v4, %v4698_v13  ;;  %v4667_v23 = vmul.f32 %v4651_v53, %v16021_v47 }
 0x6a4   : > { %16019 = vst [vmem:[#allocation85_spill] sm:$0xff] %v13754_v15  ;;  %v4622_v26 = vmul.f32 %v13754_v15, %v13754_v15  ;;  %v4654_v43 = vmul.f32 2.0, %v13754_v15  ;;  %v4728_v40 = vadd.f32 %v4712_v11, %v4696_v0  ;;  %v4574_v16 = vadd.f32 %v4558_v50, %v13650_v39 }
 0x6a5   : > { %v13764_v28 = vpop.eup %8927  ;;  %v4761_v44 = vmul.f32 %v13747_v51, %v4745_v45  ;;  %v13769_v18 = vadd.f32 %v13660_v9, %v4459_v3  ;;  %v4701_v4 = vadd.f32 %v4685_v46, %v4637_v25  ;;  %v4635_v13 = vmul.f32 %v4619_v61, %v16015_v27  ;;  %v16024_v45 = vld [vmem:[#allocation30_spill] sm:$0xff] }
 0x6a6   : > { %v4743_v2 = vmul.f32 %v13764_v28, %v4727_v35  ;;  %v4683_v53 = vmul.f32 %v4667_v23, %v13556_v7  ;;  %8937 = vrcp.f32 %v4574_v16  ;;  %v4670_v54 = vmul.f32 %v4654_v43, %v16023_v30  ;;  %v7928_v23 = vpop.f32.mrf.mxu1 }
 0x6a7   : > { %16022 = vst [vmem:[#allocation129_spill] sm:$0xff] %v13769_v18  ;;  %v13774_v47 = vpop.eup %8929  ;;  %v4777_v49 = vmax.f32 %v4761_v44, 1e-24  ;;  %v4556_v11 = vmul.f32 %v4459_v3, %v16024_v45  ;;  %v4638_v35 = vmul.f32 %v4622_v26, %v16020_v41  ;;  %v4620_v7 = vmul.f32 %v13769_v18, %v13769_v18 }
 0x6a8   : > { %v4759_v39 = vmul.f32 %v13764_v28, %v4743_v2  ;;  %v4746_v0 = vmul.f32 %v13774_v47, %v4730_v33  ;;  %v4699_v50 = vadd.f32 %v4683_v53, %v4635_v13  ;;  %v4686_v46 = vmul.f32 %v13579_v12, %v4670_v54  ;;  %v16025_v2 = vld [vmem:[#allocation60_spill] sm:$0xff]  ;;  %v16027_v53 = vld [vmem:[#allocation38_spill] sm:$0xff] }
 0x6a9   : > { %v4572_v61 = vadd.f32 %v4556_v11, %v13660_v9  ;;  %v4652_v25 = vmul.f32 2.0, %v13769_v18  ;;  %v13788_v44 = vmin.f32 %v4777_v49, 0.999998  ;;  %v4715_v26 = vmul.f32 %v13712_v59, %v16025_v2  ;;  %v16026_v9 = vld [vmem:[#allocation48_spill] sm:$0xff]  ;;  %v4472_v59 = vpop.f32.mrf.mxu1 }
 0x6aa   : > { %v13786_v43 = vpop.eup %8931  ;;  %v4775_v16 = vmax.f32 %v4759_v39, 1e-24  ;;  %v4762_v33 = vmul.f32 %v13774_v47, %v4746_v0  ;;  %v4702_v54 = vadd.f32 %v4686_v46, %v4638_v35  ;;  %v4718_v13 = vmul.f32 %v7925_v58, %v16026_v9  ;;  %v16029_v35 = vld [vmem:[#allocation46_spill] sm:$0xff] }
 0x6ab   : > { %v4744_v12 = vmul.f32 %v13786_v43, %v4728_v40  ;;  %v4668_v11 = vmul.f32 %v4652_v25, %v16027_v53  ;;  %v4733_v41 = vadd.f32 %v4717_v10, %v4701_v4  ;;  %v4731_v27 = vadd.f32 %v4715_v26, %v4699_v50  ;;  %v16030_v4 = vld [vmem:[#allocation36_spill] sm:$0xff] }
 0x6ac   : > { %v4778_v30 = vmax.f32 %v4762_v33, 1e-24  ;;  %8939 = vrcp.f32 %v4572_v61  ;;  %v13796_v31 = vmin.f32 %v4775_v16, 0.999998  ;;  %v4636_v39 = vmul.f32 %v4620_v7, %v16024_v45 }
 0x6ad   : > { %v4760_v49 = vmul.f32 %v13786_v43, %v4744_v12  ;;  %v13801_v0 = vadd.f32 %v7928_v23, %v13662_v57  ;;  %8941 = vrsqrt.f32 %v13788_v44  ;;  %v4684_v58 = vmul.f32 %v4668_v11, %v13589_v8  ;;  %v16033_v11 = vld [vmem:[#allocation86_spill] sm:$0xff] }
 0x6ae   : > { %v13803_v40 = vpop.eup %8933  ;;  %v4716_v10 = vmul.f32 %v4459_v3, %v16029_v35  ;;  %v4561_v50 = vmul.f32 %v7928_v23, %v16030_v4  ;;  %v13809_v46 = vmin.f32 %v4778_v30, 0.999998  ;;  %v4734_v7 = vadd.f32 %v4718_v13, %v4702_v54  ;;  %v7929_v35 = vpop.f32.mrf.mxu1 }
 0x6af   : > { %16028 = vst [vmem:[#allocation126_spill] sm:$0xff] %v13801_v0  ;;  %v4776_v61 = vmax.f32 %v4760_v49, 1e-24  ;;  %v4749_v25 = vmul.f32 %v13803_v40, %v4733_v41  ;;  %v4625_v26 = vmul.f32 %v13801_v0, %v13801_v0  ;;  %v4657_v12 = vmul.f32 2.0, %v13801_v0  ;;  %v16032_v41 = vld [vmem:[#allocation98_spill] sm:$0xff]  ;;  %v16034_v49 = vld [vmem:[#allocation41_spill] sm:$0xff] }
 0x6b0   : > { %v13812_v16 = vpop.eup %8935  ;;  %v4577_v33 = vadd.f32 %v4561_v50, %v13662_v57  ;;  %v13819_v8 = vadd.f32 %v13664_v42, %v4472_v59  ;;  %8943 = vrsqrt.f32 %v13796_v31  ;;  %v4721_v54 = vmul.f32 %v7928_v23, %v16032_v41  ;;  %v16038_v41 = vld [vmem:[#allocation92_spill] sm:$0xff] }
 0x6b1   : > { %v4765_v30 = vmul.f32 %v13803_v40, %v4749_v25  ;;  %v4747_v3 = vmul.f32 %v13812_v16, %v4731_v27  ;;  %v4700_v13 = vadd.f32 %v4684_v58, %v4636_v39  ;;  %v4673_v57 = vmul.f32 %v4657_v12, %v16033_v11 }
 0x6b2   : > { %16031 = vst [vmem:[#allocation130_spill] sm:$0xff] %v13819_v8  ;;  %8945 = vrcp.f32 %v4577_v33  ;;  %v4559_v50 = vmul.f32 %v4472_v59, %v16034_v49  ;;  %v13828_v53 = vmin.f32 %v4776_v61, 0.999998  ;;  %v4641_v27 = vmul.f32 %v4625_v26, %v16030_v4 }
 0x6b3   : > { %8947 = vrsqrt.f32 %v13809_v46  ;;  %v4781_v9 = vmax.f32 %v4765_v30, 1e-24  ;;  %v4763_v2 = vmul.f32 %v13812_v16, %v4747_v3  ;;  %v13831_v45 = vpop.eup %8937  ;;  %v4689_v23 = vmul.f32 %v13599_v29, %v4673_v57  ;;  %v16035_v3 = vld [vmem:[#allocation82_spill] sm:$0xff]  ;;  %v4475_v29 = vpop.f32.mrf.mxu1  ;;  %v16037_v57 = vld [vmem:[#allocation47_spill] sm:$0xff] }
 0x6b4   : > { %v4575_v39 = vadd.f32 %v4559_v50, %v13664_v42  ;;  %v4655_v58 = vmul.f32 2.0, %v13819_v8  ;;  %v4750_v12 = vmul.f32 %v13831_v45, %v4734_v7  ;;  %v4623_v61 = vmul.f32 %v13819_v8, %v13819_v8 }
 0x6b5   : > { %v13837_v25 = vmin.f32 %v4781_v9, 0.999998  ;;  %v4779_v33 = vmax.f32 %v4763_v2, 1e-24  ;;  %v4705_v30 = vadd.f32 %v4689_v23, %v4641_v27  ;;  %v13844_v26 = vadd.f32 %v7929_v35, %v13666_v17 }
 0x6b6   : > { %8949 = vrcp.f32 %v4575_v39  ;;  %v4671_v11 = vmul.f32 %v4655_v58, %v16035_v3  ;;  %v4766_v42 = vmul.f32 %v13831_v45, %v4750_v12  ;;  %v4732_v9 = vadd.f32 %v4716_v10, %v4700_v13 }
 0x6b7   : > { %16036 = vst [vmem:[#allocation128_spill] sm:$0xff] %v13844_v26  ;;  %8951 = vrsqrt.f32 %v13828_v53  ;;  %v4562_v2 = vmul.f32 %v7929_v35, %v16037_v57  ;;  %v13849_v50 = vmin.f32 %v4779_v33, 0.999998  ;;  %v4719_v27 = vmul.f32 %v4472_v59, %v16038_v41  ;;  %v7932_v59 = vpop.f32.mrf.mxu1 }
 0x6b8   : > { %v4687_v7 = vmul.f32 %v4671_v11, %v13605_v52  ;;  %v4658_v23 = vmul.f32 2.0, %v13844_v26  ;;  %v4782_v58 = vmax.f32 %v4766_v42, 1e-24  ;;  %v4639_v3 = vmul.f32 %v4623_v61, %v16034_v49  ;;  %v16040_v52 = vld [vmem:[#allocation69_spill] sm:$0xff]  ;;  %v16042_v61 = vld [vmem:[#allocation34_spill] sm:$0xff] }
 0x6b9   : > { %v13854_v39 = vpop.eup %8939  ;;  %v4578_v4 = vadd.f32 %v4562_v2, %v13666_v17  ;;  %v4626_v10 = vmul.f32 %v13844_v26, %v13844_v26  ;;  %8953 = vrsqrt.f32 %v13837_v25  ;;  %v4737_v33 = vadd.f32 %v4721_v54, %v4705_v30 }
 0x6ba   : > { %16039 = vst [vmem:[#allocation121_spill] sm:$0xff] %v13854_v39  ;;  %v4748_v13 = vmul.f32 %v13854_v39, %v4732_v9  ;;  %v4674_v11 = vmul.f32 %v4658_v23, %v16040_v52  ;;  %v13863_v12 = vpop.eup %8941  ;;  %v4703_v41 = vadd.f32 %v4687_v7, %v4639_v3  ;;  %v13866_v42 = vadd.f32 %v13676_v55, %v4475_v29  ;;  %v16043_v9 = vld [vmem:[#allocation79_spill] sm:$0xff] }
 0x6bb   : > { %8955 = vrcp.f32 %v4578_v4  ;;  %v4560_v17 = vmul.f32 %v4475_v29, %v16042_v61  ;;  %v13870_v2 = vmin.f32 %v4782_v58, 0.999998  ;;  %v4722_v54 = vmul.f32 %v7929_v35, %v16043_v9  ;;  %v4488_v35 = vpop.f32.mrf.mxu1 }
 0x6bc   : > { %16041 = vst [vmem:[#allocation150_spill] sm:$0xff] %v13866_v42  ;;  %8957 = vrsqrt.f32 %v13849_v50  ;;  %v4764_v49 = vmul.f32 %v13854_v39, %v4748_v13  ;;  %v4642_v30 = vmul.f32 %v4626_v10, %v16037_v57  ;;  %v4624_v4 = vmul.f32 %v13866_v42, %v13866_v42  ;;  %v16045_v13 = vld [vmem:[#allocation11_spill] sm:$0xff] }
 0x6bd   : > { %v4576_v23 = vadd.f32 %v4560_v17, %v13676_v55  ;;  %v4656_v3 = vmul.f32 2.0, %v13866_v42  ;;  %v13879_v7 = vpop.eup %8943  ;;  %v4690_v37 = vmul.f32 %v13609_v38, %v4674_v11  ;;  %v13883_v58 = vadd.f32 %v7932_v59, %v13678_v63  ;;  %v16047_v55 = vld [vmem:[#allocation63_spill] sm:$0xff]  ;;  %v7933_v18 = vpop.f32.mrf.mxu1 }
 0x6be   : > { %v4780_v52 = vmax.f32 %v4764_v49, 1e-24  ;;  %v4565_v6 = vmul.f32 %v7932_v59, %v16045_v13  ;;  %v4735_v10 = vadd.f32 %v4719_v27, %v4703_v41  ;;  %v16048_v57 = vld [vmem:[#allocation75_spill] sm:$0xff]  ;;  %v4640_v49 = vmul.f32 %v4624_v4, %v16042_v61 }
 0x6bf   : > { %16044 = vst [vmem:[#allocation133_spill] sm:$0xff] %v13883_v58  ;;  %v13886_v9 = vpop.eup %8945  ;;  %8959 = vrcp.f32 %v4576_v23  ;;  %v4672_v17 = vmul.f32 %v4656_v3, %v16047_v55  ;;  %v4720_v26 = vmul.f32 %v4475_v29, %v16048_v57  ;;  %v4661_v41 = vmul.f32 2.0, %v13883_v58  ;;  %v16050_v3 = vld [vmem:[#allocation110_spill] sm:$0xff]  ;;  %v16051_v55 = vld [vmem:[#allocation72_spill] sm:$0xff] }
 0x6c0   : > { %16046 = vst [vmem:[#allocation151_spill] sm:$0xff] %v13886_v9  ;;  %v13890_v42 = vpop.eup %8947  ;;  %8961 = vrsqrt.f32 %v13870_v2  ;;  %v4753_v38 = vmul.f32 %v13886_v9, %v4737_v33  ;;  %v4581_v11 = vadd.f32 %v4565_v6, %v13678_v63  ;;  %v13896_v8 = vmin.f32 %v4780_v52, 0.999998  ;;  %v16052_v63 = vld [vmem:[#allocation102_spill] sm:$0xff] }
 0x6c1   : > { %v4688_v0 = vmul.f32 %v4672_v17, %v13611_v20  ;;  %v13901_v27 = vadd.f32 %v13680_v62, %v4488_v35  ;;  %v4706_v23 = vadd.f32 %v4690_v37, %v4642_v30  ;;  %v4725_v57 = vmul.f32 %v7932_v59, %v16050_v3  ;;  %v16054_v3 = vld [vmem:[#allocation84_spill] sm:$0xff] }
 0x6c2   : > { %v4769_v29 = vmul.f32 %v13886_v9, %v4753_v38  ;;  %v4563_v33 = vmul.f32 %v4488_v35, %v16051_v55  ;;  %8963 = vrcp.f32 %v4581_v11  ;;  %v4629_v20 = vmul.f32 %v13883_v58, %v13883_v58  ;;  %v16055_v9 = vld [vmem:[#allocation77_spill] sm:$0xff] }
 0x6c3   : > { %16049 = vst [vmem:[#allocation19_spill] sm:$0xff] %v13901_v27  ;;  %v13906_v4 = vpop.eup %8949  ;;  %v4704_v6 = vadd.f32 %v4688_v0, %v4640_v49  ;;  %v4677_v52 = vmul.f32 %v4661_v41, %v16052_v63  ;;  %v4627_v59 = vmul.f32 %v13901_v27, %v13901_v27  ;;  %8965 = vrsqrt.f32 %v13896_v8 }
 0x6c4   : > { %v13911_v17 = vpop.eup %8951  ;;  %v4785_v61 = vmax.f32 %v4769_v29, 1e-24  ;;  %v4751_v38 = vmul.f32 %v13906_v4, %v4735_v10  ;;  %v4579_v37 = vadd.f32 %v4563_v33, %v13680_v62  ;;  %v4659_v30 = vmul.f32 2.0, %v13901_v27  ;;  %v16053_v29 = vld [vmem:[#allocation105_spill] sm:$0xff] }
 0x6c5   : > { %v4693_v0 = vmul.f32 %v13615_v19, %v4677_v52  ;;  %v13921_v49 = vadd.f32 %v7933_v18, %v13683_v21  ;;  %v4738_v41 = vadd.f32 %v4722_v54, %v4706_v23  ;;  %v4723_v10 = vmul.f32 %v4488_v35, %v16053_v29  ;;  %v4491_v52 = vpop.f32.mrf.mxu1 }
 0x6c6   : > { %v4767_v11 = vmul.f32 %v13906_v4, %v4751_v38  ;;  %8967 = vrcp.f32 %v4579_v37  ;;  %v13925_v63 = vpop.eup %8953  ;;  %v4736_v62 = vadd.f32 %v4720_v26, %v4704_v6  ;;  %v4645_v33 = vmul.f32 %v4629_v20, %v16045_v13 }
 0x6c7   : > { %v4675_v58 = vmul.f32 %v4659_v30, %v16054_v3  ;;  %v4566_v19 = vmul.f32 %v7933_v18, %v16055_v9  ;;  %v13932_v39 = vmin.f32 %v4785_v61, 0.999998  ;;  %v4643_v54 = vmul.f32 %v4627_v59, %v16051_v55  ;;  %v16056_v30 = vld [vmem:[#allocation89_spill] sm:$0xff] }
 0x6c8   : > { %v13930_v27 = vpop.eup %8955  ;;  %v4783_v15 = vmax.f32 %v4767_v11, 1e-24  ;;  %v4662_v23 = vmul.f32 2.0, %v13921_v49  ;;  %v4709_v6 = vadd.f32 %v4693_v0, %v4645_v33  ;;  %v4630_v61 = vmul.f32 %v13921_v49, %v13921_v49 }
 0x6c9   : > { %v13936_v35 = vpop.eup %8957  ;;  %v4754_v26 = vmul.f32 %v13930_v27, %v4738_v41  ;;  %v4691_v20 = vmul.f32 %v4675_v58, %v13618_v5  ;;  %v4582_v38 = vadd.f32 %v4566_v19, %v13683_v21  ;;  %v13947_v59 = vadd.f32 %v13685_v32, %v4491_v52  ;;  %v16058_v41 = vld [vmem:[#allocation52_spill] sm:$0xff] }
 0x6ca   : > { %v13941_v37 = vmin.f32 %v4783_v15, 0.999998  ;;  %v4678_v11 = vmul.f32 %v4662_v23, %v16056_v30  ;;  %v4564_v0 = vmul.f32 %v4491_v52, %v16058_v41  ;;  %v4646_v30 = vmul.f32 %v4630_v61, %v16055_v9 }
 0x6cb   : > { %16057 = vst [vmem:[#allocation131_spill] sm:$0xff] %v13947_v59  ;;  %v4770_v3 = vmul.f32 %v13930_v27, %v4754_v26  ;;  %v4707_v29 = vadd.f32 %v4691_v20, %v4643_v54  ;;  %8969 = vrcp.f32 %v4582_v38  ;;  %v4628_v21 = vmul.f32 %v13947_v59, %v13947_v59  ;;  %v16059_v54 = vld [vmem:[#allocation99_spill] sm:$0xff] }
 0x6cc   : > { %v13951_v33 = vpop.eup %8959  ;;  %8971 = vrsqrt.f32 %v13932_v39  ;;  %v4694_v5 = vmul.f32 %v13626_v60, %v4678_v11  ;;  %v4660_v15 = vmul.f32 2.0, %v13947_v59  ;;  %v4726_v26 = vmul.f32 %v7933_v18, %v16059_v54  ;;  %v16060_v60 = vld [vmem:[#allocation101_spill] sm:$0xff] }
 0x6cd   : > { %v13958_v58 = vpop.eup %8961  ;;  %v4786_v19 = vmax.f32 %v4770_v3, 1e-24  ;;  %v4752_v23 = vmul.f32 %v13951_v33, %v4736_v62  ;;  %v4580_v20 = vadd.f32 %v4564_v0, %v13685_v32  ;;  %8973 = vrsqrt.f32 %v13941_v37  ;;  %v16061_v0 = vld [vmem:[#allocation95_spill] sm:$0xff] }
 0x6ce   : > { %v4741_v38 = vadd.f32 %v4725_v57, %v4709_v6  ;;  %v4676_v11 = vmul.f32 %v4660_v15, %v16060_v60  ;;  %v4739_v13 = vadd.f32 %v4723_v10, %v4707_v29  ;;  %v4822_v3 = vmul.f32 %v13863_v12, %v13788_v44 }
 0x6cf   : > { %v4768_v55 = vmul.f32 %v13951_v33, %v4752_v23  ;;  %8975 = vrcp.f32 %v4580_v20  ;;  %v13969_v59 = vpop.eup %8963  ;;  %v4710_v62 = vadd.f32 %v4694_v5, %v4646_v30  ;;  %v4644_v18 = vmul.f32 %v4628_v21, %v16058_v41 }
 0x6d0   : > { %v4692_v32 = vmul.f32 %v4676_v11, %v13639_v34  ;;  %vm4823_vm8 = vcmp.eq.f32.partialorder %v13788_v44, inf  ;;  %v13974_v57 = vmin.f32 %v4786_v19, 0.999998  ;;  %v4757_v61 = vmul.f32 %v13969_v59, %v4741_v38  ;;  %v13978_v10 = vpop.eup %8965 }
 0x6d1   : > { %v4784_v6 = vmax.f32 %v4768_v55, 1e-24  ;;  %v4824_v29 = vsel %vm4823_vm8, %v13788_v44, %v4822_v3  ;;  %v4724_v12 = vmul.f32 %v4491_v52, %v16061_v0  ;;  %vm4825_vm9 = vcmp.eq.f32.partialorder %v13788_v44, 0.0 }
 0x6d2   : > { %v4826_v30 = vand.u32 2147483648, %v13788_v44  ;;  %v4808_v34 = vmul.f32 %v13879_v7, %v13796_v31  ;;  %v4773_v55 = vmul.f32 %v13969_v59, %v4757_v61  ;;  %v4708_v15 = vadd.f32 %v4692_v32, %v4644_v18 }
 0x6d3   : > { %v13985_v5 = vpop.eup %8967  ;;  %v13987_v21 = vmin.f32 %v4784_v6, 0.999998  ;;  %vm4809_vm10 = vcmp.eq.f32.partialorder %v13796_v31, inf  ;;  %v4812_v20 = vand.u32 2147483648, %v13796_v31  ;;  %8977 = vrsqrt.f32 %v13974_v57 }
 0x6d4   : > { %v4755_v19 = vmul.f32 %v13985_v5, %v4739_v13  ;;  %v4827_v23 = vsel %vm4825_vm9, %v4826_v30, %v4824_v29  ;;  %v4810_v52 = vsel %vm4809_vm10, %v13796_v31, %v4808_v34  ;;  %v4789_v44 = vmax.f32 %v4773_v55, 1e-24 }
 0x6d5   : > { %v4937_v7 = vsub.f32 1.0, %v4827_v23  ;;  %vm4811_vm11 = vcmp.eq.f32.partialorder %v13796_v31, 0.0  ;;  %8979 = vrsqrt.f32 %v13987_v21  ;;  %v4829_v13 = vmul.f32 %v13890_v42, %v13809_v46 }
 0x6d6   : > { %v4771_v38 = vmul.f32 %v13985_v5, %v4755_v19  ;;  %v13998_v11 = vsel %vm4811_vm11, %v4812_v20, %v4810_v52  ;;  %v4742_v3 = vadd.f32 %v4726_v26, %v4710_v62  ;;  %v4740_v18 = vadd.f32 %v4724_v12, %v4708_v15 }
 0x6d7   : > { %8981 = vrcp.f32 %v4937_v7  ;;  %v4935_v32 = vsub.f32 1.0, %v13998_v11  ;;  %v14005_v61 = vmin.f32 %v4789_v44, 0.999998  ;;  %vm4830_vm12 = vcmp.eq.f32.partialorder %v13809_v46, inf }
 0x6d8   : > { %v14003_v6 = vpop.eup %8969  ;;  %v4787_v29 = vmax.f32 %v4771_v38, 1e-24  ;;  %8983 = vrcp.f32 %v4827_v23  ;;  %v4831_v42 = vsel %vm4830_vm12, %v13809_v46, %v4829_v13  ;;  %v4833_v26 = vand.u32 2147483648, %v13809_v46 }
 0x6d9   : > { %v14008_v31 = vpop.eup %8971  ;;  %v4758_v30 = vmul.f32 %v14003_v6, %v4742_v3  ;;  %8985 = vrcp.f32 %v13998_v11  ;;  %vm4832_vm13 = vcmp.eq.f32.partialorder %v13809_v46, 0.0  ;;  %v4815_v12 = vmul.f32 %v13911_v17, %v13828_v53 }
 0x6da   : > { %v14014_v62 = vmin.f32 %v4787_v29, 0.999998  ;;  %8987 = vrcp.f32 %v4935_v32  ;;  %v14019_v34 = vpop.eup %8973  ;;  %v14022_v15 = vsel %vm4832_vm13, %v4833_v26, %v4831_v42  ;;  %vm4816_vm14 = vcmp.eq.f32.partialorder %v13828_v53, inf }
 0x6db   : > { %v4774_v55 = vmul.f32 %v14003_v6, %v4758_v30  ;;  %v4819_v19 = vand.u32 2147483648, %v13828_v53  ;;  %8989 = vrsqrt.f32 %v14005_v61  ;;  %v4938_v20 = vsub.f32 1.0, %v14022_v15 }
 0x6dc   : > { %v14026_v52 = vpop.eup %8975  ;;  %v4817_v46 = vsel %vm4816_vm14, %v13828_v53, %v4815_v12  ;;  %vm4818_vm15 = vcmp.eq.f32.partialorder %v13828_v53, 0.0  ;;  %8991 = vrsqrt.f32 %v14014_v62  ;;  %v4850_v13 = vmul.f32 %v13925_v63, %v13837_v25 }
 0x6dd   : > { %v4790_v17 = vmax.f32 %v4774_v55, 1e-24  ;;  %v4756_v44 = vmul.f32 %v14026_v52, %v4740_v18  ;;  %v4820_v7 = vsel %vm4818_vm15, %v4819_v19, %v4817_v46  ;;  %8993 = vrcp.f32 %v4938_v20 }
 0x6de   : > { %v4936_v38 = vsub.f32 1.0, %v4820_v7  ;;  %8995 = vrcp.f32 %v14022_v15  ;;  %vm4851_vm0 = vcmp.eq.f32.partialorder %v13837_v25, inf  ;;  %v4921_v53 = vadd.f32 1.0, %v4827_v23 }
 0x6df   : > { %v14036_v3 = vmin.f32 %v4790_v17, 0.999998  ;;  %v4772_v32 = vmul.f32 %v14026_v52, %v4756_v44  ;;  %v4852_v29 = vsel %vm4851_vm0, %v13837_v25, %v4850_v13  ;;  %v4854_v18 = vand.u32 2147483648, %v13837_v25 }
 0x6e0   : > { %8997 = vrcp.f32 %v4936_v38  ;;  %vm4853_vm2 = vcmp.eq.f32.partialorder %v13837_v25, 0.0  ;;  %v4836_v63 = vmul.f32 %v13936_v35, %v13849_v50  ;;  %v14046_v42 = vpop.eup %8977  ;;  %vm4837_vm3 = vcmp.eq.f32.partialorder %v13849_v50, inf }
 0x6e1   : > { %v4788_v30 = vmax.f32 %v4772_v32, 1e-24  ;;  %8999 = vrcp.f32 %v4820_v7  ;;  %v14049_v26 = vsel %vm4853_vm2, %v4854_v18, %v4852_v29  ;;  %v4857_v23 = vmul.f32 %v13958_v58, %v13870_v2 }
 0x6e2   : > { %9001 = vrsqrt.f32 %v14036_v3  ;;  %v14054_v12 = vpop.eup %8979  ;;  %v4941_v25 = vsub.f32 1.0, %v14049_v26  ;;  %vm4839_vm4 = vcmp.eq.f32.partialorder %v13849_v50, 0.0  ;;  %v4840_v35 = vand.u32 2147483648, %v13849_v50 }
 0x6e3   : > { %v14056_v55 = vmin.f32 %v4788_v30, 0.999998  ;;  %9003 = vrcp.f32 %v14049_v26  ;;  %v4838_v20 = vsel %vm4837_vm3, %v13849_v50, %v4836_v63  ;;  %vm4858_vm5 = vcmp.eq.f32.partialorder %v13870_v2, inf }
 0x6e4   : > { %v8982_v19 = vpop.eup %8981  ;;  %v4861_v46 = vand.u32 2147483648, %v13870_v2  ;;  %v14067_v44 = vsel %vm4839_vm4, %v4840_v35, %v4838_v20  ;;  %v4859_v38 = vsel %vm4858_vm5, %v13870_v2, %v4857_v23  ;;  %vm4860_vm6 = vcmp.eq.f32.partialorder %v13870_v2, 0.0 }
 0x6e5   : > { %v14065_v58 = vpop.eup %8983  ;;  %v4956_v17 = vmul.f32 %v8982_v19, %v4921_v53  ;;  %v4919_v32 = vadd.f32 1.0, %v13998_v11  ;;  %9005 = vrcp.f32 %v4941_v25  ;;  %v4939_v50 = vsub.f32 1.0, %v14067_v44 }
 0x6e6   : > { %v14071_v13 = vpop.eup %8985  ;;  %v14075_v29 = vsel %vm4860_vm6, %v4861_v46, %v4859_v38  ;;  %v4843_v53 = vmul.f32 %v13978_v10, %v13896_v8  ;;  %vm4844_vm7 = vcmp.eq.f32.partialorder %v13896_v8, inf  ;;  %v5849_v11 = vmul.f32 %v13461_v24, %v13461_v24 }
 0x6e7   : > { %v8988_v18 = vpop.eup %8987  ;;  %9007 = vlog2.f32 %v4956_v17  ;;  %v4942_v30 = vsub.f32 1.0, %v14075_v29  ;;  %v4847_v25 = vand.u32 2147483648, %v13896_v8  ;;  %v4922_v10 = vadd.f32 1.0, %v14022_v15 }
 0x6e8   : > { %v4952_v63 = vmul.f32 %v8988_v18, %v4919_v32  ;;  %9009 = vrcp.f32 %v4939_v50  ;;  %v14081_v2 = vpop.eup %8989  ;;  %v4845_v23 = vsel %vm4844_vm7, %v13896_v8, %v4843_v53  ;;  %vm4846_vm8 = vcmp.eq.f32.partialorder %v13896_v8, 0.0 }
 0x6e9   : > { %9011 = vrsqrt.f32 %v14056_v55  ;;  %v14088_v35 = vpop.eup %8991  ;;  %v4878_v19 = vmul.f32 %v14008_v31, %v13932_v39  ;;  %v4920_v46 = vadd.f32 1.0, %v4820_v7  ;;  %v5850_v17 = vmul.f32 %v13464_v14, %v13464_v14 }
 0x6ea   : > { %9013 = vlog2.f32 %v4952_v63  ;;  %v8994_v20 = vpop.eup %8993  ;;  %v4848_v24 = vsel %vm4846_vm8, %v4847_v25, %v4845_v23  ;;  %vm4879_vm9 = vcmp.eq.f32.partialorder %v13932_v39, inf  ;;  %v4882_v15 = vand.u32 2147483648, %v13932_v39 }
 0x6eb   : > { %9015 = vrcp.f32 %v4942_v30  ;;  %v14096_v38 = vpop.eup %8995  ;;  %v4958_v32 = vmul.f32 %v8994_v20, %v4922_v10  ;;  %v4940_v50 = vsub.f32 1.0, %v4848_v24  ;;  %v4880_v8 = vsel %vm4879_vm9, %v13932_v39, %v4878_v19 }
 0x6ec   : > { %9017 = vrcp.f32 %v14067_v44  ;;  %vm4881_vm10 = vcmp.eq.f32.partialorder %v13932_v39, 0.0  ;;  %v4864_v14 = vmul.f32 %v14019_v34, %v13941_v37  ;;  %vm4865_vm11 = vcmp.eq.f32.partialorder %v13941_v37, inf }
 0x6ed   : > { %v8998_v18 = vpop.eup %8997  ;;  %9019 = vlog2.f32 %v4958_v32  ;;  %v4883_v30 = vsel %vm4881_vm10, %v4882_v15, %v4880_v8  ;;  %v14110_v63 = vpack.c.bf16 %v5850_v17, %v5849_v11  ;;  %v4925_v39 = vadd.f32 1.0, %v14049_v26 }
 0x6ee   : > { %v14105_v31 = vpop.eup %8999  ;;  %v4954_v7 = vmul.f32 %v8998_v18, %v4920_v46  ;;  %9021 = vrcp.f32 %v4940_v50  ;;  %v4945_v23 = vsub.f32 1.0, %v4883_v30  ;;  %v4866_v25 = vsel %vm4865_vm11, %v13941_v37, %v4864_v14 }
 0x6ef   : > { %v14108_v53 = vpop.eup %9001  ;;  %v4868_v34 = vand.u32 2147483648, %v13941_v37  ;;  %v4885_v10 = vmul.f32 %v14046_v42, %v13974_v57  ;;  %vm4867_vm12 = vcmp.eq.f32.partialorder %v13941_v37, 0.0  ;;  %vm4886_vm13 = vcmp.eq.f32.partialorder %v13974_v57, inf }
 0x6f0   : > { %9023 = vlog2.f32 %v4954_v7  ;;  %v14117_v19 = vpop.eup %9003  ;;  %v4889_v11 = vand.u32 2147483648, %v13974_v57  ;;  %vm4888_vm14 = vcmp.eq.f32.partialorder %v13974_v57, 0.0  ;;  %v4871_v26 = vmul.f32 %v14054_v12, %v13987_v21 }
 0x6f1   : > { %9025 = vrcp.f32 %v4945_v23  ;;  %v4869_v20 = vsel %vm4867_vm12, %v4868_v34, %v4866_v25  ;;  %v4887_v46 = vsel %vm4886_vm13, %v13974_v57, %v4885_v10  ;;  %v4923_v42 = vadd.f32 1.0, %v14067_v44 }
 0x6f2   : > { %v9006_v17 = vpop.eup %9005  ;;  %9027 = vrcp.f32 %v14075_v29  ;;  %v4943_v32 = vsub.f32 1.0, %v4869_v20  ;;  %v14128_v50 = vsel %vm4888_vm14, %v4889_v11, %v4887_v46  ;;  %v4926_v18 = vadd.f32 1.0, %v14075_v29 }
 0x6f3   : > { %v4964_v15 = vmul.f32 %v9006_v17, %v4925_v39  ;;  %9029 = vrcp.f32 %v4848_v24  ;;  %v4946_v8 = vsub.f32 1.0, %v14128_v50  ;;  %v14134_v12 = vmul.f32 %v13501_v36, %v13501_v36 }
 0x6f4   : > { %v9008_v37 = vpop.eup %9007  ;;  %9031 = vrcp.f32 %v4943_v32  ;;  %vm4872_vm15 = vcmp.eq.f32.partialorder %v13987_v21, inf  ;;  %v4875_v29 = vand.u32 2147483648, %v13987_v21  ;;  %v4924_v34 = vadd.f32 1.0, %v4848_v24 }
 0x6f5   : > { %v9010_v14 = vpop.eup %9009  ;;  %v4988_v57 = vmul.f32 0.6931472, %v9008_v37  ;;  %9033 = vlog2.f32 %v4964_v15  ;;  %v4873_v23 = vsel %vm4872_vm15, %v13987_v21, %v4871_v26  ;;  %vm4874_vm0 = vcmp.eq.f32.partialorder %v13987_v21, 0.0  ;;  %v16062_v15 = vld [vmem:[#allocation178_spill] sm:$0xff] }
 0x6f6   : > { %v14137_v44 = vpop.eup %9011  ;;  %v4960_v7 = vmul.f32 %v9010_v14, %v4923_v42  ;;  %9035 = vrcp.f32 %v4946_v8  ;;  %v14142_v11 = vsel %vm4874_vm0, %v4875_v29, %v4873_v23  ;;  %v4906_v46 = vmul.f32 %v14081_v2, %v14005_v61 }
 0x6f7   : > { %v9014_v25 = vpop.eup %9013  ;;  %v5017_v39 = vmul.f32 0.5, %v4988_v57  ;;  %v4944_v26 = vsub.f32 1.0, %v14142_v11  ;;  %v4929_v37 = vadd.f32 1.0, %v4883_v30  ;;  %vm4907_vm2 = vcmp.eq.f32.partialorder %v14005_v61, inf }
 0x6f8   : > { %v9016_v10 = vpop.eup %9015  ;;  %v4984_v36 = vmul.f32 0.6931472, %v9014_v25  ;;  %9037 = vlog2.f32 %v4960_v7  ;;  %v16063_v8 = vcvt.s32.f32 %v16062_v15  ;;  %v4927_v57 = vadd.f32 1.0, %v4869_v20 }
 0x6f9   : > { %v5049_v17 = vmul.f32 %v14065_v58, %v5017_v39  ;;  %v4966_v42 = vmul.f32 %v9016_v10, %v4926_v18  ;;  %9039 = vrcp.f32 %v4883_v30  ;;  %v14148_v32 = vpop.eup %9017  ;;  %v4908_v2 = vsel %vm4907_vm2, %v14005_v61, %v4906_v46  ;;  %v16064_v10 = vld [vmem:[#allocation176_spill] sm:$0xff] }
 0x6fa   : > { %v5015_v24 = vmul.f32 0.5, %v4984_v36  ;;  %9041 = vrcp.f32 %v4869_v20  ;;  %v9020_v21 = vpop.eup %9019  ;;  %v4910_v23 = vand.u32 2147483648, %v14005_v61  ;;  %vm4909_vm3 = vcmp.eq.f32.partialorder %v14005_v61, 0.0 }
 0x6fb   : > { %v5113_v14 = vmul.f32 %v16063_v8, %v5049_v17  ;;  %9043 = vlog2.f32 %v4966_v42  ;;  %v9022_v58 = vpop.eup %9021  ;;  %v4990_v7 = vmul.f32 0.6931472, %v9020_v21  ;;  %v4892_v39 = vmul.f32 %v14088_v35, %v14014_v62 }
 0x6fc   : > { %v5047_v18 = vmul.f32 %v14071_v13, %v5015_v24  ;;  %9045 = vrcp.f32 %v4944_v26  ;;  %v4962_v25 = vmul.f32 %v9022_v58, %v4924_v34  ;;  %v16065_v36 = vcvt.s32.f32 %v16064_v10 }
 0x6fd   : > { %v9024_v29 = vpop.eup %9023  ;;  %v14157_v30 = vmul.f32 %v13747_v51, %v5113_v14  ;;  %v5018_v17 = vmul.f32 0.5, %v4990_v7  ;;  %v14164_v42 = vsel %vm4909_vm3, %v4910_v23, %v4908_v2  ;;  %vm4893_vm4 = vcmp.eq.f32.partialorder %v14014_v62, inf  ;;  %v16066_v2 = vld [vmem:[#allocation181_spill] sm:$0xff] }
 0x6fe   : > { %v9026_v20 = vpop.eup %9025  ;;  %v5111_v46 = vmul.f32 %v16065_v36, %v5047_v18  ;;  %v4986_v13 = vmul.f32 0.6931472, %v9024_v29  ;;  %9047 = vlog2.f32 %v4962_v25  ;;  %v4949_v21 = vsub.f32 1.0, %v14164_v42 }
 0x6ff   : > { %v5161_v26 = vmul.f32 %v14157_v30, %v13655_v22  ;;  %v4972_v51 = vmul.f32 %v9026_v20, %v4929_v37  ;;  %v14169_v34 = vpop.eup %9027  ;;  %v5050_v35 = vmul.f32 %v14096_v38, %v5018_v17  ;;  %v4930_v8 = vadd.f32 1.0, %v14128_v50  ;;  %v16068_v20 = vld [vmem:[#allocation177_spill] sm:$0xff] }
 0x700   : > { %v5127_v61 = vmul.f32 %v13764_v28, %v5111_v46  ;;  %v5016_v24 = vmul.f32 0.5, %v4986_v13  ;;  %v14174_v15 = vpop.eup %9029  ;;  %v4894_v22 = vsel %vm4893_vm4, %v14014_v62, %v4892_v39  ;;  %v4896_v37 = vand.u32 2147483648, %v14014_v62 }
 0x701   : > { %5179 = vadd.xlane.f32.xlu0 %v5161_v26  ;;  %9049 = vlog2.f32 %v4972_v51  ;;  %v9032_v14 = vpop.eup %9031  ;;  %v16067_v58 = vcvt.s32.f32 %v16066_v2  ;;  %vm4895_vm5 = vcmp.eq.f32.partialorder %v14014_v62, 0.0  ;;  %v16069_v10 = vcvt.s32.f32 %v16068_v20  ;;  %v16070_v62 = vld [vmem:[#allocation164_spill] sm:$0xff] }
 0x702   : > { %v5048_v28 = vmul.f32 %v14105_v31, %v5016_v24  ;;  %9051 = vrcp.f32 %v4949_v21  ;;  %v9034_v38 = vpop.eup %9033  ;;  %v5159_v7 = vmul.f32 %v5127_v61, %v13672_v56  ;;  %v4968_v23 = vmul.f32 %v9032_v14, %v4927_v57 }
 0x703   : > { %v5114_v18 = vmul.f32 %v16067_v58, %v5050_v35  ;;  %9053 = vrcp.f32 %v14128_v50  ;;  %v14185_v29 = vsel %vm4895_vm5, %v4896_v37, %v4894_v22  ;;  %v9036_v25 = vpop.eup %9035  ;;  %v4996_v46 = vmul.f32 0.6931472, %v9034_v38 }
 0x704   : > { %v5112_v36 = vmul.f32 %v16069_v10, %v5048_v28  ;;  %v4913_v31 = vmul.f32 %v14108_v53, %v14036_v3  ;;  %v14194_v56 = vmul.f32 %v16070_v62, %v16070_v62  ;;  %9055 = vlog2.f32 %v4968_v23  ;;  %v16074_v23 = vld [vmem:[#allocation83_spill] sm:$0xff] }
 0x705   : > { %v5130_v39 = vmul.f32 %v13774_v47, %v5114_v18  ;;  %v9038_v17 = vpop.eup %9037  ;;  %5175 = vadd.xlane.f32.xlu0 %v5159_v7  ;;  %v4974_v50 = vmul.f32 %v9036_v25, %v4930_v8  ;;  %v4947_v57 = vsub.f32 1.0, %v14185_v29  ;;  %v16071_v47 = vld [vmem:[#allocation81_spill] sm:$0xff]  ;;  %v5021_v35 = vmul.f32 0.5, %v4996_v46 }
 0x706   : > { %v14197_v13 = vpop.eup %9039  ;;  %v5128_v51 = vmul.f32 %v13786_v43, %v5112_v36  ;;  %v4928_v24 = vadd.f32 1.0, %v14142_v11  ;;  %v4992_v22 = vmul.f32 0.6931472, %v9038_v17  ;;  %vm4914_vm6 = vcmp.eq.f32.partialorder %v14036_v3, inf }
 0x707   : > { %v5162_v26 = vmul.f32 %v5130_v39, %v16071_v47  ;;  %v14202_v53 = vpop.eup %9041  ;;  %v5336_v21 = vpack.c.bf16 %v5130_v39, %v14157_v30  ;;  %9057 = vlog2.f32 %v4974_v50  ;;  %v5053_v14 = vmul.f32 %v14117_v19, %v5021_v35  ;;  %v16072_v30 = vld [vmem:[#allocation12_spill] sm:$0xff] }
 0x708   : > { %v9044_v8 = vpop.eup %9043  ;;  %v5335_v37 = vpack.c.bf16 %v5128_v51, %v5127_v61  ;;  %9059 = vrcp.f32 %v4947_v57  ;;  %v4915_v2 = vsel %vm4914_vm6, %v14036_v3, %v4913_v31  ;;  %v5019_v58 = vmul.f32 0.5, %v4992_v22 }
 0x709   : > { %5181 = vadd.xlane.f32.xlu1 %v5162_v26  ;;  %v9046_v43 = vpop.eup %9045  ;;  %v4998_v18 = vmul.f32 0.6931472, %v9044_v8  ;;  %vm4916_vm7 = vcmp.eq.f32.partialorder %v14036_v3, 0.0  ;;  %v4917_v28 = vand.u32 2147483648, %v14036_v3  ;;  %v16073_v38 = vcvt.s32.f32 %v16072_v30  ;;  %v16075_v3 = vld [vmem:[#allocation76_spill] sm:$0xff]  ;;  %v16080_v30 = vld [vmem:[#allocation85_spill] sm:$0xff] }
 0x70a   : > { %7950 = vmatprep.mubr.bf16.mxu0 %v5335_v37  ;;  %v5160_v25 = vmul.f32 %v5128_v51, %v16074_v23  ;;  %v4970_v39 = vmul.f32 %v9046_v43, %v4928_v24  ;;  %v4899_v19 = vmul.f32 %v14137_v44, %v14056_v55  ;;  %v5051_v61 = vmul.f32 %v14148_v32, %v5019_v58  ;;  %v16076_v44 = vld [vmem:[#allocation182_spill] sm:$0xff] }
 0x70b   : > { %v5117_v7 = vmul.f32 %v16073_v38, %v5053_v14  ;;  %7951 = vmatmul.mubr.bf16.vlgmr.msra.gmra.mxu0 %v5336_v21  ;;  %v5022_v20 = vmul.f32 0.5, %v4998_v18  ;;  %v4933_v10 = vadd.f32 1.0, %v14164_v42  ;;  %v14217_v36 = vsel %vm4916_vm7, %v4917_v28, %v4915_v2  ;;  %v9048_v46 = vpop.eup %9047  ;;  %v16078_v21 = vld [vmem:[#allocation142_spill] sm:$0xff] }
 0x70c   : > { %7999 = vmatpush3.bf16.xpose.msra.mxu0 %v16075_v3  ;;  %9061 = vlog2.f32 %v4970_v39  ;;  %v4950_v17 = vsub.f32 1.0, %v14217_v36  ;;  %vm4900_vm8 = vcmp.eq.f32.partialorder %v14056_v55, inf  ;;  %v16077_v32 = vcvt.s32.f32 %v16076_v44  ;;  %v16087_v44 = vld [vmem:[#allocation169_spill] sm:$0xff] }
 0x70d   : > { %v14221_v31 = vmul.f32 %v13803_v40, %v5117_v7  ;;  %5177 = vadd.xlane.f32.xlu1 %v5160_v25  ;;  %8000 = vmatprep.subr.bf16.mxu0 %v14110_v63  ;;  %v5054_v50 = vmul.f32 %v14169_v34, %v5022_v20  ;;  %v4994_v57 = vmul.f32 0.6931472, %v9048_v46  ;;  %vm4902_vm9 = vcmp.eq.f32.partialorder %v14056_v55, 0.0  ;;  %v16081_v7 = vld [vmem:[#allocation183_spill] sm:$0xff] }
 0x70e   : > { %v5115_v62 = vmul.f32 %v16077_v32, %v5051_v61  ;;  %v9050_v47 = vpop.eup %9049  ;;  %9063 = vrcp.f32 %v4950_v17  ;;  %v4901_v26 = vsel %vm4900_vm8, %v14056_v55, %v4899_v19  ;;  %v4903_v51 = vand.u32 2147483648, %v14056_v55  ;;  %v16083_v61 = vld [vmem:[#allocation121_spill] sm:$0xff] }
 0x70f   : > { %v5165_v40 = vmul.f32 %v14221_v31, %v13724_v1  ;;  %v9052_v35 = vpop.eup %9051  ;;  %v16079_v22 = vcvt.s32.f32 %v16078_v21  ;;  %v5020_v37 = vmul.f32 0.5, %v4994_v57  ;;  %v5004_v34 = vmul.f32 0.6931472, %v9050_v47  ;;  %v16089_v47 = vld [vmem:[#allocation129_spill] sm:$0xff] }
 0x710   : > { %v5131_v24 = vmul.f32 %v13812_v16, %v5115_v62  ;;  %v9054_v14 = vpop.eup %9053  ;;  %9065 = vrcp.f32 %v14142_v11  ;;  %v4980_v2 = vmul.f32 %v9052_v35, %v4933_v10  ;;  %v14238_v43 = vsel %vm4902_vm9, %v4903_v51, %v4901_v26  ;;  %v16084_v10 = vld [vmem:[#allocation120_spill] sm:$0xff] }
 0x711   : > { %v5118_v8 = vmul.f32 %v16079_v22, %v5054_v50  ;;  %5187 = vadd.xlane.f32.xlu0 %v5165_v40  ;;  %v5052_v58 = vmul.f32 %v14174_v15, %v5020_v37  ;;  %v5025_v55 = vmul.f32 0.5, %v5004_v34  ;;  %v9056_v18 = vpop.eup %9055  ;;  %v4948_v28 = vsub.f32 1.0, %v14238_v43  ;;  %v16088_v50 = vld [vmem:[#allocation151_spill] sm:$0xff]  ;;  %v16090_v22 = vld [vmem:[#allocation126_spill] sm:$0xff] }
 0x712   : > { %v5163_v16 = vmul.f32 %v5131_v24, %v13738_v48  ;;  %9067 = vlog2.f32 %v4980_v2  ;;  %v16082_v23 = vcvt.s32.f32 %v16081_v7  ;;  %v5858_v11 = vpack.c.bf16 %v14194_v56, %v14134_v12  ;;  %v16086_v12 = vld [vmem:[#allocation165_spill] sm:$0xff]  ;;  %v16095_v7 = vld [vmem:[#allocation130_spill] sm:$0xff] }
 0x713   : > { %v5134_v1 = vmul.f32 %v13831_v45, %v5118_v8  ;;  %v5057_v39 = vmul.f32 %v14197_v13, %v5025_v55  ;;  %v5000_v15 = vmul.f32 0.6931472, %v9056_v18  ;;  %v4931_v48 = vadd.f32 1.0, %v14185_v29  ;;  %v16093_v18 = vld [vmem:[#allocation145_spill] sm:$0xff] }
 0x714   : > { %v5116_v25 = vmul.f32 %v16082_v23, %v5052_v58  ;;  %v9058_v45 = vpop.eup %9057  ;;  %8001 = vmatpush3.bf16.xpose.msra.mxu0 %v14110_v63  ;;  %9069 = vrcp.f32 %v4948_v28  ;;  %v16085_v46 = vcvt.s32.f32 %v16084_v10  ;;  %v5845_v56 = vmul.f32 %v16086_v12, %v16086_v12 }
 0x715   : > { %v5166_v38 = vmul.f32 %v5134_v1, %v16080_v30  ;;  %5183 = vadd.xlane.f32.xlu0 %v5163_v16  ;;  %v9060_v19 = vpop.eup %9059  ;;  %8002 = vmatprep.subr.bf16.mxu0 %v5858_v11  ;;  %v5006_v17 = vmul.f32 0.6931472, %v9058_v45  ;;  %v5023_v13 = vmul.f32 0.5, %v5000_v15  ;;  %v5846_v63 = vmul.f32 %v16087_v44, %v16087_v44  ;;  %v16096_v45 = vld [vmem:[#allocation128_spill] sm:$0xff] }
 0x716   : > { %v5132_v20 = vmul.f32 %v16083_v61, %v5116_v25  ;;  %v5121_v3 = vmul.f32 %v16085_v46, %v5057_v39  ;;  %9071 = vrcp.f32 %v14164_v42  ;;  %v4976_v32 = vmul.f32 %v9060_v19, %v4931_v48  ;;  %v16091_v42 = vld [vmem:[#allocation140_spill] sm:$0xff]  ;;  %v16097_v48 = vld [vmem:[#allocation65_spill] sm:$0xff] }
 0x717   : > { %5189 = vadd.xlane.f32.xlu1 %v5166_v38  ;;  %v5026_v26 = vmul.f32 0.5, %v5006_v17  ;;  %v5338_v51 = vpack.c.bf16 %v5134_v1, %v14221_v31  ;;  %v5055_v35 = vmul.f32 %v14202_v53, %v5023_v13  ;;  %v16092_v34 = vcvt.s32.f32 %v16091_v42  ;;  %v16106_v42 = vld [vmem:[#allocation133_spill] sm:$0xff] }
 0x718   : > { %v5337_v62 = vpack.c.bf16 %v5132_v20, %v5131_v24  ;;  %v5137_v57 = vmul.f32 %v16088_v50, %v5121_v3  ;;  %v5164_v40 = vmul.f32 %v5132_v20, %v16089_v47  ;;  %9073 = vlog2.f32 %v4976_v32  ;;  %v16101_v32 = vld [vmem:[#allocation150_spill] sm:$0xff] }
 0x719   : > { %v9062_v21 = vpop.eup %9061  ;;  %v5058_v37 = vmul.f32 %v9054_v14, %v5026_v26  ;;  %v5119_v24 = vmul.f32 %v16092_v34, %v5055_v35  ;;  %v4934_v58 = vadd.f32 1.0, %v14217_v36  ;;  %v16094_v31 = vcvt.s32.f32 %v16093_v18 }
 0x71a   : > { %7954 = vmatprep.mubr.bf16.mxu0 %v5337_v62  ;;  %v5169_v8 = vmul.f32 %v5137_v57, %v16090_v22  ;;  %v5002_v2 = vmul.f32 0.6931472, %v9062_v21  ;;  %v5857_v53 = vpack.c.bf16 %v5846_v63, %v5845_v56  ;;  %9075 = vrcp.f32 %v14185_v29  ;;  %v16099_v29 = vld [vmem:[#allocation125_spill] sm:$0xff]  ;;  %v16105_v21 = vld [vmem:[#allocation71_spill] sm:$0xff] }
 0x71b   : > { %5185 = vadd.xlane.f32.xlu1 %v5164_v40  ;;  %7955 = vmatmul.mubr.bf16.gmra.mxu0 %v5338_v51  ;;  %v9064_v55 = vpop.eup %9063  ;;  %v5122_v1 = vmul.f32 %v16094_v31, %v5058_v37  ;;  %v5135_v16 = vmul.f32 %v13906_v4, %v5119_v24  ;;  %v5843_v19 = vmul.f32 %v16097_v48, %v16097_v48  ;;  %v16098_v4 = vld [vmem:[#allocation66_spill] sm:$0xff]  ;;  %v16100_v61 = vcvt.s32.f32 %v16099_v29  ;;  %v16102_v40 = vld [vmem:[#allocation127_spill] sm:$0xff] }
 0x71c   : > { %5195 = vadd.xlane.f32.xlu0 %v5169_v8  ;;  %v5024_v28 = vmul.f32 0.5, %v5002_v2  ;;  %8003 = vmatpush3.bf16.xpose.msra.mxu0 %v5858_v11  ;;  %v4982_v14 = vmul.f32 %v9064_v55, %v4934_v58  ;;  %v5844_v11 = vmul.f32 %v16098_v4, %v16098_v4  ;;  %v16103_v26 = vcvt.s32.f32 %v16102_v40  ;;  %v16107_v55 = vld [vmem:[#allocation123_spill] sm:$0xff] }
 0x71d   : > { %v9066_v30 = vpop.eup %9065  ;;  %v5138_v38 = vmul.f32 %v13930_v27, %v5122_v1  ;;  %8004 = vmatprep.subr.bf16.mxu0 %v5857_v53  ;;  %v5167_v23 = vmul.f32 %v5135_v16, %v16095_v7  ;;  %v4932_v27 = vadd.f32 1.0, %v14238_v43  ;;  %v5842_v22 = vmul.f32 %v16105_v21, %v16105_v21 }
 0x71e   : > { %v5056_v25 = vmul.f32 %v9066_v30, %v5024_v28  ;;  %9077 = vlog2.f32 %v4982_v14  ;;  %v5856_v13 = vpack.c.bf16 %v5844_v11, %v5843_v19  ;;  %v16108_v18 = vcvt.s32.f32 %v16107_v55  ;;  %v16109_v28 = vld [vmem:[#allocation73_spill] sm:$0xff]  ;;  %v16110_v14 = vld [vmem:[#allocation74_spill] sm:$0xff] }
 0x71f   : > { %v9068_v39 = vpop.eup %9067  ;;  %v5170_v15 = vmul.f32 %v5138_v38, %v16096_v45  ;;  %9079 = vrcp.f32 %v14217_v36  ;;  %v5340_v47 = vpack.c.bf16 %v5138_v38, %v5137_v57  ;;  %v16104_v36 = vld [vmem:[#allocation70_spill] sm:$0xff]  ;;  %v5840_v30 = vmul.f32 %v16110_v14, %v16110_v14  ;;  %v16111_v38 = vld [vmem:[#allocation19_spill] sm:$0xff] }
 0x720   : > { %5191 = vadd.xlane.f32.xlu0 %v5167_v23  ;;  %v5120_v20 = vmul.f32 %v16100_v61, %v5056_v25  ;;  %v5012_v10 = vmul.f32 0.6931472, %v9068_v39  ;;  %v5841_v35 = vmul.f32 %v16104_v36, %v16104_v36  ;;  %v16112_v39 = vld [vmem:[#allocation158_spill] sm:$0xff] }
 0x721   : > { %v9070_v46 = vpop.eup %9069  ;;  %5197 = vadd.xlane.f32.xlu1 %v5170_v15  ;;  %v16113_v45 = vcvt.s32.f32 %v16112_v39 }
 0x722   : > { %v5136_v3 = vmul.f32 %v13951_v33, %v5120_v20  ;;  %v5029_v17 = vmul.f32 0.5, %v5012_v10  ;;  %v4978_v12 = vmul.f32 %v9070_v46, %v4932_v27  ;;  %v5855_v58 = vpack.c.bf16 %v5842_v22, %v5841_v35  ;;  %v16114_v20 = vld [vmem:[#allocation78_spill] sm:$0xff]  ;;  %v16115_v27 = vld [vmem:[#allocation80_spill] sm:$0xff] }
 0x723   : > { %v9072_v56 = vpop.eup %9071  ;;  %v5837_v10 = vmul.f32 %v16114_v20, %v16114_v20  ;;  %v5838_v46 = vmul.f32 %v16115_v27, %v16115_v27  ;;  %v5144_v35 = vld [vmem:[#allocation3 + $0x8] sm:$0xff] }
 0x724   : > { %v5339_v44 = vpack.c.bf16 %v5136_v3, %v5135_v16  ;;  %v5061_v63 = vmul.f32 %v9072_v56, %v5029_v17  ;;  %v5168_v62 = vmul.f32 %v5136_v3, %v16101_v32  ;;  %9081 = vlog2.f32 %v4978_v12  ;;  %8005 = vmatpush3.bf16.xpose.msra.mxu0 %v5857_v53  ;;  %v16116_v3 = vld [vmem:[#allocation146_spill] sm:$0xff]  ;;  %v5156_v20 = vld [vmem:[#allocation3 + $0x68] sm:$0xff] }
 0x725   : > { %v9074_v50 = vpop.eup %9073  ;;  %8006 = vmatprep.subr.bf16.mxu0 %v5856_v13  ;;  %9083 = vrcp.f32 %v14238_v43  ;;  %v5839_v43 = vmul.f32 %v16109_v28, %v16109_v28  ;;  %v16117_v17 = vcvt.s32.f32 %v16116_v3  ;;  %v5151_v28 = vld [vmem:[#allocation3 + $0x40] sm:$0xff] }
 0x726   : > { %7958 = vmatprep.mubr.bf16.mxu0 %v5339_v44  ;;  %v5125_v51 = vmul.f32 %v16103_v26, %v5061_v63  ;;  %5193 = vadd.xlane.f32.xlu1 %v5168_v62  ;;  %v5008_v33 = vmul.f32 0.6931472, %v9074_v50  ;;  %v16118_v44 = vld [vmem:[#allocation131_spill] sm:$0xff] }
 0x727   : > { %7959 = vmatmul.mubr.bf16.gmra.mxu0 %v5340_v47  ;;  %v9076_v57 = vpop.eup %9075  ;;  %v5854_v19 = vpack.c.bf16 %v5840_v30, %v5839_v43  ;;  %v5143_v47 = vld [vmem:[#allocation3] sm:$0xff]  ;;  %v5154_v30 = vld [vmem:[#allocation3 + $0x58] sm:$0xff] }
 0x728   : > { %v5141_v8 = vmul.f32 %v13969_v59, %v5125_v51  ;;  %v5027_v37 = vmul.f32 0.5, %v5008_v33  ;;  %v5146_v51 = vld [vmem:[#allocation3 + $0x18] sm:$0xff] }
 0x72a   : > { %v5173_v34 = vmul.f32 %v5141_v8, %v16106_v42  ;;  %v5059_v24 = vmul.f32 %v9076_v57, %v5027_v37  ;;  %v5147_v42 = vld [vmem:[#allocation3 + $0x20] sm:$0xff] }
 0x72b   : > { %v9078_v2 = vpop.eup %9077 }
 0x72c   : > { %5203 = vadd.xlane.f32.xlu0 %v5173_v34  ;;  %v5123_v31 = vmul.f32 %v16108_v18, %v5059_v24  ;;  %v5014_v1 = vmul.f32 0.6931472, %v9078_v2  ;;  %8007 = vmatpush3.bf16.xpose.msra.mxu0 %v5856_v13  ;;  %v9080_v59 = vpop.eup %9079  ;;  %v5150_v2 = vld [vmem:[#allocation3 + $0x38] sm:$0xff]  ;;  %v5148_v18 = vld [vmem:[#allocation3 + $0x28] sm:$0xff] }
 0x72d   : > { %8008 = vmatprep.subr.bf16.mxu0 %v5855_v58 }
 0x72e   : > { %v5139_v53 = vmul.f32 %v13985_v5, %v5123_v31  ;;  %v5030_v16 = vmul.f32 0.5, %v5014_v1 }
 0x730   : > { %v5171_v7 = vmul.f32 %v5139_v53, %v16111_v38  ;;  %v5062_v23 = vmul.f32 %v9080_v59, %v5030_v16 }
 0x731   : > { %v9082_v25 = vpop.eup %9081 }
 0x732   : > { %5199 = vadd.xlane.f32.xlu0 %v5171_v7  ;;  %v5126_v15 = vmul.f32 %v16113_v45, %v5062_v23  ;;  %v5010_v48 = vmul.f32 0.6931472, %v9082_v25  ;;  %v9084_v11 = vpop.eup %9083  ;;  %v5152_v23 = vld [vmem:[#allocation3 + $0x48] sm:$0xff]  ;;  %v5157_v45 = vld [vmem:[#allocation3 + $0x70] sm:$0xff] }
 0x734   : > { %v5142_v5 = vmul.f32 %v14003_v6, %v5126_v15  ;;  %v5028_v4 = vmul.f32 0.5, %v5010_v48  ;;  %8009 = vmatpush3.bf16.xpose.msra.mxu0 %v5855_v58  ;;  %v5853_v6 = vpack.c.bf16 %v5838_v46, %v5837_v10  ;;  %v5321_v46 = vld [vmem:[#allocation2 + $0x58] sm:$0xff] }
 0x735   : > { %8010 = vmatprep.subr.bf16.mxu0 %v5854_v19 }
 0x736   : > { %v5174_v29 = vmul.f32 %v5142_v5, %v13921_v49  ;;  %v5060_v61 = vmul.f32 %v9084_v11, %v5028_v4  ;;  %v5342_v32 = vpack.c.bf16 %v5142_v5, %v5141_v8  ;;  %v16119_v49 = vmov 1065369472   ;;  %v5149_v8 = vld [vmem:[#allocation3 + $0x30] sm:$0xff]  ;;  %v5158_v11 = vld [vmem:[#allocation3 + $0x78] sm:$0xff] }
 0x738   : > { %5205 = vadd.xlane.f32.xlu1 %v5174_v29  ;;  %v5124_v12 = vmul.f32 %v16117_v17, %v5060_v61 }
 0x73a   : > { %v5140_v56 = vmul.f32 %v14026_v52, %v5124_v12  ;;  %v5145_v52 = vld [vmem:[#allocation3 + $0x10] sm:$0xff] }
 0x73b   : > { %v5319_v12 = vld [vmem:[#allocation2 + $0x30] sm:$0xff] }
 0x73c   : > { %v5341_v13 = vpack.c.bf16 %v5140_v56, %v5139_v53  ;;  %v5172_v63 = vmul.f32 %v5140_v56, %v16118_v44  ;;  %8011 = vmatpush3.bf16.xpose.msra.mxu0 %v5854_v19  ;;  %v5153_v53 = vld [vmem:[#allocation3 + $0x50] sm:$0xff]  ;;  %v5155_v19 = vld [vmem:[#allocation3 + $0x60] sm:$0xff]  ;;  %v5322_v44 = vld [vmem:[#allocation2 + $0x18] sm:$0xff] }
 0x73d   : > { %8012 = vmatprep.subr.bf16.mxu0 %v5853_v6 }
 0x73e   : > { %7962 = vmatprep.mubr.bf16.mxu0 %v5341_v13  ;;  %5201 = vadd.xlane.f32.xlu1 %v5172_v63 }
 0x73f   : > { %7963 = vmatmul.mubr.bf16.gmra.mxu0 %v5342_v32 }
 0x740   : > { %8014 = vmatprep.mubr.bf16.mxu0 %v16119_v49 }
 0x744   : > { %8013 = vmatpush3.bf16.xpose.msra.mxu0 %v5853_v6  ;;  %v14338_v6 = vpop.f32.mrf.mxu1 }
 0x74b   : > { %8015 = vmatmul.mubr.bf16.vlgmr.msra.gmra.mxu0 %v16119_v49 }
 0x74c   : > { %8018 = vmatprep.mubr.bf16.mxu0 %v16119_v49 }
 0x753   : > { %8019 = vmatmul.mubr.bf16.gmra.mxu0 %v16119_v49 }
 0x754   : > { %8022 = vmatprep.mubr.bf16.mxu0 %v16119_v49 }
 0x75b   : > { %8023 = vmatmul.mubr.bf16.gmra.mxu0 %v16119_v49 }
 0x75c   : > { %8026 = vmatprep.mubr.bf16.mxu0 %v16119_v49 }
 0x763   : > { %8027 = vmatmul.mubr.bf16.gmra.mxu0 %v16119_v49  ;;  %v5320_v49 = vld [vmem:[#allocation2] sm:$0xff] }
 0x78a   : > { %v5180_v62 = vpop.xlane.xlu0 %5179 }
 0x78b   : > { %v5209_v50 = vadd.f32 %v5180_v62, %v5145_v52  ;;  %v14340_v62 = vpop.f32.mrf.mxu1 }
 0x78d   : > { %5225 = vst.msk [vmem:[#allocation3 + $0x10] sm:$0xff] %vm2312_vm1, %v5209_v50 }
 0x78e   : > { %v5176_v40 = vpop.xlane.xlu0 %5175 }
 0x78f   : > { %v5207_v26 = vadd.f32 %v5176_v40, %v5143_v47  ;;  %v14342_v47 = vpop.f32.mrf.mxu1 }
 0x791   : > { %5223 = vst.msk [vmem:[#allocation3] sm:$0xff] %vm2312_vm1, %v5207_v26  ;;  %v14344_v40 = vpop.f32.mrf.mxu1  ;;  %v5325_v26 = vld [vmem:[#allocation2 + $0x8] sm:$0xff] }
 0x792   : > { %v5182_v33 = vpop.xlane.xlu1 %5181 }
 0x793   : > { %v5210_v36 = vadd.f32 %v5182_v33, %v5146_v51 }
 0x795   : > { %5226 = vst.msk [vmem:[#allocation3 + $0x18] sm:$0xff] %vm2312_vm1, %v5210_v36  ;;  %v5323_v36 = vld [vmem:[#allocation2 + $0x50] sm:$0xff] }
 0x796   : > { %v5178_v21 = vpop.xlane.xlu1 %5177 }
 0x797   : > { %v5208_v22 = vadd.f32 %v5178_v21, %v5144_v35 }
 0x799   : > { %5224 = vst.msk [vmem:[#allocation3 + $0x8] sm:$0xff] %vm2312_vm1, %v5208_v22  ;;  %v14346_v22 = vpop.f32.mrf.mxu1 }
 0x79a   : > { %v5188_v37 = vpop.xlane.xlu0 %5187 }
 0x79b   : > { %v5213_v57 = vadd.f32 %v5188_v37, %v5149_v8  ;;  %v5326_v8 = vld [vmem:[#allocation2 + $0x48] sm:$0xff] }
 0x79d   : > { %5229 = vst.msk [vmem:[#allocation3 + $0x30] sm:$0xff] %vm2312_vm1, %v5213_v57 }
 0x79e   : > { %v5184_v34 = vpop.xlane.xlu0 %5183 }
 0x79f   : > { %v5211_v24 = vadd.f32 %v5184_v34, %v5147_v42  ;;  %v5324_v42 = vld [vmem:[#allocation2 + $0x68] sm:$0xff] }
 0x7a0   : > { %v5190_v58 = vpop.xlane.xlu1 %5189 }
 0x7a1   : > { %v5214_v55 = vadd.f32 %v5190_v58, %v5150_v2  ;;  %5227 = vst.msk [vmem:[#allocation3 + $0x20] sm:$0xff] %vm2312_vm1, %v5211_v24  ;;  %v14348_v2 = vpop.f32.mrf.mxu1 }
 0x7a3   : > { %5230 = vst.msk [vmem:[#allocation3 + $0x38] sm:$0xff] %vm2312_vm1, %v5214_v55  ;;  %v14350_v58 = vpop.f32.mrf.mxu1  ;;  %v5329_v55 = vld [vmem:[#allocation2 + $0x10] sm:$0xff] }
 0x7a4   : > { %v5186_v31 = vpop.xlane.xlu1 %5185 }
 0x7a5   : > { %v5212_v1 = vadd.f32 %v5186_v31, %v5148_v18  ;;  %v5196_v16 = vpop.xlane.xlu0 %5195 }
 0x7a6   : > { %v5217_v59 = vadd.f32 %v5196_v16, %v5153_v53  ;;  %v14352_v16 = vpop.f32.mrf.mxu1 }
 0x7a7   : > { %5228 = vst.msk [vmem:[#allocation3 + $0x28] sm:$0xff] %vm2312_vm1, %v5212_v1  ;;  %v5327_v1 = vld [vmem:[#allocation2 + $0x40] sm:$0xff] }
 0x7a8   : > { %5233 = vst.msk [vmem:[#allocation3 + $0x50] sm:$0xff] %vm2312_vm1, %v5217_v59 }
 0x7a9   : > { %v5192_v43 = vpop.xlane.xlu0 %5191 }
 0x7aa   : > { %v5215_v14 = vadd.f32 %v5192_v43, %v5151_v28  ;;  %v5198_v38 = vpop.xlane.xlu1 %5197  ;;  %v5330_v28 = vld [vmem:[#allocation2 + $0x38] sm:$0xff] }
 0x7ab   : > { %v5218_v7 = vadd.f32 %v5198_v38, %v5154_v30  ;;  %v5328_v30 = vld [vmem:[#allocation2 + $0x20] sm:$0xff] }
 0x7ac   : > { %5231 = vst.msk [vmem:[#allocation3 + $0x40] sm:$0xff] %vm2312_vm1, %v5215_v14 }
 0x7ad   : > { %5234 = vst.msk [vmem:[#allocation3 + $0x58] sm:$0xff] %vm2312_vm1, %v5218_v7  ;;  %v14354_v7 = vpop.f32.mrf.mxu1 }
 0x7af   : > { %v5194_v25 = vpop.xlane.xlu1 %5193 }
 0x7b0   : > { %v5216_v39 = vadd.f32 %v5194_v25, %v5152_v23  ;;  %v14356_v25 = vpop.f32.mrf.mxu1 }
 0x7b2   : > { %5232 = vst.msk [vmem:[#allocation3 + $0x48] sm:$0xff] %vm2312_vm1, %v5216_v39  ;;  %v14358_v39 = vpop.f32.mrf.mxu1 }
 0x7b5   : > { %v5204_v15 = vpop.xlane.xlu0 %5203 }
 0x7b6   : > { %v5221_v48 = vadd.f32 %v5204_v15, %v5157_v45  ;;  %v14360_v45 = vpop.f32.mrf.mxu1 }
 0x7b8   : > { %5237 = vst.msk [vmem:[#allocation3 + $0x70] sm:$0xff] %vm2312_vm1, %v5221_v48  ;;  %v14362_v15 = vpop.f32.mrf.mxu1  ;;  %v5333_v48 = vld [vmem:[#allocation2 + $0x78] sm:$0xff] }
 0x7bb   : > { %v5200_v5 = vpop.xlane.xlu0 %5199 }
 0x7bc   : > { %v5219_v4 = vadd.f32 %v5200_v5, %v5155_v19 }
 0x7be   : > { %5235 = vst.msk [vmem:[#allocation3 + $0x60] sm:$0xff] %vm2312_vm1, %v5219_v4  ;;  %v5331_v4 = vld [vmem:[#allocation2 + $0x60] sm:$0xff] }
 0x7c1   : > { %v5206_v29 = vpop.xlane.xlu1 %5205 }
 0x7c2   : > { %v5222_v61 = vadd.f32 %v5206_v29, %v5158_v11  ;;  %v14364_v29 = vpop.f32.mrf.mxu1 }
 0x7c4   : > { %5238 = vst.msk [vmem:[#allocation3 + $0x78] sm:$0xff] %vm2312_vm1, %v5222_v61 }
 0x7c7   : > { %v5202_v10 = vpop.xlane.xlu1 %5201 }
 0x7c8   : > { %v5220_v27 = vadd.f32 %v5202_v10, %v5156_v20  ;;  %v5334_v20 = vld [vmem:[#allocation2 + $0x28] sm:$0xff] }
 0x7ca   : > { %5236 = vst.msk [vmem:[#allocation3 + $0x68] sm:$0xff] %vm2312_vm1, %v5220_v27 }
 0x7cb   : > { %v7952_v3 = vpop.f32.mrf.mxu0 }
 0x7cc   : > { %v5442_v17 = vadd.f32 %v7952_v3, %v5321_v46  ;;  %v5960_v46 = vmul.f32 2.0, %v14338_v6  ;;  %v5958_v3 = vmul.f32 2.0, %v14340_v62 }
 0x7cd   : > { %v5377_v56 = vpop.f32.mrf.mxu0 }
 0x7ce   : > { %5458 = vst [vmem:[#allocation2 + $0x58] sm:$0xff] %v5442_v17  ;;  %v5440_v13 = vadd.f32 %v5377_v56, %v5319_v12  ;;  %v5332_v17 = vld [vmem:[#allocation2 + $0x70] sm:$0xff]  ;;  %v5961_v56 = vmul.f32 2.0, %v14342_v47 }
 0x7cf   : > { %v7953_v63 = vpop.f32.mrf.mxu0 }
 0x7d0   : > { %5456 = vst [vmem:[#allocation2 + $0x30] sm:$0xff] %v5440_v13  ;;  %v5443_v32 = vadd.f32 %v7953_v63, %v5322_v44  ;;  %v14369_v13 = vpop.f32.mrf.mxu1  ;;  %v5959_v63 = vmul.f32 2.0, %v14344_v40 }
 0x7d1   : > { %v5380_v52 = vpop.f32.mrf.mxu0 }
 0x7d2   : > { %5459 = vst [vmem:[#allocation2 + $0x18] sm:$0xff] %v5443_v32  ;;  %v5441_v50 = vadd.f32 %v5380_v52, %v5320_v49  ;;  %v5964_v32 = vmul.f32 2.0, %v14346_v22  ;;  %v5962_v49 = vmul.f32 2.0, %v14348_v2  ;;  %v5965_v52 = vmul.f32 2.0, %v14350_v58 }
 0x7d4   : > { %5457 = vst [vmem:[#allocation2] sm:$0xff] %v5441_v50  ;;  %v5976_v50 = vadd.f32 1.0, %v5960_v46 }
 0x7db   : > { %v7956_v51 = vpop.f32.mrf.mxu0 }
 0x7dc   : > { %v5446_v33 = vadd.f32 %v7956_v51, %v5325_v26  ;;  %v5974_v26 = vadd.f32 1.0, %v5958_v3  ;;  %v5963_v51 = vmul.f32 2.0, %v14352_v16 }
 0x7dd   : > { %v5393_v35 = vpop.f32.mrf.mxu0 }
 0x7de   : > { %5462 = vst [vmem:[#allocation2 + $0x8] sm:$0xff] %v5446_v33  ;;  %v5444_v21 = vadd.f32 %v5393_v35, %v5323_v36  ;;  %v5968_v33 = vmul.f32 2.0, %v14354_v7  ;;  %v5966_v36 = vmul.f32 2.0, %v14356_v25  ;;  %v5969_v35 = vmul.f32 2.0, %v14358_v39 }
 0x7df   : > { %v7957_v37 = vpop.f32.mrf.mxu0 }
 0x7e0   : > { %5460 = vst [vmem:[#allocation2 + $0x50] sm:$0xff] %v5444_v21  ;;  %v5447_v57 = vadd.f32 %v7957_v37, %v5326_v8  ;;  %v14379_v21 = vpop.f32.mrf.mxu1  ;;  %v5977_v8 = vadd.f32 1.0, %v5961_v56  ;;  %v5975_v37 = vadd.f32 1.0, %v5959_v63 }
 0x7e1   : > { %v5396_v34 = vpop.f32.mrf.mxu0 }
 0x7e2   : > { %5463 = vst [vmem:[#allocation2 + $0x48] sm:$0xff] %v5447_v57  ;;  %v5445_v24 = vadd.f32 %v5396_v34, %v5324_v42  ;;  %v14381_v57 = vadd.f32 1.0, %v5964_v32  ;;  %v14383_v42 = vadd.f32 1.0, %v5962_v49 }
 0x7e4   : > { %5461 = vst [vmem:[#allocation2 + $0x68] sm:$0xff] %v5445_v24  ;;  %v14385_v24 = vadd.f32 1.0, %v5965_v52  ;;  %v16126_v52 = vld [vmem:[#allocation24_spill] sm:$0xff] }
 0x7e7   : > { %v7960_v18 = vpop.f32.mrf.mxu0 }
 0x7e8   : > { %v5450_v31 = vadd.f32 %v7960_v18, %v5329_v55  ;;  %v5967_v55 = vmul.f32 2.0, %v14360_v45  ;;  %v5972_v18 = vmul.f32 2.0, %v14362_v15 }
 0x7e9   : > { %v5409_v53 = vpop.f32.mrf.mxu0 }
 0x7ea   : > { %5466 = vst [vmem:[#allocation2 + $0x10] sm:$0xff] %v5450_v31  ;;  %v5448_v59 = vadd.f32 %v5409_v53, %v5327_v1  ;;  %v5970_v31 = vmul.f32 2.0, %v14364_v29  ;;  %v16121_v53 = vld [vmem:[#allocation22_spill] sm:$0xff]  ;;  %v14411_v46 = vadd.f32 1.0, %v5972_v18 }
 0x7eb   : > { %v7961_v43 = vpop.f32.mrf.mxu0  ;;  %v16128_v18 = vld [vmem:[#allocation26_spill] sm:$0xff] }
 0x7ec   : > { %5464 = vst [vmem:[#allocation2 + $0x40] sm:$0xff] %v5448_v59  ;;  %v5451_v14 = vadd.f32 %v7961_v43, %v5330_v28  ;;  %v5973_v28 = vmul.f32 2.0, %v14369_v13  ;;  %v5971_v43 = vmul.f32 2.0, %v14379_v21  ;;  %v14413_v3 = vadd.f32 1.0, %v5970_v31 }
 0x7ed   : > { %v5412_v38 = vpop.f32.mrf.mxu0 }
 0x7ee   : > { %5467 = vst [vmem:[#allocation2 + $0x38] sm:$0xff] %v5451_v14  ;;  %v5449_v23 = vadd.f32 %v5412_v38, %v5328_v30  ;;  %v14395_v30 = vadd.f32 1.0, %v5963_v51  ;;  %v14397_v38 = vadd.f32 1.0, %v5968_v33  ;;  %v14416_v56 = vadd.f32 1.0, %v5973_v28 }
 0x7f0   : > { %5465 = vst [vmem:[#allocation2 + $0x20] sm:$0xff] %v5449_v23  ;;  %v14399_v23 = vadd.f32 1.0, %v5966_v36 }
 0x7ff   : > { %v7964_v19 = vpop.f32.mrf.mxu0 }
 0x800   : > { %v5454_v5 = vadd.f32 %v7964_v19, %v5333_v48  ;;  %v14401_v48 = vadd.f32 1.0, %v5969_v35 }
 0x801   : > { %v5425_v11 = vpop.f32.mrf.mxu0 }
 0x802   : > { %5470 = vst [vmem:[#allocation2 + $0x78] sm:$0xff] %v5454_v5  ;;  %v5452_v61 = vadd.f32 %v5425_v11, %v5331_v4 }
 0x803   : > { %v7965_v10 = vpop.f32.mrf.mxu0 }
 0x804   : > { %5468 = vst [vmem:[#allocation2 + $0x60] sm:$0xff] %v5452_v61  ;;  %v5455_v27 = vadd.f32 %v7965_v10, %v5334_v20  ;;  %v16123_v61 = vld [vmem:[#allocation23_spill] sm:$0xff] }
 0x805   : > { %v5428_v12 = vpop.f32.mrf.mxu0 }
 0x806   : > { %5471 = vst [vmem:[#allocation2 + $0x28] sm:$0xff] %v5455_v27  ;;  %v5453_v44 = vadd.f32 %v5428_v12, %v5332_v17  ;;  %v14409_v27 = vadd.f32 1.0, %v5967_v55  ;;  %v16124_v17 = vld [vmem:[#allocation29_spill] sm:$0xff] }
 0x808   : > { %5469 = vst [vmem:[#allocation2 + $0x70] sm:$0xff] %v5453_v44  ;;  %v14418_v44 = vadd.f32 1.0, %v5971_v43 }
 0x80b   : > { %v8016_v34 = vpop.f32.mrf.mxu0 }
 0x80c   : > { %v14390_v1 = vadd.f32 %v8016_v34, %v5976_v50  ;;  %v6008_v59 = vmul.f32 %v8016_v34, %v16121_v53 }
 0x80d   : > { %v5895_v14 = vpop.f32.mrf.mxu0 }
 0x80e   : > { %16120 = vst [vmem:[#allocation134_spill] sm:$0xff] %v14390_v1  ;;  %v6024_v19 = vadd.f32 %v6008_v59, %v5976_v50  ;;  %v6072_v5 = vmul.f32 %v14390_v1, %v14390_v1  ;;  %v6104_v4 = vmul.f32 2.0, %v14390_v1  ;;  %v14406_v11 = vadd.f32 %v5974_v26, %v5895_v14  ;;  %v16135_v1 = vld [vmem:[#allocation32_spill] sm:$0xff] }
 0x80f   : > { %v6006_v20 = vmul.f32 %v5895_v14, %v16123_v61  ;;  %v8017_v10 = vpop.f32.mrf.mxu0 }
 0x810   : > { %16122 = vst [vmem:[#allocation152_spill] sm:$0xff] %v14406_v11  ;;  %9085 = vrcp.f32 %v6024_v19  ;;  %v6120_v12 = vmul.f32 %v6104_v4, %v16124_v17  ;;  %v6102_v32 = vmul.f32 2.0, %v14406_v11  ;;  %v14421_v49 = vadd.f32 %v8017_v10, %v5977_v8  ;;  %v16129_v19 = vld [vmem:[#allocation35_spill] sm:$0xff] }
 0x811   : > { %v6022_v63 = vadd.f32 %v6006_v20, %v5974_v26  ;;  %v6009_v50 = vmul.f32 %v8017_v10, %v16126_v52  ;;  %v5898_v51 = vpop.f32.mrf.mxu0  ;;  %v6088_v33 = vmul.f32 %v6072_v5, %v16121_v53  ;;  %v6070_v35 = vmul.f32 %v14406_v11, %v14406_v11  ;;  %v16130_v5 = vld [vmem:[#allocation21_spill] sm:$0xff] }
 0x812   : > { %16125 = vst [vmem:[#allocation132_spill] sm:$0xff] %v14421_v49  ;;  %v6136_v36 = vmul.f32 %v14338_v6, %v6120_v12  ;;  %v14428_v55 = vadd.f32 %v5975_v37, %v5898_v51  ;;  %v6118_v31 = vmul.f32 %v6102_v32, %v16128_v18  ;;  %v6073_v59 = vmul.f32 %v14421_v49, %v14421_v49  ;;  %v16131_v32 = vld [vmem:[#allocation33_spill] sm:$0xff] }
 0x813   : > { %9087 = vrcp.f32 %v6022_v63  ;;  %v6025_v26 = vadd.f32 %v6009_v50, %v5977_v8  ;;  %v8020_v28 = vpop.f32.mrf.mxu0  ;;  %v6168_v4 = vmul.f32 %v8016_v34, %v16129_v19  ;;  %v6105_v53 = vmul.f32 2.0, %v14421_v49  ;;  %v16133_v19 = vld [vmem:[#allocation28_spill] sm:$0xff] }
 0x814   : > { %16127 = vst [vmem:[#allocation119_spill] sm:$0xff] %v14428_v55  ;;  %v6152_v43 = vadd.f32 %v6136_v36, %v6088_v33  ;;  %v6007_v6 = vmul.f32 %v5898_v51, %v16130_v5  ;;  %v6134_v20 = vmul.f32 %v6118_v31, %v14340_v62  ;;  %v6071_v17 = vmul.f32 %v14428_v55, %v14428_v55  ;;  %v16132_v33 = vld [vmem:[#allocation31_spill] sm:$0xff] }
 0x815   : > { %9089 = vrcp.f32 %v6025_v26  ;;  %v6103_v12 = vmul.f32 2.0, %v14428_v55  ;;  %v14440_v8 = vpop.f32.mrf.mxu0  ;;  %v6086_v63 = vmul.f32 %v6070_v35, %v16123_v61  ;;  %v6166_v50 = vmul.f32 %v5895_v14, %v16131_v32  ;;  %v16134_v62 = vld [vmem:[#allocation27_spill] sm:$0xff] }
 0x816   : > { %v6121_v34 = vmul.f32 %v6105_v53, %v16132_v33  ;;  %v6023_v36 = vadd.f32 %v6007_v6, %v5975_v37  ;;  %v6089_v18 = vmul.f32 %v6073_v59, %v16126_v52  ;;  %v6169_v49 = vmul.f32 %v8017_v10, %v16133_v19 }
 0x817   : > { %v6119_v31 = vmul.f32 %v6103_v12, %v16134_v62  ;;  %v14449_v26 = vadd.f32 %v8020_v28, %v14381_v57  ;;  %v6150_v11 = vadd.f32 %v6134_v20, %v6086_v63  ;;  %v6012_v61 = vmul.f32 %v8020_v28, %v16135_v1  ;;  %v8021_v59 = vpop.f32.mrf.mxu0  ;;  %v16139_v12 = vld [vmem:[#allocation67_spill] sm:$0xff] }
 0x818   : > { %v6137_v55 = vmul.f32 %v14342_v47, %v6121_v34  ;;  %9091 = vrcp.f32 %v6023_v36  ;;  %v6184_v35 = vadd.f32 %v6168_v4, %v6152_v43  ;;  %v6087_v14 = vmul.f32 %v6071_v17, %v16130_v5  ;;  %v16136_v47 = vld [vmem:[#allocation37_spill] sm:$0xff] }
 0x819   : > { %v6135_v37 = vmul.f32 %v6119_v31, %v14344_v40  ;;  %v6108_v52 = vmul.f32 2.0, %v14449_v26  ;;  %v6028_v10 = vadd.f32 %v6012_v61, %v14381_v57  ;;  %v6076_v53 = vmul.f32 %v14449_v26, %v14449_v26  ;;  %v16137_v4 = vld [vmem:[#allocation25_spill] sm:$0xff]  ;;  %v16141_v31 = vld [vmem:[#allocation51_spill] sm:$0xff] }
 0x81a   : > { %v14461_v6 = vadd.f32 %v14383_v42, %v14440_v8  ;;  %v6010_v20 = vmul.f32 %v14440_v8, %v16136_v47  ;;  %v6153_v43 = vadd.f32 %v6137_v55, %v6089_v18  ;;  %v6167_v5 = vmul.f32 %v5898_v51, %v16137_v4  ;;  %v16138_v17 = vld [vmem:[#allocation57_spill] sm:$0xff]  ;;  %v5914_v18 = vpop.f32.mrf.mxu0 }
 0x81b   : > { %v6124_v40 = vmul.f32 %v6108_v52, %v16138_v17  ;;  %v6172_v63 = vmul.f32 %v8020_v28, %v16139_v12  ;;  %v6182_v32 = vadd.f32 %v6166_v50, %v6150_v11  ;;  %v6151_v33 = vadd.f32 %v6135_v37, %v6087_v14  ;;  %v16140_v50 = vld [vmem:[#allocation39_spill] sm:$0xff] }
 0x81c   : > { %9093 = vrcp.f32 %v6028_v10  ;;  %v6026_v57 = vadd.f32 %v6010_v20, %v14383_v42  ;;  %v6074_v19 = vmul.f32 %v14461_v6, %v14461_v6  ;;  %v6106_v55 = vmul.f32 2.0, %v14461_v6 }
 0x81d   : > { %v14469_v34 = vpop.eup %9085  ;;  %v6140_v36 = vmul.f32 %v14346_v22, %v6124_v40  ;;  %v14476_v51 = vadd.f32 %v8021_v59, %v14385_v24  ;;  %v6092_v11 = vmul.f32 %v6076_v53, %v16135_v1  ;;  %v6013_v42 = vmul.f32 %v8021_v59, %v16140_v50  ;;  %v16143_v40 = vld [vmem:[#allocation40_spill] sm:$0xff] }
 0x81e   : > { %v6200_v28 = vmul.f32 %v14469_v34, %v6184_v35  ;;  %9095 = vrcp.f32 %v6026_v57  ;;  %v6185_v62 = vadd.f32 %v6169_v49, %v6153_v43  ;;  %v6122_v61 = vmul.f32 %v6106_v55, %v16141_v31  ;;  %v16144_v57 = vld [vmem:[#allocation30_spill] sm:$0xff] }
 0x81f   : > { %v6077_v22 = vmul.f32 %v14476_v51, %v14476_v51  ;;  %v6109_v14 = vmul.f32 2.0, %v14476_v51  ;;  %v6183_v10 = vadd.f32 %v6167_v5, %v6151_v33  ;;  %v6029_v35 = vadd.f32 %v6013_v42, %v14385_v24 }
 0x820   : > { %v14485_v37 = vpop.eup %9087  ;;  %v6216_v52 = vmul.f32 %v14469_v34, %v6200_v28  ;;  %v14490_v1 = vadd.f32 %v14395_v30, %v5914_v18  ;;  %v6156_v49 = vadd.f32 %v6140_v36, %v6092_v11  ;;  %v6090_v20 = vmul.f32 %v6074_v19, %v16136_v47  ;;  %v8024_v28 = vpop.f32.mrf.mxu0 }
 0x821   : > { %v6198_v53 = vmul.f32 %v14485_v37, %v6182_v32  ;;  %v6138_v43 = vmul.f32 %v6122_v61, %v14348_v2  ;;  %9097 = vrcp.f32 %v6029_v35  ;;  %v6125_v12 = vmul.f32 %v6109_v14, %v16143_v40  ;;  %v16145_v61 = vld [vmem:[#allocation60_spill] sm:$0xff] }
 0x822   : > { %16142 = vst [vmem:[#allocation122_spill] sm:$0xff] %v14490_v1  ;;  %v14495_v4 = vpop.eup %9089  ;;  %v6232_v17 = vmax.f32 %v6216_v52, 1e-24  ;;  %v6011_v5 = vmul.f32 %v5914_v18, %v16144_v57  ;;  %v6093_v32 = vmul.f32 %v6077_v22, %v16140_v50  ;;  %v6075_v2 = vmul.f32 %v14490_v1, %v14490_v1  ;;  %v16147_v52 = vld [vmem:[#allocation38_spill] sm:$0xff] }
 0x823   : > { %v6214_v24 = vmul.f32 %v14485_v37, %v6198_v53  ;;  %v6201_v33 = vmul.f32 %v14495_v4, %v6185_v62  ;;  %v6154_v55 = vadd.f32 %v6138_v43, %v6090_v20  ;;  %v6141_v36 = vmul.f32 %v14350_v58, %v6125_v12 }
 0x824   : > { %v6027_v47 = vadd.f32 %v6011_v5, %v14395_v30  ;;  %v6107_v19 = vmul.f32 2.0, %v14490_v1  ;;  %v14509_v42 = vmin.f32 %v6232_v17, 0.999998  ;;  %v6170_v50 = vmul.f32 %v14440_v8, %v16145_v61  ;;  %v16146_v30 = vld [vmem:[#allocation48_spill] sm:$0xff]  ;;  %v5927_v8 = vpop.f32.mrf.mxu0  ;;  %v16152_v61 = vld [vmem:[#allocation98_spill] sm:$0xff] }
 0x825   : > { %v14507_v11 = vpop.eup %9091  ;;  %v6230_v31 = vmax.f32 %v6214_v24, 1e-24  ;;  %v6217_v62 = vmul.f32 %v14495_v4, %v6201_v33  ;;  %v6157_v22 = vadd.f32 %v6141_v36, %v6093_v32  ;;  %v6173_v14 = vmul.f32 %v8021_v59, %v16146_v30  ;;  %v16149_v24 = vld [vmem:[#allocation46_spill] sm:$0xff]  ;;  %v16154_v30 = vld [vmem:[#allocation41_spill] sm:$0xff] }
 0x826   : > { %v6199_v58 = vmul.f32 %v14507_v11, %v6183_v10  ;;  %v6123_v35 = vmul.f32 %v6107_v19, %v16147_v52  ;;  %v6188_v20 = vadd.f32 %v6172_v63, %v6156_v49  ;;  %v6186_v43 = vadd.f32 %v6170_v50, %v6154_v55  ;;  %v16150_v49 = vld [vmem:[#allocation36_spill] sm:$0xff]  ;;  %v8025_v52 = vpop.f32.mrf.mxu0 }
 0x827   : > { %v6233_v53 = vmax.f32 %v6217_v62, 1e-24  ;;  %9099 = vrcp.f32 %v6027_v47  ;;  %v14517_v40 = vmin.f32 %v6230_v31, 0.999998  ;;  %v6091_v12 = vmul.f32 %v6075_v2, %v16144_v57 }
 0x828   : > { %v6215_v17 = vmul.f32 %v14507_v11, %v6199_v58  ;;  %v14522_v5 = vadd.f32 %v8024_v28, %v14397_v38  ;;  %9101 = vrsqrt.f32 %v14509_v42  ;;  %v6139_v59 = vmul.f32 %v6123_v35, %v14352_v16 }
 0x829   : > { %v14524_v10 = vpop.eup %9093  ;;  %v6171_v63 = vmul.f32 %v5914_v18, %v16149_v24  ;;  %v6016_v33 = vmul.f32 %v8024_v28, %v16150_v49  ;;  %v14530_v55 = vmin.f32 %v6233_v53, 0.999998  ;;  %v6189_v57 = vadd.f32 %v6173_v14, %v6157_v22  ;;  %v16153_v22 = vld [vmem:[#allocation86_spill] sm:$0xff] }
 0x82a   : > { %16148 = vst [vmem:[#allocation58_spill] sm:$0xff] %v14522_v5  ;;  %v6231_v32 = vmax.f32 %v6215_v17, 1e-24  ;;  %v6204_v36 = vmul.f32 %v14524_v10, %v6188_v20  ;;  %v6080_v19 = vmul.f32 %v14522_v5, %v14522_v5  ;;  %v6112_v31 = vmul.f32 2.0, %v14522_v5 }
 0x82b   : > { %v14533_v47 = vpop.eup %9095  ;;  %v6032_v2 = vadd.f32 %v6016_v33, %v14397_v38  ;;  %v14540_v16 = vadd.f32 %v14399_v23, %v5927_v8  ;;  %9103 = vrsqrt.f32 %v14517_v40  ;;  %v6176_v50 = vmul.f32 %v8024_v28, %v16152_v61 }
 0x82c   : > { %v6220_v18 = vmul.f32 %v14524_v10, %v6204_v36  ;;  %v6202_v62 = vmul.f32 %v14533_v47, %v6186_v43  ;;  %v6155_v58 = vadd.f32 %v6139_v59, %v6091_v12  ;;  %v6128_v38 = vmul.f32 %v6112_v31, %v16153_v22  ;;  %v16155_v31 = vld [vmem:[#allocation82_spill] sm:$0xff] }
 0x82d   : > { %16151 = vst [vmem:[#allocation167_spill] sm:$0xff] %v14540_v16  ;;  %9105 = vrcp.f32 %v6032_v2  ;;  %v6014_v14 = vmul.f32 %v5927_v8, %v16154_v30  ;;  %v14549_v35 = vmin.f32 %v6231_v32, 0.999998  ;;  %v6096_v43 = vmul.f32 %v6080_v19, %v16150_v49 }
 0x82e   : > { %9107 = vrsqrt.f32 %v14530_v55  ;;  %v6236_v53 = vmax.f32 %v6220_v18, 1e-24  ;;  %v6218_v20 = vmul.f32 %v14533_v47, %v6202_v62  ;;  %v14552_v17 = vpop.eup %9097  ;;  %v6144_v28 = vmul.f32 %v14354_v7, %v6128_v38  ;;  %v5930_v7 = vpop.f32.mrf.mxu0  ;;  %v16157_v62 = vld [vmem:[#allocation47_spill] sm:$0xff]  ;;  %v16158_v38 = vld [vmem:[#allocation92_spill] sm:$0xff] }
 0x82f   : > { %v6030_v12 = vadd.f32 %v6014_v14, %v14399_v23  ;;  %v6110_v59 = vmul.f32 2.0, %v14540_v16  ;;  %v6205_v36 = vmul.f32 %v14552_v17, %v6189_v57  ;;  %v6078_v32 = vmul.f32 %v14540_v16, %v14540_v16 }
 0x830   : > { %v14558_v24 = vmin.f32 %v6236_v53, 0.999998  ;;  %v6234_v33 = vmax.f32 %v6218_v20, 1e-24  ;;  %v6160_v2 = vadd.f32 %v6144_v28, %v6096_v43  ;;  %v14565_v49 = vadd.f32 %v8025_v52, %v14401_v48 }
 0x831   : > { %9109 = vrcp.f32 %v6030_v12  ;;  %v6126_v18 = vmul.f32 %v6110_v59, %v16155_v31  ;;  %v6221_v23 = vmul.f32 %v14552_v17, %v6205_v36  ;;  %v6187_v19 = vadd.f32 %v6171_v63, %v6155_v58 }
 0x832   : > { %16156 = vst [vmem:[#allocation161_spill] sm:$0xff] %v14565_v49  ;;  %9111 = vrsqrt.f32 %v14549_v35  ;;  %v6017_v61 = vmul.f32 %v8025_v52, %v16157_v62  ;;  %v14570_v22 = vmin.f32 %v6234_v33, 0.999998  ;;  %v6174_v14 = vmul.f32 %v5927_v8, %v16158_v38  ;;  %v8028_v8 = vpop.f32.mrf.mxu0 }
 0x833   : > { %v6142_v57 = vmul.f32 %v6126_v18, %v14356_v25  ;;  %v6113_v53 = vmul.f32 2.0, %v14565_v49  ;;  %v6237_v43 = vmax.f32 %v6221_v23, 1e-24  ;;  %v6094_v28 = vmul.f32 %v6078_v32, %v16154_v30  ;;  %v16160_v25 = vld [vmem:[#allocation69_spill] sm:$0xff]  ;;  %v16162_v30 = vld [vmem:[#allocation34_spill] sm:$0xff] }
 0x834   : > { %v14575_v20 = vpop.eup %9099  ;;  %v6033_v12 = vadd.f32 %v6017_v61, %v14401_v48  ;;  %v6081_v63 = vmul.f32 %v14565_v49, %v14565_v49  ;;  %9113 = vrsqrt.f32 %v14558_v24  ;;  %v6192_v59 = vadd.f32 %v6176_v50, %v6160_v2 }
 0x835   : > { %16159 = vst [vmem:[#allocation153_spill] sm:$0xff] %v14575_v20  ;;  %v6203_v58 = vmul.f32 %v14575_v20, %v6187_v19  ;;  %v6129_v33 = vmul.f32 %v6113_v53, %v16160_v25  ;;  %v14584_v36 = vpop.eup %9101  ;;  %v6158_v31 = vadd.f32 %v6142_v57, %v6094_v28  ;;  %v14587_v18 = vadd.f32 %v14409_v27, %v5930_v7  ;;  %v16163_v19 = vld [vmem:[#allocation79_spill] sm:$0xff] }
 0x836   : > { %9115 = vrcp.f32 %v6033_v12  ;;  %v6015_v48 = vmul.f32 %v5930_v7, %v16162_v30  ;;  %v14591_v32 = vmin.f32 %v6237_v43, 0.999998  ;;  %v6177_v50 = vmul.f32 %v8025_v52, %v16163_v19  ;;  %v5943_v52 = vpop.f32.mrf.mxu0 }
 0x837   : > { %16161 = vst [vmem:[#allocation156_spill] sm:$0xff] %v14587_v18  ;;  %9117 = vrsqrt.f32 %v14570_v22  ;;  %v6219_v23 = vmul.f32 %v14575_v20, %v6203_v58  ;;  %v6097_v2 = vmul.f32 %v6081_v63, %v16157_v62  ;;  %v6079_v57 = vmul.f32 %v14587_v18, %v14587_v18  ;;  %v16165_v58 = vld [vmem:[#allocation11_spill] sm:$0xff] }
 0x838   : > { %v6031_v61 = vadd.f32 %v6015_v48, %v14409_v27  ;;  %v6111_v38 = vmul.f32 2.0, %v14587_v18  ;;  %v14600_v53 = vpop.eup %9103  ;;  %v6145_v12 = vmul.f32 %v14358_v39, %v6129_v33  ;;  %v14604_v43 = vadd.f32 %v8028_v8, %v14411_v46  ;;  %v16167_v27 = vld [vmem:[#allocation63_spill] sm:$0xff]  ;;  %v8029_v1 = vpop.f32.mrf.mxu0 }
 0x839   : > { %v6235_v28 = vmax.f32 %v6219_v23, 1e-24  ;;  %v6020_v25 = vmul.f32 %v8028_v8, %v16165_v58  ;;  %v6190_v62 = vadd.f32 %v6174_v14, %v6158_v31  ;;  %v16168_v48 = vld [vmem:[#allocation75_spill] sm:$0xff]  ;;  %v6095_v33 = vmul.f32 %v6079_v57, %v16162_v30  ;;  %v16172_v57 = vld [vmem:[#allocation102_spill] sm:$0xff] }
 0x83a   : > { %16164 = vst [vmem:[#allocation135_spill] sm:$0xff] %v14604_v43  ;;  %v14607_v19 = vpop.eup %9105  ;;  %9119 = vrcp.f32 %v6031_v61  ;;  %v6127_v63 = vmul.f32 %v6111_v38, %v16167_v27  ;;  %v6175_v49 = vmul.f32 %v5930_v7, %v16168_v48  ;;  %v6116_v14 = vmul.f32 2.0, %v14604_v43  ;;  %v16170_v38 = vld [vmem:[#allocation110_spill] sm:$0xff]  ;;  %v16171_v48 = vld [vmem:[#allocation72_spill] sm:$0xff] }
 0x83b   : > { %16166 = vst [vmem:[#allocation13_spill] sm:$0xff] %v14607_v19  ;;  %v14611_v18 = vpop.eup %9107  ;;  %9121 = vrsqrt.f32 %v14591_v32  ;;  %v6208_v39 = vmul.f32 %v14607_v19, %v6192_v59  ;;  %v6036_v23 = vadd.f32 %v6020_v25, %v14411_v46  ;;  %v14617_v16 = vmin.f32 %v6235_v28, 0.999998 }
 0x83c   : > { %v6143_v5 = vmul.f32 %v6127_v63, %v14360_v45  ;;  %v14622_v31 = vadd.f32 %v14413_v3, %v5943_v52  ;;  %v6161_v61 = vadd.f32 %v6145_v12, %v6097_v2  ;;  %v6180_v27 = vmul.f32 %v8028_v8, %v16170_v38 }
 0x83d   : > { %v6224_v7 = vmul.f32 %v14607_v19, %v6208_v39  ;;  %v6018_v59 = vmul.f32 %v5943_v52, %v16171_v48  ;;  %9123 = vrcp.f32 %v6036_v23  ;;  %v6084_v45 = vmul.f32 %v14604_v43, %v14604_v43 }
 0x83e   : > { %16169 = vst [vmem:[#allocation168_spill] sm:$0xff] %v14622_v31  ;;  %v14627_v30 = vpop.eup %9109  ;;  %v6159_v46 = vadd.f32 %v6143_v5, %v6095_v33  ;;  %v6132_v28 = vmul.f32 %v6116_v14, %v16172_v57  ;;  %v6082_v8 = vmul.f32 %v14622_v31, %v14622_v31  ;;  %9125 = vrsqrt.f32 %v14617_v16  ;;  %v16174_v57 = vld [vmem:[#allocation84_spill] sm:$0xff] }
 0x83f   : > { %v14632_v25 = vpop.eup %9111  ;;  %v6240_v63 = vmax.f32 %v6224_v7, 1e-24  ;;  %v6206_v39 = vmul.f32 %v14627_v30, %v6190_v62  ;;  %v6034_v2 = vadd.f32 %v6018_v59, %v14413_v3  ;;  %v6114_v12 = vmul.f32 2.0, %v14622_v31  ;;  %v16173_v7 = vld [vmem:[#allocation105_spill] sm:$0xff] }
 0x840   : > { %v6148_v5 = vmul.f32 %v14362_v15, %v6132_v28  ;;  %v14642_v33 = vadd.f32 %v8029_v1, %v14416_v56  ;;  %v6193_v14 = vadd.f32 %v6177_v50, %v6161_v61  ;;  %v6178_v62 = vmul.f32 %v5943_v52, %v16173_v7  ;;  %v5946_v28 = vpop.f32.mrf.mxu0 }
 0x841   : > { %v6222_v23 = vmul.f32 %v14627_v30, %v6206_v39  ;;  %9127 = vrcp.f32 %v6034_v2  ;;  %v14646_v38 = vpop.eup %9113  ;;  %v6191_v3 = vadd.f32 %v6175_v49, %v6159_v46  ;;  %v6100_v59 = vmul.f32 %v6084_v45, %v16165_v58  ;;  %v16175_v2 = vld [vmem:[#allocation89_spill] sm:$0xff] }
 0x842   : > { %v6130_v43 = vmul.f32 %v6114_v12, %v16174_v57  ;;  %v6021_v15 = vmul.f32 %v8029_v1, %v16055_v9  ;;  %v14653_v19 = vmin.f32 %v6240_v63, 0.999998  ;;  %v6098_v50 = vmul.f32 %v6082_v8, %v16171_v48 }
 0x843   : > { %v14651_v31 = vpop.eup %9115  ;;  %v6238_v20 = vmax.f32 %v6222_v23, 1e-24  ;;  %v6117_v61 = vmul.f32 2.0, %v14642_v33  ;;  %v6164_v46 = vadd.f32 %v6148_v5, %v6100_v59  ;;  %v6085_v63 = vmul.f32 %v14642_v33, %v14642_v33 }
 0x844   : > { %v14657_v52 = vpop.eup %9117  ;;  %v6209_v49 = vmul.f32 %v14651_v31, %v6193_v14  ;;  %v6146_v58 = vmul.f32 %v6130_v43, %v14364_v29  ;;  %v6037_v45 = vadd.f32 %v6021_v15, %v14416_v56  ;;  %v14668_v48 = vadd.f32 %v14418_v44, %v5946_v28 }
 0x845   : > { %v14662_v39 = vmin.f32 %v6238_v20, 0.999998  ;;  %v6133_v12 = vmul.f32 %v6117_v61, %v16175_v2  ;;  %v6019_v5 = vmul.f32 %v5946_v28, %v16058_v41  ;;  %v6181_v57 = vmul.f32 %v8029_v1, %v16059_v54 }
 0x846   : > { %v6225_v8 = vmul.f32 %v14651_v31, %v6209_v49  ;;  %v6162_v23 = vadd.f32 %v6146_v58, %v6098_v50  ;;  %9129 = vrcp.f32 %v6037_v45  ;;  %v6083_v56 = vmul.f32 %v14668_v48, %v14668_v48 }
 0x847   : > { %v14672_v14 = vpop.eup %9119  ;;  %9131 = vrsqrt.f32 %v14653_v19  ;;  %v6149_v29 = vmul.f32 %v14369_v13, %v6133_v12  ;;  %v6115_v20 = vmul.f32 2.0, %v14668_v48  ;;  %v6035_v15 = vadd.f32 %v6019_v5, %v14418_v44 }
 0x848   : > { %v14679_v43 = vpop.eup %9121  ;;  %v6241_v7 = vmax.f32 %v6225_v8, 1e-24  ;;  %v6207_v59 = vmul.f32 %v14672_v14, %v6191_v3  ;;  %9133 = vrsqrt.f32 %v14662_v39  ;;  %v6196_v50 = vadd.f32 %v6180_v27, %v6164_v46 }
 0x849   : > { %v6101_v61 = vmul.f32 %v6085_v63, %v16055_v9  ;;  %v6131_v13 = vmul.f32 %v6115_v20, %v16060_v60  ;;  %v6194_v58 = vadd.f32 %v6178_v62, %v6162_v23  ;;  %9135 = vrcp.f32 %v6035_v15 }
 0x84a   : > { %v6223_v49 = vmul.f32 %v14672_v14, %v6207_v59  ;;  %v6277_v45 = vmul.f32 %v14584_v36, %v14509_v42  ;;  %v14690_v2 = vpop.eup %9123  ;;  %v6099_v54 = vmul.f32 %v6083_v56, %v16058_v41  ;;  %vm6278_vm10 = vcmp.eq.f32.partialorder %v14509_v42, inf }
 0x84b   : > { %v6165_v3 = vadd.f32 %v6149_v29, %v6101_v61  ;;  %v6147_v44 = vmul.f32 %v6131_v13, %v14379_v21  ;;  %v14695_v1 = vmin.f32 %v6241_v7, 0.999998  ;;  %v6212_v60 = vmul.f32 %v14690_v2, %v6196_v50  ;;  %v14699_v62 = vpop.eup %9125 }
 0x84c   : > { %v6239_v9 = vmax.f32 %v6223_v49, 1e-24  ;;  %v6279_v27 = vsel %vm6278_vm10, %v14509_v42, %v6277_v45  ;;  %v6179_v36 = vmul.f32 %v5946_v28, %v16061_v0  ;;  %vm6280_vm11 = vcmp.eq.f32.partialorder %v14509_v42, 0.0 }
 0x84d   : > { %v6281_v46 = vand.u32 2147483648, %v14509_v42  ;;  %v6263_v41 = vmul.f32 %v14600_v53, %v14517_v40  ;;  %v6228_v12 = vmul.f32 %v14690_v2, %v6212_v60  ;;  %v6163_v8 = vadd.f32 %v6147_v44, %v6099_v54 }
 0x84e   : > { %v14706_v21 = vpop.eup %9127  ;;  %v14708_v63 = vmin.f32 %v6239_v9, 0.999998  ;;  %vm6264_vm12 = vcmp.eq.f32.partialorder %v14517_v40, inf  ;;  %v6267_v28 = vand.u32 2147483648, %v14517_v40  ;;  %9137 = vrsqrt.f32 %v14695_v1 }
 0x84f   : > { %v6210_v23 = vmul.f32 %v14706_v21, %v6194_v58  ;;  %v6282_v5 = vsel %vm6280_vm11, %v6281_v46, %v6279_v27  ;;  %v6265_v0 = vsel %vm6264_vm12, %v14517_v40, %v6263_v41  ;;  %v6244_v42 = vmax.f32 %v6228_v12, 1e-24 }
 0x850   : > { %v6392_v53 = vsub.f32 1.0, %v6282_v5  ;;  %vm6266_vm13 = vcmp.eq.f32.partialorder %v14517_v40, 0.0  ;;  %9139 = vrsqrt.f32 %v14708_v63  ;;  %v6284_v20 = vmul.f32 %v14611_v18, %v14530_v55 }
 0x851   : > { %v6226_v29 = vmul.f32 %v14706_v21, %v6210_v23  ;;  %v14719_v56 = vsel %vm6266_vm13, %v6267_v28, %v6265_v0  ;;  %v6197_v7 = vadd.f32 %v6181_v57, %v6165_v3  ;;  %v6195_v59 = vadd.f32 %v6179_v36, %v6163_v8 }
 0x852   : > { %9141 = vrcp.f32 %v6392_v53  ;;  %v6390_v15 = vsub.f32 1.0, %v14719_v56  ;;  %v14726_v61 = vmin.f32 %v6244_v42, 0.999998  ;;  %vm6285_vm14 = vcmp.eq.f32.partialorder %v14530_v55, inf }
 0x853   : > { %v14724_v50 = vpop.eup %9129  ;;  %v6242_v13 = vmax.f32 %v6226_v29, 1e-24  ;;  %9143 = vrcp.f32 %v6282_v5  ;;  %v6286_v18 = vsel %vm6285_vm14, %v14530_v55, %v6284_v20  ;;  %v6288_v57 = vand.u32 2147483648, %v14530_v55 }
 0x854   : > { %v14729_v40 = vpop.eup %9131  ;;  %v6213_v49 = vmul.f32 %v14724_v50, %v6197_v7  ;;  %9145 = vrcp.f32 %v14719_v56  ;;  %vm6287_vm15 = vcmp.eq.f32.partialorder %v14530_v55, 0.0  ;;  %v6270_v45 = vmul.f32 %v14632_v25, %v14549_v35 }
 0x855   : > { %v14735_v58 = vmin.f32 %v6242_v13, 0.999998  ;;  %9147 = vrcp.f32 %v6390_v15  ;;  %v14740_v3 = vpop.eup %9133  ;;  %v6289_v44 = vsel %vm6287_vm15, %v6288_v57, %v6286_v18  ;;  %vm6271_vm0 = vcmp.eq.f32.partialorder %v14549_v35, inf }
 0x856   : > { %v6229_v54 = vmul.f32 %v14724_v50, %v6213_v49  ;;  %v6274_v9 = vand.u32 2147483648, %v14549_v35  ;;  %v14745_v60 = vpop.eup %9135  ;;  %9149 = vrsqrt.f32 %v14726_v61  ;;  %v6393_v27 = vsub.f32 1.0, %v6289_v44 }
 0x857   : > { %v6272_v36 = vsel %vm6271_vm0, %v14549_v35, %v6270_v45  ;;  %vm6273_vm2 = vcmp.eq.f32.partialorder %v14549_v35, 0.0  ;;  %9151 = vrsqrt.f32 %v14735_v58  ;;  %v6211_v25 = vmul.f32 %v14745_v60, %v6195_v59 }
 0x858   : > { %v6245_v55 = vmax.f32 %v6229_v54, 1e-24  ;;  %v6275_v46 = vsel %vm6273_vm2, %v6274_v9, %v6272_v36  ;;  %9153 = vrcp.f32 %v6393_v27  ;;  %v6305_v12 = vmul.f32 %v14646_v38, %v14558_v24 }
 0x859   : > { %v6391_v41 = vsub.f32 1.0, %v6275_v46  ;;  %v6227_v23 = vmul.f32 %v14745_v60, %v6211_v25  ;;  %9155 = vrcp.f32 %v6289_v44  ;;  %vm6306_vm3 = vcmp.eq.f32.partialorder %v14558_v24, inf }
 0x85a   : > { %v14754_v8 = vmin.f32 %v6245_v55, 0.999998  ;;  %v6307_v35 = vsel %vm6306_vm3, %v14558_v24, %v6305_v12  ;;  %v6309_v0 = vand.u32 2147483648, %v14558_v24  ;;  %vm6308_vm4 = vcmp.eq.f32.partialorder %v14558_v24, 0.0 }
 0x85b   : > { %9157 = vrcp.f32 %v6391_v41  ;;  %v6291_v28 = vmul.f32 %v14657_v52, %v14570_v22  ;;  %v14763_v42 = vpop.eup %9137  ;;  %v6376_v38 = vadd.f32 1.0, %v6282_v5  ;;  %v6312_v29 = vmul.f32 %v14679_v43, %v14591_v32 }
 0x85c   : > { %9159 = vrcp.f32 %v6275_v46  ;;  %v14766_v53 = vsel %vm6308_vm4, %v6309_v0, %v6307_v35  ;;  %v6243_v7 = vmax.f32 %v6227_v23, 1e-24  ;;  %vm6292_vm5 = vcmp.eq.f32.partialorder %v14570_v22, inf }
 0x85d   : > { %9161 = vrsqrt.f32 %v14754_v8  ;;  %v14770_v20 = vpop.eup %9139  ;;  %v6396_v59 = vsub.f32 1.0, %v14766_v53  ;;  %v6295_v24 = vand.u32 2147483648, %v14570_v22  ;;  %v6293_v15 = vsel %vm6292_vm5, %v14570_v22, %v6291_v28 }
 0x85e   : > { %vm6294_vm6 = vcmp.eq.f32.partialorder %v14570_v22, 0.0  ;;  %vm6313_vm7 = vcmp.eq.f32.partialorder %v14591_v32, inf  ;;  %v6316_v5 = vand.u32 2147483648, %v14591_v32  ;;  %vm6315_vm8 = vcmp.eq.f32.partialorder %v14591_v32, 0.0 }
 0x85f   : > { %v9142_v52 = vpop.eup %9141  ;;  %v14781_v49 = vsel %vm6294_vm6, %v6295_v24, %v6293_v15  ;;  %v6314_v18 = vsel %vm6313_vm7, %v14591_v32, %v6312_v29  ;;  %v6374_v45 = vadd.f32 1.0, %v14719_v56  ;;  %9163 = vrcp.f32 %v6396_v59 }
 0x860   : > { %v14779_v13 = vpop.eup %9143  ;;  %v6411_v43 = vmul.f32 %v9142_v52, %v6376_v38  ;;  %v6394_v22 = vsub.f32 1.0, %v14781_v49  ;;  %v6317_v54 = vsel %vm6315_vm8, %v6316_v5, %v6314_v18  ;;  %v6377_v27 = vadd.f32 1.0, %v6289_v44 }
 0x861   : > { %v14785_v57 = vpop.eup %9145  ;;  %v6397_v36 = vsub.f32 1.0, %v6317_v54  ;;  %v6298_v55 = vmul.f32 %v14699_v62, %v14617_v16  ;;  %v6375_v41 = vadd.f32 1.0, %v6275_v46  ;;  %vm6299_vm9 = vcmp.eq.f32.partialorder %v14617_v16, inf }
 0x862   : > { %v9148_v9 = vpop.eup %9147  ;;  %9165 = vlog2.f32 %v6411_v43  ;;  %v14794_v12 = vmin.f32 %v6243_v7, 0.999998  ;;  %v6302_v23 = vand.u32 2147483648, %v14617_v16  ;;  %v6333_v44 = vmul.f32 %v14729_v40, %v14653_v19 }
 0x863   : > { %v6407_v25 = vmul.f32 %v9148_v9, %v6374_v45  ;;  %9167 = vrcp.f32 %v6394_v22  ;;  %v14792_v32 = vpop.eup %9149  ;;  %v6300_v56 = vsel %vm6299_vm9, %v14617_v16, %v6298_v55  ;;  %vm6301_vm10 = vcmp.eq.f32.partialorder %v14617_v16, 0.0 }
 0x864   : > { %v14800_v35 = vpop.eup %9151  ;;  %vm6334_vm11 = vcmp.eq.f32.partialorder %v14653_v19, inf  ;;  %v6337_v62 = vand.u32 2147483648, %v14653_v19  ;;  %v6303_v0 = vsel %vm6301_vm10, %v6302_v23, %v6300_v56  ;;  %v6319_v38 = vmul.f32 %v14740_v3, %v14662_v39 }
 0x865   : > { %9169 = vlog2.f32 %v6407_v25  ;;  %v9154_v46 = vpop.eup %9153  ;;  %v6335_v28 = vsel %vm6334_vm11, %v14653_v19, %v6333_v44  ;;  %v6395_v7 = vsub.f32 1.0, %v6303_v0  ;;  %vm6336_vm12 = vcmp.eq.f32.partialorder %v14653_v19, 0.0 }
 0x866   : > { %9171 = vrcp.f32 %v6397_v36  ;;  %v14808_v29 = vpop.eup %9155  ;;  %v6413_v40 = vmul.f32 %v9154_v46, %v6377_v27  ;;  %v6338_v59 = vsel %vm6336_vm12, %v6337_v62, %v6335_v28  ;;  %vm6320_vm13 = vcmp.eq.f32.partialorder %v14662_v39, inf }
 0x867   : > { %9173 = vrcp.f32 %v14766_v53  ;;  %v6400_v15 = vsub.f32 1.0, %v6338_v59  ;;  %vm6322_vm14 = vcmp.eq.f32.partialorder %v14662_v39, 0.0  ;;  %v6321_v5 = vsel %vm6320_vm13, %v14662_v39, %v6319_v38 }
 0x868   : > { %v9158_v16 = vpop.eup %9157  ;;  %9175 = vrsqrt.f32 %v14794_v12  ;;  %v6323_v19 = vand.u32 2147483648, %v14662_v39  ;;  %v6340_v43 = vmul.f32 %v14763_v42, %v14695_v1  ;;  %vm6341_vm15 = vcmp.eq.f32.partialorder %v14695_v1, inf }
 0x869   : > { %v14814_v24 = vpop.eup %9159  ;;  %9177 = vlog2.f32 %v6413_v40  ;;  %v6409_v52 = vmul.f32 %v9158_v16, %v6375_v41  ;;  %vm6343_vm0 = vcmp.eq.f32.partialorder %v14695_v1, 0.0  ;;  %v6344_v18 = vand.u32 2147483648, %v14695_v1 }
 0x86a   : > { %v14817_v3 = vpop.eup %9161  ;;  %9179 = vrcp.f32 %v6395_v7  ;;  %v6324_v45 = vsel %vm6322_vm14, %v6323_v19, %v6321_v5  ;;  %v6342_v22 = vsel %vm6341_vm15, %v14695_v1, %v6340_v43  ;;  %v6326_v9 = vmul.f32 %v14770_v20, %v14708_v63 }
 0x86b   : > { %9181 = vlog2.f32 %v6409_v52  ;;  %v6380_v27 = vadd.f32 1.0, %v14766_v53  ;;  %v6398_v39 = vsub.f32 1.0, %v6324_v45  ;;  %v14831_v42 = vsel %vm6343_vm0, %v6344_v18, %v6342_v22  ;;  %v16176_v22 = vld [vmem:[#allocation144_spill] sm:$0xff] }
 0x86c   : > { %9183 = vrcp.f32 %v6400_v15  ;;  %v9164_v36 = vpop.eup %9163  ;;  %v6378_v55 = vadd.f32 1.0, %v14781_v49  ;;  %v6401_v25 = vsub.f32 1.0, %v14831_v42  ;;  %v6381_v23 = vadd.f32 1.0, %v6317_v54 }
 0x86d   : > { %9185 = vrcp.f32 %v14781_v49  ;;  %v6419_v56 = vmul.f32 %v9164_v36, %v6380_v27  ;;  %vm6327_vm2 = vcmp.eq.f32.partialorder %v14708_v63, inf  ;;  %v6330_v44 = vand.u32 2147483648, %v14708_v63 }
 0x86e   : > { %9187 = vrcp.f32 %v6317_v54  ;;  %v6328_v53 = vsel %vm6327_vm2, %v14708_v63, %v6326_v9  ;;  %vm6329_vm3 = vcmp.eq.f32.partialorder %v14708_v63, 0.0  ;;  %v6361_v49 = vmul.f32 %v14792_v32, %v14726_v61 }
 0x86f   : > { %v9166_v41 = vpop.eup %9165  ;;  %9189 = vrcp.f32 %v6398_v39  ;;  %v6379_v54 = vadd.f32 1.0, %v6303_v0  ;;  %v14841_v38 = vsel %vm6329_vm3, %v6330_v44, %v6328_v53  ;;  %vm6362_vm4 = vcmp.eq.f32.partialorder %v14726_v61, inf  ;;  %v16178_v53 = vld [vmem:[#allocation154_spill] sm:$0xff] }
 0x870   : > { %v9168_v1 = vpop.eup %9167  ;;  %v6443_v20 = vmul.f32 0.6931472, %v9166_v41  ;;  %9191 = vrcp.f32 %v6401_v25  ;;  %v6399_v16 = vsub.f32 1.0, %v14841_v38  ;;  %v6363_v32 = vsel %vm6362_vm4, %v14726_v61, %v6361_v49  ;;  %v16180_v49 = vld [vmem:[#allocation134_spill] sm:$0xff] }
 0x871   : > { %9193 = vlog2.f32 %v6419_v56  ;;  %v6415_v62 = vmul.f32 %v9168_v1, %v6378_v55  ;;  %v6384_v19 = vadd.f32 1.0, %v6338_v59  ;;  %v6365_v43 = vand.u32 2147483648, %v14726_v61 }
 0x872   : > { %v9170_v46 = vpop.eup %9169  ;;  %v6472_v28 = vmul.f32 0.5, %v6443_v20  ;;  %9195 = vrcp.f32 %v6303_v0  ;;  %v16177_v9 = vcvt.s32.f32 %v16176_v22  ;;  %v6382_v39 = vadd.f32 1.0, %v6324_v45  ;;  %v16183_v22 = vld [vmem:[#allocation152_spill] sm:$0xff] }
 0x873   : > { %v9172_v40 = vpop.eup %9171  ;;  %v6439_v7 = vmul.f32 0.6931472, %v9170_v46  ;;  %9197 = vlog2.f32 %v6415_v62  ;;  %vm6364_vm5 = vcmp.eq.f32.partialorder %v14726_v61, 0.0  ;;  %v6347_v1 = vmul.f32 %v14800_v35, %v14735_v58 }
 0x874   : > { %v14845_v52 = vpop.eup %9173  ;;  %v6504_v63 = vmul.f32 %v14779_v13, %v6472_v28  ;;  %v6421_v15 = vmul.f32 %v9172_v40, %v6381_v23  ;;  %9199 = vrcp.f32 %v6338_v59  ;;  %v14856_v25 = vsel %vm6364_vm5, %v6365_v43, %v6363_v32 }
 0x875   : > { %v14849_v5 = vpop.eup %9175  ;;  %v6470_v0 = vmul.f32 0.5, %v6439_v7  ;;  %9201 = vrcp.f32 %v6399_v16  ;;  %v6404_v23 = vsub.f32 1.0, %v14856_v25  ;;  %v16179_v61 = vcvt.s32.f32 %v16178_v53 }
 0x876   : > { %v9178_v18 = vpop.eup %9177  ;;  %v6568_v27 = vmul.f32 %v16177_v9, %v6504_v63  ;;  %9203 = vlog2.f32 %v6421_v15  ;;  %vm6348_vm6 = vcmp.eq.f32.partialorder %v14735_v58, inf  ;;  %v6385_v16 = vadd.f32 1.0, %v14831_v42 }
 0x877   : > { %v9180_v13 = vpop.eup %9179  ;;  %v6502_v36 = vmul.f32 %v14785_v57, %v6470_v0  ;;  %v6445_v55 = vmul.f32 0.6931472, %v9178_v18  ;;  %9205 = vrcp.f32 %v6324_v45  ;;  %v6349_v63 = vsel %vm6348_vm6, %v14735_v58, %v6347_v1  ;;  %v16181_v0 = vld [vmem:[#allocation15_spill] sm:$0xff] }
 0x878   : > { %v9182_v41 = vpop.eup %9181  ;;  %v14859_v59 = vmul.f32 %v14469_v34, %v6568_v27  ;;  %v6417_v56 = vmul.f32 %v9180_v13, %v6379_v54  ;;  %9207 = vrcp.f32 %v14831_v42  ;;  %v6351_v15 = vand.u32 2147483648, %v14735_v58 }
 0x879   : > { %v9184_v20 = vpop.eup %9183  ;;  %v6566_v44 = vmul.f32 %v16179_v61, %v6502_v36  ;;  %v6473_v62 = vmul.f32 0.5, %v6445_v55  ;;  %v6441_v57 = vmul.f32 0.6931472, %v9182_v41  ;;  %vm6350_vm7 = vcmp.eq.f32.partialorder %v14735_v58, 0.0  ;;  %v16184_v41 = vld [vmem:[#allocation149_spill] sm:$0xff] }
 0x87a   : > { %v14867_v45 = vpop.eup %9185  ;;  %v6616_v34 = vmul.f32 %v14859_v59, %v16180_v49  ;;  %9209 = vlog2.f32 %v6417_v56  ;;  %v6427_v46 = vmul.f32 %v9184_v20, %v6384_v19  ;;  %v16182_v19 = vcvt.s32.f32 %v16181_v0 }
 0x87b   : > { %v14872_v28 = vpop.eup %9187  ;;  %v6582_v35 = vmul.f32 %v14485_v37, %v6566_v44  ;;  %v6505_v54 = vmul.f32 %v14808_v29, %v6473_v62  ;;  %v6471_v40 = vmul.f32 0.5, %v6441_v57  ;;  %9211 = vrcp.f32 %v6404_v23 }
 0x87c   : > { %v9190_v7 = vpop.eup %9189  ;;  %6634 = vadd.xlane.f32.xlu0 %v6616_v34  ;;  %9213 = vlog2.f32 %v6427_v46  ;;  %v14884_v13 = vsel %vm6350_vm7, %v6351_v15, %v6349_v63  ;;  %v6368_v42 = vmul.f32 %v14817_v3, %v14754_v8  ;;  %v16185_v56 = vcvt.s32.f32 %v16184_v41  ;;  %v16186_v3 = vld [vmem:[#allocation132_spill] sm:$0xff] }
 0x87d   : > { %v9192_v32 = vpop.eup %9191  ;;  %v6569_v43 = vmul.f32 %v16182_v19, %v6505_v54  ;;  %v6503_v18 = vmul.f32 %v14814_v24, %v6471_v40  ;;  %v6423_v37 = vmul.f32 %v9190_v7, %v6382_v39  ;;  %v6614_v9 = vmul.f32 %v6582_v35, %v16183_v22 }
 0x87e   : > { %v9194_v29 = vpop.eup %9193  ;;  %v6429_v27 = vmul.f32 %v9192_v32, %v6385_v16  ;;  %v6383_v58 = vadd.f32 1.0, %v14841_v38  ;;  %v6402_v1 = vsub.f32 1.0, %v14884_v13  ;;  %vm6369_vm8 = vcmp.eq.f32.partialorder %v14754_v8, inf }
 0x87f   : > { %v14888_v36 = vpop.eup %9195  ;;  %v6585_v55 = vmul.f32 %v14495_v4, %v6569_v43  ;;  %v6567_v23 = vmul.f32 %v16185_v56, %v6503_v18  ;;  %v6451_v24 = vmul.f32 0.6931472, %v9194_v29  ;;  %9215 = vlog2.f32 %v6423_v37  ;;  %v16189_v43 = vld [vmem:[#allocation119_spill] sm:$0xff] }
 0x880   : > { %v9198_v39 = vpop.eup %9197  ;;  %6630 = vadd.xlane.f32.xlu0 %v6614_v9  ;;  %9217 = vlog2.f32 %v6429_v27  ;;  %v6370_v44 = vsel %vm6369_vm8, %v14754_v8, %v6368_v42  ;;  %v6354_v57 = vmul.f32 %v14849_v5, %v14794_v12  ;;  %v6372_v34 = vand.u32 2147483648, %v14754_v8  ;;  %v16187_v5 = vld [vmem:[#allocation155_spill] sm:$0xff]  ;;  %v16190_v27 = vld [vmem:[#allocation17_spill] sm:$0xff] }
 0x881   : > { %v14896_v20 = vpop.eup %9199  ;;  %v6617_v53 = vmul.f32 %v6585_v55, %v16186_v3  ;;  %v6583_v4 = vmul.f32 %v14507_v11, %v6567_v23  ;;  %v6476_v61 = vmul.f32 0.5, %v6451_v24  ;;  %v6447_v49 = vmul.f32 0.6931472, %v9198_v39 }
 0x882   : > { %v9202_v62 = vpop.eup %9201  ;;  %9219 = vrcp.f32 %v6402_v1  ;;  %vm6371_vm9 = vcmp.eq.f32.partialorder %v14754_v8, 0.0  ;;  %v6791_v16 = vpack.c.bf16 %v6585_v55, %v14859_v59  ;;  %v16188_v0 = vcvt.s32.f32 %v16187_v5 }
 0x883   : > { %v9204_v46 = vpop.eup %9203  ;;  %6636 = vadd.xlane.f32.xlu1 %v6617_v53  ;;  %v6790_v54 = vpack.c.bf16 %v6583_v4, %v6582_v35  ;;  %v6508_v40 = vmul.f32 %v14845_v52, %v6476_v61  ;;  %v6425_v7 = vmul.f32 %v9202_v62, %v6383_v58  ;;  %v6474_v63 = vmul.f32 0.5, %v6447_v49  ;;  %v16192_v58 = vld [vmem:[#allocation117_spill] sm:$0xff] }
 0x884   : > { %v9206_v11 = vpop.eup %9205  ;;  %v6453_v15 = vmul.f32 0.6931472, %v9204_v46  ;;  %v14907_v32 = vsel %vm6371_vm9, %v6372_v34, %v6370_v44  ;;  %v6615_v18 = vmul.f32 %v6583_v4, %v16189_v43  ;;  %v6388_v22 = vadd.f32 1.0, %v14856_v25  ;;  %v16194_v46 = vld [vmem:[#allocation16_spill] sm:$0xff] }
 0x885   : > { %8046 = vmatprep.mubr.bf16.mxu1 %v6790_v54  ;;  %v6572_v19 = vmul.f32 %v16188_v0, %v6508_v40  ;;  %9221 = vlog2.f32 %v6425_v7  ;;  %v6405_v35 = vsub.f32 1.0, %v14907_v32  ;;  %v14913_v52 = vpop.eup %9207  ;;  %v6506_v8 = vmul.f32 %v14867_v45, %v6474_v63 }
 0x886   : > { %8047 = vmatmul.mubr.bf16.vlgmr.msra.gmra.mxu1 %v6791_v16  ;;  %v6477_v37 = vmul.f32 0.5, %v6453_v15  ;;  %9223 = vrcp.f32 %v14841_v38  ;;  %vm6355_vm10 = vcmp.eq.f32.partialorder %v14794_v12, inf  ;;  %v16191_v42 = vcvt.s32.f32 %v16190_v27  ;;  %v16197_v15 = vld [vmem:[#allocation20_spill] sm:$0xff] }
 0x887   : > { %v9210_v59 = vpop.eup %9209  ;;  %v14918_v29 = vmul.f32 %v14524_v10, %v6572_v19  ;;  %6632 = vadd.xlane.f32.xlu1 %v6615_v18  ;;  %9225 = vrcp.f32 %v6405_v35  ;;  %vm6357_vm11 = vcmp.eq.f32.partialorder %v14794_v12, 0.0  ;;  %v6356_v23 = vsel %vm6355_vm10, %v14794_v12, %v6354_v57  ;;  %v9291_v18 = vld [vmem:[%s9533_s18 + $0x70] sm:$0xff] }
 0x888   : > { %v9212_v9 = vpop.eup %9211  ;;  %v6570_v55 = vmul.f32 %v16191_v42, %v6506_v8  ;;  %v6509_v41 = vmul.f32 %v14872_v28, %v6477_v37  ;;  %v6449_v45 = vmul.f32 0.6931472, %v9210_v59  ;;  %v6358_v24 = vand.u32 2147483648, %v14794_v12  ;;  %v16199_v59 = vld [vmem:[#allocation13_spill] sm:$0xff] }
 0x889   : > { %v9214_v38 = vpop.eup %9213  ;;  %v6620_v10 = vmul.f32 %v14918_v29, %v14449_v26  ;;  %v6435_v56 = vmul.f32 %v9212_v9, %v6388_v22  ;;  %v16193_v1 = vcvt.s32.f32 %v16192_v58  ;;  %v16195_v54 = vcvt.s32.f32 %v16194_v46  ;;  %v16200_v9 = vld [vmem:[#allocation122_spill] sm:$0xff]  ;;  %v16204_v58 = vld [vmem:[#allocation147_spill] sm:$0xff] }
 0x88a   : > { %v6586_v39 = vmul.f32 %v14533_v47, %v6570_v55  ;;  %v6475_v53 = vmul.f32 0.5, %v6449_v45  ;;  %v6459_v4 = vmul.f32 0.6931472, %v9214_v38  ;;  %v14933_v28 = vsel %vm6357_vm11, %v6358_v24, %v6356_v23  ;;  %v16203_v23 = vld [vmem:[#allocation58_spill] sm:$0xff] }
 0x88b   : > { %v6573_v3 = vmul.f32 %v16193_v1, %v6509_v41  ;;  %6642 = vadd.xlane.f32.xlu0 %v6620_v10  ;;  %9227 = vlog2.f32 %v6435_v56  ;;  %v6403_v47 = vsub.f32 1.0, %v14933_v28  ;;  %v16198_v5 = vcvt.s32.f32 %v16197_v15  ;;  %v16201_v41 = vld [vmem:[#allocation18_spill] sm:$0xff] }
 0x88c   : > { %v9216_v61 = vpop.eup %9215  ;;  %v6507_v26 = vmul.f32 %v14888_v36, %v6475_v53  ;;  %v6480_v62 = vmul.f32 0.5, %v6459_v4  ;;  %v6618_v12 = vmul.f32 %v6586_v39, %v14461_v6  ;;  %9229 = vrcp.f32 %v14856_v25  ;;  %v16196_v6 = vld [vmem:[#allocation153_spill] sm:$0xff] }
 0x88d   : > { %v6589_v44 = vmul.f32 %v14552_v17, %v6573_v3  ;;  %v9218_v57 = vpop.eup %9217  ;;  %v6455_v49 = vmul.f32 0.6931472, %v9216_v61  ;;  %v6386_v17 = vadd.f32 1.0, %v14884_v13  ;;  %9231 = vrcp.f32 %v6403_v47 }
 0x88e   : > { %v6571_v40 = vmul.f32 %v16195_v54, %v6507_v26  ;;  %v6512_v7 = vmul.f32 %v14896_v20, %v6480_v62  ;;  %v6461_v63 = vmul.f32 0.6931472, %v9218_v57  ;;  %v6532_v35 = vshra.s32 %v9291_v18, 3  ;;  %v16206_v26 = vld [vmem:[#allocation167_spill] sm:$0xff]  ;;  %v16207_v57 = vld [vmem:[#allocation161_spill] sm:$0xff] }
 0x88f   : > { %v6621_v34 = vmul.f32 %v6589_v44, %v14476_v51  ;;  %v9220_v36 = vpop.eup %9219  ;;  %6638 = vadd.xlane.f32.xlu0 %v6618_v12  ;;  %v6478_v16 = vmul.f32 0.5, %v6455_v49  ;;  %v6389_v20 = vadd.f32 1.0, %v14907_v32  ;;  %v6793_v55 = vpack.c.bf16 %v6589_v44, %v14918_v29  ;;  %v16208_v49 = vld [vmem:[#allocation118_spill] sm:$0xff]  ;;  %v16211_v18 = vld [vmem:[#allocation135_spill] sm:$0xff] }
 0x890   : > { %v6587_v25 = vmul.f32 %v16196_v6, %v6571_v40  ;;  %v6576_v0 = vmul.f32 %v16198_v5, %v6512_v7  ;;  %v6431_v19 = vmul.f32 %v9220_v36, %v6386_v17  ;;  %v6481_v43 = vmul.f32 0.5, %v6461_v63 }
 0x891   : > { %6644 = vadd.xlane.f32.xlu1 %v6621_v34  ;;  %v6510_v51 = vmul.f32 %v9206_v11, %v6478_v16  ;;  %v16202_v45 = vcvt.s32.f32 %v16201_v41  ;;  %v16205_v1 = vcvt.s32.f32 %v16204_v58  ;;  %v6548_v29 = vand.u32 1, %v6532_v35  ;;  %v16210_v16 = vld [vmem:[#allocation156_spill] sm:$0xff] }
 0x892   : > { %v9222_v8 = vpop.eup %9221  ;;  %v6792_v37 = vpack.c.bf16 %v6587_v25, %v6586_v39  ;;  %v6592_v22 = vmul.f32 %v16199_v59, %v6576_v0  ;;  %v6619_v27 = vmul.f32 %v6587_v25, %v16200_v9  ;;  %9233 = vlog2.f32 %v6431_v19  ;;  %v9292_v0 = vld [vmem:[%s9533_s18 + $0x78] sm:$0xff] }
 0x893   : > { %v9224_v42 = vpop.eup %9223  ;;  %v6574_v38 = vmul.f32 %v16202_v45, %v6510_v51  ;;  %v6513_v11 = vmul.f32 %v14913_v52, %v6481_v43  ;;  %v6457_v10 = vmul.f32 0.6931472, %v9222_v8  ;;  %9235 = vrcp.f32 %v14884_v13 }
 0x894   : > { %v9226_v56 = vpop.eup %9225  ;;  %8050 = vmatprep.mubr.bf16.mxu1 %v6792_v37  ;;  %v6624_v24 = vmul.f32 %v6592_v22, %v16203_v23  ;;  %v6564_v54 = vcvt.s32.f32 %v6548_v29  ;;  %v6533_v19 = vshra.s32 %v9292_v0, 3  ;;  %v6606_v0 = vld [vmem:[#allocation3 + $0x40] sm:$0xff] }
 0x895   : > { %6640 = vadd.xlane.f32.xlu1 %v6619_v27  ;;  %8051 = vmatmul.mubr.bf16.gmra.mxu1 %v6793_v55  ;;  %v6590_v39 = vmul.f32 %v14627_v30, %v6574_v38  ;;  %v6577_v3 = vmul.f32 %v16205_v1, %v6513_v11  ;;  %v6479_v53 = vmul.f32 0.5, %v6457_v10  ;;  %v6437_v4 = vmul.f32 %v9226_v56, %v6389_v20  ;;  %v16214_v38 = vld [vmem:[#allocation168_spill] sm:$0xff] }
 0x896   : > { %6650 = vadd.xlane.f32.xlu0 %v6624_v24  ;;  %v16209_v30 = vcvt.s32.f32 %v16208_v49  ;;  %v6549_v20 = vand.u32 1, %v6533_v19 }
 0x897   : > { %v6593_v52 = vmul.f32 %v14651_v31, %v6577_v3  ;;  %v6511_v61 = vmul.f32 %v9224_v42, %v6479_v53  ;;  %9237 = vlog2.f32 %v6437_v4  ;;  %v6622_v62 = vmul.f32 %v6590_v39, %v16206_v26  ;;  %v16215_v3 = vld [vmem:[#allocation148_spill] sm:$0xff]  ;;  %v6598_v26 = vld [vmem:[#allocation3] sm:$0xff] }
 0x898   : > { %v9228_v44 = vpop.eup %9227  ;;  %9239 = vrcp.f32 %v14907_v32  ;;  %v6387_v31 = vadd.f32 1.0, %v14933_v28  ;;  %v6565_v55 = vcvt.s32.f32 %v6549_v20  ;;  %v16216_v53 = vcvt.s32.f32 %v16215_v3  ;;  %v6774_v3 = vld [vmem:[#allocation2 + $0x30] sm:$0xff] }
 0x899   : > { %v6625_v12 = vmul.f32 %v6593_v52, %v16207_v57  ;;  %v6575_v47 = vmul.f32 %v16209_v30, %v6511_v61  ;;  %v6467_v34 = vmul.f32 0.6931472, %v9228_v44  ;;  %v9230_v46 = vpop.eup %9229  ;;  %v6795_v25 = vpack.c.bf16 %v6593_v52, %v6592_v22  ;;  %v16212_v22 = vld [vmem:[#allocation143_spill] sm:$0xff] }
 0x89a   : > { %6646 = vadd.xlane.f32.xlu0 %v6622_v62  ;;  %v9232_v7 = vpop.eup %9231  ;;  %v16213_v9 = vcvt.s32.f32 %v16212_v22  ;;  %v6610_v22 = vld [vmem:[#allocation3 + $0x60] sm:$0xff] }
 0x89b   : > { %6652 = vadd.xlane.f32.xlu1 %v6625_v12  ;;  %v6591_v13 = vmul.f32 %v14672_v14, %v6575_v47  ;;  %v6484_v40 = vmul.f32 0.5, %v6467_v34  ;;  %v6433_v6 = vmul.f32 %v9232_v7, %v6387_v31  ;;  %v6601_v12 = vld [vmem:[#allocation3 + $0x18] sm:$0xff]  ;;  %v6604_v34 = vld [vmem:[#allocation3 + $0x30] sm:$0xff] }
 0x89c   : > { %v6605_v7 = vld [vmem:[#allocation3 + $0x38] sm:$0xff] }
 0x89d   : > { %v6794_v17 = vpack.c.bf16 %v6591_v13, %v6590_v39  ;;  %v6516_v36 = vmul.f32 %v9230_v46, %v6484_v40  ;;  %v6623_v63 = vmul.f32 %v6591_v13, %v16210_v16  ;;  %9241 = vlog2.f32 %v6433_v6  ;;  %v6602_v13 = vld [vmem:[#allocation3 + $0x20] sm:$0xff]  ;;  %v6603_v16 = vld [vmem:[#allocation3 + $0x28] sm:$0xff] }
 0x89e   : > { %9243 = vrcp.f32 %v14933_v28 }
 0x89f   : > { %v9234_v15 = vpop.eup %9233  ;;  %8054 = vmatprep.mubr.bf16.mxu1 %v6794_v17  ;;  %v6580_v5 = vmul.f32 %v6564_v54, %v6516_v36  ;;  %6648 = vadd.xlane.f32.xlu1 %v6623_v63 }
 0x8a0   : > { %8055 = vmatmul.mubr.bf16.gmra.mxu1 %v6795_v25  ;;  %v6463_v14 = vmul.f32 0.6931472, %v9234_v15  ;;  %v9236_v43 = vpop.eup %9235  ;;  %v6608_v25 = vld [vmem:[#allocation3 + $0x50] sm:$0xff] }
 0x8a1   : > { %v6596_v32 = vmul.f32 %v14690_v2, %v6580_v5 }
 0x8a2   : > { %v6482_v51 = vmul.f32 0.5, %v6463_v14 }
 0x8a3   : > { %v6628_v35 = vmul.f32 %v6596_v32, %v16211_v18  ;;  %v6607_v18 = vld [vmem:[#allocation3 + $0x48] sm:$0xff] }
 0x8a4   : > { %v9238_v8 = vpop.eup %9237  ;;  %v6514_v37 = vmul.f32 %v9236_v43, %v6482_v51 }
 0x8a5   : > { %6658 = vadd.xlane.f32.xlu0 %v6628_v35  ;;  %v6469_v59 = vmul.f32 0.6931472, %v9238_v8  ;;  %v9240_v41 = vpop.eup %9239  ;;  %v6612_v8 = vld [vmem:[#allocation3 + $0x70] sm:$0xff] }
 0x8a6   : > { %v6578_v27 = vmul.f32 %v16213_v9, %v6514_v37 }
 0x8a7   : > { %v6485_v42 = vmul.f32 0.5, %v6469_v59 }
 0x8a8   : > { %v6594_v45 = vmul.f32 %v14706_v21, %v6578_v27 }
 0x8a9   : > { %v6517_v2 = vmul.f32 %v9240_v41, %v6485_v42  ;;  %v6708_v42 = vld [vmem:[#allocation4 + $0x70] sm:$0xff]  ;;  %v6613_v41 = vld [vmem:[#allocation3 + $0x78] sm:$0xff] }
 0x8aa   : > { %v6626_v11 = vmul.f32 %v6594_v45, %v16214_v38  ;;  %v9242_v56 = vpop.eup %9241 }
 0x8ab   : > { %v6581_v10 = vmul.f32 %v6565_v55, %v6517_v2  ;;  %v6465_v23 = vmul.f32 0.6931472, %v9242_v56  ;;  %v9244_v58 = vpop.eup %9243 }
 0x8ac   : > { %6654 = vadd.xlane.f32.xlu0 %v6626_v11  ;;  %v6611_v11 = vld [vmem:[#allocation3 + $0x68] sm:$0xff] }
 0x8ad   : > { %v6597_v28 = vmul.f32 %v14724_v50, %v6581_v10  ;;  %v6483_v39 = vmul.f32 0.5, %v6465_v23  ;;  %v6600_v50 = vld [vmem:[#allocation3 + $0x10] sm:$0xff] }
 0x8af   : > { %v6629_v24 = vmul.f32 %v6597_v28, %v14642_v33  ;;  %v6515_v1 = vmul.f32 %v9244_v58, %v6483_v39  ;;  %v6797_v61 = vpack.c.bf16 %v6597_v28, %v6596_v32  ;;  %v6609_v32 = vld [vmem:[#allocation3 + $0x58] sm:$0xff] }
 0x8b0   : > { %6738 = vadd.xlane.f32.xlu0 %v6564_v54  ;;  %v6709_v28 = vld [vmem:[#allocation4 + $0x78] sm:$0xff] }
 0x8b1   : > { %6660 = vadd.xlane.f32.xlu1 %v6629_v24  ;;  %v6579_v4 = vmul.f32 %v16216_v53, %v6515_v1  ;;  %v6776_v24 = vld [vmem:[#allocation2 + $0x58] sm:$0xff] }
 0x8b3   : > { %v6595_v21 = vmul.f32 %v14745_v60, %v6579_v4 }
 0x8b5   : > { %v6796_v29 = vpack.c.bf16 %v6595_v21, %v6594_v45  ;;  %v6627_v52 = vmul.f32 %v6595_v21, %v14668_v48  ;;  %v6599_v48 = vld [vmem:[#allocation3 + $0x8] sm:$0xff]  ;;  %v6777_v21 = vld [vmem:[#allocation2 + $0x18] sm:$0xff] }
 0x8b7   : > { %8058 = vmatprep.mubr.bf16.mxu1 %v6796_v29  ;;  %6656 = vadd.xlane.f32.xlu1 %v6627_v52 }
 0x8b8   : > { %8059 = vmatmul.mubr.bf16.gmra.mxu1 %v6797_v61  ;;  %v6775_v61 = vld [vmem:[#allocation2] sm:$0xff] }
 0x8bb   : > { %6740 = vadd.xlane.f32.xlu1 %v6565_v55 }
 0x905   : > { %v6635_v33 = vpop.xlane.xlu0 %6634 }
 0x906   : > { %v6664_v44 = vadd.f32 %v6635_v33, %v6600_v50 }
 0x908   : > { %6680 = vst.msk [vmem:[#allocation3 + $0x10] sm:$0xff] %vm2312_vm1, %v6664_v44  ;;  %v6780_v44 = vld [vmem:[#allocation2 + $0x8] sm:$0xff] }
 0x909   : > { %v6631_v62 = vpop.xlane.xlu0 %6630 }
 0x90a   : > { %v6662_v57 = vadd.f32 %v6631_v62, %v6598_v26 }
 0x90c   : > { %6678 = vst.msk [vmem:[#allocation3] sm:$0xff] %vm2312_vm1, %v6662_v57  ;;  %v6637_v60 = vpop.xlane.xlu1 %6636  ;;  %v6778_v57 = vld [vmem:[#allocation2 + $0x50] sm:$0xff] }
 0x90d   : > { %v6665_v49 = vadd.f32 %v6637_v60, %v6601_v12 }
 0x90f   : > { %6681 = vst.msk [vmem:[#allocation3 + $0x18] sm:$0xff] %vm2312_vm1, %v6665_v49  ;;  %v6781_v49 = vld [vmem:[#allocation2 + $0x48] sm:$0xff] }
 0x910   : > { %v6633_v30 = vpop.xlane.xlu1 %6632 }
 0x911   : > { %v6663_v47 = vadd.f32 %v6633_v30, %v6599_v48 }
 0x913   : > { %6679 = vst.msk [vmem:[#allocation3 + $0x8] sm:$0xff] %vm2312_vm1, %v6663_v47  ;;  %v6779_v47 = vld [vmem:[#allocation2 + $0x68] sm:$0xff] }
 0x914   : > { %v6643_v46 = vpop.xlane.xlu0 %6642 }
 0x915   : > { %v6668_v54 = vadd.f32 %v6643_v46, %v6604_v34 }
 0x917   : > { %6684 = vst.msk [vmem:[#allocation3 + $0x30] sm:$0xff] %vm2312_vm1, %v6668_v54  ;;  %v6784_v54 = vld [vmem:[#allocation2 + $0x10] sm:$0xff] }
 0x918   : > { %v6639_v40 = vpop.xlane.xlu0 %6638 }
 0x919   : > { %v6666_v31 = vadd.f32 %v6639_v40, %v6602_v13 }
 0x91a   : > { %v6645_v17 = vpop.xlane.xlu1 %6644 }
 0x91b   : > { %v6669_v36 = vadd.f32 %v6645_v17, %v6605_v7  ;;  %6682 = vst.msk [vmem:[#allocation3 + $0x20] sm:$0xff] %vm2312_vm1, %v6666_v31  ;;  %v6782_v31 = vld [vmem:[#allocation2 + $0x40] sm:$0xff] }
 0x91d   : > { %6685 = vst.msk [vmem:[#allocation3 + $0x38] sm:$0xff] %vm2312_vm1, %v6669_v36  ;;  %v6785_v36 = vld [vmem:[#allocation2 + $0x38] sm:$0xff] }
 0x91e   : > { %v6641_v63 = vpop.xlane.xlu1 %6640 }
 0x91f   : > { %v6667_v6 = vadd.f32 %v6641_v63, %v6603_v16  ;;  %v6651_v15 = vpop.xlane.xlu0 %6650 }
 0x920   : > { %v6672_v5 = vadd.f32 %v6651_v15, %v6608_v25 }
 0x921   : > { %6683 = vst.msk [vmem:[#allocation3 + $0x28] sm:$0xff] %vm2312_vm1, %v6667_v6  ;;  %v6783_v6 = vld [vmem:[#allocation2 + $0x20] sm:$0xff] }
 0x922   : > { %6688 = vst.msk [vmem:[#allocation3 + $0x50] sm:$0xff] %vm2312_vm1, %v6672_v5  ;;  %v6788_v5 = vld [vmem:[#allocation2 + $0x78] sm:$0xff] }
 0x923   : > { %v6647_v19 = vpop.xlane.xlu0 %6646 }
 0x924   : > { %v6670_v14 = vadd.f32 %v6647_v19, %v6606_v0  ;;  %v6653_v51 = vpop.xlane.xlu1 %6652 }
 0x925   : > { %v6673_v43 = vadd.f32 %v6653_v51, %v6609_v32 }
 0x926   : > { %6686 = vst.msk [vmem:[#allocation3 + $0x40] sm:$0xff] %vm2312_vm1, %v6670_v14  ;;  %v6786_v14 = vld [vmem:[#allocation2 + $0x60] sm:$0xff] }
 0x927   : > { %6689 = vst.msk [vmem:[#allocation3 + $0x58] sm:$0xff] %vm2312_vm1, %v6673_v43  ;;  %v6789_v43 = vld [vmem:[#allocation2 + $0x28] sm:$0xff] }
 0x928   : > { %v6649_v35 = vpop.xlane.xlu1 %6648 }
 0x929   : > { %v6671_v20 = vadd.f32 %v6649_v35, %v6607_v18 }
 0x92b   : > { %6687 = vst.msk [vmem:[#allocation3 + $0x48] sm:$0xff] %vm2312_vm1, %v6671_v20  ;;  %v6787_v20 = vld [vmem:[#allocation2 + $0x70] sm:$0xff] }
 0x92e   : > { %v6659_v37 = vpop.xlane.xlu0 %6658 }
 0x92f   : > { %v6676_v59 = vadd.f32 %v6659_v37, %v6612_v8 }
 0x931   : > { %6692 = vst.msk [vmem:[#allocation3 + $0x70] sm:$0xff] %vm2312_vm1, %v6676_v59 }
 0x935   : > { %v6655_v9 = vpop.xlane.xlu0 %6654 }
 0x936   : > { %v6674_v27 = vadd.f32 %v6655_v9, %v6610_v22 }
 0x938   : > { %6690 = vst.msk [vmem:[#allocation3 + $0x60] sm:$0xff] %vm2312_vm1, %v6674_v27 }
 0x939   : > { %v6739_v55 = vpop.xlane.xlu0 %6738 }
 0x93a   : > { %v6661_v45 = vpop.xlane.xlu1 %6660  ;;  %v6756_v2 = vadd.f32 %v6739_v55, %v6708_v42 }
 0x93b   : > { %v6677_v38 = vadd.f32 %v6661_v45, %v6613_v41 }
 0x93c   : > { %6772 = vst.msk [vmem:[#allocation4 + $0x70] sm:$0xff] %vm2312_vm1, %v6756_v2 }
 0x93d   : > { %6693 = vst.msk [vmem:[#allocation3 + $0x78] sm:$0xff] %vm2312_vm1, %v6677_v38 }
 0x940   : > { %v6657_v10 = vpop.xlane.xlu1 %6656 }
 0x941   : > { %v6675_v56 = vadd.f32 %v6657_v10, %v6611_v11 }
 0x943   : > { %6691 = vst.msk [vmem:[#allocation3 + $0x68] sm:$0xff] %vm2312_vm1, %v6675_v56 }
 0x944   : > { %v6741_v23 = vpop.xlane.xlu1 %6740 }
 0x945   : > { %v6757_v58 = vadd.f32 %v6741_v23, %v6709_v28 }
 0x946   : > { %v8048_v39 = vpop.f32.mrf.mxu1 }
 0x947   : > { %v6897_v1 = vadd.f32 %v8048_v39, %v6776_v24  ;;  %6773 = vst.msk [vmem:[#allocation4 + $0x78] sm:$0xff] %vm2312_vm1, %v6757_v58 }
 0x948   : > { %v6832_v53 = vpop.f32.mrf.mxu1 }
 0x949   : > { %6913 = vst [vmem:[#allocation2 + $0x58] sm:$0xff] %v6897_v1  ;;  %v6895_v4 = vadd.f32 %v6832_v53, %v6774_v3 }
 0x94a   : > { %v8049_v29 = vpop.f32.mrf.mxu1 }
 0x94b   : > { %6911 = vst [vmem:[#allocation2 + $0x30] sm:$0xff] %v6895_v4  ;;  %v6898_v52 = vadd.f32 %v8049_v29, %v6777_v21 }
 0x94c   : > { %v6835_v50 = vpop.f32.mrf.mxu1 }
 0x94d   : > { %6914 = vst [vmem:[#allocation2 + $0x18] sm:$0xff] %v6898_v52  ;;  %v6896_v33 = vadd.f32 %v6835_v50, %v6775_v61 }
 0x94f   : > { %6912 = vst [vmem:[#allocation2] sm:$0xff] %v6896_v33 }
 0x955   : > { %v8052_v26 = vpop.f32.mrf.mxu1 }
 0x956   : > { %v6901_v62 = vadd.f32 %v8052_v26, %v6780_v44 }
 0x957   : > { %v6848_v12 = vpop.f32.mrf.mxu1 }
 0x958   : > { %6917 = vst [vmem:[#allocation2 + $0x8] sm:$0xff] %v6901_v62  ;;  %v6899_v60 = vadd.f32 %v6848_v12, %v6778_v57 }
 0x959   : > { %v8053_v48 = vpop.f32.mrf.mxu1 }
 0x95a   : > { %6915 = vst [vmem:[#allocation2 + $0x50] sm:$0xff] %v6899_v60  ;;  %v6902_v30 = vadd.f32 %v8053_v48, %v6781_v49 }
 0x95b   : > { %v6851_v34 = vpop.f32.mrf.mxu1 }
 0x95c   : > { %6918 = vst [vmem:[#allocation2 + $0x48] sm:$0xff] %v6902_v30  ;;  %v6900_v46 = vadd.f32 %v6851_v34, %v6779_v47 }
 0x95e   : > { %6916 = vst [vmem:[#allocation2 + $0x68] sm:$0xff] %v6900_v46 }
 0x960   : > { %v8056_v13 = vpop.f32.mrf.mxu1 }
 0x961   : > { %v6905_v40 = vadd.f32 %v8056_v13, %v6784_v54 }
 0x962   : > { %v6864_v7 = vpop.f32.mrf.mxu1 }
 0x963   : > { %6921 = vst [vmem:[#allocation2 + $0x10] sm:$0xff] %v6905_v40  ;;  %v6903_v17 = vadd.f32 %v6864_v7, %v6782_v31 }
 0x964   : > { %v8057_v16 = vpop.f32.mrf.mxu1 }
 0x965   : > { %6919 = vst [vmem:[#allocation2 + $0x40] sm:$0xff] %v6903_v17  ;;  %v6906_v63 = vadd.f32 %v8057_v16, %v6785_v36 }
 0x966   : > { %v6867_v25 = vpop.f32.mrf.mxu1 }
 0x967   : > { %6922 = vst [vmem:[#allocation2 + $0x38] sm:$0xff] %v6906_v63  ;;  %v6904_v15 = vadd.f32 %v6867_v25, %v6783_v6 }
 0x969   : > { %6920 = vst [vmem:[#allocation2 + $0x20] sm:$0xff] %v6904_v15 }
 0x978   : > { %v8060_v0 = vpop.f32.mrf.mxu1 }
 0x979   : > { %v6909_v19 = vadd.f32 %v8060_v0, %v6788_v5 }
 0x97a   : > { %v6880_v32 = vpop.f32.mrf.mxu1 }
 0x97b   : > { %6925 = vst [vmem:[#allocation2 + $0x78] sm:$0xff] %v6909_v19  ;;  %v6907_v51 = vadd.f32 %v6880_v32, %v6786_v14 }
 0x97c   : > { %v8061_v18 = vpop.f32.mrf.mxu1 }
 0x97d   : > { %6923 = vst [vmem:[#allocation2 + $0x60] sm:$0xff] %v6907_v51  ;;  %v6910_v35 = vadd.f32 %v8061_v18, %v6789_v43 }
 0x97e   : > { %v6883_v8 = vpop.f32.mrf.mxu1 }
 0x97f   : > { %6926 = vst [vmem:[#allocation2 + $0x28] sm:$0xff] %v6910_v35  ;;  %v6908_v37 = vadd.f32 %v6883_v8, %v6787_v20 }
 0x981   : > { %6924 = vst [vmem:[#allocation2 + $0x70] sm:$0xff] %v6908_v37 }
 0x982 PF: > { %p7482_p5 = scmp.ne.s32.totalorder %s9379_s25, 1 }
 0x984   : > { %6930 = sbr.rel (%p7482_p5) target bundleno = 2662 (0xa66), region = 86 }
 0x989   : > { %v6981_v59 = vld [vmem:[#allocation3 + $0x10] sm:$0xff]  ;;  %v6979_v22 = vld [vmem:[#allocation3] sm:$0xff]  ;;  %v9401_v9 = vmov 0   ;;  %v6982_v27 = vld [vmem:[#allocation3 + $0x18] sm:$0xff] }
 0x98a   : > { %9294 = vset.pattern.permute.xlu1 %v9401_v9  ;;  %9293 = vset.pattern.permute.xlu0 %v9401_v9  ;;  %v6980_v42 = vld [vmem:[#allocation3 + $0x8] sm:$0xff]  ;;  %v6983_v41 = vld [vmem:[#allocation3 + $0x20] sm:$0xff]  ;;  %v6986_v45 = vld [vmem:[#allocation3 + $0x38] sm:$0xff] }
 0x98b   : > { %7023 = vperm.xlu1 %9294, %v6981_v59   ;;  %7013 = vperm.xlu0 %9293, %v6979_v22   ;;  %v6984_v55 = vld [vmem:[#allocation3 + $0x28] sm:$0xff]  ;;  %v6985_v2 = vld [vmem:[#allocation3 + $0x30] sm:$0xff]  ;;  %v6987_v11 = vld [vmem:[#allocation3 + $0x40] sm:$0xff] }
 0x98c   : > { %v6988_v38 = vld [vmem:[#allocation3 + $0x48] sm:$0xff]  ;;  %v6990_v10 = vld [vmem:[#allocation3 + $0x58] sm:$0xff]  ;;  %v6989_v56 = vld [vmem:[#allocation3 + $0x50] sm:$0xff] }
 0x98d   : > { %v6992_v28 = vld [vmem:[#allocation3 + $0x68] sm:$0xff]  ;;  %v6991_v23 = vld [vmem:[#allocation3 + $0x60] sm:$0xff]  ;;  %v6994_v24 = vld [vmem:[#allocation3 + $0x78] sm:$0xff] }
 0x98e   : > { %v6993_v39 = vld [vmem:[#allocation3 + $0x70] sm:$0xff]  ;;  %v7108_v58 = vld [vmem:[#allocation6 + $0x8] sm:$0xff]  ;;  %v7107_v1 = vld [vmem:[#allocation6] sm:$0xff] }
 0x98f   : > { %7028 = vperm.xlu1 %9294, %v6982_v27   ;;  %7018 = vperm.xlu0 %9293, %v6980_v42   ;;  %v7110_v3 = vld [vmem:[#allocation6 + $0x18] sm:$0xff]  ;;  %v7109_v53 = vld [vmem:[#allocation6 + $0x10] sm:$0xff]  ;;  %v7112_v4 = vld [vmem:[#allocation6 + $0x28] sm:$0xff] }
 0x990   : > { %v7111_v21 = vld [vmem:[#allocation6 + $0x20] sm:$0xff]  ;;  %v6932_v29 = vld [vmem:[#allocation4 + $0x8] sm:$0xff]  ;;  %v7114_v52 = vld [vmem:[#allocation6 + $0x38] sm:$0xff] }
 0x991   : > { %v7113_v61 = vld [vmem:[#allocation6 + $0x30] sm:$0xff]  ;;  %v6931_v50 = vld [vmem:[#allocation4] sm:$0xff]  ;;  %v6948_v33 = vmax.f32 %v6932_v29, 1.0  ;;  %v6934_v26 = vld [vmem:[#allocation4 + $0x18] sm:$0xff] }
 0x992   : > { %v6947_v44 = vmax.f32 %v6931_v50, 1.0  ;;  %v7116_v62 = vld [vmem:[#allocation6 + $0x48] sm:$0xff]  ;;  %v7115_v57 = vld [vmem:[#allocation6 + $0x40] sm:$0xff]  ;;  %v6933_v12 = vld [vmem:[#allocation4 + $0x10] sm:$0xff]  ;;  %v6950_v60 = vmax.f32 %v6934_v26, 1.0 }
 0x993   : > { %7038 = vperm.xlu1 %9294, %v6984_v55   ;;  %7033 = vperm.xlu0 %9293, %v6983_v41   ;;  %9295 = vrcp.f32 %v6948_v33  ;;  %v6949_v49 = vmax.f32 %v6933_v12, 1.0  ;;  %v6936_v48 = vld [vmem:[#allocation4 + $0x28] sm:$0xff]  ;;  %v7118_v30 = vld [vmem:[#allocation6 + $0x58] sm:$0xff]  ;;  %v7117_v47 = vld [vmem:[#allocation6 + $0x50] sm:$0xff] }
 0x994   : > { %9297 = vrcp.f32 %v6947_v44  ;;  %v6935_v34 = vld [vmem:[#allocation4 + $0x20] sm:$0xff]  ;;  %v6952_v46 = vmax.f32 %v6936_v48, 1.0  ;;  %v6938_v13 = vld [vmem:[#allocation4 + $0x38] sm:$0xff]  ;;  %v7120_v40 = vld [vmem:[#allocation6 + $0x68] sm:$0xff] }
 0x995   : > { %9299 = vrcp.f32 %v6950_v60  ;;  %v6951_v54 = vmax.f32 %v6935_v34, 1.0  ;;  %v7119_v31 = vld [vmem:[#allocation6 + $0x60] sm:$0xff]  ;;  %v6937_v7 = vld [vmem:[#allocation4 + $0x30] sm:$0xff]  ;;  %v6954_v17 = vmax.f32 %v6938_v13, 1.0  ;;  %v6940_v16 = vld [vmem:[#allocation4 + $0x48] sm:$0xff] }
 0x996   : > { %9301 = vrcp.f32 %v6949_v49  ;;  %v6953_v36 = vmax.f32 %v6937_v7, 1.0  ;;  %v7122_v63 = vld [vmem:[#allocation6 + $0x78] sm:$0xff]  ;;  %v7121_v6 = vld [vmem:[#allocation6 + $0x70] sm:$0xff]  ;;  %v6939_v25 = vld [vmem:[#allocation4 + $0x40] sm:$0xff]  ;;  %v6956_v15 = vmax.f32 %v6940_v16, 1.0 }
 0x997   : > { %7048 = vperm.xlu1 %9294, %v6986_v45   ;;  %7043 = vperm.xlu0 %9293, %v6985_v2   ;;  %9303 = vrcp.f32 %v6952_v46  ;;  %v6955_v0 = vmax.f32 %v6939_v25, 1.0  ;;  %v6942_v19 = vld [vmem:[#allocation4 + $0x58] sm:$0xff]  ;;  %v6941_v32 = vld [vmem:[#allocation4 + $0x50] sm:$0xff]  ;;  %v6944_v35 = vld [vmem:[#allocation4 + $0x68] sm:$0xff] }
 0x998   : > { %9305 = vrcp.f32 %v6951_v54  ;;  %v6958_v51 = vmax.f32 %v6942_v19, 1.0  ;;  %v6957_v18 = vmax.f32 %v6941_v32, 1.0  ;;  %v6943_v8 = vld [vmem:[#allocation4 + $0x60] sm:$0xff]  ;;  %v6960_v37 = vmax.f32 %v6944_v35, 1.0  ;;  %v6946_v9 = vld [vmem:[#allocation4 + $0x78] sm:$0xff]  ;;  %v6945_v42 = vld [vmem:[#allocation4 + $0x70] sm:$0xff] }
 0x999   : > { %9307 = vrcp.f32 %v6954_v17  ;;  %v6959_v22 = vmax.f32 %v6943_v8, 1.0  ;;  %v6962_v55 = vmax.f32 %v6946_v9, 1.0  ;;  %v6961_v45 = vmax.f32 %v6945_v42, 1.0  ;;  %v7124_v17 = vld [vmem:[#allocation2] sm:$0xff]  ;;  %v6996_v25 = vld [vmem:[#allocation5 + $0x68] sm:$0xff]  ;;  %v7125_v19 = vld [vmem:[#allocation2 + $0x58] sm:$0xff] }
 0x99a   : > { %9309 = vrcp.f32 %v6953_v36  ;;  %v7123_v36 = vld [vmem:[#allocation2 + $0x30] sm:$0xff]  ;;  %v6998_v35 = vld [vmem:[#allocation5 + $0x40] sm:$0xff] }
 0x99b   : > { %7058 = vperm.xlu1 %9294, %v6988_v38   ;;  %7053 = vperm.xlu0 %9293, %v6987_v11   ;;  %9311 = vrcp.f32 %v6956_v15  ;;  %v7127_v9 = vld [vmem:[#allocation2 + $0x50] sm:$0xff] }
 0x99c   : > { %9313 = vrcp.f32 %v6955_v0  ;;  %v7126_v0 = vld [vmem:[#allocation2 + $0x18] sm:$0xff] }
 0x99d   : > { %9315 = vrcp.f32 %v6958_v51 }
 0x99e   : > { %9317 = vrcp.f32 %v6957_v18  ;;  %v6997_v18 = vld [vmem:[#allocation5 + $0x10] sm:$0xff] }
 0x99f   : > { %7068 = vperm.xlu1 %9294, %v6990_v10   ;;  %7063 = vperm.xlu0 %9293, %v6989_v56   ;;  %9319 = vrcp.f32 %v6960_v37 }
 0x9a0   : > { %v9296_v5 = vpop.eup %9295  ;;  %9321 = vrcp.f32 %v6959_v22  ;;  %v7128_v22 = vld [vmem:[#allocation2 + $0x68] sm:$0xff] }
 0x9a1   : > { %v9298_v14 = vpop.eup %9297  ;;  %9323 = vrcp.f32 %v6962_v55 }
 0x9a2   : > { %v9300_v43 = vpop.eup %9299  ;;  %9325 = vrcp.f32 %v6961_v45 }
 0x9a3   : > { %7078 = vperm.xlu1 %9294, %v6992_v28   ;;  %7073 = vperm.xlu0 %9293, %v6991_v23   ;;  %v9302_v20 = vpop.eup %9301 }
 0x9a4   : > { %v9304_v59 = vpop.eup %9303 }
 0x9a5   : > { %v9306_v27 = vpop.eup %9305 }
 0x9a6   : > { %v9308_v41 = vpop.eup %9307 }
 0x9a7   : > { %7088 = vperm.xlu1 %9294, %v6994_v24   ;;  %7083 = vperm.xlu0 %9293, %v6993_v39   ;;  %v9310_v2 = vpop.eup %9309 }
 0x9a8   : > { %v9312_v38 = vpop.eup %9311 }
 0x9a9   : > { %v9314_v11 = vpop.eup %9313 }
 0x9aa   : > { %v9316_v10 = vpop.eup %9315 }
 0x9ab   : > { %7146 = vperm.xlu1 %9294, %v7108_v58   ;;  %7141 = vperm.xlu0 %9293, %v7107_v1   ;;  %v9318_v56 = vpop.eup %9317 }
 0x9ac   : > { %v9320_v28 = vpop.eup %9319 }
 0x9ad   : > { %v9322_v23 = vpop.eup %9321 }
 0x9ae   : > { %v9324_v24 = vpop.eup %9323 }
 0x9af   : > { %7156 = vperm.xlu1 %9294, %v7110_v3   ;;  %7151 = vperm.xlu0 %9293, %v7109_v53   ;;  %v9326_v39 = vpop.eup %9325 }
 0x9b3   : > { %7166 = vperm.xlu1 %9294, %v7112_v4   ;;  %7161 = vperm.xlu0 %9293, %v7111_v21  }
 0x9b7   : > { %7176 = vperm.xlu1 %9294, %v7114_v52   ;;  %7171 = vperm.xlu0 %9293, %v7113_v61  }
 0x9bb   : > { %7186 = vperm.xlu1 %9294, %v7116_v62   ;;  %7181 = vperm.xlu0 %9293, %v7115_v57  }
 0x9bf   : > { %7196 = vperm.xlu1 %9294, %v7118_v30   ;;  %7191 = vperm.xlu0 %9293, %v7117_v47  }
 0x9c3   : > { %7206 = vperm.xlu1 %9294, %v7120_v40   ;;  %7201 = vperm.xlu0 %9293, %v7119_v31  }
 0x9c7   : > { %7216 = vperm.xlu1 %9294, %v7122_v63   ;;  %7211 = vperm.xlu0 %9293, %v7121_v6   ;;  %v6995_v6 = vld [vmem:[#allocation5 + $0x28] sm:$0xff] }
 0x9cb   : > { %7258 = vperm.xlu1 %9294, %v9296_v5   ;;  %7253 = vperm.xlu0 %9293, %v9298_v14  }
 0x9cf   : > { %7268 = vperm.xlu1 %9294, %v9300_v43   ;;  %7263 = vperm.xlu0 %9293, %v9302_v20  }
 0x9d3   : > { %7278 = vperm.xlu1 %9294, %v9304_v59   ;;  %7273 = vperm.xlu0 %9293, %v9306_v27  }
 0x9d7   : > { %7288 = vperm.xlu1 %9294, %v9308_v41   ;;  %7283 = vperm.xlu0 %9293, %v9310_v2  }
 0x9db   : > { %7298 = vperm.xlu1 %9294, %v9312_v38   ;;  %7293 = vperm.xlu0 %9293, %v9314_v11   ;;  %v7000_v38 = vld [vmem:[#allocation5 + $0x30] sm:$0xff]  ;;  %v6999_v11 = vld [vmem:[#allocation5 + $0x48] sm:$0xff] }
 0x9df   : > { %7308 = vperm.xlu1 %9294, %v9316_v10   ;;  %7303 = vperm.xlu0 %9293, %v9318_v56  }
 0x9e3   : > { %7318 = vperm.xlu1 %9294, %v9320_v28   ;;  %7313 = vperm.xlu0 %9293, %v9322_v23  }
 0x9e7   : > { %7328 = vperm.xlu1 %9294, %v9324_v24   ;;  %7323 = vperm.xlu0 %9293, %v9326_v39   ;;  %v7130_v24 = vld [vmem:[#allocation2 + $0x48] sm:$0xff] }
 0x9e8   : > { %v7129_v39 = vld [vmem:[#allocation2 + $0x8] sm:$0xff] }
 0xa06   : > { %v7024_v58 = vpop.permute.xlu1 %7023  ;;  %v7014_v1 = vpop.permute.xlu0 %7013 }
 0xa07   : > { %v7091_v51 = vmul.f32 %v7014_v1, %v6995_v6  ;;  %v7093_v55 = vmul.f32 %v7024_v58, %v6997_v18  ;;  %v7132_v6 = vld [vmem:[#allocation2 + $0x20] sm:$0xff] }
 0xa0a   : > { %v7029_v3 = vpop.permute.xlu1 %7028  ;;  %v7019_v53 = vpop.permute.xlu0 %7018 }
 0xa0b   : > { %v7092_v43 = vmul.f32 %v7019_v53, %v6996_v25  ;;  %v7094_v41 = vmul.f32 %v7029_v3, %v6998_v35  ;;  %v7131_v25 = vld [vmem:[#allocation2 + $0x40] sm:$0xff] }
 0xa0e   : > { %v15003_v4 = vpop.permute.xlu1 %7038  ;;  %v15005_v21 = vpop.permute.xlu0 %7033 }
 0xa0f   : > { %v7095_v58 = vmul.f32 %v15005_v21, %v6999_v11 }
 0xa12   : > { %v15007_v29 = vpop.permute.xlu1 %7048  ;;  %v15009_v52 = vpop.permute.xlu0 %7043 }
 0xa16   : > { %v15011_v61 = vpop.permute.xlu1 %7058  ;;  %v15013_v50 = vpop.permute.xlu0 %7053 }
 0xa1a   : > { %v15015_v33 = vpop.permute.xlu1 %7068  ;;  %v15017_v44 = vpop.permute.xlu0 %7063 }
 0xa1e   : > { %v15019_v26 = vpop.permute.xlu1 %7078  ;;  %v15021_v62 = vpop.permute.xlu0 %7073 }
 0xa22   : > { %v15023_v57 = vpop.permute.xlu1 %7088  ;;  %v15025_v12 = vpop.permute.xlu0 %7083 }
 0xa26   : > { %v7147_v60 = vpop.permute.xlu1 %7146  ;;  %v7142_v49 = vpop.permute.xlu0 %7141 }
 0xa27   : > { %v7220_v15 = vmul.f32 %v7147_v60, %v7124_v17  ;;  %v7219_v5 = vmul.f32 %v7142_v49, %v7123_v36  ;;  %v7096_v60 = vmul.f32 %v15003_v4, %v7000_v38 }
 0xa29   : > { %v7236_v37 = vadd.f32 %v7220_v15, %v7092_v43  ;;  %v7235_v59 = vadd.f32 %v7219_v5, %v7091_v51  ;;  %v7004_v51 = vld [vmem:[#allocation5 + $0x78] sm:$0xff]  ;;  %v7003_v43 = vld [vmem:[#allocation5 + $0x20] sm:$0xff] }
 0xa2a   : > { %v7157_v48 = vpop.permute.xlu1 %7156  ;;  %v7152_v30 = vpop.permute.xlu0 %7151 }
 0xa2b   : > { %v7222_v20 = vmul.f32 %v7157_v48, %v7126_v0  ;;  %v7221_v8 = vmul.f32 %v7152_v30, %v7125_v19  ;;  %v7002_v48 = vld [vmem:[#allocation5 + $0x38] sm:$0xff]  ;;  %v7001_v30 = vld [vmem:[#allocation5 + $0x70] sm:$0xff] }
 0xa2c   : > { %v7098_v4 = vmul.f32 %v15007_v29, %v7002_v48  ;;  %v7097_v21 = vmul.f32 %v15009_v52, %v7001_v30  ;;  %v7100_v52 = vmul.f32 %v15011_v61, %v7004_v51 }
 0xa2d   : > { %v7238_v28 = vadd.f32 %v7222_v20, %v7094_v41  ;;  %v7237_v23 = vadd.f32 %v7221_v8, %v7093_v55  ;;  %v7134_v20 = vld [vmem:[#allocation2 + $0x38] sm:$0xff]  ;;  %v7133_v8 = vld [vmem:[#allocation2 + $0x10] sm:$0xff] }
 0xa2e   : > { %v7167_v47 = vpop.permute.xlu1 %7166  ;;  %v7162_v34 = vpop.permute.xlu0 %7161 }
 0xa2f   : > { %v7224_v10 = vmul.f32 %v7167_v47, %v7128_v22  ;;  %v7223_v56 = vmul.f32 %v7162_v34, %v7127_v9 }
 0xa31   : > { %v7240_v17 = vadd.f32 %v7224_v10, %v7096_v60  ;;  %v7239_v36 = vadd.f32 %v7223_v56, %v7095_v58 }
 0xa32   : > { %v7177_v46 = vpop.permute.xlu1 %7176  ;;  %v7172_v54 = vpop.permute.xlu0 %7171 }
 0xa33   : > { %v7226_v47 = vmul.f32 %v7177_v46, %v7130_v24  ;;  %v7225_v34 = vmul.f32 %v7172_v54, %v7129_v39 }
 0xa35   : > { %v7242_v18 = vadd.f32 %v7226_v47, %v7098_v4  ;;  %v7241_v35 = vadd.f32 %v7225_v34, %v7097_v21 }
 0xa36   : > { %v15027_v13 = vpop.permute.xlu1 %7186  ;;  %v15029_v40 = vpop.permute.xlu0 %7181 }
 0xa37   : > { %v7228_v46 = vmul.f32 %v15027_v13, %v7132_v6  ;;  %v7227_v54 = vmul.f32 %v15029_v40, %v7131_v25  ;;  %v7005_v13 = vld [vmem:[#allocation5 + $0x18] sm:$0xff] }
 0xa38   : > { %v7101_v11 = vmul.f32 %v15017_v44, %v7005_v13 }
 0xa39   : > { %v7244_v55 = vadd.f32 %v7228_v46, %v7100_v52 }
 0xa3a   : > { %v15031_v31 = vpop.permute.xlu1 %7196  ;;  %v15033_v7 = vpop.permute.xlu0 %7191 }
 0xa3b   : > { %v7230_v40 = vmul.f32 %v15031_v31, %v7134_v20  ;;  %v7007_v31 = vld [vmem:[#allocation5] sm:$0xff] }
 0xa3c   : > { %v7103_v58 = vmul.f32 %v15021_v62, %v7007_v31 }
 0xa3e   : > { %v15035_v16 = vpop.permute.xlu1 %7206  ;;  %v15037_v63 = vpop.permute.xlu0 %7201 }
 0xa42   : > { %v15039_v14 = vpop.permute.xlu1 %7216  ;;  %v15041_v32 = vpop.permute.xlu0 %7211 }
 0xa46   : > { %v7259_v27 = vpop.permute.xlu1 %7258  ;;  %v7254_v42 = vpop.permute.xlu0 %7253 }
 0xa47   : > { %v7332_v45 = vmul.f32 %v7259_v27, %v7236_v37  ;;  %v7331_v2 = vmul.f32 %v7254_v42, %v7235_v59  ;;  %v7099_v59 = vmul.f32 %v15013_v50, %v7003_v43  ;;  %v7006_v27 = vld [vmem:[#allocation5 + $0x58] sm:$0xff]  ;;  %v7229_v42 = vmul.f32 %v15033_v7, %v7133_v8 }
 0xa48   : > { %v7102_v50 = vmul.f32 %v15015_v33, %v7006_v27 }
 0xa49   : > { %7348 = vst [vmem:[%s9526_s14 + $0x8] sm:$0xff] %v7332_v45  ;;  %7347 = vst [vmem:[%s9526_s14] sm:$0xff] %v7331_v2  ;;  %v7243_v41 = vadd.f32 %v7227_v54, %v7099_v59  ;;  %v7136_v45 = vld [vmem:[#allocation2 + $0x70] sm:$0xff]  ;;  %v7135_v2 = vld [vmem:[#allocation2 + $0x60] sm:$0xff]  ;;  %v7245_v39 = vadd.f32 %v7229_v42, %v7101_v11 }
 0xa4a   : > { %v7269_v1 = vpop.permute.xlu1 %7268  ;;  %v7264_v53 = vpop.permute.xlu0 %7263  ;;  %v7232_v7 = vmul.f32 %v15035_v16, %v7136_v45  ;;  %v7246_v24 = vadd.f32 %v7230_v40, %v7102_v50  ;;  %v7010_v16 = vld [vmem:[#allocation5 + $0x50] sm:$0xff] }
 0xa4b   : > { %v7334_v3 = vmul.f32 %v7269_v1, %v7238_v28  ;;  %v7333_v49 = vmul.f32 %v7264_v53, %v7237_v23  ;;  %v7008_v28 = vld [vmem:[#allocation5 + $0x8] sm:$0xff]  ;;  %v7231_v23 = vmul.f32 %v15037_v63, %v7135_v2  ;;  %v7137_v53 = vld [vmem:[#allocation2 + $0x78] sm:$0xff]  ;;  %v7009_v63 = vld [vmem:[#allocation5 + $0x60] sm:$0xff]  ;;  %v7106_v62 = vmul.f32 %v15023_v57, %v7010_v16 }
 0xa4c   : > { %v7138_v1 = vld [vmem:[#allocation2 + $0x28] sm:$0xff]  ;;  %v7104_v44 = vmul.f32 %v15019_v26, %v7008_v28  ;;  %v7233_v30 = vmul.f32 %v15041_v32, %v7137_v53 }
 0xa4d   : > { %7350 = vst [vmem:[%s9526_s14 + $0x18] sm:$0xff] %v7334_v3  ;;  %7349 = vst [vmem:[%s9526_s14 + $0x10] sm:$0xff] %v7333_v49  ;;  %v7234_v48 = vmul.f32 %v15039_v14, %v7138_v1  ;;  %v7247_v34 = vadd.f32 %v7231_v23, %v7103_v58 }
 0xa4e   : > { %v7279_v15 = vpop.permute.xlu1 %7278  ;;  %v7274_v5 = vpop.permute.xlu0 %7273  ;;  %v7248_v47 = vadd.f32 %v7232_v7, %v7104_v44 }
 0xa4f   : > { %v7336_v0 = vmul.f32 %v7279_v15, %v7240_v17  ;;  %v7335_v19 = vmul.f32 %v7274_v5, %v7239_v36  ;;  %v7105_v36 = vmul.f32 %v15025_v12, %v7009_v63  ;;  %v7250_v15 = vadd.f32 %v7234_v48, %v7106_v62 }
 0xa51   : > { %7352 = vst [vmem:[%s9526_s14 + $0x28] sm:$0xff] %v7336_v0  ;;  %7351 = vst [vmem:[%s9526_s14 + $0x20] sm:$0xff] %v7335_v19  ;;  %v7249_v14 = vadd.f32 %v7233_v30, %v7105_v36 }
 0xa52   : > { %v7289_v37 = vpop.permute.xlu1 %7288  ;;  %v7284_v29 = vpop.permute.xlu0 %7283 }
 0xa53   : > { %v7338_v22 = vmul.f32 %v7289_v37, %v7242_v18  ;;  %v7337_v9 = vmul.f32 %v7284_v29, %v7241_v35 }
 0xa55   : > { %7354 = vst [vmem:[%s9526_s14 + $0x38] sm:$0xff] %v7338_v22  ;;  %7353 = vst [vmem:[%s9526_s14 + $0x30] sm:$0xff] %v7337_v9 }
 0xa56   : > { %v7299_v38 = vpop.permute.xlu1 %7298  ;;  %v7294_v61 = vpop.permute.xlu0 %7293 }
 0xa57   : > { %v7340_v10 = vmul.f32 %v7299_v38, %v7244_v55  ;;  %v7339_v56 = vmul.f32 %v7294_v61, %v7243_v41 }
 0xa59   : > { %7356 = vst [vmem:[%s9526_s14 + $0x48] sm:$0xff] %v7340_v10  ;;  %7355 = vst [vmem:[%s9526_s14 + $0x40] sm:$0xff] %v7339_v56 }
 0xa5a   : > { %v7309_v60 = vpop.permute.xlu1 %7308  ;;  %v7304_v33 = vpop.permute.xlu0 %7303 }
 0xa5b   : > { %v7342_v3 = vmul.f32 %v7309_v60, %v7246_v24  ;;  %v7341_v49 = vmul.f32 %v7304_v33, %v7245_v39 }
 0xa5d   : > { %7358 = vst [vmem:[%s9526_s14 + $0x58] sm:$0xff] %v7342_v3  ;;  %7357 = vst [vmem:[%s9526_s14 + $0x50] sm:$0xff] %v7341_v49 }
 0xa5e   : > { %v7319_v17 = vpop.permute.xlu1 %7318  ;;  %v7314_v26 = vpop.permute.xlu0 %7313 }
 0xa5f   : > { %v7344_v6 = vmul.f32 %v7319_v17, %v7248_v47  ;;  %v7343_v25 = vmul.f32 %v7314_v26, %v7247_v34 }
 0xa61   : > { %7360 = vst [vmem:[%s9526_s14 + $0x68] sm:$0xff] %v7344_v6  ;;  %7359 = vst [vmem:[%s9526_s14 + $0x60] sm:$0xff] %v7343_v25 }
 0xa62   : > { %v7329_v5 = vpop.permute.xlu1 %7328  ;;  %v7324_v32 = vpop.permute.xlu0 %7323 }
 0xa63   : > { %v7346_v4 = vmul.f32 %v7329_v5, %v7250_v15  ;;  %v7345_v21 = vmul.f32 %v7324_v32, %v7249_v14 }
 0xa65   : > { %7362 = vst [vmem:[%s9526_s14 + $0x78] sm:$0xff] %v7346_v4  ;;  %7361 = vst [vmem:[%s9526_s14 + $0x70] sm:$0xff] %v7345_v21 }
 0xa66 PF: > { %s21_s28 = sadd.s32 1, %s9395_s28   ;;  %s16217_s23 = smov %s9375_s24 }
 0xa67   : > { %p18_p6 = scmp.ge.s32.totalorder %s21_s28, 6   ;;  %s16218_s24 = smov %s9486_s10 }
 0xa68   : > { %s16219_s25 = smov %s9387_s26  ;;  %s16220_s0 = smov %s9391_s27 }
 0xa69   : > { %s16221_s26 = smov %s16224_s29  ;;  %s16222_s27 = smov %s16228_s30 }
 0xa6a   :  { %20 = sbr.rel (!%p18_p6) target bundleno = 19 (0x13), region = 127 }

</bundles_post_ra>
